<compile_context>
chip_gen: v6e
topology: v6e:2x2x1
jax: 0.10.0
libtpu: 0.0.40
codegen_flags: <defaults>
</compile_context>

<pallas_src>
from functools import partial

import numpy as np
import jax
import jax.numpy as jnp
from jax.experimental import pallas as pl
from jax.experimental.pallas import tpu as pltpu

_VMEM_LIMIT = 32 * 1024 * 1024   # v7x-safe; raise to ~64 MiB on v5e/v6e if desired
_ROW_BLOCK = 512                 # max rows per grid step for row-tiled kernels


def _round_up(x, m):
    return (x + m - 1) // m * m


def _pick_tm(m, cap=_ROW_BLOCK):
    """Row tile that divides m exactly (no pad / slice round trip), preferring
    >=2 grid steps so v7x's two TensorCores both get work."""
    best = None
    for t in (1024, 512, 256, 128, 64, 32, 16, 8):
        if t <= cap and m % t == 0:
            if m // t >= 2:
                return t, m
            if best is None:
                best = t
    if best is not None:
        return best, m
    tm = min(cap, _round_up(m, 8))
    return tm, _round_up(m, tm)


def _pad_rows(x2d, mp):
    m = x2d.shape[0]
    if m == mp:
        return x2d
    return jnp.pad(x2d, ((0, mp - m), (0, 0)))


def _pick_wblk(nwin, total_win, cap=8):
    """Windows per attention grid step: a divisor of nwin (so the per-window
    bias/mask block never straddles a batch boundary) leaving >=2 grid steps."""
    wblk = 1
    for t in range(1, min(cap, nwin) + 1):
        if nwin % t == 0 and total_win // t >= 2:
            wblk = t
    return wblk


def _row_params():
    return pltpu.CompilerParams(dimension_semantics=("parallel",),
                                vmem_limit_bytes=_VMEM_LIMIT)


# ---------------------------------------------------------------------------
# In-kernel helpers (f32 elementwise; bf16 only feeds the MXU)
# ---------------------------------------------------------------------------

def _layer_norm_rows(x, gamma, beta, eps=1e-5):
    mu = jnp.mean(x, axis=-1, keepdims=True)
    var = jnp.mean(jnp.square(x - mu), axis=-1, keepdims=True)
    return (x - mu) * jax.lax.rsqrt(var + eps) * gamma + beta


def _erf_poly(x):
    # Abramowitz & Stegun 7.1.26 rational approximation, |err| <= 1.5e-7.
    a1, a2, a3, a4, a5 = (0.254829592, -0.284496736, 1.421413741,
                          -1.453152027, 1.061405429)
    pc = 0.3275911
    sgn = jnp.where(x >= 0.0, 1.0, -1.0)
    ax = jnp.abs(x)
    t = 1.0 / (1.0 + pc * ax)
    poly = ((((a5 * t + a4) * t + a3) * t + a2) * t + a1) * t
    return sgn * (1.0 - poly * jnp.exp(-ax * ax))


def _gelu_exact(x):
    return 0.5 * x * (1.0 + _erf_poly(x * 0.7071067811865476))


# ---------------------------------------------------------------------------
# Pallas kernels
# ---------------------------------------------------------------------------

def fused_ln_q(x2d, gamma, beta, wq_t, q_b):
    """q = LayerNorm(x) @ wq_t + q_b (scale already folded into wq_t/q_b);
    also returns LayerNorm(x) in bf16 (feeds the K/V max-pool)."""
    M, C = x2d.shape
    N = wq_t.shape[1]
    tm, Mp = _pick_tm(M)
    xp = _pad_rows(x2d, Mp)

    def kernel(x_ref, g_ref, b_ref, w_ref, qb_ref, q_ref, xn_ref):
        xn = _layer_norm_rows(x_ref[...], g_ref[...], b_ref[...])
        xn_ref[...] = xn.astype(xn_ref.dtype)
        q = jnp.dot(xn.astype(jnp.bfloat16), w_ref[...],
                    preferred_element_type=jnp.float32) + qb_ref[...]
        q_ref[...] = q.astype(q_ref.dtype)

    q, xn = pl.pallas_call(
        kernel,
        grid=(Mp // tm,),
        in_specs=[
            pl.BlockSpec((tm, C), lambda i: (i, 0)),
            pl.BlockSpec((1, C), lambda i: (0, 0)),
            pl.BlockSpec((1, C), lambda i: (0, 0)),
            pl.BlockSpec((C, N), lambda i: (0, 0)),
            pl.BlockSpec((1, N), lambda i: (0, 0)),
        ],
        out_specs=[
            pl.BlockSpec((tm, N), lambda i: (i, 0)),
            pl.BlockSpec((tm, C), lambda i: (i, 0)),
        ],
        out_shape=(
            jax.ShapeDtypeStruct((Mp, N), jnp.bfloat16),
            jax.ShapeDtypeStruct((Mp, C), jnp.bfloat16),
        ),
        compiler_params=_row_params(),
    )(xp, gamma.reshape(1, C), beta.reshape(1, C), wq_t, q_b.reshape(1, N))
    if Mp != M:
        q, xn = q[:M], xn[:M]
    return q, xn


def matmul_bias(x2d, w_t, bias, out_dtype=jnp.bfloat16):
    """y = x @ w_t + bias, row-tiled; bf16 MXU operands, f32 accumulation."""
    M, K = x2d.shape
    N = w_t.shape[1]
    tm, Mp = _pick_tm(M)
    xp = _pad_rows(x2d, Mp)

    def kernel(x_ref, w_ref, b_ref, o_ref):
        y = jnp.dot(x_ref[...].astype(jnp.bfloat16), w_ref[...],
                    preferred_element_type=jnp.float32) + b_ref[...]
        o_ref[...] = y.astype(o_ref.dtype)

    out = pl.pallas_call(
        kernel,
        grid=(Mp // tm,),
        in_specs=[
            pl.BlockSpec((tm, K), lambda i: (i, 0)),
            pl.BlockSpec((K, N), lambda i: (0, 0)),
            pl.BlockSpec((1, N), lambda i: (0, 0)),
        ],
        out_specs=pl.BlockSpec((tm, N), lambda i: (i, 0)),
        out_shape=jax.ShapeDtypeStruct((Mp, N), out_dtype),
        compiler_params=_row_params(),
    )(xp, w_t, bias.reshape(1, N))
    if Mp != M:
        out = out[:M]
    return out


def fused_window_attention(q4, k4, v4, bias, wproj_t, proj_b, res2d, *,
                           wblk, per_window_bias):
    """One grid step = `wblk` windows.  Per head (leading-axis index, no lane
    slicing): batched scores + additive bias (+ folded SW mask) + softmax +
    probs@v.  Head outputs are concatenated along channels; a single output
    projection matmul + the MSA residual add finish the step."""
    T, nh, np_, hd = q4.shape
    ndp = k4.shape[2]
    C = wproj_t.shape[0]
    nsteps = T // wblk
    nbw = bias.shape[0]                       # nwin (SW, per-window) or 1 (W)

    if per_window_bias:
        bias_spec = pl.BlockSpec((wblk, nh, np_, ndp),
                                 lambda i: (i % (nbw // wblk), 0, 0, 0))
    else:
        bias_spec = pl.BlockSpec((1, nh, np_, ndp), lambda i: (0, 0, 0, 0))

    def kernel(q_ref, k_ref, v_ref, b_ref, wp_ref, pb_ref, r_ref, o_ref):
        qb = q_ref[...]                       # (wblk, nh, np, hd)   bf16
        kb = k_ref[...]                       # (wblk, nh, ndp, hd)  bf16
        vb = v_ref[...]                       # (wblk, nh, ndp, hd)  bf16
        bb = b_ref[...]                       # (wblk|1, nh, np, ndp) f32
        outs = []
        for h in range(nh):                   # static unroll; head index is a free
            s = jnp.einsum('wpd,wkd->wpk',    # major-axis select, all data in VMEM
                           qb[:, h], kb[:, h],
                           preferred_element_type=jnp.float32)   # (wblk, np, ndp)
            s = s + (bb[:, h] if per_window_bias else bb[0, h])
            s = s - jnp.max(s, axis=-1, keepdims=True)           # f32 softmax
            e = jnp.exp(s)
            inv = pl.reciprocal(jnp.sum(e, axis=-1, keepdims=True), approx=True)
            p = e * inv
            outs.append(jnp.einsum('wpk,wkd->wpd', p.astype(jnp.bfloat16), vb[:, h],
                                   preferred_element_type=jnp.float32))
        oc = jnp.concatenate(outs, axis=-1)                      # (wblk, np, C) f32
        oc = oc.reshape(wblk * np_, C)
        y = jnp.dot(oc.astype(jnp.bfloat16), wp_ref[...],        # one K=C matmul
                    preferred_element_type=jnp.float32)
        o_ref[...] = (y + pb_ref[...] + r_ref[...]).astype(o_ref.dtype)

    return pl.pallas_call(
        kernel,
        grid=(nsteps,),
        in_specs=[
            pl.BlockSpec((wblk, nh, np_, hd), lambda i: (i, 0, 0, 0)),
            pl.BlockSpec((wblk, nh, ndp, hd), lambda i: (i, 0, 0, 0)),
            pl.BlockSpec((wblk, nh, ndp, hd), lambda i: (i, 0, 0, 0)),
            bias_spec,
            pl.BlockSpec((C, C), lambda i: (0, 0)),
            pl.BlockSpec((1, C), lambda i: (0, 0)),
            pl.BlockSpec((wblk * np_, C), lambda i: (i, 0)),
        ],
        out_specs=pl.BlockSpec((wblk * np_, C), lambda i: (i, 0)),
        out_shape=jax.ShapeDtypeStruct((T * np_, C), jnp.float32),
        compiler_params=pltpu.CompilerParams(
            dimension_semantics=("parallel",),
            vmem_limit_bytes=_VMEM_LIMIT),
    )(q4, k4, v4, bias, wproj_t, proj_b.reshape(1, C), res2d)


def fused_mlp(x2d, gamma, beta, w1_t, b1, w2_t, b2):
    """x + Linear2(GELU(Linear1(LayerNorm(x)))) in one row-tiled kernel.
    The (rows, 4C) hidden activation lives only in VMEM."""
    M, C = x2d.shape
    Ch = w1_t.shape[1]
    tm, Mp = _pick_tm(M)
    xp = _pad_rows(x2d, Mp)

    def kernel(x_ref, g_ref, be_ref, w1_ref, b1_ref, w2_ref, b2_ref, o_ref):
        x = x_ref[...]
        xn = _layer_norm_rows(x, g_ref[...], be_ref[...])
        h = jnp.dot(xn.astype(jnp.bfloat16), w1_ref[...],
                    preferred_element_type=jnp.float32) + b1_ref[...]
        h = _gelu_exact(h)
        y = jnp.dot(h.astype(jnp.bfloat16), w2_ref[...],
                    preferred_element_type=jnp.float32) + b2_ref[...]
        o_ref[...] = (x + y).astype(o_ref.dtype)

    out = pl.pallas_call(
        kernel,
        grid=(Mp // tm,),
        in_specs=[
            pl.BlockSpec((tm, C), lambda i: (i, 0)),
            pl.BlockSpec((1, C), lambda i: (0, 0)),
            pl.BlockSpec((1, C), lambda i: (0, 0)),
            pl.BlockSpec((C, Ch), lambda i: (0, 0)),
            pl.BlockSpec((1, Ch), lambda i: (0, 0)),
            pl.BlockSpec((Ch, C), lambda i: (0, 0)),
            pl.BlockSpec((1, C), lambda i: (0, 0)),
        ],
        out_specs=pl.BlockSpec((tm, C), lambda i: (i, 0)),
        out_shape=jax.ShapeDtypeStruct((Mp, C), jnp.float32),
        compiler_params=_row_params(),
    )(xp, gamma.reshape(1, C), beta.reshape(1, C),
      w1_t, b1.reshape(1, Ch), w2_t, b2.reshape(1, C))
    if Mp != M:
        out = out[:M]
    return out


# ---------------------------------------------------------------------------
# Static attention metadata (relative position bias indices, SW mask)
# ---------------------------------------------------------------------------

def relative_embedding(table, ws, down_r):
    coords = np.array([[i, j] for i in range(ws) for j in range(ws)])
    rel = coords[:, None, :] - coords[None, :, :] + ws - 1          # (np, np, 2)
    rel = rel[:, 0:int(ws * ws // down_r // down_r), :]             # (np, ndp, 2)
    return table[:, rel[:, :, 0], rel[:, :, 1]]                     # (nh, np, ndp)


def generate_mask_bool(h, w, p, shift, down_r):
    m = np.zeros((h, w, p, p, p // down_r, p // down_r), dtype=bool)
    s = p - shift
    m[-1, :, :s, :, s // down_r:, :] = True
    m[-1, :, s:, :, :s // down_r, :] = True
    m[:, -1, :, :s, :, s // down_r:] = True
    m[:, -1, :, s:, :, :s // down_r] = True
    return m.reshape(h * w, p * p, (p // down_r) * (p // down_r))


# ---------------------------------------------------------------------------
# SwinTBlock forward (Pallas path)
# ---------------------------------------------------------------------------

def swint_block_forward(x_nchw, p, head_dim, window_size, wtype, down_r):
    x = jnp.transpose(x_nchw, (0, 2, 3, 1)).astype(jnp.float32)     # NCHW -> NHWC
    B, H, W, C = x.shape
    ws = window_size
    shift = ws // 2
    nh_w, nw_w = H // ws, W // ws
    nwin, np_ = nh_w * nw_w, ws * ws
    dp = ws // down_r
    ndp = dp * dp
    n_heads = C // head_dim
    T = B * nwin

    # cyclic shift + window partition (pure data movement, XLA)
    xr = x if wtype == 'W' else jnp.roll(x, shift=(-shift, -shift), axis=(1, 2))
    xw = xr.reshape(B, nh_w, ws, nw_w, ws, C).transpose(0, 1, 3, 2, 4, 5)
    res2d = xw.reshape(T * np_, C)                                   # MSA residual

    # kernel 1: LN1 + scale-folded Q projection (xn emitted in bf16)
    q_flat, xn_flat = fused_ln_q(res2d, p['ln1_w'], p['ln1_b'], p['q_wt'], p['q_b'])

    # heads to a leading axis (XLA transpose; kernel 3 indexes heads for free)
    q4 = q_flat.reshape(T, np_, n_heads, head_dim).transpose(0, 2, 1, 3)

    # down_r x down_r max-pool of the LN'd windows (bf16, XLA)
    # TODO(synk): fuse this pool into the K/V projection kernel to drop the
    # remaining HBM round trip of xn.
    xd = (xn_flat.reshape(T, dp, down_r, dp, down_r, C)
                 .max(axis=(2, 4))
                 .reshape(T * ndp, C))

    # kernel 2: fused K|V projection on the pooled tokens
    kv_flat = matmul_bias(xd, p['kv_wt'], p['kv_b'])                 # (T*ndp, 2C)
    kv5 = kv_flat.reshape(T, ndp, 2, n_heads, head_dim)
    k4 = kv5[:, :, 0].transpose(0, 2, 1, 3)                          # (T, nh, ndp, hd)
    v4 = kv5[:, :, 1].transpose(0, 2, 1, 3)

    # relative-position bias; SW mask folded in (W path carries no mask input).
    rel_bias = relative_embedding(p['rel_table'], ws, down_r).astype(jnp.float32)
    if wtype == 'W':
        bias_full = rel_bias[None]                                   # (1, nh, np, ndp)
        per_window_bias = False
    else:
        mb = jnp.asarray(generate_mask_bool(nh_w, nw_w, ws, shift, down_r))
        # finite -1e9 instead of -inf: no query row is ever fully masked for the
        # standard Swin shift, so the softmax matches the reference exactly.
        bias_full = (rel_bias[None] +
                     jnp.where(mb, -1e9, 0.0).astype(jnp.float32)[:, None])
        per_window_bias = True

    wblk = _pick_wblk(nwin, T)

    # kernel 3: fused window attention (+ output projection + MSA residual)
    y2d = fused_window_attention(q4, k4, v4, bias_full, p['proj_wt'], p['proj_b'],
                                 res2d, wblk=wblk, per_window_bias=per_window_bias)

    # un-window + reverse cyclic shift; the residual was already added in-kernel
    y = (y2d.reshape(B, nh_w, nw_w, ws, ws, C)
            .transpose(0, 1, 3, 2, 4, 5)
            .reshape(B, H, W, C))
    if wtype != 'W':
        y = jnp.roll(y, shift=(shift, shift), axis=(1, 2))

    # kernel 4: fused LN2 + MLP + residual
    out = fused_mlp(y.reshape(-1, C), p['ln2_w'], p['ln2_b'],
                    p['mlp1_wt'], p['mlp1_b'], p['mlp2_wt'], p['mlp2_b'])
    out = out.reshape(B, H, W, C)
    return jnp.transpose(out, (0, 3, 1, 2))                          # NHWC -> NCHW


# ---------------------------------------------------------------------------
# Pure-JAX f32 reference (mirrors the PyTorch SwinTBlock forward)
# ---------------------------------------------------------------------------

def reference_forward(x_nchw, p, head_dim, window_size, wtype, down_r):
    x = jnp.transpose(x_nchw, (0, 2, 3, 1)).astype(jnp.float32)
    B, H, W, C = x.shape
    ws = window_size
    shift = ws // 2
    nh_w, nw_w = H // ws, W // ws
    nwin, np_ = nh_w * nw_w, ws * ws
    dp = ws // down_r
    ndp = dp * dp
    nh = C // head_dim
    scale = head_dim ** (-0.5)

    def ln(t, g, b):
        mu = jnp.mean(t, axis=-1, keepdims=True)
        var = jnp.mean(jnp.square(t - mu), axis=-1, keepdims=True)
        return (t - mu) / jnp.sqrt(var + 1e-5) * g + b

    xn = ln(x, p['ln1_w'], p['ln1_b'])
    xr = xn if wtype == 'W' else jnp.roll(xn, shift=(-shift, -shift), axis=(1, 2))
    xw = xr.reshape(B, nh_w, ws, nw_w, ws, C).transpose(0, 1, 3, 2, 4, 5)
    xd = xw.reshape(B, nh_w, nw_w, dp, down_r, dp, down_r, C).max(axis=(4, 6))
    xflat = xw.reshape(B, nwin, np_, C)
    xdflat = xd.reshape(B, nwin, ndp, C)

    q = xflat @ p['q_w'].T + p['q_b']
    k = xdflat @ p['k_w'].T + p['k_b']
    v = xdflat @ p['v_w'].T + p['v_b']

    def split_heads(t, npos):
        return t.reshape(B, nwin, npos, nh, head_dim).transpose(3, 0, 1, 2, 4)

    qh = split_heads(q, np_) * scale
    kh = split_heads(k, ndp)
    vh = split_heads(v, ndp)
    attn = jnp.einsum('hbwpd,hbwqd->hbwpq', qh, kh)
    attn = attn + relative_embedding(p['rel_table'], ws, down_r)[:, None, None]
    if wtype != 'W':
        mb = jnp.asarray(generate_mask_bool(nh_w, nw_w, ws, shift, down_r))
        attn = jnp.where(mb[None, None], -jnp.inf, attn)
    probs = jax.nn.softmax(attn, axis=-1)
    out = jnp.einsum('hbwpq,hbwqd->hbwpd', probs, vh)
    out = out.transpose(1, 2, 3, 0, 4).reshape(B, nwin, np_, C)
    out = out @ p['proj_w'].T + p['proj_b']
    out = (out.reshape(B, nh_w, nw_w, ws, ws, C)
              .transpose(0, 1, 3, 2, 4, 5).reshape(B, H, W, C))
    if wtype != 'W':
        out = jnp.roll(out, shift=(shift, shift), axis=(1, 2))
    x = x + out

    h = ln(x, p['ln2_w'], p['ln2_b'])
    h = h @ p['mlp1_w'].T + p['mlp1_b']
    h = 0.5 * h * (1.0 + jax.lax.erf(h * 0.7071067811865476))        # exact GELU
    h = h @ p['mlp2_w'].T + p['mlp2_b']
    x = x + h
    return jnp.transpose(x, (0, 3, 1, 2))


# ---------------------------------------------------------------------------
# Deterministic synthetic parameters (matches module __init__ shapes)
# ---------------------------------------------------------------------------

def init_params(key, dim, head_dim, window_size):
    nh = dim // head_dim
    scale = head_dim ** (-0.5)
    keys = iter(jax.random.split(key, 32))

    def nrm(shape, s=0.05):
        return s * jax.random.normal(next(keys), shape, dtype=jnp.float32)

    ref = dict(
        ln1_w=jnp.ones((dim,), jnp.float32), ln1_b=jnp.zeros((dim,), jnp.float32),
        ln2_w=jnp.ones((dim,), jnp.float32), ln2_b=jnp.zeros((dim,), jnp.float32),
        q_w=nrm((dim, dim)), q_b=nrm((dim,)),
        k_w=nrm((dim, dim)), k_b=nrm((dim,)),
        v_w=nrm((dim, dim)), v_b=nrm((dim,)),
        proj_w=nrm((dim, dim)), proj_b=nrm((dim,)),
        rel_table=nrm((nh, 2 * window_size - 1, 2 * window_size - 1), 0.02),
        mlp1_w=nrm((4 * dim, dim)), mlp1_b=nrm((4 * dim,)),
        mlp2_w=nrm((dim, 4 * dim)), mlp2_b=nrm((dim,)),
    )
    kern = dict(
        ln1_w=ref['ln1_w'], ln1_b=ref['ln1_b'],
        ln2_w=ref['ln2_w'], ln2_b=ref['ln2_b'],
        # attention scale (head_dim**-0.5) folded into the Q projection
        q_wt=(jnp.transpose(ref['q_w']) * scale).astype(jnp.bfloat16),
        q_b=ref['q_b'] * scale,
        kv_wt=jnp.concatenate([jnp.transpose(ref['k_w']),
                               jnp.transpose(ref['v_w'])], axis=1).astype(jnp.bfloat16),
        kv_b=jnp.concatenate([ref['k_b'], ref['v_b']]),
        proj_wt=jnp.transpose(ref['proj_w']).astype(jnp.bfloat16), proj_b=ref['proj_b'],
        rel_table=ref['rel_table'],
        mlp1_wt=jnp.transpose(ref['mlp1_w']).astype(jnp.bfloat16), mlp1_b=ref['mlp1_b'],
        mlp2_wt=jnp.transpose(ref['mlp2_w']).astype(jnp.bfloat16), mlp2_b=ref['mlp2_b'],
    )
    return ref, kern


# ---------------------------------------------------------------------------

if __name__ == "__main__":
    B, C, H, W = 2, 32, 16, 16
    HEAD_DIM = 8
    WINDOW_SIZE = 4
    DOWN_R = 2

    key = jax.random.PRNGKey(0)
    kx, kp = jax.random.split(key)
    x = jax.random.normal(kx, (B, C, H, W), dtype=jnp.float32)       # NCHW, like PyTorch
    ref_params, kern_params = init_params(kp, C, HEAD_DIM, WINDOW_SIZE)

    for wtype in ("W", "SW"):                 # regular and shifted-window variants
        fwd = jax.jit(partial(swint_block_forward, head_dim=HEAD_DIM,
                              window_size=WINDOW_SIZE, wtype=wtype, down_r=DOWN_R))
        out = fwd(x, kern_params)
        jax.block_until_ready(out)
        assert out.shape == (B, C, H, W), out.shape
        assert bool(jnp.all(jnp.isfinite(out)))

        # f32 pure-JAX reference; tolerance accounts for bf16 MXU operands.
        ref = reference_forward(x, ref_params, HEAD_DIM, WINDOW_SIZE, wtype, DOWN_R)
        np.testing.assert_allclose(np.asarray(out), np.asarray(ref),
                                   atol=5e-2, rtol=5e-2)

    print("KERNEL_OK")
</pallas_src>

<mosaic_0001>
module attributes {stable_mosaic.version = 11 : i64} {
  func.func @kernel(%arg0: i32, %arg1: memref<64x32xbf16, #tpu.memory_space<vmem>>, %arg2: memref<32x64xbf16, #tpu.memory_space<vmem>>, %arg3: memref<1x64xf32, #tpu.memory_space<vmem>>, %arg4: memref<64x64xbf16, #tpu.memory_space<vmem>>) attributes {dimension_semantics = [#tpu.dimension_semantics<parallel>], iteration_bounds = array<i64: 2>, scalar_prefetch = 0 : i64, scratch_operands = 0 : i64, tpu.core_type = #tpu.core_type<tc>, window_params = [{transform_indices = @transform_0, window_bounds = array<i64: 64, 32>}, {pipeline_mode = #tpu.pipeline_mode<synchronous>, transform_indices = @transform_1, window_bounds = array<i64: 32, 64>}, {pipeline_mode = #tpu.pipeline_mode<synchronous>, transform_indices = @transform_2, window_bounds = array<i64: 1, 64>}, {transform_indices = @transform_3, window_bounds = array<i64: 64, 64>}]} {
    %c0 = arith.constant 0 : index
    %c0_0 = arith.constant 0 : index
    %0 = vector.load %arg1[%c0, %c0_0] : memref<64x32xbf16, #tpu.memory_space<vmem>>, vector<64x32xbf16>
    %c0_1 = arith.constant 0 : index
    %c0_2 = arith.constant 0 : index
    %1 = vector.load %arg2[%c0_1, %c0_2] : memref<32x64xbf16, #tpu.memory_space<vmem>>, vector<32x64xbf16>
    %cst = arith.constant dense<0.000000e+00> : vector<64x64xf32>
    %2 = tpu.matmul %0, %1, %cst {dimension_numbers = #tpu.dot_dimension_numbers<[1], [0], [0], [1], [0, 0, 1, 1], [], []>} : vector<64x32xbf16>, vector<32x64xbf16>, vector<64x64xf32> -> vector<64x64xf32>
    %c0_3 = arith.constant 0 : index
    %c0_4 = arith.constant 0 : index
    %3 = vector.load %arg3[%c0_3, %c0_4] : memref<1x64xf32, #tpu.memory_space<vmem>>, vector<1x64xf32>
    %4 = vector.broadcast %3 : vector<1x64xf32> to vector<64x64xf32>
    %5 = arith.addf %2, %4 : vector<64x64xf32>
    %6 = arith.truncf %5 : vector<64x64xf32> to vector<64x64xbf16>
    %c0_5 = arith.constant 0 : index
    %c0_6 = arith.constant 0 : index
    %7 = vector.load %arg4[%c0_5, %c0_6] : memref<64x64xbf16, #tpu.memory_space<vmem>>, vector<64x64xbf16>
    tpu.vector_store %arg4[%c0_5, %c0_6], %6 {strides = array<i32>} : memref<64x64xbf16, #tpu.memory_space<vmem>>, vector<64x64xbf16>,
    return
  }
  func.func @transform_0(%arg0: i32) -> (i32, i32) {
    %c0_i32 = arith.constant 0 : i32
    %c0_i32_0 = arith.constant 0 : i32
    return %arg0, %c0_i32 : i32, i32
  }
  func.func @transform_1(%arg0: i32) -> (i32, i32) {
    %c0_i32 = arith.constant 0 : i32
    %c0_i32_0 = arith.constant 0 : i32
    %c0_i32_1 = arith.constant 0 : i32
    return %c0_i32, %c0_i32_0 : i32, i32
  }
  func.func @transform_2(%arg0: i32) -> (i32, i32) {
    %c0_i32 = arith.constant 0 : i32
    %c0_i32_0 = arith.constant 0 : i32
    %c0_i32_1 = arith.constant 0 : i32
    return %c0_i32, %c0_i32_0 : i32, i32
  }
  func.func @transform_3(%arg0: i32) -> (i32, i32) {
    %c0_i32 = arith.constant 0 : i32
    %c0_i32_0 = arith.constant 0 : i32
    return %arg0, %c0_i32 : i32, i32
  }
}

module attributes {stable_mosaic.version = 11 : i64} {
  func.func @kernel(%arg0: i32, %arg1: memref<256x32xf32, #tpu.memory_space<vmem>>, %arg2: memref<1x32xf32, #tpu.memory_space<vmem>>, %arg3: memref<1x32xf32, #tpu.memory_space<vmem>>, %arg4: memref<32x32xbf16, #tpu.memory_space<vmem>>, %arg5: memref<1x32xf32, #tpu.memory_space<vmem>>, %arg6: memref<256x32xbf16, #tpu.memory_space<vmem>>, %arg7: memref<256x32xbf16, #tpu.memory_space<vmem>>) attributes {dimension_semantics = [#tpu.dimension_semantics<parallel>], iteration_bounds = array<i64: 2>, scalar_prefetch = 0 : i64, scratch_operands = 0 : i64, tpu.core_type = #tpu.core_type<tc>, window_params = [{transform_indices = @transform_0, window_bounds = array<i64: 256, 32>}, {pipeline_mode = #tpu.pipeline_mode<synchronous>, transform_indices = @transform_1, window_bounds = array<i64: 1, 32>}, {pipeline_mode = #tpu.pipeline_mode<synchronous>, transform_indices = @transform_2, window_bounds = array<i64: 1, 32>}, {pipeline_mode = #tpu.pipeline_mode<synchronous>, transform_indices = @transform_3, window_bounds = array<i64: 32, 32>}, {pipeline_mode = #tpu.pipeline_mode<synchronous>, transform_indices = @transform_4, window_bounds = array<i64: 1, 32>}, {transform_indices = @transform_5, window_bounds = array<i64: 256, 32>}, {transform_indices = @transform_6, window_bounds = array<i64: 256, 32>}]} {
    %c0 = arith.constant 0 : index
    %c0_0 = arith.constant 0 : index
    %0 = vector.load %arg1[%c0, %c0_0] : memref<256x32xf32, #tpu.memory_space<vmem>>, vector<256x32xf32>
    %c0_1 = arith.constant 0 : index
    %c0_2 = arith.constant 0 : index
    %1 = vector.load %arg2[%c0_1, %c0_2] : memref<1x32xf32, #tpu.memory_space<vmem>>, vector<1x32xf32>
    %c0_3 = arith.constant 0 : index
    %c0_4 = arith.constant 0 : index
    %2 = vector.load %arg3[%c0_3, %c0_4] : memref<1x32xf32, #tpu.memory_space<vmem>>, vector<1x32xf32>
    %cst = arith.constant dense<0.000000e+00> : vector<256xf32>
    %3 = vector.multi_reduction <add>, %0, %cst [1] : vector<256x32xf32> to vector<256xf32>
    %4 = vector.shape_cast %3 : vector<256xf32> to vector<256x1xf32>
    %cst_5 = arith.constant 3.200000e+01 : f32
    %5 = vector.broadcast %cst_5 : f32 to vector<256x1xf32>
    %6 = arith.divf %4, %5 : vector<256x1xf32>
    %7 = vector.broadcast %6 : vector<256x1xf32> to vector<256x32xf32>
    %8 = arith.subf %0, %7 : vector<256x32xf32>
    %9 = arith.mulf %8, %8 : vector<256x32xf32>
    %cst_6 = arith.constant dense<0.000000e+00> : vector<256xf32>
    %10 = vector.multi_reduction <add>, %9, %cst_6 [1] : vector<256x32xf32> to vector<256xf32>
    %11 = vector.shape_cast %10 : vector<256xf32> to vector<256x1xf32>
    %cst_7 = arith.constant 3.200000e+01 : f32
    %12 = vector.broadcast %cst_7 : f32 to vector<256x1xf32>
    %13 = arith.divf %11, %12 : vector<256x1xf32>
    %14 = vector.broadcast %6 : vector<256x1xf32> to vector<256x32xf32>
    %15 = arith.subf %0, %14 : vector<256x32xf32>
    %cst_8 = arith.constant 9.99999974E-6 : f32
    %16 = vector.broadcast %cst_8 : f32 to vector<256x1xf32>
    %17 = arith.addf %13, %16 : vector<256x1xf32>
    %18 = math.rsqrt %17 : vector<256x1xf32>
    %19 = vector.broadcast %18 : vector<256x1xf32> to vector<256x32xf32>
    %20 = arith.mulf %15, %19 : vector<256x32xf32>
    %21 = vector.broadcast %1 : vector<1x32xf32> to vector<256x32xf32>
    %22 = arith.mulf %20, %21 : vector<256x32xf32>
    %23 = vector.broadcast %2 : vector<1x32xf32> to vector<256x32xf32>
    %24 = arith.addf %22, %23 : vector<256x32xf32>
    %25 = arith.truncf %24 : vector<256x32xf32> to vector<256x32xbf16>
    %c0_9 = arith.constant 0 : index
    %c0_10 = arith.constant 0 : index
    %26 = vector.load %arg7[%c0_9, %c0_10] : memref<256x32xbf16, #tpu.memory_space<vmem>>, vector<256x32xbf16>
    tpu.vector_store %arg7[%c0_9, %c0_10], %25 {strides = array<i32>} : memref<256x32xbf16, #tpu.memory_space<vmem>>, vector<256x32xbf16>,
    %27 = arith.truncf %24 : vector<256x32xf32> to vector<256x32xbf16>
    %c0_11 = arith.constant 0 : index
    %c0_12 = arith.constant 0 : index
    %28 = vector.load %arg4[%c0_11, %c0_12] : memref<32x32xbf16, #tpu.memory_space<vmem>>, vector<32x32xbf16>
    %cst_13 = arith.constant dense<0.000000e+00> : vector<256x32xf32>
    %29 = tpu.matmul %27, %28, %cst_13 {dimension_numbers = #tpu.dot_dimension_numbers<[1], [0], [0], [1], [0, 0, 1, 1], [], []>} : vector<256x32xbf16>, vector<32x32xbf16>, vector<256x32xf32> -> vector<256x32xf32>
    %c0_14 = arith.constant 0 : index
    %c0_15 = arith.constant 0 : index
    %30 = vector.load %arg5[%c0_14, %c0_15] : memref<1x32xf32, #tpu.memory_space<vmem>>, vector<1x32xf32>
    %31 = vector.broadcast %30 : vector<1x32xf32> to vector<256x32xf32>
    %32 = arith.addf %29, %31 : vector<256x32xf32>
    %33 = arith.truncf %32 : vector<256x32xf32> to vector<256x32xbf16>
    %c0_16 = arith.constant 0 : index
    %c0_17 = arith.constant 0 : index
    %34 = vector.load %arg6[%c0_16, %c0_17] : memref<256x32xbf16, #tpu.memory_space<vmem>>, vector<256x32xbf16>
    tpu.vector_store %arg6[%c0_16, %c0_17], %33 {strides = array<i32>} : memref<256x32xbf16, #tpu.memory_space<vmem>>, vector<256x32xbf16>,
    return
  }
  func.func @transform_0(%arg0: i32) -> (i32, i32) {
    %c0_i32 = arith.constant 0 : i32
    %c0_i32_0 = arith.constant 0 : i32
    return %arg0, %c0_i32 : i32, i32
  }
  func.func @transform_1(%arg0: i32) -> (i32, i32) {
    %c0_i32 = arith.constant 0 : i32
    %c0_i32_0 = arith.constant 0 : i32
    %c0_i32_1 = arith.constant 0 : i32
    return %c0_i32, %c0_i32_0 : i32, i32
  }
  func.func @transform_2(%arg0: i32) -> (i32, i32) {
    %c0_i32 = arith.constant 0 : i32
    %c0_i32_0 = arith.constant 0 : i32
    %c0_i32_1 = arith.constant 0 : i32
    return %c0_i32, %c0_i32_0 : i32, i32
  }
  func.func @transform_3(%arg0: i32) -> (i32, i32) {
    %c0_i32 = arith.constant 0 : i32
    %c0_i32_0 = arith.constant 0 : i32
    %c0_i32_1 = arith.constant 0 : i32
    return %c0_i32, %c0_i32_0 : i32, i32
  }
  func.func @transform_4(%arg0: i32) -> (i32, i32) {
    %c0_i32 = arith.constant 0 : i32
    %c0_i32_0 = arith.constant 0 : i32
    %c0_i32_1 = arith.constant 0 : i32
    return %c0_i32, %c0_i32_0 : i32, i32
  }
  func.func @transform_5(%arg0: i32) -> (i32, i32) {
    %c0_i32 = arith.constant 0 : i32
    %c0_i32_0 = arith.constant 0 : i32
    return %arg0, %c0_i32 : i32, i32
  }
  func.func @transform_6(%arg0: i32) -> (i32, i32) {
    %c0_i32 = arith.constant 0 : i32
    %c0_i32_0 = arith.constant 0 : i32
    return %arg0, %c0_i32 : i32, i32
  }
}

module attributes {stable_mosaic.version = 11 : i64} {
  func.func @kernel(%arg0: i32, %arg1: memref<8x4x16x8xbf16, #tpu.memory_space<vmem>>, %arg2: memref<8x4x4x8xbf16, #tpu.memory_space<vmem>>, %arg3: memref<8x4x4x8xbf16, #tpu.memory_space<vmem>>, %arg4: memref<1x4x16x4xf32, #tpu.memory_space<vmem>>, %arg5: memref<32x32xbf16, #tpu.memory_space<vmem>>, %arg6: memref<1x32xf32, #tpu.memory_space<vmem>>, %arg7: memref<128x32xf32, #tpu.memory_space<vmem>>, %arg8: memref<128x32xf32, #tpu.memory_space<vmem>>) attributes {dimension_semantics = [#tpu.dimension_semantics<parallel>], iteration_bounds = array<i64: 4>, scalar_prefetch = 0 : i64, scratch_operands = 0 : i64, tpu.core_type = #tpu.core_type<tc>, window_params = [{transform_indices = @transform_0, window_bounds = array<i64: 8, 4, 16, 8>}, {transform_indices = @transform_1, window_bounds = array<i64: 8, 4, 4, 8>}, {transform_indices = @transform_2, window_bounds = array<i64: 8, 4, 4, 8>}, {pipeline_mode = #tpu.pipeline_mode<synchronous>, transform_indices = @transform_3, window_bounds = array<i64: 1, 4, 16, 4>}, {pipeline_mode = #tpu.pipeline_mode<synchronous>, transform_indices = @transform_4, window_bounds = array<i64: 32, 32>}, {pipeline_mode = #tpu.pipeline_mode<synchronous>, transform_indices = @transform_5, window_bounds = array<i64: 1, 32>}, {transform_indices = @transform_6, window_bounds = array<i64: 128, 32>}, {transform_indices = @transform_7, window_bounds = array<i64: 128, 32>}]} {
    %c0 = arith.constant 0 : index
    %c0_0 = arith.constant 0 : index
    %c0_1 = arith.constant 0 : index
    %c0_2 = arith.constant 0 : index
    %0 = vector.load %arg1[%c0, %c0_0, %c0_1, %c0_2] : memref<8x4x16x8xbf16, #tpu.memory_space<vmem>>, vector<8x4x16x8xbf16>
    %c0_3 = arith.constant 0 : index
    %c0_4 = arith.constant 0 : index
    %c0_5 = arith.constant 0 : index
    %c0_6 = arith.constant 0 : index
    %1 = vector.load %arg2[%c0_3, %c0_4, %c0_5, %c0_6] : memref<8x4x4x8xbf16, #tpu.memory_space<vmem>>, vector<8x4x4x8xbf16>
    %c0_7 = arith.constant 0 : index
    %c0_8 = arith.constant 0 : index
    %c0_9 = arith.constant 0 : index
    %c0_10 = arith.constant 0 : index
    %2 = vector.load %arg3[%c0_7, %c0_8, %c0_9, %c0_10] : memref<8x4x4x8xbf16, #tpu.memory_space<vmem>>, vector<8x4x4x8xbf16>
    %c0_11 = arith.constant 0 : index
    %c0_12 = arith.constant 0 : index
    %c0_13 = arith.constant 0 : index
    %c0_14 = arith.constant 0 : index
    %3 = vector.load %arg4[%c0_11, %c0_12, %c0_13, %c0_14] : memref<1x4x16x4xf32, #tpu.memory_space<vmem>>, vector<1x4x16x4xf32>
    %4 = vector.extract_strided_slice %0 {offsets = [0, 0, 0, 0], sizes = [8, 1, 16, 8], strides = [1, 1, 1, 1]} : vector<8x4x16x8xbf16> to vector<8x1x16x8xbf16>
    %5 = vector.shape_cast %4 : vector<8x1x16x8xbf16> to vector<8x16x8xbf16>
    %6 = vector.extract_strided_slice %1 {offsets = [0, 0, 0, 0], sizes = [8, 1, 4, 8], strides = [1, 1, 1, 1]} : vector<8x4x4x8xbf16> to vector<8x1x4x8xbf16>
    %7 = vector.shape_cast %6 : vector<8x1x4x8xbf16> to vector<8x4x8xbf16>
    "tpu.trace_start"() <{level = 10 : i32, message = "wpd,wkd->wpk"}> : () -> ()
    %cst = arith.constant dense<0.000000e+00> : vector<8x16x4xf32>
    %8 = tpu.matmul %5, %7, %cst {dimension_numbers = #tpu.dot_dimension_numbers<[2], [2], [1], [1], [0, 0, 0, 1, 1, 1], [0], [0]>} : vector<8x16x8xbf16>, vector<8x4x8xbf16>, vector<8x16x4xf32> -> vector<8x16x4xf32>
    "tpu.trace_stop"() : () -> ()
    %9 = vector.extract_strided_slice %3 {offsets = [0, 0, 0, 0], sizes = [1, 1, 16, 4], strides = [1, 1, 1, 1]} : vector<1x4x16x4xf32> to vector<1x1x16x4xf32>
    %10 = vector.shape_cast %9 : vector<1x1x16x4xf32> to vector<16x4xf32>
    %11 = vector.shape_cast %10 : vector<16x4xf32> to vector<1x16x4xf32>
    %12 = vector.broadcast %11 : vector<1x16x4xf32> to vector<8x16x4xf32>
    %13 = arith.addf %8, %12 : vector<8x16x4xf32>
    %cst_15 = arith.constant dense<0xFF800000> : vector<8x16xf32>
    %14 = vector.multi_reduction <maximumf>, %13, %cst_15 [2] : vector<8x16x4xf32> to vector<8x16xf32>
    %15 = vector.shape_cast %14 : vector<8x16xf32> to vector<8x16x1xf32>
    %16 = vector.broadcast %15 : vector<8x16x1xf32> to vector<8x16x4xf32>
    %17 = arith.subf %13, %16 : vector<8x16x4xf32>
    %18 = math.exp %17 : vector<8x16x4xf32>
    %cst_16 = arith.constant dense<0.000000e+00> : vector<8x16xf32>
    %19 = vector.multi_reduction <add>, %18, %cst_16 [2] : vector<8x16x4xf32> to vector<8x16xf32>
    %20 = vector.shape_cast %19 : vector<8x16xf32> to vector<8x16x1xf32>
    %21 = tpu.reciprocal %20 {approx = true} : vector<8x16x1xf32> -> vector<8x16x1xf32>
    %22 = vector.broadcast %21 : vector<8x16x1xf32> to vector<8x16x4xf32>
    %23 = arith.mulf %18, %22 : vector<8x16x4xf32>
    %24 = arith.truncf %23 : vector<8x16x4xf32> to vector<8x16x4xbf16>
    %25 = vector.extract_strided_slice %2 {offsets = [0, 0, 0, 0], sizes = [8, 1, 4, 8], strides = [1, 1, 1, 1]} : vector<8x4x4x8xbf16> to vector<8x1x4x8xbf16>
    %26 = vector.shape_cast %25 : vector<8x1x4x8xbf16> to vector<8x4x8xbf16>
    "tpu.trace_start"() <{level = 10 : i32, message = "wpk,wkd->wpd"}> : () -> ()
    %cst_17 = arith.constant dense<0.000000e+00> : vector<8x16x8xf32>
    %27 = tpu.matmul %24, %26, %cst_17 {dimension_numbers = #tpu.dot_dimension_numbers<[2], [1], [1], [2], [0, 0, 0, 1, 1, 2], [0], [0]>} : vector<8x16x4xbf16>, vector<8x4x8xbf16>, vector<8x16x8xf32> -> vector<8x16x8xf32>
    "tpu.trace_stop"() : () -> ()
    %28 = vector.extract_strided_slice %0 {offsets = [0, 1, 0, 0], sizes = [8, 1, 16, 8], strides = [1, 1, 1, 1]} : vector<8x4x16x8xbf16> to vector<8x1x16x8xbf16>
    %29 = vector.shape_cast %28 : vector<8x1x16x8xbf16> to vector<8x16x8xbf16>
    %30 = vector.extract_strided_slice %1 {offsets = [0, 1, 0, 0], sizes = [8, 1, 4, 8], strides = [1, 1, 1, 1]} : vector<8x4x4x8xbf16> to vector<8x1x4x8xbf16>
    %31 = vector.shape_cast %30 : vector<8x1x4x8xbf16> to vector<8x4x8xbf16>
    "tpu.trace_start"() <{level = 10 : i32, message = "wpd,wkd->wpk"}> : () -> ()
    %cst_18 = arith.constant dense<0.000000e+00> : vector<8x16x4xf32>
    %32 = tpu.matmul %29, %31, %cst_18 {dimension_numbers = #tpu.dot_dimension_numbers<[2], [2], [1], [1], [0, 0, 0, 1, 1, 1], [0], [0]>} : vector<8x16x8xbf16>, vector<8x4x8xbf16>, vector<8x16x4xf32> -> vector<8x16x4xf32>
    "tpu.trace_stop"() : () -> ()
    %33 = vector.extract_strided_slice %3 {offsets = [0, 1, 0, 0], sizes = [1, 1, 16, 4], strides = [1, 1, 1, 1]} : vector<1x4x16x4xf32> to vector<1x1x16x4xf32>
    %34 = vector.shape_cast %33 : vector<1x1x16x4xf32> to vector<16x4xf32>
    %35 = vector.shape_cast %34 : vector<16x4xf32> to vector<1x16x4xf32>
    %36 = vector.broadcast %35 : vector<1x16x4xf32> to vector<8x16x4xf32>
    %37 = arith.addf %32, %36 : vector<8x16x4xf32>
    %cst_19 = arith.constant dense<0xFF800000> : vector<8x16xf32>
    %38 = vector.multi_reduction <maximumf>, %37, %cst_19 [2] : vector<8x16x4xf32> to vector<8x16xf32>
    %39 = vector.shape_cast %38 : vector<8x16xf32> to vector<8x16x1xf32>
    %40 = vector.broadcast %39 : vector<8x16x1xf32> to vector<8x16x4xf32>
    %41 = arith.subf %37, %40 : vector<8x16x4xf32>
    %42 = math.exp %41 : vector<8x16x4xf32>
    %cst_20 = arith.constant dense<0.000000e+00> : vector<8x16xf32>
    %43 = vector.multi_reduction <add>, %42, %cst_20 [2] : vector<8x16x4xf32> to vector<8x16xf32>
    %44 = vector.shape_cast %43 : vector<8x16xf32> to vector<8x16x1xf32>
    %45 = tpu.reciprocal %44 {approx = true} : vector<8x16x1xf32> -> vector<8x16x1xf32>
    %46 = vector.broadcast %45 : vector<8x16x1xf32> to vector<8x16x4xf32>
    %47 = arith.mulf %42, %46 : vector<8x16x4xf32>
    %48 = arith.truncf %47 : vector<8x16x4xf32> to vector<8x16x4xbf16>
    %49 = vector.extract_strided_slice %2 {offsets = [0, 1, 0, 0], sizes = [8, 1, 4, 8], strides = [1, 1, 1, 1]} : vector<8x4x4x8xbf16> to vector<8x1x4x8xbf16>
    %50 = vector.shape_cast %49 : vector<8x1x4x8xbf16> to vector<8x4x8xbf16>
    "tpu.trace_start"() <{level = 10 : i32, message = "wpk,wkd->wpd"}> : () -> ()
    %cst_21 = arith.constant dense<0.000000e+00> : vector<8x16x8xf32>
    %51 = tpu.matmul %48, %50, %cst_21 {dimension_numbers = #tpu.dot_dimension_numbers<[2], [1], [1], [2], [0, 0, 0, 1, 1, 2], [0], [0]>} : vector<8x16x4xbf16>, vector<8x4x8xbf16>, vector<8x16x8xf32> -> vector<8x16x8xf32>
    "tpu.trace_stop"() : () -> ()
    %52 = vector.extract_strided_slice %0 {offsets = [0, 2, 0, 0], sizes = [8, 1, 16, 8], strides = [1, 1, 1, 1]} : vector<8x4x16x8xbf16> to vector<8x1x16x8xbf16>
    %53 = vector.shape_cast %52 : vector<8x1x16x8xbf16> to vector<8x16x8xbf16>
    %54 = vector.extract_strided_slice %1 {offsets = [0, 2, 0, 0], sizes = [8, 1, 4, 8], strides = [1, 1, 1, 1]} : vector<8x4x4x8xbf16> to vector<8x1x4x8xbf16>
    %55 = vector.shape_cast %54 : vector<8x1x4x8xbf16> to vector<8x4x8xbf16>
    "tpu.trace_start"() <{level = 10 : i32, message = "wpd,wkd->wpk"}> : () -> ()
    %cst_22 = arith.constant dense<0.000000e+00> : vector<8x16x4xf32>
    %56 = tpu.matmul %53, %55, %cst_22 {dimension_numbers = #tpu.dot_dimension_numbers<[2], [2], [1], [1], [0, 0, 0, 1, 1, 1], [0], [0]>} : vector<8x16x8xbf16>, vector<8x4x8xbf16>, vector<8x16x4xf32> -> vector<8x16x4xf32>
    "tpu.trace_stop"() : () -> ()
    %57 = vector.extract_strided_slice %3 {offsets = [0, 2, 0, 0], sizes = [1, 1, 16, 4], strides = [1, 1, 1, 1]} : vector<1x4x16x4xf32> to vector<1x1x16x4xf32>
    %58 = vector.shape_cast %57 : vector<1x1x16x4xf32> to vector<16x4xf32>
    %59 = vector.shape_cast %58 : vector<16x4xf32> to vector<1x16x4xf32>
    %60 = vector.broadcast %59 : vector<1x16x4xf32> to vector<8x16x4xf32>
    %61 = arith.addf %56, %60 : vector<8x16x4xf32>
    %cst_23 = arith.constant dense<0xFF800000> : vector<8x16xf32>
    %62 = vector.multi_reduction <maximumf>, %61, %cst_23 [2] : vector<8x16x4xf32> to vector<8x16xf32>
    %63 = vector.shape_cast %62 : vector<8x16xf32> to vector<8x16x1xf32>
    %64 = vector.broadcast %63 : vector<8x16x1xf32> to vector<8x16x4xf32>
    %65 = arith.subf %61, %64 : vector<8x16x4xf32>
    %66 = math.exp %65 : vector<8x16x4xf32>
    %cst_24 = arith.constant dense<0.000000e+00> : vector<8x16xf32>
    %67 = vector.multi_reduction <add>, %66, %cst_24 [2] : vector<8x16x4xf32> to vector<8x16xf32>
    %68 = vector.shape_cast %67 : vector<8x16xf32> to vector<8x16x1xf32>
    %69 = tpu.reciprocal %68 {approx = true} : vector<8x16x1xf32> -> vector<8x16x1xf32>
    %70 = vector.broadcast %69 : vector<8x16x1xf32> to vector<8x16x4xf32>
    %71 = arith.mulf %66, %70 : vector<8x16x4xf32>
    %72 = arith.truncf %71 : vector<8x16x4xf32> to vector<8x16x4xbf16>
    %73 = vector.extract_strided_slice %2 {offsets = [0, 2, 0, 0], sizes = [8, 1, 4, 8], strides = [1, 1, 1, 1]} : vector<8x4x4x8xbf16> to vector<8x1x4x8xbf16>
    %74 = vector.shape_cast %73 : vector<8x1x4x8xbf16> to vector<8x4x8xbf16>
    "tpu.trace_start"() <{level = 10 : i32, message = "wpk,wkd->wpd"}> : () -> ()
    %cst_25 = arith.constant dense<0.000000e+00> : vector<8x16x8xf32>
    %75 = tpu.matmul %72, %74, %cst_25 {dimension_numbers = #tpu.dot_dimension_numbers<[2], [1], [1], [2], [0, 0, 0, 1, 1, 2], [0], [0]>} : vector<8x16x4xbf16>, vector<8x4x8xbf16>, vector<8x16x8xf32> -> vector<8x16x8xf32>
    "tpu.trace_stop"() : () -> ()
    %76 = vector.extract_strided_slice %0 {offsets = [0, 3, 0, 0], sizes = [8, 1, 16, 8], strides = [1, 1, 1, 1]} : vector<8x4x16x8xbf16> to vector<8x1x16x8xbf16>
    %77 = vector.shape_cast %76 : vector<8x1x16x8xbf16> to vector<8x16x8xbf16>
    %78 = vector.extract_strided_slice %1 {offsets = [0, 3, 0, 0], sizes = [8, 1, 4, 8], strides = [1, 1, 1, 1]} : vector<8x4x4x8xbf16> to vector<8x1x4x8xbf16>
    %79 = vector.shape_cast %78 : vector<8x1x4x8xbf16> to vector<8x4x8xbf16>
    "tpu.trace_start"() <{level = 10 : i32, message = "wpd,wkd->wpk"}> : () -> ()
    %cst_26 = arith.constant dense<0.000000e+00> : vector<8x16x4xf32>
    %80 = tpu.matmul %77, %79, %cst_26 {dimension_numbers = #tpu.dot_dimension_numbers<[2], [2], [1], [1], [0, 0, 0, 1, 1, 1], [0], [0]>} : vector<8x16x8xbf16>, vector<8x4x8xbf16>, vector<8x16x4xf32> -> vector<8x16x4xf32>
    "tpu.trace_stop"() : () -> ()
    %81 = vector.extract_strided_slice %3 {offsets = [0, 3, 0, 0], sizes = [1, 1, 16, 4], strides = [1, 1, 1, 1]} : vector<1x4x16x4xf32> to vector<1x1x16x4xf32>
    %82 = vector.shape_cast %81 : vector<1x1x16x4xf32> to vector<16x4xf32>
    %83 = vector.shape_cast %82 : vector<16x4xf32> to vector<1x16x4xf32>
    %84 = vector.broadcast %83 : vector<1x16x4xf32> to vector<8x16x4xf32>
    %85 = arith.addf %80, %84 : vector<8x16x4xf32>
    %cst_27 = arith.constant dense<0xFF800000> : vector<8x16xf32>
    %86 = vector.multi_reduction <maximumf>, %85, %cst_27 [2] : vector<8x16x4xf32> to vector<8x16xf32>
    %87 = vector.shape_cast %86 : vector<8x16xf32> to vector<8x16x1xf32>
    %88 = vector.broadcast %87 : vector<8x16x1xf32> to vector<8x16x4xf32>
    %89 = arith.subf %85, %88 : vector<8x16x4xf32>
    %90 = math.exp %89 : vector<8x16x4xf32>
    %cst_28 = arith.constant dense<0.000000e+00> : vector<8x16xf32>
    %91 = vector.multi_reduction <add>, %90, %cst_28 [2] : vector<8x16x4xf32> to vector<8x16xf32>
    %92 = vector.shape_cast %91 : vector<8x16xf32> to vector<8x16x1xf32>
    %93 = tpu.reciprocal %92 {approx = true} : vector<8x16x1xf32> -> vector<8x16x1xf32>
    %94 = vector.broadcast %93 : vector<8x16x1xf32> to vector<8x16x4xf32>
    %95 = arith.mulf %90, %94 : vector<8x16x4xf32>
    %96 = arith.truncf %95 : vector<8x16x4xf32> to vector<8x16x4xbf16>
    %97 = vector.extract_strided_slice %2 {offsets = [0, 3, 0, 0], sizes = [8, 1, 4, 8], strides = [1, 1, 1, 1]} : vector<8x4x4x8xbf16> to vector<8x1x4x8xbf16>
    %98 = vector.shape_cast %97 : vector<8x1x4x8xbf16> to vector<8x4x8xbf16>
    "tpu.trace_start"() <{level = 10 : i32, message = "wpk,wkd->wpd"}> : () -> ()
    %cst_29 = arith.constant dense<0.000000e+00> : vector<8x16x8xf32>
    %99 = tpu.matmul %96, %98, %cst_29 {dimension_numbers = #tpu.dot_dimension_numbers<[2], [1], [1], [2], [0, 0, 0, 1, 1, 2], [0], [0]>} : vector<8x16x4xbf16>, vector<8x4x8xbf16>, vector<8x16x8xf32> -> vector<8x16x8xf32>
    "tpu.trace_stop"() : () -> ()
    %100 = tpu.concatenate %27, %51, %75, %99 in 2 : vector<8x16x8xf32>, vector<8x16x8xf32>, vector<8x16x8xf32>, vector<8x16x8xf32> -> vector<8x16x32xf32>
    %101 = vector.shape_cast %100 : vector<8x16x32xf32> to vector<128x32xf32>
    %102 = arith.truncf %101 : vector<128x32xf32> to vector<128x32xbf16>
    %c0_30 = arith.constant 0 : index
    %c0_31 = arith.constant 0 : index
    %103 = vector.load %arg5[%c0_30, %c0_31] : memref<32x32xbf16, #tpu.memory_space<vmem>>, vector<32x32xbf16>
    %cst_32 = arith.constant dense<0.000000e+00> : vector<128x32xf32>
    %104 = tpu.matmul %102, %103, %cst_32 {dimension_numbers = #tpu.dot_dimension_numbers<[1], [0], [0], [1], [0, 0, 1, 1], [], []>} : vector<128x32xbf16>, vector<32x32xbf16>, vector<128x32xf32> -> vector<128x32xf32>
    %c0_33 = arith.constant 0 : index
    %c0_34 = arith.constant 0 : index
    %105 = vector.load %arg6[%c0_33, %c0_34] : memref<1x32xf32, #tpu.memory_space<vmem>>, vector<1x32xf32>
    %106 = vector.broadcast %105 : vector<1x32xf32> to vector<128x32xf32>
    %107 = arith.addf %104, %106 : vector<128x32xf32>
    %c0_35 = arith.constant 0 : index
    %c0_36 = arith.constant 0 : index
    %108 = vector.load %arg7[%c0_35, %c0_36] : memref<128x32xf32, #tpu.memory_space<vmem>>, vector<128x32xf32>
    %109 = arith.addf %107, %108 : vector<128x32xf32>
    %c0_37 = arith.constant 0 : index
    %c0_38 = arith.constant 0 : index
    %110 = vector.load %arg8[%c0_37, %c0_38] : memref<128x32xf32, #tpu.memory_space<vmem>>, vector<128x32xf32>
    tpu.vector_store %arg8[%c0_37, %c0_38], %109 {strides = array<i32>} : memref<128x32xf32, #tpu.memory_space<vmem>>, vector<128x32xf32>,
    return
  }
  func.func @transform_0(%arg0: i32) -> (i32, i32, i32, i32) {
    %c0_i32 = arith.constant 0 : i32
    %c0_i32_0 = arith.constant 0 : i32
    %c0_i32_1 = arith.constant 0 : i32
    %c0_i32_2 = arith.constant 0 : i32
    return %arg0, %c0_i32, %c0_i32_0, %c0_i32_1 : i32, i32, i32, i32
  }
  func.func @transform_1(%arg0: i32) -> (i32, i32, i32, i32) {
    %c0_i32 = arith.constant 0 : i32
    %c0_i32_0 = arith.constant 0 : i32
    %c0_i32_1 = arith.constant 0 : i32
    %c0_i32_2 = arith.constant 0 : i32
    return %arg0, %c0_i32, %c0_i32_0, %c0_i32_1 : i32, i32, i32, i32
  }
  func.func @transform_2(%arg0: i32) -> (i32, i32, i32, i32) {
    %c0_i32 = arith.constant 0 : i32
    %c0_i32_0 = arith.constant 0 : i32
    %c0_i32_1 = arith.constant 0 : i32
    %c0_i32_2 = arith.constant 0 : i32
    return %arg0, %c0_i32, %c0_i32_0, %c0_i32_1 : i32, i32, i32, i32
  }
  func.func @transform_3(%arg0: i32) -> (i32, i32, i32, i32) {
    %c0_i32 = arith.constant 0 : i32
    %c0_i32_0 = arith.constant 0 : i32
    %c0_i32_1 = arith.constant 0 : i32
    %c0_i32_2 = arith.constant 0 : i32
    %c0_i32_3 = arith.constant 0 : i32
    return %c0_i32, %c0_i32_0, %c0_i32_1, %c0_i32_2 : i32, i32, i32, i32
  }
  func.func @transform_4(%arg0: i32) -> (i32, i32) {
    %c0_i32 = arith.constant 0 : i32
    %c0_i32_0 = arith.constant 0 : i32
    %c0_i32_1 = arith.constant 0 : i32
    return %c0_i32, %c0_i32_0 : i32, i32
  }
  func.func @transform_5(%arg0: i32) -> (i32, i32) {
    %c0_i32 = arith.constant 0 : i32
    %c0_i32_0 = arith.constant 0 : i32
    %c0_i32_1 = arith.constant 0 : i32
    return %c0_i32, %c0_i32_0 : i32, i32
  }
  func.func @transform_6(%arg0: i32) -> (i32, i32) {
    %c0_i32 = arith.constant 0 : i32
    %c0_i32_0 = arith.constant 0 : i32
    return %arg0, %c0_i32 : i32, i32
  }
  func.func @transform_7(%arg0: i32) -> (i32, i32) {
    %c0_i32 = arith.constant 0 : i32
    %c0_i32_0 = arith.constant 0 : i32
    return %arg0, %c0_i32 : i32, i32
  }
}

module attributes {stable_mosaic.version = 11 : i64} {
  func.func @kernel(%arg0: i32, %arg1: memref<256x32xf32, #tpu.memory_space<vmem>>, %arg2: memref<1x32xf32, #tpu.memory_space<vmem>>, %arg3: memref<1x32xf32, #tpu.memory_space<vmem>>, %arg4: memref<32x128xbf16, #tpu.memory_space<vmem>>, %arg5: memref<1x128xf32, #tpu.memory_space<vmem>>, %arg6: memref<128x32xbf16, #tpu.memory_space<vmem>>, %arg7: memref<1x32xf32, #tpu.memory_space<vmem>>, %arg8: memref<256x32xf32, #tpu.memory_space<vmem>>) attributes {dimension_semantics = [#tpu.dimension_semantics<parallel>], iteration_bounds = array<i64: 2>, scalar_prefetch = 0 : i64, scratch_operands = 0 : i64, tpu.core_type = #tpu.core_type<tc>, window_params = [{transform_indices = @transform_0, window_bounds = array<i64: 256, 32>}, {pipeline_mode = #tpu.pipeline_mode<synchronous>, transform_indices = @transform_1, window_bounds = array<i64: 1, 32>}, {pipeline_mode = #tpu.pipeline_mode<synchronous>, transform_indices = @transform_2, window_bounds = array<i64: 1, 32>}, {pipeline_mode = #tpu.pipeline_mode<synchronous>, transform_indices = @transform_3, window_bounds = array<i64: 32, 128>}, {pipeline_mode = #tpu.pipeline_mode<synchronous>, transform_indices = @transform_4, window_bounds = array<i64: 1, 128>}, {pipeline_mode = #tpu.pipeline_mode<synchronous>, transform_indices = @transform_5, window_bounds = array<i64: 128, 32>}, {pipeline_mode = #tpu.pipeline_mode<synchronous>, transform_indices = @transform_6, window_bounds = array<i64: 1, 32>}, {transform_indices = @transform_7, window_bounds = array<i64: 256, 32>}]} {
    %c0 = arith.constant 0 : index
    %c0_0 = arith.constant 0 : index
    %0 = vector.load %arg1[%c0, %c0_0] : memref<256x32xf32, #tpu.memory_space<vmem>>, vector<256x32xf32>
    %c0_1 = arith.constant 0 : index
    %c0_2 = arith.constant 0 : index
    %1 = vector.load %arg2[%c0_1, %c0_2] : memref<1x32xf32, #tpu.memory_space<vmem>>, vector<1x32xf32>
    %c0_3 = arith.constant 0 : index
    %c0_4 = arith.constant 0 : index
    %2 = vector.load %arg3[%c0_3, %c0_4] : memref<1x32xf32, #tpu.memory_space<vmem>>, vector<1x32xf32>
    %cst = arith.constant dense<0.000000e+00> : vector<256xf32>
    %3 = vector.multi_reduction <add>, %0, %cst [1] : vector<256x32xf32> to vector<256xf32>
    %4 = vector.shape_cast %3 : vector<256xf32> to vector<256x1xf32>
    %cst_5 = arith.constant 3.200000e+01 : f32
    %5 = vector.broadcast %cst_5 : f32 to vector<256x1xf32>
    %6 = arith.divf %4, %5 : vector<256x1xf32>
    %7 = vector.broadcast %6 : vector<256x1xf32> to vector<256x32xf32>
    %8 = arith.subf %0, %7 : vector<256x32xf32>
    %9 = arith.mulf %8, %8 : vector<256x32xf32>
    %cst_6 = arith.constant dense<0.000000e+00> : vector<256xf32>
    %10 = vector.multi_reduction <add>, %9, %cst_6 [1] : vector<256x32xf32> to vector<256xf32>
    %11 = vector.shape_cast %10 : vector<256xf32> to vector<256x1xf32>
    %cst_7 = arith.constant 3.200000e+01 : f32
    %12 = vector.broadcast %cst_7 : f32 to vector<256x1xf32>
    %13 = arith.divf %11, %12 : vector<256x1xf32>
    %14 = vector.broadcast %6 : vector<256x1xf32> to vector<256x32xf32>
    %15 = arith.subf %0, %14 : vector<256x32xf32>
    %cst_8 = arith.constant 9.99999974E-6 : f32
    %16 = vector.broadcast %cst_8 : f32 to vector<256x1xf32>
    %17 = arith.addf %13, %16 : vector<256x1xf32>
    %18 = math.rsqrt %17 : vector<256x1xf32>
    %19 = vector.broadcast %18 : vector<256x1xf32> to vector<256x32xf32>
    %20 = arith.mulf %15, %19 : vector<256x32xf32>
    %21 = vector.broadcast %1 : vector<1x32xf32> to vector<256x32xf32>
    %22 = arith.mulf %20, %21 : vector<256x32xf32>
    %23 = vector.broadcast %2 : vector<1x32xf32> to vector<256x32xf32>
    %24 = arith.addf %22, %23 : vector<256x32xf32>
    %25 = arith.truncf %24 : vector<256x32xf32> to vector<256x32xbf16>
    %c0_9 = arith.constant 0 : index
    %c0_10 = arith.constant 0 : index
    %26 = vector.load %arg4[%c0_9, %c0_10] : memref<32x128xbf16, #tpu.memory_space<vmem>>, vector<32x128xbf16>
    %cst_11 = arith.constant dense<0.000000e+00> : vector<256x128xf32>
    %27 = tpu.matmul %25, %26, %cst_11 {dimension_numbers = #tpu.dot_dimension_numbers<[1], [0], [0], [1], [0, 0, 1, 1], [], []>} : vector<256x32xbf16>, vector<32x128xbf16>, vector<256x128xf32> -> vector<256x128xf32>
    %c0_12 = arith.constant 0 : index
    %c0_13 = arith.constant 0 : index
    %28 = vector.load %arg5[%c0_12, %c0_13] : memref<1x128xf32, #tpu.memory_space<vmem>>, vector<1x128xf32>
    %29 = vector.broadcast %28 : vector<1x128xf32> to vector<256x128xf32>
    %30 = arith.addf %27, %29 : vector<256x128xf32>
    %cst_14 = arith.constant 5.000000e-01 : f32
    %31 = vector.broadcast %cst_14 : f32 to vector<256x128xf32>
    %32 = arith.mulf %31, %30 : vector<256x128xf32>
    %cst_15 = arith.constant 0.707106769 : f32
    %33 = vector.broadcast %cst_15 : f32 to vector<256x128xf32>
    %34 = arith.mulf %30, %33 : vector<256x128xf32>
    %cst_16 = arith.constant 0.000000e+00 : f32
    %35 = vector.broadcast %cst_16 : f32 to vector<256x128xf32>
    %36 = arith.cmpf oge, %34, %35 : vector<256x128xf32>
    %cst_17 = arith.constant 1.000000e+00 : f32
    %cst_18 = arith.constant -1.000000e+00 : f32
    %37 = vector.broadcast %cst_17 : f32 to vector<256x128xf32>
    %38 = vector.broadcast %cst_18 : f32 to vector<256x128xf32>
    %39 = arith.select %36, %37, %38 : vector<256x128xi1>, vector<256x128xf32>
    %40 = math.absf %34 : vector<256x128xf32>
    %cst_19 = arith.constant 0.327591091 : f32
    %41 = vector.broadcast %cst_19 : f32 to vector<256x128xf32>
    %42 = arith.mulf %41, %40 : vector<256x128xf32>
    %cst_20 = arith.constant 1.000000e+00 : f32
    %43 = vector.broadcast %cst_20 : f32 to vector<256x128xf32>
    %44 = arith.addf %43, %42 : vector<256x128xf32>
    %cst_21 = arith.constant 1.000000e+00 : f32
    %45 = vector.broadcast %cst_21 : f32 to vector<256x128xf32>
    %46 = arith.divf %45, %44 : vector<256x128xf32>
    %cst_22 = arith.constant 1.06140542 : f32
    %47 = vector.broadcast %cst_22 : f32 to vector<256x128xf32>
    %48 = arith.mulf %47, %46 : vector<256x128xf32>
    %cst_23 = arith.constant -1.45315206 : f32
    %49 = vector.broadcast %cst_23 : f32 to vector<256x128xf32>
    %50 = arith.addf %48, %49 : vector<256x128xf32>
    %51 = arith.mulf %50, %46 : vector<256x128xf32>
    %cst_24 = arith.constant 1.42141378 : f32
    %52 = vector.broadcast %cst_24 : f32 to vector<256x128xf32>
    %53 = arith.addf %51, %52 : vector<256x128xf32>
    %54 = arith.mulf %53, %46 : vector<256x128xf32>
    %cst_25 = arith.constant -0.284496725 : f32
    %55 = vector.broadcast %cst_25 : f32 to vector<256x128xf32>
    %56 = arith.addf %54, %55 : vector<256x128xf32>
    %57 = arith.mulf %56, %46 : vector<256x128xf32>
    %cst_26 = arith.constant 0.254829586 : f32
    %58 = vector.broadcast %cst_26 : f32 to vector<256x128xf32>
    %59 = arith.addf %57, %58 : vector<256x128xf32>
    %60 = arith.mulf %59, %46 : vector<256x128xf32>
    %cst_27 = arith.constant 0.000000e+00 : f32
    %61 = vector.broadcast %cst_27 : f32 to vector<256x128xf32>
    %62 = arith.subf %61, %40 : vector<256x128xf32>
    %63 = arith.mulf %62, %40 : vector<256x128xf32>
    %64 = math.exp %63 : vector<256x128xf32>
    %65 = arith.mulf %60, %64 : vector<256x128xf32>
    %cst_28 = arith.constant 1.000000e+00 : f32
    %66 = vector.broadcast %cst_28 : f32 to vector<256x128xf32>
    %67 = arith.subf %66, %65 : vector<256x128xf32>
    %68 = arith.mulf %39, %67 : vector<256x128xf32>
    %cst_29 = arith.constant 1.000000e+00 : f32
    %69 = vector.broadcast %cst_29 : f32 to vector<256x128xf32>
    %70 = arith.addf %69, %68 : vector<256x128xf32>
    %71 = arith.mulf %32, %70 : vector<256x128xf32>
    %72 = arith.truncf %71 : vector<256x128xf32> to vector<256x128xbf16>
    %c0_30 = arith.constant 0 : index
    %c0_31 = arith.constant 0 : index
    %73 = vector.load %arg6[%c0_30, %c0_31] : memref<128x32xbf16, #tpu.memory_space<vmem>>, vector<128x32xbf16>
    %cst_32 = arith.constant dense<0.000000e+00> : vector<256x32xf32>
    %74 = tpu.matmul %72, %73, %cst_32 {dimension_numbers = #tpu.dot_dimension_numbers<[1], [0], [0], [1], [0, 0, 1, 1], [], []>} : vector<256x128xbf16>, vector<128x32xbf16>, vector<256x32xf32> -> vector<256x32xf32>
    %c0_33 = arith.constant 0 : index
    %c0_34 = arith.constant 0 : index
    %75 = vector.load %arg7[%c0_33, %c0_34] : memref<1x32xf32, #tpu.memory_space<vmem>>, vector<1x32xf32>
    %76 = vector.broadcast %75 : vector<1x32xf32> to vector<256x32xf32>
    %77 = arith.addf %74, %76 : vector<256x32xf32>
    %78 = arith.addf %0, %77 : vector<256x32xf32>
    %c0_35 = arith.constant 0 : index
    %c0_36 = arith.constant 0 : index
    %79 = vector.load %arg8[%c0_35, %c0_36] : memref<256x32xf32, #tpu.memory_space<vmem>>, vector<256x32xf32>
    tpu.vector_store %arg8[%c0_35, %c0_36], %78 {strides = array<i32>} : memref<256x32xf32, #tpu.memory_space<vmem>>, vector<256x32xf32>,
    return
  }
  func.func @transform_0(%arg0: i32) -> (i32, i32) {
    %c0_i32 = arith.constant 0 : i32
    %c0_i32_0 = arith.constant 0 : i32
    return %arg0, %c0_i32 : i32, i32
  }
  func.func @transform_1(%arg0: i32) -> (i32, i32) {
    %c0_i32 = arith.constant 0 : i32
    %c0_i32_0 = arith.constant 0 : i32
    %c0_i32_1 = arith.constant 0 : i32
    return %c0_i32, %c0_i32_0 : i32, i32
  }
  func.func @transform_2(%arg0: i32) -> (i32, i32) {
    %c0_i32 = arith.constant 0 : i32
    %c0_i32_0 = arith.constant 0 : i32
    %c0_i32_1 = arith.constant 0 : i32
    return %c0_i32, %c0_i32_0 : i32, i32
  }
  func.func @transform_3(%arg0: i32) -> (i32, i32) {
    %c0_i32 = arith.constant 0 : i32
    %c0_i32_0 = arith.constant 0 : i32
    %c0_i32_1 = arith.constant 0 : i32
    return %c0_i32, %c0_i32_0 : i32, i32
  }
  func.func @transform_4(%arg0: i32) -> (i32, i32) {
    %c0_i32 = arith.constant 0 : i32
    %c0_i32_0 = arith.constant 0 : i32
    %c0_i32_1 = arith.constant 0 : i32
    return %c0_i32, %c0_i32_0 : i32, i32
  }
  func.func @transform_5(%arg0: i32) -> (i32, i32) {
    %c0_i32 = arith.constant 0 : i32
    %c0_i32_0 = arith.constant 0 : i32
    %c0_i32_1 = arith.constant 0 : i32
    return %c0_i32, %c0_i32_0 : i32, i32
  }
  func.func @transform_6(%arg0: i32) -> (i32, i32) {
    %c0_i32 = arith.constant 0 : i32
    %c0_i32_0 = arith.constant 0 : i32
    %c0_i32_1 = arith.constant 0 : i32
    return %c0_i32, %c0_i32_0 : i32, i32
  }
  func.func @transform_7(%arg0: i32) -> (i32, i32) {
    %c0_i32 = arith.constant 0 : i32
    %c0_i32_0 = arith.constant 0 : i32
    return %arg0, %c0_i32 : i32, i32
  }
}

</mosaic_0001>

<bundles_post_ra>
// kernel: swint_block_forward.5
= control target key start
LH: loop header
LB: loop body
LE: loop exit
PB: predicated region body
PF: predicated region fallthrough
CT: control target
= control target key end

     0   :  { %s503_s12 = smov 0   ;;  %s537_s0 = inlined_call_operand.vmem [shape: bf16[128,32], index: 0, kind: input, shape index: {}]   ;;  %s538_s1 = inlined_call_operand.vmem [shape: bf16[32,64], index: 1, kind: input, shape index: {}]   ;;  %s539_s2 = inlined_call_operand.vmem [shape: f32[1,64], index: 2, kind: input, shape index: {}]   ;;  %s540_s3 = inlined_call_operand.vmem [shape: bf16[128,64], index: 3, kind: output, shape index: {}]  }
   0x1 LB: > { %s401_s13 = sadd.s32 4294967295, %s481_s12   ;;  %p405_p0 = scmp.ge.s32.totalorder %s481_s12, 1  ;;  %s481_s12 = sphi %s503_s12, %s13_s12  }
   0x2   : > { %p138_p1 = scmp.lt.s32.totalorder %s481_s12, 3 }
   0x4   : > { %p139_p2 = pnand %p405_p0, %p138_p1 }
   0x5   : > { %s406_s16 = sshll.u32 (!%p139_p2), %s401_s13, 3 }
   0x6   : > { %142 = sbr.rel (%p139_p2) target bundleno = 224 (0xe0), region = 32  ;;  %p163_p3 = scmp.lt.s32.totalorder (!%p139_p2), %s406_s16, 15 }
   0xb   : > { %v469_v0 = vld [vmem:[%s538_s1 + $0x8] sm:$0xff]   ;;  %v470_v1 = vld [vmem:[%s538_s1] sm:$0xff]   ;;  %s542_s16 = smov (!%p163_p3, %s406_s16), 15  ;;  %vm226_vm0 = vcmask 261120   ;;  %vm336_vm1 = vcmask 519168  }
   0xc   : > { %445 = vmatprep.subr.bf16.mxu0 %v469_v0  ;;  %457 = vmatprep.subr.bf16.mxu1 %v469_v0  ;;  %s407_s19 = sshll.u32 %s542_s16, 2  ;;  %v410_v6 = vld [vmem:[%s539_s2] ss:$0 sm:$0xff] }
   0xd   : > { %446 = vmatpush3.bf16.msra.mxu0 %v469_v0  ;;  %459 = vmatpush3.bf16.msra.mxu1 %v469_v0  ;;  %s166_s22 = scalar_lea.vmem %s537_s0, %s407_s19  ;;  %s172_s27 = scalar_lea.vmem %s540_s3, %s407_s19 }
   0xe   : > { %447 = vmatprep.subr.bf16.mxu0 %v470_v1  ;;  %458 = vmatprep.subr.bf16.mxu1 %v470_v1  ;;  %v471_v2 = vld [vmem:[%s166_s22] sm:$0xff]   ;;  %v472_v3 = vld [vmem:[%s166_s22 + $0x10] sm:$0xff]   ;;  %v473_v4 = vld [vmem:[%s166_s22 + $0x8] sm:$0xff]  }
   0xf   : > { %449 = vmatprep.mubr.msk.bf16.mxu0 %vm226_vm0, %v471_v2  ;;  %453 = vmatprep.mubr.msk.bf16.mxu1 %vm226_vm0, %v472_v3  ;;  %v474_v5 = vld [vmem:[%s166_s22 + $0x18] sm:$0xff]  }
  0x11   : > { %448 = vmatpush3.bf16.msra.mxu0 %v470_v1  ;;  %460 = vmatpush3.bf16.msra.mxu1 %v470_v1 }
  0x14   : > { %450 = vmatmul.mubr.msk.bf16.vlgmr.msra.gmra.mxu0 %vm226_vm0, %v473_v4  ;;  %454 = vmatmul.mubr.msk.bf16.vlgmr.msra.gmra.mxu1 %vm226_vm0, %v474_v5 }
  0xd4   : > { %v451_v7 = vpop.f32.mrf.mxu0  ;;  %v455_v9 = vpop.f32.mrf.mxu1 }
  0xd5   : > { %v282_v8 = vadd.f32 %v451_v7, %v410_v6  ;;  %v298_v10 = vadd.f32 %v455_v9, %v410_v6 }
  0xd6   : > { %v273_v11 = vpop.f32.mrf.mxu0  ;;  %v289_v14 = vpop.f32.mrf.mxu1 }
  0xd7   : > { %v433_v12 = vpack.c.bf16 %v282_v8, %v282_v8  ;;  %v274_v13 = vadd.f32 %v410_v6, %v273_v11  ;;  %v437_v15 = vpack.c.bf16 %v298_v10, %v298_v10  ;;  %v290_v16 = vadd.f32 %v410_v6, %v289_v14 }
  0xd8   : > { %v452_v17 = vpop.f32.mrf.mxu0  ;;  %v456_v20 = vpop.f32.mrf.mxu1 }
  0xd9   : > { %339 = vst.msk [vmem:[%s172_s27 + $0x8] sm:$0xf] %vm336_vm1, %v433_v12  ;;  %v431_v18 = vpack.c.bf16 %v274_v13, %v274_v13  ;;  %v285_v19 = vadd.f32 %v452_v17, %v410_v6  ;;  %343 = vst.msk [vmem:[%s172_s27 + $0x18] sm:$0xf] %vm336_vm1, %v437_v15  ;;  %v435_v21 = vpack.c.bf16 %v290_v16, %v290_v16 }
  0xda   : > { %v301_v22 = vadd.f32 %v456_v20, %v410_v6  ;;  %v276_v23 = vpop.f32.mrf.mxu0  ;;  %v292_v26 = vpop.f32.mrf.mxu1 }
  0xdb   : > { %337 = vst.msk [vmem:[%s172_s27] sm:$0xf] %vm336_vm1, %v431_v18  ;;  %v434_v24 = vpack.c.bf16 %v285_v19, %v285_v19  ;;  %v277_v25 = vadd.f32 %v410_v6, %v276_v23  ;;  %341 = vst.msk [vmem:[%s172_s27 + $0x10] sm:$0xf] %vm336_vm1, %v435_v21  ;;  %v293_v28 = vadd.f32 %v410_v6, %v292_v26 }
  0xdc   : > { %v438_v27 = vpack.c.bf16 %v301_v22, %v301_v22 }
  0xdd   : > { %340 = vst.msk [vmem:[%s172_s27 + $0xc] sm:$0xf] %vm336_vm1, %v434_v24  ;;  %v432_v29 = vpack.c.bf16 %v277_v25, %v277_v25  ;;  %v436_v30 = vpack.c.bf16 %v293_v28, %v293_v28 }
  0xde   : > { %344 = vst.msk [vmem:[%s172_s27 + $0x1c] sm:$0xf] %vm336_vm1, %v438_v27 }
  0xdf   : > { %338 = vst.msk [vmem:[%s172_s27 + $0x4] sm:$0xf] %vm336_vm1, %v432_v29  ;;  %342 = vst.msk [vmem:[%s172_s27 + $0x14] sm:$0xf] %vm336_vm1, %v436_v30 }
  0xe0 PF: > { %s13_s12 = sadd.s32 1, %s481_s12  }
  0xe1   : > { %p10_p4 = scmp.ge.s32.totalorder %s13_s12, 4  }
  0xe3   :  { %12 = sbr.rel (!%p10_p4) target bundleno = 1 (0x1), region = 62 }

// kernel: swint_block_forward.4
= control target key start
LH: loop header
LB: loop body
LE: loop exit
PB: predicated region body
PF: predicated region fallthrough
CT: control target
= control target key end

     0   :  { %s1778_s21 = smov 0   ;;  %s2457_s0 = inlined_call_operand.vmem [shape: f32[512,32], index: 0, kind: input, shape index: {}]   ;;  %s2458_s1 = inlined_call_operand.vmem [shape: f32[1,32], index: 1, kind: input, shape index: {}]   ;;  %s2459_s2 = inlined_call_operand.vmem [shape: f32[1,32], index: 2, kind: input, shape index: {}]   ;;  %s2460_s3 = inlined_call_operand.vmem [shape: bf16[32,32], index: 3, kind: input, shape index: {}]   ;;  %s2461_s4 = inlined_call_operand.vmem [shape: f32[1,32], index: 4, kind: input, shape index: {}]   ;;  %s2462_s5 = inlined_call_operand.vmem [shape: bf16[512,32], index: 5, kind: output, shape index: {0}]   ;;  %s2463_s6 = inlined_call_operand.vmem [shape: bf16[512,32], index: 6, kind: output, shape index: {1}]  }
   0x1 LB: > { %s1441_s22 = sadd.s32 4294967295, %s1741_s21   ;;  %p1445_p0 = scmp.ge.s32.totalorder %s1741_s21, 1  ;;  %s1741_s21 = sphi %s1778_s21, %s17_s21  }
   0x2   : > { %p216_p1 = scmp.lt.s32.totalorder %s1741_s21, 3 }
   0x4   : > { %p217_p2 = pnand %p1445_p0, %p216_p1 }
   0x5   : > { %s1446_s23 = sshll.u32 (!%p217_p2), %s1441_s22, 5 }
   0x6   : > { %220 = sbr.rel (%p217_p2) target bundleno = 593 (0x251), region = 40  ;;  %p252_p3 = scmp.lt.s32.totalorder (!%p217_p2), %s1446_s23, 63 }
   0xb   : > { %s2465_s23 = smov (!%p252_p3, %s1446_s23), 63  ;;  %vm304_vm0 = vcmask 261120   ;;  %vm926_vm1 = vcmask 257024  }
   0xc   : > { %s1447_s24 = sshll.u32 %s2465_s23, 3  ;;  %s1449_s12 = sshll.u32 %s2465_s23, 2 }
   0xd   : > { %s1792_s27 = scalar_lea.vmem %s2457_s0, %s1447_s24  ;;  %s2173_s15 = scalar_lea.vmem %s2463_s6, %s1449_s12 }
   0xe   : > { %v1795_v0 = vld [vmem:[%s1792_s27] sm:$0xff]  ;;  %v1801_v2 = vld [vmem:[%s1792_s27 + $0x8] sm:$0xff]  ;;  %v1815_v8 = vld [vmem:[%s1792_s27 + $0x10] sm:$0xff]  ;;  %s2357_s20 = scalar_lea.vmem %s2462_s5, %s1449_s12 }
   0xf   : > { %v1798_v1 = vld [vmem:[%s1792_s27 + $0x80] sm:$0xff]  ;;  %v305_v3 = vsel %vm304_vm0, %v1795_v0, 0.0  ;;  %v1808_v5 = vld [vmem:[%s1792_s27 + $0x88] sm:$0xff]  ;;  %v308_v6 = vsel %vm304_vm0, %v1801_v2, 0.0  ;;  %v1818_v9 = vld [vmem:[%s1792_s27 + $0x18] sm:$0xff]  ;;  %v311_v10 = vsel %vm304_vm0, %v1815_v8, 0.0 }
  0x10   : > { %v353_v4 = vsel %vm304_vm0, %v1798_v1, 0.0  ;;  %306 = vadd.xlane.f32.xlu0 %v305_v3  ;;  %v356_v7 = vsel %vm304_vm0, %v1808_v5, 0.0  ;;  %v314_v11 = vsel %vm304_vm0, %v1818_v9, 0.0  ;;  %v1825_v12 = vld [vmem:[%s1792_s27 + $0x90] sm:$0xff]  ;;  %v1828_v13 = vld [vmem:[%s1792_s27 + $0x98] sm:$0xff]  ;;  %v1835_v16 = vld [vmem:[%s1792_s27 + $0x20] sm:$0xff] }
  0x11   : > { %354 = vadd.xlane.f32.xlu1 %v353_v4  ;;  %v359_v14 = vsel %vm304_vm0, %v1825_v12, 0.0  ;;  %v362_v15 = vsel %vm304_vm0, %v1828_v13, 0.0  ;;  %v1838_v17 = vld [vmem:[%s1792_s27 + $0x28] sm:$0xff]  ;;  %v317_v18 = vsel %vm304_vm0, %v1835_v16, 0.0  ;;  %v1845_v20 = vld [vmem:[%s1792_s27 + $0xa0] sm:$0xff]  ;;  %v1855_v24 = vld [vmem:[%s1792_s27 + $0x30] sm:$0xff] }
  0x12   : > { %v320_v19 = vsel %vm304_vm0, %v1838_v17, 0.0  ;;  %v1848_v21 = vld [vmem:[%s1792_s27 + $0xa8] sm:$0xff]  ;;  %v365_v22 = vsel %vm304_vm0, %v1845_v20, 0.0  ;;  %v1858_v25 = vld [vmem:[%s1792_s27 + $0x38] sm:$0xff]  ;;  %v323_v26 = vsel %vm304_vm0, %v1855_v24, 0.0  ;;  %v1865_v28 = vld [vmem:[%s1792_s27 + $0xb0] sm:$0xff] }
  0x13   : > { %v368_v23 = vsel %vm304_vm0, %v1848_v21, 0.0  ;;  %v326_v27 = vsel %vm304_vm0, %v1858_v25, 0.0  ;;  %v1868_v29 = vld [vmem:[%s1792_s27 + $0xb8] sm:$0xff]  ;;  %v371_v30 = vsel %vm304_vm0, %v1865_v28, 0.0  ;;  %v1875_v32 = vld [vmem:[%s1792_s27 + $0x40] sm:$0xff]  ;;  %v1878_v33 = vld [vmem:[%s1792_s27 + $0x48] sm:$0xff] }
  0x14   : > { %309 = vadd.xlane.f32.xlu0 %v308_v6  ;;  %v374_v31 = vsel %vm304_vm0, %v1868_v29, 0.0  ;;  %v329_v34 = vsel %vm304_vm0, %v1875_v32, 0.0  ;;  %v332_v35 = vsel %vm304_vm0, %v1878_v33, 0.0  ;;  %v1885_v36 = vld [vmem:[%s1792_s27 + $0xc0] sm:$0xff]  ;;  %v1888_v37 = vld [vmem:[%s1792_s27 + $0xc8] sm:$0xff]  ;;  %v1895_v40 = vld [vmem:[%s1792_s27 + $0x50] sm:$0xff] }
  0x15   : > { %357 = vadd.xlane.f32.xlu1 %v356_v7  ;;  %v377_v38 = vsel %vm304_vm0, %v1885_v36, 0.0  ;;  %v380_v39 = vsel %vm304_vm0, %v1888_v37, 0.0  ;;  %v1898_v41 = vld [vmem:[%s1792_s27 + $0x58] sm:$0xff]  ;;  %v335_v42 = vsel %vm304_vm0, %v1895_v40, 0.0  ;;  %v1905_v44 = vld [vmem:[%s1792_s27 + $0xd0] sm:$0xff]  ;;  %v1915_v48 = vld [vmem:[%s1792_s27 + $0x60] sm:$0xff] }
  0x16   : > { %v338_v43 = vsel %vm304_vm0, %v1898_v41, 0.0  ;;  %v1908_v45 = vld [vmem:[%s1792_s27 + $0xd8] sm:$0xff]  ;;  %v383_v46 = vsel %vm304_vm0, %v1905_v44, 0.0  ;;  %v1918_v49 = vld [vmem:[%s1792_s27 + $0x68] sm:$0xff]  ;;  %v341_v50 = vsel %vm304_vm0, %v1915_v48, 0.0  ;;  %v1925_v52 = vld [vmem:[%s1792_s27 + $0xe0] sm:$0xff] }
  0x17   : > { %v386_v47 = vsel %vm304_vm0, %v1908_v45, 0.0  ;;  %v344_v51 = vsel %vm304_vm0, %v1918_v49, 0.0  ;;  %v1928_v53 = vld [vmem:[%s1792_s27 + $0xe8] sm:$0xff]  ;;  %v389_v54 = vsel %vm304_vm0, %v1925_v52, 0.0  ;;  %v1935_v56 = vld [vmem:[%s1792_s27 + $0x70] sm:$0xff]  ;;  %v1938_v57 = vld [vmem:[%s1792_s27 + $0x78] sm:$0xff] }
  0x18   : > { %312 = vadd.xlane.f32.xlu0 %v311_v10  ;;  %v392_v55 = vsel %vm304_vm0, %v1928_v53, 0.0  ;;  %v347_v58 = vsel %vm304_vm0, %v1935_v56, 0.0  ;;  %v350_v59 = vsel %vm304_vm0, %v1938_v57, 0.0  ;;  %v1945_v60 = vld [vmem:[%s1792_s27 + $0xf0] sm:$0xff]  ;;  %v1948_v61 = vld [vmem:[%s1792_s27 + $0xf8] sm:$0xff] }
  0x19   : > { %315 = vadd.xlane.f32.xlu1 %v314_v11  ;;  %v395_v62 = vsel %vm304_vm0, %v1945_v60, 0.0  ;;  %v398_v63 = vsel %vm304_vm0, %v1948_v61, 0.0 }
  0x1c   : > { %360 = vadd.xlane.f32.xlu0 %v359_v14 }
  0x1d   : > { %363 = vadd.xlane.f32.xlu1 %v362_v15 }
  0x20   : > { %318 = vadd.xlane.f32.xlu0 %v317_v18 }
  0x21   : > { %321 = vadd.xlane.f32.xlu1 %v320_v19 }
  0x24   : > { %366 = vadd.xlane.f32.xlu0 %v365_v22 }
  0x25   : > { %369 = vadd.xlane.f32.xlu1 %v368_v23 }
  0x28   : > { %324 = vadd.xlane.f32.xlu0 %v323_v26 }
  0x29   : > { %327 = vadd.xlane.f32.xlu1 %v326_v27 }
  0x2c   : > { %372 = vadd.xlane.f32.xlu0 %v371_v30 }
  0x2d   : > { %375 = vadd.xlane.f32.xlu1 %v374_v31 }
  0x30   : > { %330 = vadd.xlane.f32.xlu0 %v329_v34 }
  0x31   : > { %333 = vadd.xlane.f32.xlu1 %v332_v35 }
  0x34   : > { %378 = vadd.xlane.f32.xlu0 %v377_v38 }
  0x35   : > { %381 = vadd.xlane.f32.xlu1 %v380_v39 }
  0x38   : > { %336 = vadd.xlane.f32.xlu0 %v335_v42 }
  0x39   : > { %339 = vadd.xlane.f32.xlu1 %v338_v43 }
  0x3c   : > { %384 = vadd.xlane.f32.xlu0 %v383_v46 }
  0x3d   : > { %387 = vadd.xlane.f32.xlu1 %v386_v47 }
  0x40   : > { %342 = vadd.xlane.f32.xlu0 %v341_v50 }
  0x41   : > { %345 = vadd.xlane.f32.xlu1 %v344_v51 }
  0x44   : > { %390 = vadd.xlane.f32.xlu0 %v389_v54 }
  0x45   : > { %393 = vadd.xlane.f32.xlu1 %v392_v55 }
  0x48   : > { %348 = vadd.xlane.f32.xlu0 %v347_v58 }
  0x49   : > { %351 = vadd.xlane.f32.xlu1 %v350_v59 }
  0x4c   : > { %396 = vadd.xlane.f32.xlu0 %v395_v62 }
  0x4d   : > { %399 = vadd.xlane.f32.xlu1 %v398_v63 }
  0x99   : > { %v307_v3 = vpop.xlane.xlu0 %306 }
  0x9a   : > { %v355_v4 = vpop.xlane.xlu1 %354  ;;  %v402_v6 = vmul.f32 0.03125, %v307_v3 }
  0x9b   : > { %v418_v7 = vmul.f32 0.03125, %v355_v4 }
  0x9c   : > { %v1955_v10 = vsub.f32 %v1795_v0, %v402_v6 }
  0x9d   : > { %v1958_v11 = vsub.f32 %v1798_v1, %v418_v7  ;;  %v310_v14 = vpop.xlane.xlu0 %309 }
  0x9e   : > { %v358_v15 = vpop.xlane.xlu1 %357  ;;  %v403_v18 = vmul.f32 0.03125, %v310_v14  ;;  %v466_v22 = vmul.f32 %v1955_v10, %v1955_v10 }
  0x9f   : > { %v419_v19 = vmul.f32 0.03125, %v358_v15  ;;  %v482_v23 = vmul.f32 %v1958_v11, %v1958_v11 }
  0xa0   : > { %v1965_v26 = vsub.f32 %v1801_v2, %v403_v18  ;;  %v498_v0 = vsel %vm304_vm0, %v466_v22, 0.0 }
  0xa1   : > { %v1968_v27 = vsub.f32 %v1808_v5, %v419_v19  ;;  %499 = vadd.xlane.f32.xlu0 %v498_v0  ;;  %v313_v1 = vpop.xlane.xlu0 %312  ;;  %v546_v31 = vsel %vm304_vm0, %v482_v23, 0.0 }
  0xa2   : > { %v316_v30 = vpop.xlane.xlu1 %315  ;;  %v404_v34 = vmul.f32 0.03125, %v313_v1  ;;  %v467_v38 = vmul.f32 %v1965_v26, %v1965_v26 }
  0xa3   : > { %v405_v35 = vmul.f32 0.03125, %v316_v30  ;;  %v483_v39 = vmul.f32 %v1968_v27, %v1968_v27 }
  0xa4   : > { %v1977_v2 = vsub.f32 %v1815_v8, %v404_v34  ;;  %v501_v42 = vsel %vm304_vm0, %v467_v38, 0.0 }
  0xa5   : > { %v1980_v5 = vsub.f32 %v1818_v9, %v405_v35  ;;  %547 = vadd.xlane.f32.xlu0 %v546_v31  ;;  %502 = vadd.xlane.f32.xlu1 %v501_v42  ;;  %v361_v43 = vpop.xlane.xlu0 %360  ;;  %v549_v47 = vsel %vm304_vm0, %v483_v39, 0.0 }
  0xa6   : > { %v364_v46 = vpop.xlane.xlu1 %363  ;;  %v420_v50 = vmul.f32 0.03125, %v361_v43  ;;  %v468_v54 = vmul.f32 %v1977_v2, %v1977_v2 }
  0xa7   : > { %v421_v51 = vmul.f32 0.03125, %v364_v46  ;;  %v469_v8 = vmul.f32 %v1980_v5, %v1980_v5 }
  0xa8   : > { %v1989_v55 = vsub.f32 %v1825_v12, %v420_v50  ;;  %v504_v58 = vsel %vm304_vm0, %v468_v54, 0.0 }
  0xa9   : > { %v1992_v9 = vsub.f32 %v1828_v13, %v421_v51  ;;  %550 = vadd.xlane.f32.xlu1 %v549_v47  ;;  %505 = vadd.xlane.f32.xlu0 %v504_v58  ;;  %v319_v59 = vpop.xlane.xlu0 %318  ;;  %v507_v63 = vsel %vm304_vm0, %v469_v8, 0.0 }
  0xaa   : > { %v322_v62 = vpop.xlane.xlu1 %321  ;;  %v406_v3 = vmul.f32 0.03125, %v319_v59  ;;  %v484_v6 = vmul.f32 %v1989_v55, %v1989_v55 }
  0xab   : > { %v407_v4 = vmul.f32 0.03125, %v322_v62  ;;  %v485_v12 = vmul.f32 %v1992_v9, %v1992_v9 }
  0xac   : > { %v2001_v7 = vsub.f32 %v1835_v16, %v406_v3  ;;  %v552_v14 = vsel %vm304_vm0, %v484_v6, 0.0 }
  0xad   : > { %v2004_v13 = vsub.f32 %v1838_v17, %v407_v4  ;;  %508 = vadd.xlane.f32.xlu1 %v507_v63  ;;  %553 = vadd.xlane.f32.xlu0 %v552_v14  ;;  %v367_v15 = vpop.xlane.xlu0 %366  ;;  %v555_v19 = vsel %vm304_vm0, %v485_v12, 0.0 }
  0xae   : > { %v370_v18 = vpop.xlane.xlu1 %369  ;;  %v422_v22 = vmul.f32 0.03125, %v367_v15  ;;  %v470_v0 = vmul.f32 %v2001_v7, %v2001_v7 }
  0xaf   : > { %v423_v23 = vmul.f32 0.03125, %v370_v18  ;;  %v471_v16 = vmul.f32 %v2004_v13, %v2004_v13 }
  0xb0   : > { %v2013_v1 = vsub.f32 %v1845_v20, %v422_v22  ;;  %v510_v30 = vsel %vm304_vm0, %v470_v0, 0.0 }
  0xb1   : > { %v2016_v17 = vsub.f32 %v1848_v21, %v423_v23  ;;  %556 = vadd.xlane.f32.xlu1 %v555_v19  ;;  %511 = vadd.xlane.f32.xlu0 %v510_v30  ;;  %v325_v31 = vpop.xlane.xlu0 %324  ;;  %v513_v35 = vsel %vm304_vm0, %v471_v16, 0.0 }
  0xb2   : > { %v328_v34 = vpop.xlane.xlu1 %327  ;;  %v408_v38 = vmul.f32 0.03125, %v325_v31  ;;  %v486_v42 = vmul.f32 %v2013_v1, %v2013_v1 }
  0xb3   : > { %v409_v39 = vmul.f32 0.03125, %v328_v34  ;;  %v487_v20 = vmul.f32 %v2016_v17, %v2016_v17 }
  0xb4   : > { %v2025_v43 = vsub.f32 %v1855_v24, %v408_v38  ;;  %v558_v46 = vsel %vm304_vm0, %v486_v42, 0.0 }
  0xb5   : > { %v2028_v21 = vsub.f32 %v1858_v25, %v409_v39  ;;  %514 = vadd.xlane.f32.xlu1 %v513_v35  ;;  %559 = vadd.xlane.f32.xlu0 %v558_v46  ;;  %v373_v47 = vpop.xlane.xlu0 %372  ;;  %v561_v51 = vsel %vm304_vm0, %v487_v20, 0.0 }
  0xb6   : > { %v376_v50 = vpop.xlane.xlu1 %375  ;;  %v424_v54 = vmul.f32 0.03125, %v373_v47  ;;  %v472_v58 = vmul.f32 %v2025_v43, %v2025_v43 }
  0xb7   : > { %v425_v8 = vmul.f32 0.03125, %v376_v50  ;;  %v473_v24 = vmul.f32 %v2028_v21, %v2028_v21 }
  0xb8   : > { %v2037_v59 = vsub.f32 %v1865_v28, %v424_v54  ;;  %v516_v62 = vsel %vm304_vm0, %v472_v58, 0.0 }
  0xb9   : > { %v2040_v25 = vsub.f32 %v1868_v29, %v425_v8  ;;  %562 = vadd.xlane.f32.xlu1 %v561_v51  ;;  %517 = vadd.xlane.f32.xlu0 %v516_v62  ;;  %v331_v63 = vpop.xlane.xlu0 %330  ;;  %v519_v4 = vsel %vm304_vm0, %v473_v24, 0.0 }
  0xba   : > { %v334_v3 = vpop.xlane.xlu1 %333  ;;  %v410_v6 = vmul.f32 0.03125, %v331_v63  ;;  %v488_v14 = vmul.f32 %v2037_v59, %v2037_v59 }
  0xbb   : > { %v411_v12 = vmul.f32 0.03125, %v334_v3  ;;  %v489_v28 = vmul.f32 %v2040_v25, %v2040_v25 }
  0xbc   : > { %v2049_v15 = vsub.f32 %v1875_v32, %v410_v6  ;;  %v564_v18 = vsel %vm304_vm0, %v488_v14, 0.0 }
  0xbd   : > { %v2052_v29 = vsub.f32 %v1878_v33, %v411_v12  ;;  %520 = vadd.xlane.f32.xlu1 %v519_v4  ;;  %565 = vadd.xlane.f32.xlu0 %v564_v18  ;;  %v379_v19 = vpop.xlane.xlu0 %378  ;;  %v567_v23 = vsel %vm304_vm0, %v489_v28, 0.0  ;;  %v1669_v4 = vld [vmem:[%s2460_s3 + $0x8] sm:$0xff]  }
  0xbe   : > { %v382_v22 = vpop.xlane.xlu1 %381  ;;  %v426_v0 = vmul.f32 0.03125, %v379_v19  ;;  %v474_v30 = vmul.f32 %v2049_v15, %v2049_v15  ;;  %1621 = vmatprep.subr.bf16.mxu0 %v1669_v4  ;;  %1657 = vmatprep.subr.bf16.mxu1 %v1669_v4 }
  0xbf   : > { %v427_v16 = vmul.f32 0.03125, %v382_v22  ;;  %v475_v32 = vmul.f32 %v2052_v29, %v2052_v29  ;;  %1622 = vmatpush3.bf16.msra.mxu0 %v1669_v4  ;;  %1659 = vmatpush3.bf16.msra.mxu1 %v1669_v4 }
  0xc0   : > { %v2061_v31 = vsub.f32 %v1885_v36, %v426_v0  ;;  %v522_v34 = vsel %vm304_vm0, %v474_v30, 0.0  ;;  %v1670_v0 = vld [vmem:[%s2460_s3] sm:$0xff]  }
  0xc1   : > { %v2064_v33 = vsub.f32 %v1888_v37, %v427_v16  ;;  %568 = vadd.xlane.f32.xlu1 %v567_v23  ;;  %523 = vadd.xlane.f32.xlu0 %v522_v34  ;;  %v337_v35 = vpop.xlane.xlu0 %336  ;;  %v525_v39 = vsel %vm304_vm0, %v475_v32, 0.0 }
  0xc2   : > { %v340_v38 = vpop.xlane.xlu1 %339  ;;  %v412_v42 = vmul.f32 0.03125, %v337_v35  ;;  %v490_v46 = vmul.f32 %v2061_v31, %v2061_v31  ;;  %1623 = vmatprep.subr.bf16.mxu0 %v1670_v0  ;;  %1658 = vmatprep.subr.bf16.mxu1 %v1670_v0 }
  0xc3   : > { %v413_v20 = vmul.f32 0.03125, %v340_v38  ;;  %v491_v36 = vmul.f32 %v2064_v33, %v2064_v33  ;;  %1624 = vmatpush3.bf16.msra.mxu0 %v1670_v0  ;;  %1660 = vmatpush3.bf16.msra.mxu1 %v1670_v0 }
  0xc4   : > { %v2073_v47 = vsub.f32 %v1895_v40, %v412_v42  ;;  %v570_v50 = vsel %vm304_vm0, %v490_v46, 0.0 }
  0xc5   : > { %v2076_v37 = vsub.f32 %v1898_v41, %v413_v20  ;;  %526 = vadd.xlane.f32.xlu1 %v525_v39  ;;  %571 = vadd.xlane.f32.xlu0 %v570_v50  ;;  %v385_v51 = vpop.xlane.xlu0 %384  ;;  %v573_v8 = vsel %vm304_vm0, %v491_v36, 0.0 }
  0xc6   : > { %v388_v54 = vpop.xlane.xlu1 %387  ;;  %v428_v58 = vmul.f32 0.03125, %v385_v51  ;;  %v476_v62 = vmul.f32 %v2073_v47, %v2073_v47 }
  0xc7   : > { %v429_v24 = vmul.f32 0.03125, %v388_v54  ;;  %v477_v40 = vmul.f32 %v2076_v37, %v2076_v37 }
  0xc8   : > { %v2085_v63 = vsub.f32 %v1905_v44, %v428_v58  ;;  %v528_v3 = vsel %vm304_vm0, %v476_v62, 0.0 }
  0xc9   : > { %v2088_v41 = vsub.f32 %v1908_v45, %v429_v24  ;;  %574 = vadd.xlane.f32.xlu1 %v573_v8  ;;  %529 = vadd.xlane.f32.xlu0 %v528_v3  ;;  %v343_v6 = vpop.xlane.xlu0 %342  ;;  %v531_v14 = vsel %vm304_vm0, %v477_v40, 0.0 }
  0xca   : > { %v346_v12 = vpop.xlane.xlu1 %345  ;;  %v414_v28 = vmul.f32 0.03125, %v343_v6  ;;  %v492_v44 = vmul.f32 %v2085_v63, %v2085_v63 }
  0xcb   : > { %v415_v18 = vmul.f32 0.03125, %v346_v12  ;;  %v493_v45 = vmul.f32 %v2088_v41, %v2088_v41 }
  0xcc   : > { %v2100_v19 = vsub.f32 %v1915_v48, %v414_v28  ;;  %v576_v23 = vsel %vm304_vm0, %v492_v44, 0.0 }
  0xcd   : > { %v2103_v22 = vsub.f32 %v1918_v49, %v415_v18  ;;  %532 = vadd.xlane.f32.xlu1 %v531_v14  ;;  %577 = vadd.xlane.f32.xlu0 %v576_v23  ;;  %v391_v16 = vpop.xlane.xlu0 %390  ;;  %v579_v32 = vsel %vm304_vm0, %v493_v45, 0.0 }
  0xce   : > { %v394_v30 = vpop.xlane.xlu1 %393  ;;  %v430_v34 = vmul.f32 0.03125, %v391_v16  ;;  %v478_v48 = vmul.f32 %v2100_v19, %v2100_v19 }
  0xcf   : > { %v431_v35 = vmul.f32 0.03125, %v394_v30  ;;  %v479_v49 = vmul.f32 %v2103_v22, %v2103_v22 }
  0xd0   : > { %v2115_v38 = vsub.f32 %v1925_v52, %v430_v34  ;;  %v534_v42 = vsel %vm304_vm0, %v478_v48, 0.0 }
  0xd1   : > { %v2118_v39 = vsub.f32 %v1928_v53, %v431_v35  ;;  %580 = vadd.xlane.f32.xlu1 %v579_v32  ;;  %535 = vadd.xlane.f32.xlu0 %v534_v42  ;;  %v349_v20 = vpop.xlane.xlu0 %348  ;;  %v537_v36 = vsel %vm304_vm0, %v479_v49, 0.0 }
  0xd2   : > { %v352_v46 = vpop.xlane.xlu1 %351  ;;  %v416_v50 = vmul.f32 0.03125, %v349_v20  ;;  %v494_v54 = vmul.f32 %v2115_v38, %v2115_v38 }
  0xd3   : > { %v417_v51 = vmul.f32 0.03125, %v352_v46  ;;  %v495_v52 = vmul.f32 %v2118_v39, %v2118_v39 }
  0xd4   : > { %v2127_v8 = vsub.f32 %v1935_v56, %v416_v50  ;;  %v582_v58 = vsel %vm304_vm0, %v494_v54, 0.0 }
  0xd5   : > { %v2130_v53 = vsub.f32 %v1938_v57, %v417_v51  ;;  %538 = vadd.xlane.f32.xlu1 %v537_v36  ;;  %583 = vadd.xlane.f32.xlu0 %v582_v58  ;;  %v397_v24 = vpop.xlane.xlu0 %396  ;;  %v585_v40 = vsel %vm304_vm0, %v495_v52, 0.0 }
  0xd6   : > { %v400_v62 = vpop.xlane.xlu1 %399  ;;  %v432_v3 = vmul.f32 0.03125, %v397_v24  ;;  %v480_v6 = vmul.f32 %v2127_v8, %v2127_v8 }
  0xd7   : > { %v433_v4 = vmul.f32 0.03125, %v400_v62  ;;  %v481_v56 = vmul.f32 %v2130_v53, %v2130_v53 }
  0xd8   : > { %v2139_v12 = vsub.f32 %v1945_v60, %v432_v3  ;;  %v540_v14 = vsel %vm304_vm0, %v480_v6, 0.0 }
  0xd9   : > { %v2142_v57 = vsub.f32 %v1948_v61, %v433_v4  ;;  %586 = vadd.xlane.f32.xlu1 %v585_v40  ;;  %541 = vadd.xlane.f32.xlu0 %v540_v14  ;;  %v543_v28 = vsel %vm304_vm0, %v481_v56, 0.0  ;;  %v2155_v14 = vld [vmem:[%s2458_s1] ss:$0 sm:$0xff] }
  0xda   : > { %v496_v18 = vmul.f32 %v2139_v12, %v2139_v12 }
  0xdb   : > { %v497_v44 = vmul.f32 %v2142_v57, %v2142_v57 }
  0xdc   : > { %v588_v45 = vsel %vm304_vm0, %v496_v18, 0.0 }
  0xdd   : > { %544 = vadd.xlane.f32.xlu1 %v543_v28  ;;  %589 = vadd.xlane.f32.xlu0 %v588_v45  ;;  %v591_v60 = vsel %vm304_vm0, %v497_v44, 0.0 }
  0xe1   : > { %592 = vadd.xlane.f32.xlu1 %v591_v60 }
 0x12a   : > { %v500_v61 = vpop.xlane.xlu0 %499 }
 0x12b   : > { %v594_v23 = vmul.f32 0.03125, %v500_v61  ;;  %v2161_v61 = vld [vmem:[%s2459_s2] ss:$0 sm:$0xff] }
 0x12d   : > { %v626_v0 = vadd.f32 1e-05, %v594_v23 }
 0x12e   : > { %v503_v16 = vpop.xlane.xlu1 %502  ;;  %v548_v30 = vpop.xlane.xlu0 %547 }
 0x12f   : > { %1671 = vrsqrt.f32 %v626_v0  ;;  %v595_v32 = vmul.f32 0.03125, %v503_v16  ;;  %v610_v34 = vmul.f32 0.03125, %v548_v30 }
 0x131   : > { %v627_v35 = vadd.f32 1e-05, %v595_v32  ;;  %v642_v48 = vadd.f32 1e-05, %v610_v34 }
 0x132   : > { %v551_v49 = vpop.xlane.xlu1 %550  ;;  %v506_v42 = vpop.xlane.xlu0 %505 }
 0x133   : > { %1673 = vrsqrt.f32 %v627_v35  ;;  %v611_v20 = vmul.f32 0.03125, %v551_v49  ;;  %v596_v46 = vmul.f32 0.03125, %v506_v42 }
 0x134   : > { %1675 = vrsqrt.f32 %v642_v48 }
 0x135   : > { %v643_v36 = vadd.f32 1e-05, %v611_v20  ;;  %v628_v50 = vadd.f32 1e-05, %v596_v46 }
 0x136   : > { %v509_v51 = vpop.xlane.xlu1 %508  ;;  %v554_v54 = vpop.xlane.xlu0 %553 }
 0x137   : > { %1677 = vrsqrt.f32 %v643_v36  ;;  %v597_v52 = vmul.f32 0.03125, %v509_v51  ;;  %v612_v58 = vmul.f32 0.03125, %v554_v54 }
 0x138   : > { %1679 = vrsqrt.f32 %v628_v50 }
 0x139   : > { %v629_v24 = vadd.f32 1e-05, %v597_v52  ;;  %v644_v62 = vadd.f32 1e-05, %v612_v58 }
 0x13a   : > { %v557_v40 = vpop.xlane.xlu1 %556  ;;  %v512_v3 = vpop.xlane.xlu0 %511 }
 0x13b   : > { %1681 = vrsqrt.f32 %v629_v24  ;;  %v613_v4 = vmul.f32 0.03125, %v557_v40  ;;  %v598_v6 = vmul.f32 0.03125, %v512_v3 }
 0x13c   : > { %v1672_v56 = vpop.eup %1671  ;;  %1683 = vrsqrt.f32 %v644_v62 }
 0x13d   : > { %v645_v28 = vadd.f32 1e-05, %v613_v4  ;;  %v630_v18 = vadd.f32 1e-05, %v598_v6  ;;  %v690_v44 = vmul.f32 %v1672_v56, %v1955_v10 }
 0x13e   : > { %v515_v45 = vpop.xlane.xlu1 %514  ;;  %v560_v60 = vpop.xlane.xlu0 %559 }
 0x13f   : > { %1685 = vrsqrt.f32 %v645_v28  ;;  %v599_v23 = vmul.f32 0.03125, %v515_v45  ;;  %v614_v0 = vmul.f32 0.03125, %v560_v60  ;;  %v728_v16 = vmul.f32 %v2155_v14, %v690_v44 }
 0x140   : > { %v1674_v30 = vpop.eup %1673  ;;  %1687 = vrsqrt.f32 %v630_v18 }
 0x141   : > { %v1676_v32 = vpop.eup %1675  ;;  %v631_v34 = vadd.f32 1e-05, %v599_v23  ;;  %v646_v35 = vadd.f32 1e-05, %v614_v0  ;;  %v691_v10 = vmul.f32 %v1674_v30, %v1965_v26  ;;  %v766_v48 = vadd.f32 %v2161_v61, %v728_v16 }
 0x142   : > { %v563_v49 = vpop.xlane.xlu1 %562  ;;  %v518_v42 = vpop.xlane.xlu0 %517  ;;  %v706_v20 = vmul.f32 %v1676_v32, %v1958_v11 }
 0x143   : > { %1689 = vrsqrt.f32 %v631_v34  ;;  %v615_v46 = vmul.f32 0.03125, %v563_v49  ;;  %v600_v36 = vmul.f32 0.03125, %v518_v42  ;;  %v729_v50 = vmul.f32 %v2155_v14, %v691_v10 }
 0x144   : > { %v1678_v26 = vpop.eup %1677  ;;  %1691 = vrsqrt.f32 %v646_v35  ;;  %v1539_v51 = vpack.c.bf16 %v766_v48, %v766_v48  ;;  %v744_v54 = vmul.f32 %v2155_v14, %v706_v20 }
 0x145   : > { %v1680_v52 = vpop.eup %1679  ;;  %v647_v58 = vadd.f32 1e-05, %v615_v46  ;;  %v632_v11 = vadd.f32 1e-05, %v600_v36  ;;  %v767_v24 = vadd.f32 %v2161_v61, %v729_v50  ;;  %v707_v62 = vmul.f32 %v1678_v26, %v1968_v27 }
 0x146   : > { %v521_v40 = vpop.xlane.xlu1 %520  ;;  %v566_v3 = vpop.xlane.xlu0 %565  ;;  %927 = vst.msk [vmem:[%s2173_s15] sm:$0xf] %vm926_vm1, %v1539_v51  ;;  %v782_v4 = vadd.f32 %v2161_v61, %v744_v54  ;;  %v692_v6 = vmul.f32 %v1680_v52, %v1977_v2 }
 0x147   : > { %1693 = vrsqrt.f32 %v647_v58  ;;  %v601_v56 = vmul.f32 0.03125, %v521_v40  ;;  %v616_v28 = vmul.f32 0.03125, %v566_v3  ;;  %v798_v18 = vpack.c.bf16 %v767_v24, %v766_v48 }
 0x148   : > { %v1682_v44 = vpop.eup %1681  ;;  %1695 = vrsqrt.f32 %v632_v11  ;;  %v1540_v45 = vpack.c.bf16 %v767_v24, %v767_v24  ;;  %v745_v60 = vmul.f32 %v2155_v14, %v707_v62  ;;  %v1555_v27 = vpack.c.bf16 %v782_v4, %v782_v4 }
 0x149   : > { %v1684_v23 = vpop.eup %1683  ;;  %v633_v0 = vadd.f32 1e-05, %v601_v56  ;;  %v648_v16 = vadd.f32 1e-05, %v616_v28  ;;  %1625 = vmatprep.mubr.msk.bf16.mxu0 %vm304_vm0, %v798_v18  ;;  %v693_v30 = vmul.f32 %v1682_v44, %v1980_v5  ;;  %v730_v2 = vmul.f32 %v2155_v14, %v692_v6 }
 0x14a   : > { %928 = vst.msk [vmem:[%s2173_s15 + $0x4] sm:$0xf] %vm926_vm1, %v1540_v45  ;;  %v569_v32 = vpop.xlane.xlu1 %568  ;;  %v524_v34 = vpop.xlane.xlu0 %523  ;;  %v783_v35 = vadd.f32 %v2161_v61, %v745_v60  ;;  %943 = vst.msk [vmem:[%s2173_s15 + $0x40] sm:$0xf] %vm926_vm1, %v1555_v27  ;;  %v708_v10 = vmul.f32 %v1684_v23, %v1989_v55 }
 0x14b   : > { %1697 = vrsqrt.f32 %v633_v0  ;;  %v617_v48 = vmul.f32 0.03125, %v569_v32  ;;  %v602_v49 = vmul.f32 0.03125, %v524_v34  ;;  %v731_v42 = vmul.f32 %v2155_v14, %v693_v30 }
 0x14c   : > { %v1686_v20 = vpop.eup %1685  ;;  %1699 = vrsqrt.f32 %v648_v16  ;;  %v806_v5 = vpack.c.bf16 %v783_v35, %v782_v4  ;;  %v1556_v46 = vpack.c.bf16 %v783_v35, %v783_v35  ;;  %v768_v36 = vadd.f32 %v2161_v61, %v730_v2 }
 0x14d   : > { %v1688_v50 = vpop.eup %1687  ;;  %v649_v26 = vadd.f32 1e-05, %v617_v48  ;;  %v634_v51 = vadd.f32 1e-05, %v602_v49  ;;  %v769_v54 = vadd.f32 %v2161_v61, %v731_v42  ;;  %v709_v52 = vmul.f32 %v1686_v20, %v1992_v9 }
 0x14e   : > { %944 = vst.msk [vmem:[%s2173_s15 + $0x44] sm:$0xf] %vm926_vm1, %v1556_v46  ;;  %1641 = vmatprep.mubr.msk.bf16.mxu1 %vm304_vm0, %v806_v5  ;;  %v527_v55 = vpop.xlane.xlu1 %526  ;;  %v572_v58 = vpop.xlane.xlu0 %571  ;;  %v1541_v11 = vpack.c.bf16 %v768_v36, %v768_v36  ;;  %v746_v24 = vmul.f32 %v2155_v14, %v708_v10  ;;  %v694_v62 = vmul.f32 %v1688_v50, %v2001_v7 }
 0x14f   : > { %1701 = vrsqrt.f32 %v649_v26  ;;  %v603_v40 = vmul.f32 0.03125, %v527_v55  ;;  %v618_v3 = vmul.f32 0.03125, %v572_v58  ;;  %v799_v4 = vpack.c.bf16 %v769_v54, %v768_v36 }
 0x150   : > { %v1690_v6 = vpop.eup %1689  ;;  %1703 = vrsqrt.f32 %v634_v51  ;;  %v1542_v56 = vpack.c.bf16 %v769_v54, %v769_v54  ;;  %929 = vst.msk [vmem:[%s2173_s15 + $0x8] sm:$0xf] %vm926_vm1, %v1541_v11  ;;  %v747_v9 = vmul.f32 %v2155_v14, %v709_v52  ;;  %v784_v28 = vadd.f32 %v2161_v61, %v746_v24 }
 0x151   : > { %v1692_v18 = vpop.eup %1691  ;;  %v635_v44 = vadd.f32 1e-05, %v603_v40  ;;  %v650_v45 = vadd.f32 1e-05, %v618_v3  ;;  %1626 = vmatmul.mubr.msk.bf16.vlgmr.msra.gmra.mxu0 %vm304_vm0, %v799_v4  ;;  %v695_v7 = vmul.f32 %v1690_v6, %v2004_v13  ;;  %v732_v60 = vmul.f32 %v2155_v14, %v694_v62 }
 0x152   : > { %930 = vst.msk [vmem:[%s2173_s15 + $0xc] sm:$0xf] %vm926_vm1, %v1542_v56  ;;  %v575_v27 = vpop.xlane.xlu1 %574  ;;  %v530_v23 = vpop.xlane.xlu0 %529  ;;  %v785_v0 = vadd.f32 %v2161_v61, %v747_v9  ;;  %v1557_v16 = vpack.c.bf16 %v784_v28, %v784_v28  ;;  %v710_v30 = vmul.f32 %v1692_v18, %v2013_v1 }
 0x153   : > { %1705 = vrsqrt.f32 %v635_v44  ;;  %v619_v2 = vmul.f32 0.03125, %v575_v27  ;;  %v604_v32 = vmul.f32 0.03125, %v530_v23  ;;  %v733_v34 = vmul.f32 %v2155_v14, %v695_v7 }
 0x154   : > { %v1694_v35 = vpop.eup %1693  ;;  %1707 = vrsqrt.f32 %v650_v45  ;;  %v807_v13 = vpack.c.bf16 %v785_v0, %v784_v28  ;;  %v1558_v10 = vpack.c.bf16 %v785_v0, %v785_v0  ;;  %945 = vst.msk [vmem:[%s2173_s15 + $0x48] sm:$0xf] %vm926_vm1, %v1557_v16  ;;  %v770_v48 = vadd.f32 %v2161_v61, %v732_v60 }
 0x155   : > { %v1696_v49 = vpop.eup %1695  ;;  %v651_v42 = vadd.f32 1e-05, %v619_v2  ;;  %v636_v20 = vadd.f32 1e-05, %v604_v32  ;;  %v771_v5 = vadd.f32 %v2161_v61, %v733_v34  ;;  %v711_v1 = vmul.f32 %v1694_v35, %v2016_v17 }
 0x156   : > { %946 = vst.msk [vmem:[%s2173_s15 + $0x4c] sm:$0xf] %vm926_vm1, %v1558_v10  ;;  %1642 = vmatmul.mubr.msk.bf16.vlgmr.msra.gmra.mxu1 %vm304_vm0, %v807_v13  ;;  %v533_v46 = vpop.xlane.xlu1 %532  ;;  %v578_v36 = vpop.xlane.xlu0 %577  ;;  %v1543_v50 = vpack.c.bf16 %v770_v48, %v770_v48  ;;  %v748_v26 = vmul.f32 %v2155_v14, %v710_v30  ;;  %v696_v51 = vmul.f32 %v1696_v49, %v2025_v43 }
 0x157   : > { %1709 = vrsqrt.f32 %v651_v42  ;;  %v605_v54 = vmul.f32 0.03125, %v533_v46  ;;  %v620_v52 = vmul.f32 0.03125, %v578_v36  ;;  %v800_v55 = vpack.c.bf16 %v771_v5, %v770_v48 }
 0x158   : > { %v1698_v58 = vpop.eup %1697  ;;  %1711 = vrsqrt.f32 %v636_v20  ;;  %v1544_v11 = vpack.c.bf16 %v771_v5, %v771_v5  ;;  %931 = vst.msk [vmem:[%s2173_s15 + $0x10] sm:$0xf] %vm926_vm1, %v1543_v50  ;;  %v749_v17 = vmul.f32 %v2155_v14, %v711_v1  ;;  %v786_v24 = vadd.f32 %v2161_v61, %v748_v26 }
 0x159   : > { %v1700_v62 = vpop.eup %1699  ;;  %v637_v40 = vadd.f32 1e-05, %v605_v54  ;;  %v652_v3 = vadd.f32 1e-05, %v620_v52  ;;  %1629 = vmatprep.mubr.msk.bf16.mxu0 %vm304_vm0, %v800_v55  ;;  %v697_v43 = vmul.f32 %v1698_v58, %v2028_v21  ;;  %v734_v4 = vmul.f32 %v2155_v14, %v696_v51 }
 0x15a   : > { %932 = vst.msk [vmem:[%s2173_s15 + $0x14] sm:$0xf] %vm926_vm1, %v1544_v11  ;;  %v581_v6 = vpop.xlane.xlu1 %580  ;;  %v536_v56 = vpop.xlane.xlu0 %535  ;;  %v787_v9 = vadd.f32 %v2161_v61, %v749_v17  ;;  %v1559_v28 = vpack.c.bf16 %v786_v24, %v786_v24  ;;  %v712_v18 = vmul.f32 %v1700_v62, %v2037_v59 }
 0x15b   : > { %1713 = vrsqrt.f32 %v637_v40  ;;  %v621_v44 = vmul.f32 0.03125, %v581_v6  ;;  %v606_v45 = vmul.f32 0.03125, %v536_v56  ;;  %v735_v7 = vmul.f32 %v2155_v14, %v697_v43 }
 0x15c   : > { %v1702_v60 = vpop.eup %1701  ;;  %1715 = vrsqrt.f32 %v652_v3  ;;  %v808_v21 = vpack.c.bf16 %v787_v9, %v786_v24  ;;  %v1560_v27 = vpack.c.bf16 %v787_v9, %v787_v9  ;;  %947 = vst.msk [vmem:[%s2173_s15 + $0x50] sm:$0xf] %vm926_vm1, %v1559_v28  ;;  %v772_v23 = vadd.f32 %v2161_v61, %v734_v4 }
 0x15d   : > { %v1704_v0 = vpop.eup %1703  ;;  %v653_v16 = vadd.f32 1e-05, %v621_v44  ;;  %v638_v30 = vadd.f32 1e-05, %v606_v45  ;;  %v773_v2 = vadd.f32 %v2161_v61, %v735_v7  ;;  %v713_v59 = vmul.f32 %v1702_v60, %v2040_v25 }
 0x15e   : > { %948 = vst.msk [vmem:[%s2173_s15 + $0x54] sm:$0xf] %vm926_vm1, %v1560_v27  ;;  %1645 = vmatprep.mubr.msk.bf16.mxu1 %vm304_vm0, %v808_v21  ;;  %v539_v32 = vpop.xlane.xlu1 %538  ;;  %v584_v34 = vpop.xlane.xlu0 %583  ;;  %v1545_v35 = vpack.c.bf16 %v772_v23, %v772_v23  ;;  %v750_v13 = vmul.f32 %v2155_v14, %v712_v18  ;;  %v698_v10 = vmul.f32 %v1704_v0, %v2049_v15 }
 0x15f   : > { %1717 = vrsqrt.f32 %v653_v16  ;;  %v607_v48 = vmul.f32 0.03125, %v539_v32  ;;  %v622_v49 = vmul.f32 0.03125, %v584_v34  ;;  %v801_v42 = vpack.c.bf16 %v773_v2, %v772_v23 }
 0x160   : > { %v1706_v20 = vpop.eup %1705  ;;  %1719 = vrsqrt.f32 %v638_v30  ;;  %v1546_v5 = vpack.c.bf16 %v773_v2, %v773_v2  ;;  %933 = vst.msk [vmem:[%s2173_s15 + $0x18] sm:$0xf] %vm926_vm1, %v1545_v35  ;;  %v751_v25 = vmul.f32 %v2155_v14, %v713_v59  ;;  %v788_v1 = vadd.f32 %v2161_v61, %v750_v13 }
 0x161   : > { %v1708_v46 = vpop.eup %1707  ;;  %v639_v36 = vadd.f32 1e-05, %v607_v48  ;;  %v654_v50 = vadd.f32 1e-05, %v622_v49  ;;  %1630 = vmatmul.mubr.msk.bf16.gmra.mxu0 %vm304_vm0, %v801_v42  ;;  %v699_v15 = vmul.f32 %v1706_v20, %v2052_v29  ;;  %v736_v26 = vmul.f32 %v2155_v14, %v698_v10 }
 0x162   : > { %934 = vst.msk [vmem:[%s2173_s15 + $0x1c] sm:$0xf] %vm926_vm1, %v1546_v5  ;;  %v587_v51 = vpop.xlane.xlu1 %586  ;;  %v542_v54 = vpop.xlane.xlu0 %541  ;;  %v789_v52 = vadd.f32 %v2161_v61, %v751_v25  ;;  %v1561_v55 = vpack.c.bf16 %v788_v1, %v788_v1  ;;  %v714_v58 = vmul.f32 %v1708_v46, %v2061_v31 }
 0x163   : > { %1721 = vrsqrt.f32 %v639_v36  ;;  %v623_v11 = vmul.f32 0.03125, %v587_v51  ;;  %v608_v17 = vmul.f32 0.03125, %v542_v54  ;;  %v737_v24 = vmul.f32 %v2155_v14, %v699_v15 }
 0x164   : > { %v1710_v62 = vpop.eup %1709  ;;  %1723 = vrsqrt.f32 %v654_v50  ;;  %v809_v29 = vpack.c.bf16 %v789_v52, %v788_v1  ;;  %v1562_v40 = vpack.c.bf16 %v789_v52, %v789_v52  ;;  %949 = vst.msk [vmem:[%s2173_s15 + $0x58] sm:$0xf] %vm926_vm1, %v1561_v55  ;;  %v774_v3 = vadd.f32 %v2161_v61, %v736_v26 }
 0x165   : > { %v1712_v43 = vpop.eup %1711  ;;  %v655_v4 = vadd.f32 1e-05, %v623_v11  ;;  %v640_v6 = vadd.f32 1e-05, %v608_v17  ;;  %v775_v56 = vadd.f32 %v2161_v61, %v737_v24  ;;  %v715_v31 = vmul.f32 %v1710_v62, %v2064_v33 }
 0x166   : > { %950 = vst.msk [vmem:[%s2173_s15 + $0x5c] sm:$0xf] %vm926_vm1, %v1562_v40  ;;  %1646 = vmatmul.mubr.msk.bf16.gmra.mxu1 %vm304_vm0, %v809_v29  ;;  %v545_v9 = vpop.xlane.xlu1 %544  ;;  %v590_v28 = vpop.xlane.xlu0 %589  ;;  %v1547_v18 = vpack.c.bf16 %v774_v3, %v774_v3  ;;  %v752_v44 = vmul.f32 %v2155_v14, %v714_v58  ;;  %v700_v45 = vmul.f32 %v1712_v43, %v2073_v47 }
 0x167   : > { %1725 = vrsqrt.f32 %v655_v4  ;;  %v609_v7 = vmul.f32 0.03125, %v545_v9  ;;  %v624_v60 = vmul.f32 0.03125, %v590_v28  ;;  %v802_v21 = vpack.c.bf16 %v775_v56, %v774_v3 }
 0x168   : > { %v1714_v27 = vpop.eup %1713  ;;  %1727 = vrsqrt.f32 %v640_v6  ;;  %v1548_v23 = vpack.c.bf16 %v775_v56, %v775_v56  ;;  %935 = vst.msk [vmem:[%s2173_s15 + $0x20] sm:$0xf] %vm926_vm1, %v1547_v18  ;;  %v753_v33 = vmul.f32 %v2155_v14, %v715_v31  ;;  %v790_v0 = vadd.f32 %v2161_v61, %v752_v44 }
 0x169   : > { %v1716_v16 = vpop.eup %1715  ;;  %v641_v30 = vadd.f32 1e-05, %v609_v7  ;;  %v656_v2 = vadd.f32 1e-05, %v624_v60  ;;  %1633 = vmatprep.mubr.msk.bf16.mxu0 %vm304_vm0, %v802_v21  ;;  %v701_v47 = vmul.f32 %v1714_v27, %v2076_v37  ;;  %v738_v59 = vmul.f32 %v2155_v14, %v700_v45 }
 0x16a   : > { %936 = vst.msk [vmem:[%s2173_s15 + $0x24] sm:$0xf] %vm926_vm1, %v1548_v23  ;;  %v593_v32 = vpop.xlane.xlu1 %592  ;;  %v791_v34 = vadd.f32 %v2161_v61, %v753_v33  ;;  %v1563_v35 = vpack.c.bf16 %v790_v0, %v790_v0  ;;  %v716_v13 = vmul.f32 %v1716_v16, %v2085_v63 }
 0x16b   : > { %1729 = vrsqrt.f32 %v641_v30  ;;  %v625_v10 = vmul.f32 0.03125, %v593_v32  ;;  %v739_v48 = vmul.f32 %v2155_v14, %v701_v47  ;;  %v776_v49 = vadd.f32 %v2161_v61, %v738_v59 }
 0x16c   : > { %v1718_v42 = vpop.eup %1717  ;;  %1731 = vrsqrt.f32 %v656_v2  ;;  %v810_v37 = vpack.c.bf16 %v791_v34, %v790_v0  ;;  %v1564_v20 = vpack.c.bf16 %v791_v34, %v791_v34  ;;  %951 = vst.msk [vmem:[%s2173_s15 + $0x60] sm:$0xf] %vm926_vm1, %v1563_v35  ;;  %v754_v5 = vmul.f32 %v2155_v14, %v716_v13 }
 0x16d   : > { %v1720_v25 = vpop.eup %1719  ;;  %v657_v1 = vadd.f32 1e-05, %v625_v10  ;;  %v777_v63 = vadd.f32 %v2161_v61, %v739_v48  ;;  %v1549_v46 = vpack.c.bf16 %v776_v49, %v776_v49  ;;  %v717_v36 = vmul.f32 %v1718_v42, %v2088_v41  ;;  %v2349_v48 = vld [vmem:[%s2461_s4] ss:$0 sm:$0xff] }
 0x16e   : > { %952 = vst.msk [vmem:[%s2173_s15 + $0x64] sm:$0xf] %vm926_vm1, %v1564_v20  ;;  %1649 = vmatprep.mubr.msk.bf16.mxu1 %vm304_vm0, %v810_v37  ;;  %v792_v50 = vadd.f32 %v2161_v61, %v754_v5  ;;  %v702_v15 = vmul.f32 %v1720_v25, %v2100_v19 }
 0x16f   : > { %1733 = vrsqrt.f32 %v657_v1  ;;  %v803_v26 = vpack.c.bf16 %v777_v63, %v776_v49  ;;  %v1550_v51 = vpack.c.bf16 %v777_v63, %v777_v63  ;;  %937 = vst.msk [vmem:[%s2173_s15 + $0x28] sm:$0xf] %vm926_vm1, %v1549_v46  ;;  %v755_v54 = vmul.f32 %v2155_v14, %v717_v36 }
 0x170   : > { %v1722_v52 = vpop.eup %1721  ;;  %v1565_v55 = vpack.c.bf16 %v792_v50, %v792_v50  ;;  %v740_v41 = vmul.f32 %v2155_v14, %v702_v15 }
 0x171   : > { %v1724_v58 = vpop.eup %1723  ;;  %938 = vst.msk [vmem:[%s2173_s15 + $0x2c] sm:$0xf] %vm926_vm1, %v1550_v51  ;;  %1634 = vmatmul.mubr.msk.bf16.gmra.mxu0 %vm304_vm0, %v803_v26  ;;  %v793_v11 = vadd.f32 %v2161_v61, %v755_v54  ;;  %v703_v19 = vmul.f32 %v1722_v52, %v2103_v22 }
 0x172   : > { %953 = vst.msk [vmem:[%s2173_s15 + $0x68] sm:$0xf] %vm926_vm1, %v1565_v55  ;;  %v778_v17 = vadd.f32 %v2161_v61, %v740_v41  ;;  %v718_v24 = vmul.f32 %v1724_v58, %v2115_v38 }
 0x173   : > { %v811_v62 = vpack.c.bf16 %v793_v11, %v792_v50  ;;  %v1566_v29 = vpack.c.bf16 %v793_v11, %v793_v11  ;;  %v741_v40 = vmul.f32 %v2155_v14, %v703_v19 }
 0x174   : > { %v1726_v3 = vpop.eup %1725  ;;  %v1551_v43 = vpack.c.bf16 %v778_v17, %v778_v17  ;;  %v756_v4 = vmul.f32 %v2155_v14, %v718_v24 }
 0x175   : > { %v1728_v6 = vpop.eup %1727  ;;  %954 = vst.msk [vmem:[%s2173_s15 + $0x6c] sm:$0xf] %vm926_vm1, %v1566_v29  ;;  %1650 = vmatmul.mubr.msk.bf16.gmra.mxu1 %vm304_vm0, %v811_v62  ;;  %v779_v22 = vadd.f32 %v2161_v61, %v741_v40  ;;  %v719_v56 = vmul.f32 %v1726_v3, %v2118_v39 }
 0x176   : > { %939 = vst.msk [vmem:[%s2173_s15 + $0x30] sm:$0xf] %vm926_vm1, %v1551_v43  ;;  %v794_v38 = vadd.f32 %v2161_v61, %v756_v4  ;;  %v704_v31 = vmul.f32 %v1728_v6, %v2127_v8 }
 0x177   : > { %v804_v9 = vpack.c.bf16 %v779_v22, %v778_v17  ;;  %v1552_v28 = vpack.c.bf16 %v779_v22, %v779_v22  ;;  %v757_v18 = vmul.f32 %v2155_v14, %v719_v56 }
 0x178   : > { %v1730_v44 = vpop.eup %1729  ;;  %v1567_v45 = vpack.c.bf16 %v794_v38, %v794_v38  ;;  %v742_v7 = vmul.f32 %v2155_v14, %v704_v31 }
 0x179   : > { %v1732_v60 = vpop.eup %1731  ;;  %940 = vst.msk [vmem:[%s2173_s15 + $0x34] sm:$0xf] %vm926_vm1, %v1552_v28  ;;  %1637 = vmatprep.mubr.msk.bf16.mxu0 %vm304_vm0, %v804_v9  ;;  %v795_v39 = vadd.f32 %v2161_v61, %v757_v18  ;;  %v705_v21 = vmul.f32 %v1730_v44, %v2130_v53 }
 0x17a   : > { %955 = vst.msk [vmem:[%s2173_s15 + $0x70] sm:$0xf] %vm926_vm1, %v1567_v45  ;;  %v780_v8 = vadd.f32 %v2161_v61, %v742_v7  ;;  %v720_v27 = vmul.f32 %v1732_v60, %v2139_v12 }
 0x17b   : > { %v812_v23 = vpack.c.bf16 %v795_v39, %v794_v38  ;;  %v1568_v33 = vpack.c.bf16 %v795_v39, %v795_v39  ;;  %v743_v0 = vmul.f32 %v2155_v14, %v705_v21 }
 0x17c   : > { %v1734_v16 = vpop.eup %1733  ;;  %v1553_v30 = vpack.c.bf16 %v780_v8, %v780_v8  ;;  %v758_v2 = vmul.f32 %v2155_v14, %v720_v27 }
 0x17d   : > { %956 = vst.msk [vmem:[%s2173_s15 + $0x74] sm:$0xf] %vm926_vm1, %v1568_v33  ;;  %1653 = vmatprep.mubr.msk.bf16.mxu1 %vm304_vm0, %v812_v23  ;;  %v781_v53 = vadd.f32 %v2161_v61, %v743_v0  ;;  %v721_v47 = vmul.f32 %v1734_v16, %v2142_v57 }
 0x17e   : > { %941 = vst.msk [vmem:[%s2173_s15 + $0x38] sm:$0xf] %vm926_vm1, %v1553_v30  ;;  %v796_v12 = vadd.f32 %v2161_v61, %v758_v2 }
 0x17f   : > { %v805_v59 = vpack.c.bf16 %v781_v53, %v780_v8  ;;  %v1554_v32 = vpack.c.bf16 %v781_v53, %v781_v53  ;;  %v759_v34 = vmul.f32 %v2155_v14, %v721_v47 }
 0x180   : > { %v1569_v35 = vpack.c.bf16 %v796_v12, %v796_v12 }
 0x181   : > { %942 = vst.msk [vmem:[%s2173_s15 + $0x3c] sm:$0xf] %vm926_vm1, %v1554_v32  ;;  %1638 = vmatmul.mubr.msk.bf16.gmra.mxu0 %vm304_vm0, %v805_v59  ;;  %v797_v13 = vadd.f32 %v2161_v61, %v759_v34 }
 0x182   : > { %957 = vst.msk [vmem:[%s2173_s15 + $0x78] sm:$0xf] %vm926_vm1, %v1569_v35 }
 0x183   : > { %v813_v10 = vpack.c.bf16 %v797_v13, %v796_v12  ;;  %v1570_v57 = vpack.c.bf16 %v797_v13, %v797_v13 }
 0x185   : > { %958 = vst.msk [vmem:[%s2173_s15 + $0x7c] sm:$0xf] %vm926_vm1, %v1570_v57  ;;  %1654 = vmatmul.mubr.msk.bf16.gmra.mxu1 %vm304_vm0, %v813_v10 }
 0x211   : > { %v1627_v14 = vpop.f32.mrf.mxu0 }
 0x212   : > { %v1073_v49 = vadd.f32 %v1627_v14, %v2349_v48 }
 0x213   : > { %v1064_v61 = vpop.f32.mrf.mxu0 }
 0x214   : > { %v1573_v42 = vpack.c.bf16 %v1073_v49, %v1073_v49  ;;  %v1065_v37 = vadd.f32 %v2349_v48, %v1064_v61 }
 0x215   : > { %v1628_v20 = vpop.f32.mrf.mxu0 }
 0x216   : > { %1321 = vst.msk [vmem:[%s2357_s20 + $0x8] sm:$0xf] %vm926_vm1, %v1573_v42  ;;  %v1571_v5 = vpack.c.bf16 %v1065_v37, %v1065_v37  ;;  %v1076_v25 = vadd.f32 %v1628_v20, %v2349_v48  ;;  %v1643_v1 = vpop.f32.mrf.mxu1 }
 0x217   : > { %v1137_v63 = vadd.f32 %v1643_v1, %v2349_v48  ;;  %v1067_v46 = vpop.f32.mrf.mxu0 }
 0x218   : > { %1319 = vst.msk [vmem:[%s2357_s20] sm:$0xf] %vm926_vm1, %v1571_v5  ;;  %v1574_v36 = vpack.c.bf16 %v1076_v25, %v1076_v25  ;;  %v1068_v50 = vadd.f32 %v2349_v48, %v1067_v46  ;;  %v1128_v15 = vpop.f32.mrf.mxu1 }
 0x219   : > { %v1589_v26 = vpack.c.bf16 %v1137_v63, %v1137_v63  ;;  %v1129_v51 = vadd.f32 %v2349_v48, %v1128_v15 }
 0x21a   : > { %1322 = vst.msk [vmem:[%s2357_s20 + $0xc] sm:$0xf] %vm926_vm1, %v1574_v36  ;;  %v1572_v54 = vpack.c.bf16 %v1068_v50, %v1068_v50  ;;  %v1644_v52 = vpop.f32.mrf.mxu1 }
 0x21b   : > { %1337 = vst.msk [vmem:[%s2357_s20 + $0x48] sm:$0xf] %vm926_vm1, %v1589_v26  ;;  %v1587_v55 = vpack.c.bf16 %v1129_v51, %v1129_v51  ;;  %v1140_v41 = vadd.f32 %v1644_v52, %v2349_v48 }
 0x21c   : > { %1320 = vst.msk [vmem:[%s2357_s20 + $0x4] sm:$0xf] %vm926_vm1, %v1572_v54  ;;  %v1131_v58 = vpop.f32.mrf.mxu1 }
 0x21d   : > { %1335 = vst.msk [vmem:[%s2357_s20 + $0x40] sm:$0xf] %vm926_vm1, %v1587_v55  ;;  %v1590_v11 = vpack.c.bf16 %v1140_v41, %v1140_v41  ;;  %v1132_v19 = vadd.f32 %v2349_v48, %v1131_v58 }
 0x21f   : > { %1338 = vst.msk [vmem:[%s2357_s20 + $0x4c] sm:$0xf] %vm926_vm1, %v1590_v11  ;;  %v1588_v17 = vpack.c.bf16 %v1132_v19, %v1132_v19 }
 0x221   : > { %1336 = vst.msk [vmem:[%s2357_s20 + $0x44] sm:$0xf] %vm926_vm1, %v1588_v17  ;;  %v1631_v24 = vpop.f32.mrf.mxu0 }
 0x222   : > { %v1089_v62 = vadd.f32 %v1631_v24, %v2349_v48 }
 0x223   : > { %v1080_v29 = vpop.f32.mrf.mxu0 }
 0x224   : > { %v1577_v40 = vpack.c.bf16 %v1089_v62, %v1089_v62  ;;  %v1081_v3 = vadd.f32 %v2349_v48, %v1080_v29 }
 0x225   : > { %v1632_v43 = vpop.f32.mrf.mxu0 }
 0x226   : > { %1325 = vst.msk [vmem:[%s2357_s20 + $0x18] sm:$0xf] %vm926_vm1, %v1577_v40  ;;  %v1575_v4 = vpack.c.bf16 %v1081_v3, %v1081_v3  ;;  %v1092_v6 = vadd.f32 %v1632_v43, %v2349_v48  ;;  %v1647_v22 = vpop.f32.mrf.mxu1 }
 0x227   : > { %v1153_v56 = vadd.f32 %v1647_v22, %v2349_v48  ;;  %v1083_v38 = vpop.f32.mrf.mxu0 }
 0x228   : > { %1323 = vst.msk [vmem:[%s2357_s20 + $0x10] sm:$0xf] %vm926_vm1, %v1575_v4  ;;  %v1578_v31 = vpack.c.bf16 %v1092_v6, %v1092_v6  ;;  %v1084_v9 = vadd.f32 %v2349_v48, %v1083_v38  ;;  %v1144_v28 = vpop.f32.mrf.mxu1 }
 0x229   : > { %v1593_v18 = vpack.c.bf16 %v1153_v56, %v1153_v56  ;;  %v1145_v44 = vadd.f32 %v2349_v48, %v1144_v28 }
 0x22a   : > { %1326 = vst.msk [vmem:[%s2357_s20 + $0x1c] sm:$0xf] %vm926_vm1, %v1578_v31  ;;  %v1576_v45 = vpack.c.bf16 %v1084_v9, %v1084_v9  ;;  %v1648_v7 = vpop.f32.mrf.mxu1 }
 0x22b   : > { %1341 = vst.msk [vmem:[%s2357_s20 + $0x58] sm:$0xf] %vm926_vm1, %v1593_v18  ;;  %v1591_v60 = vpack.c.bf16 %v1145_v44, %v1145_v44  ;;  %v1156_v39 = vadd.f32 %v1648_v7, %v2349_v48 }
 0x22c   : > { %1324 = vst.msk [vmem:[%s2357_s20 + $0x14] sm:$0xf] %vm926_vm1, %v1576_v45  ;;  %v1147_v21 = vpop.f32.mrf.mxu1 }
 0x22d   : > { %1339 = vst.msk [vmem:[%s2357_s20 + $0x50] sm:$0xf] %vm926_vm1, %v1591_v60  ;;  %v1594_v8 = vpack.c.bf16 %v1156_v39, %v1156_v39  ;;  %v1148_v27 = vadd.f32 %v2349_v48, %v1147_v21 }
 0x22f   : > { %1342 = vst.msk [vmem:[%s2357_s20 + $0x5c] sm:$0xf] %vm926_vm1, %v1594_v8  ;;  %v1592_v23 = vpack.c.bf16 %v1148_v27, %v1148_v27 }
 0x231   : > { %1340 = vst.msk [vmem:[%s2357_s20 + $0x54] sm:$0xf] %vm926_vm1, %v1592_v23  ;;  %v1635_v33 = vpop.f32.mrf.mxu0 }
 0x232   : > { %v1105_v0 = vadd.f32 %v1635_v33, %v2349_v48 }
 0x233   : > { %v1096_v16 = vpop.f32.mrf.mxu0 }
 0x234   : > { %v1581_v30 = vpack.c.bf16 %v1105_v0, %v1105_v0  ;;  %v1097_v2 = vadd.f32 %v2349_v48, %v1096_v16 }
 0x235   : > { %v1636_v53 = vpop.f32.mrf.mxu0  ;;  %v1651_v47 = vpop.f32.mrf.mxu1 }
 0x236   : > { %1329 = vst.msk [vmem:[%s2357_s20 + $0x28] sm:$0xf] %vm926_vm1, %v1581_v30  ;;  %v1579_v12 = vpack.c.bf16 %v1097_v2, %v1097_v2  ;;  %v1108_v59 = vadd.f32 %v1636_v53, %v2349_v48  ;;  %v1169_v32 = vadd.f32 %v1651_v47, %v2349_v48 }
 0x237   : > { %v1099_v34 = vpop.f32.mrf.mxu0  ;;  %v1160_v35 = vpop.f32.mrf.mxu1 }
 0x238   : > { %1327 = vst.msk [vmem:[%s2357_s20 + $0x20] sm:$0xf] %vm926_vm1, %v1579_v12  ;;  %v1582_v13 = vpack.c.bf16 %v1108_v59, %v1108_v59  ;;  %v1597_v10 = vpack.c.bf16 %v1169_v32, %v1169_v32  ;;  %v1100_v57 = vadd.f32 %v2349_v48, %v1099_v34  ;;  %v1161_v14 = vadd.f32 %v2349_v48, %v1160_v35 }
 0x239   : > { %v1652_v49 = vpop.f32.mrf.mxu1 }
 0x23a   : > { %1330 = vst.msk [vmem:[%s2357_s20 + $0x2c] sm:$0xf] %vm926_vm1, %v1582_v13  ;;  %1345 = vst.msk [vmem:[%s2357_s20 + $0x68] sm:$0xf] %vm926_vm1, %v1597_v10  ;;  %v1580_v61 = vpack.c.bf16 %v1100_v57, %v1100_v57  ;;  %v1595_v42 = vpack.c.bf16 %v1161_v14, %v1161_v14  ;;  %v1172_v37 = vadd.f32 %v1652_v49, %v2349_v48 }
 0x23b   : > { %v1163_v20 = vpop.f32.mrf.mxu1 }
 0x23c   : > { %1328 = vst.msk [vmem:[%s2357_s20 + $0x24] sm:$0xf] %vm926_vm1, %v1580_v61  ;;  %1343 = vst.msk [vmem:[%s2357_s20 + $0x60] sm:$0xf] %vm926_vm1, %v1595_v42  ;;  %v1598_v5 = vpack.c.bf16 %v1172_v37, %v1172_v37  ;;  %v1164_v25 = vadd.f32 %v2349_v48, %v1163_v20 }
 0x23e   : > { %1346 = vst.msk [vmem:[%s2357_s20 + $0x6c] sm:$0xf] %vm926_vm1, %v1598_v5  ;;  %v1596_v1 = vpack.c.bf16 %v1164_v25, %v1164_v25 }
 0x240   : > { %1344 = vst.msk [vmem:[%s2357_s20 + $0x64] sm:$0xf] %vm926_vm1, %v1596_v1 }
 0x241   : > { %v1639_v63 = vpop.f32.mrf.mxu0 }
 0x242   : > { %v1121_v46 = vadd.f32 %v1639_v63, %v2349_v48 }
 0x243   : > { %v1112_v36 = vpop.f32.mrf.mxu0 }
 0x244   : > { %v1585_v50 = vpack.c.bf16 %v1121_v46, %v1121_v46  ;;  %v1113_v15 = vadd.f32 %v2349_v48, %v1112_v36 }
 0x245   : > { %v1640_v26 = vpop.f32.mrf.mxu0  ;;  %v1655_v51 = vpop.f32.mrf.mxu1 }
 0x246   : > { %1333 = vst.msk [vmem:[%s2357_s20 + $0x38] sm:$0xf] %vm926_vm1, %v1585_v50  ;;  %v1583_v54 = vpack.c.bf16 %v1113_v15, %v1113_v15  ;;  %v1124_v52 = vadd.f32 %v1640_v26, %v2349_v48  ;;  %v1185_v55 = vadd.f32 %v1655_v51, %v2349_v48 }
 0x247   : > { %v1115_v41 = vpop.f32.mrf.mxu0  ;;  %v1176_v58 = vpop.f32.mrf.mxu1 }
 0x248   : > { %1331 = vst.msk [vmem:[%s2357_s20 + $0x30] sm:$0xf] %vm926_vm1, %v1583_v54  ;;  %v1586_v11 = vpack.c.bf16 %v1124_v52, %v1124_v52  ;;  %v1601_v19 = vpack.c.bf16 %v1185_v55, %v1185_v55  ;;  %v1116_v17 = vadd.f32 %v2349_v48, %v1115_v41  ;;  %v1177_v24 = vadd.f32 %v2349_v48, %v1176_v58 }
 0x249   : > { %v1656_v62 = vpop.f32.mrf.mxu1 }
 0x24a   : > { %1334 = vst.msk [vmem:[%s2357_s20 + $0x3c] sm:$0xf] %vm926_vm1, %v1586_v11  ;;  %1349 = vst.msk [vmem:[%s2357_s20 + $0x78] sm:$0xf] %vm926_vm1, %v1601_v19  ;;  %v1584_v29 = vpack.c.bf16 %v1116_v17, %v1116_v17  ;;  %v1599_v40 = vpack.c.bf16 %v1177_v24, %v1177_v24  ;;  %v1188_v3 = vadd.f32 %v1656_v62, %v2349_v48 }
 0x24b   : > { %v1179_v43 = vpop.f32.mrf.mxu1 }
 0x24c   : > { %1332 = vst.msk [vmem:[%s2357_s20 + $0x34] sm:$0xf] %vm926_vm1, %v1584_v29  ;;  %1347 = vst.msk [vmem:[%s2357_s20 + $0x70] sm:$0xf] %vm926_vm1, %v1599_v40  ;;  %v1602_v4 = vpack.c.bf16 %v1188_v3, %v1188_v3  ;;  %v1180_v6 = vadd.f32 %v2349_v48, %v1179_v43 }
 0x24e   : > { %1350 = vst.msk [vmem:[%s2357_s20 + $0x7c] sm:$0xf] %vm926_vm1, %v1602_v4  ;;  %v1600_v22 = vpack.c.bf16 %v1180_v6, %v1180_v6 }
 0x250   : > { %1348 = vst.msk [vmem:[%s2357_s20 + $0x74] sm:$0xf] %vm926_vm1, %v1600_v22 }
 0x251 PF: > { %s17_s21 = sadd.s32 1, %s1741_s21  }
 0x252   : > { %p14_p4 = scmp.ge.s32.totalorder %s17_s21, 4  }
 0x254   :  { %16 = sbr.rel (!%p14_p4) target bundleno = 1 (0x1), region = 82 }

// kernel: swint_block_forward.7
= control target key start
LH: loop header
LB: loop body
LE: loop exit
PB: predicated region body
PF: predicated region fallthrough
CT: control target
= control target key end

     0   :  { %12 = vsyncpa [#allocation3], 0  ;;  %s4593_s0 = inlined_call_operand.vmem [shape: f32[512,32], index: 0, kind: input, shape index: {}]   ;;  %s4594_s1 = inlined_call_operand.vmem [shape: f32[1,32], index: 1, kind: input, shape index: {}]   ;;  %s4595_s2 = inlined_call_operand.vmem [shape: f32[1,32], index: 2, kind: input, shape index: {}]   ;;  %s4596_s3 = inlined_call_operand.vmem [shape: bf16[32,128], index: 3, kind: input, shape index: {}]   ;;  %s4597_s4 = inlined_call_operand.vmem [shape: f32[1,128], index: 4, kind: input, shape index: {}]   ;;  %s4598_s5 = inlined_call_operand.vmem [shape: bf16[128,32], index: 5, kind: input, shape index: {}]   ;;  %s4599_s6 = inlined_call_operand.vmem [shape: f32[1,32], index: 6, kind: input, shape index: {}]   ;;  %s4600_s7 = inlined_call_operand.hbm [shape: f32[512,32], index: 7, kind: output, shape index: {}]  }
   0x1   :  { %14 = vsyncpa [#allocation3 + $0x1], 0  ;;  %s2877_s24 = smov 0   ;;  %s2879_s25 = smov 0  }
   0x2   :  { %s2881_s26 = smov 0   ;;  %s2883_s27 = smov 0  }
   0x3 LB: > { %s2898_s28 = sadd.s32 4294967295, %s2831_s27   ;;  %s2309_s29 = sadd.s32 4294967294, %s2831_s27   ;;  %s2831_s27 = sphi %s2883_s27, %s4740_s27   ;;  %s2827_s26 = sphi %s2881_s26, %s4739_s26   ;;  %s2823_s25 = sphi %s2879_s25, %s4738_s25   ;;  %s2819_s24 = sphi %s2877_s24, %s4737_s24  }
   0x4   : > { %s2902_s30 = sadd.s32 1, %s2831_s27   ;;  %s179_s8 = sadd.s32 1, %s2827_s26 }
   0x5   : > { %s176_s9 = ssub.s32 %s2831_s27, %s2902_s30  ;;  %p189_p0 = scmp.ne.s32.totalorder %s2827_s26, %s2823_s25 }
   0x6   : > { %p177_p1 = scmp.eq.s32.totalorder %s176_s9, 0  ;;  %p190_p2 = scmp.eq.s32.totalorder %s2898_s28, 1 }
   0x7   : > { %p195_p3 = scmp.ne.s32.totalorder %s2823_s25, %s2819_s24  ;;  %p196_p4 = scmp.eq.s32.totalorder %s2309_s29, 1 }
   0x8   : > { %s2913_s10 = scalar_select %p177_p1, %s2827_s26, %s179_s8  }
   0x9   : > { %p2915_p5 = por %p190_p2, %p189_p0  ;;  %p2919_p6 = por %p196_p4, %p195_p3 }
   0xa   : > { %p2312_p7 = scmp.ge.s32.totalorder %s2831_s27, 1  ;;  %p241_p8 = scmp.lt.s32.totalorder %s2831_s27, 3 }
   0xc   : > { %p242_p9 = pnand %p2312_p7, %p241_p8 }
   0xe   : > { %245 = sbr.rel (%p242_p9) target bundleno = 992 (0x3e0), region = 48 }
  0x13   : > { %s2314_s13 = sshll.u32 %s2898_s28, 5  ;;  %vm315_vm0 = vcmask 261120   ;;  %s270_s20 = sand.u32 1, %s2823_s25  }
  0x14   : > { %p274_p10 = scmp.lt.s32.totalorder %s2314_s13, 63  ;;  %s2313_s23 = sshll.u32 %s270_s20, 8 }
  0x15   : > { %s4415_s29 = scalar_lea.vmem [#allocation2], %s2313_s23  ;;  %s2351_s8 = sshll.u32 %s2898_s28, 12 }
  0x16   : > { %s4742_s13 = smov (!%p274_p10, %s2314_s13), 63  ;;  %s2247_s9 = sshll.u32 %s4415_s29, 4  ;;  %s4544_s9 = int_to_ptr.vmem [resolvable:$true] %s2247_s9 }
  0x17   : > { %s2315_s14 = sshll.u32 %s4742_s13, 3  ;;  %s4542_s15 = scalar_lea.hbm %s4600_s7, %s2351_s8 }
  0x18   : > { %s2929_s17 = scalar_lea.vmem %s4593_s0, %s2315_s14  ;;  %s4553_s28 = scalar_lea.sflag [#allocation3], %s270_s20 }
  0x19   : > { %v2932_v0 = vld [vmem:[%s2929_s17] sm:$0xff]  ;;  %v2935_v1 = vld [vmem:[%s2929_s17 + $0x10] sm:$0xff]  ;;  %v2938_v2 = vld [vmem:[%s2929_s17 + $0x8] sm:$0xff]  ;;  %s2771_s16 = scalar_lea.vmem %s4544_s9, 4096  ;;  %s2834_s18 = smov [#allocation2]  }
  0x1a   : > { %v316_v3 = vsel %vm315_vm0, %v2932_v0, 0.0  ;;  %v322_v4 = vsel %vm315_vm0, %v2935_v1, 0.0  ;;  %v2945_v5 = vld [vmem:[%s2929_s17 + $0x18] sm:$0xff]  ;;  %v319_v6 = vsel %vm315_vm0, %v2938_v2, 0.0  ;;  %v2952_v8 = vld [vmem:[%s2929_s17 + $0x20] sm:$0xff]  ;;  %v2955_v9 = vld [vmem:[%s2929_s17 + $0x28] sm:$0xff]  ;;  %p2772_p11 = scmp.ne.s32.totalorder %s4544_s9, %s2771_s16 }
  0x1b   : > { %317 = vadd.xlane.f32.xlu0 %v316_v3  ;;  %323 = vadd.xlane.f32.xlu1 %v322_v4  ;;  %v325_v7 = vsel %vm315_vm0, %v2945_v5, 0.0  ;;  %v328_v10 = vsel %vm315_vm0, %v2952_v8, 0.0  ;;  %v331_v11 = vsel %vm315_vm0, %v2955_v9, 0.0  ;;  %v2962_v12 = vld [vmem:[%s2929_s17 + $0x30] sm:$0xff]  ;;  %v2965_v13 = vld [vmem:[%s2929_s17 + $0x38] sm:$0xff]  ;;  %v2972_v16 = vld [vmem:[%s2929_s17 + $0x40] sm:$0xff] }
  0x1c   : > { %v334_v14 = vsel %vm315_vm0, %v2962_v12, 0.0  ;;  %v337_v15 = vsel %vm315_vm0, %v2965_v13, 0.0  ;;  %v2975_v17 = vld [vmem:[%s2929_s17 + $0x48] sm:$0xff]  ;;  %v340_v18 = vsel %vm315_vm0, %v2972_v16, 0.0  ;;  %v2982_v20 = vld [vmem:[%s2929_s17 + $0x50] sm:$0xff]  ;;  %v2985_v21 = vld [vmem:[%s2929_s17 + $0x58] sm:$0xff]  ;;  %p2773_p12 = pnand %p2772_p11, %p2915_p5 }
  0x1d   : > { %v343_v19 = vsel %vm315_vm0, %v2975_v17, 0.0  ;;  %v346_v22 = vsel %vm315_vm0, %v2982_v20, 0.0  ;;  %v349_v23 = vsel %vm315_vm0, %v2985_v21, 0.0  ;;  %v2992_v24 = vld [vmem:[%s2929_s17 + $0x60] sm:$0xff]  ;;  %v2995_v25 = vld [vmem:[%s2929_s17 + $0x68] sm:$0xff]  ;;  %v3002_v28 = vld [vmem:[%s2929_s17 + $0x70] sm:$0xff] }
  0x1e   : > { %v352_v26 = vsel %vm315_vm0, %v2992_v24, 0.0  ;;  %v355_v27 = vsel %vm315_vm0, %v2995_v25, 0.0  ;;  %v3005_v29 = vld [vmem:[%s2929_s17 + $0x78] sm:$0xff]  ;;  %v358_v30 = vsel %vm315_vm0, %v3002_v28, 0.0  ;;  %v3012_v32 = vld [vmem:[%s2929_s17 + $0x80] sm:$0xff]  ;;  %v3015_v33 = vld [vmem:[%s2929_s17 + $0x88] sm:$0xff]  ;;  %p2774_p13 = pneg %p2773_p12 }
  0x1f   : > { %320 = vadd.xlane.f32.xlu0 %v319_v6  ;;  %326 = vadd.xlane.f32.xlu1 %v325_v7  ;;  %v361_v31 = vsel %vm315_vm0, %v3005_v29, 0.0  ;;  %v364_v34 = vsel %vm315_vm0, %v3012_v32, 0.0  ;;  %v367_v35 = vsel %vm315_vm0, %v3015_v33, 0.0  ;;  %v3022_v36 = vld [vmem:[%s2929_s17 + $0x90] sm:$0xff]  ;;  %v3025_v37 = vld [vmem:[%s2929_s17 + $0x98] sm:$0xff]  ;;  %v3032_v40 = vld [vmem:[%s2929_s17 + $0xa0] sm:$0xff] }
  0x20   : > { %v370_v38 = vsel %vm315_vm0, %v3022_v36, 0.0  ;;  %v373_v39 = vsel %vm315_vm0, %v3025_v37, 0.0  ;;  %v3035_v41 = vld [vmem:[%s2929_s17 + $0xa8] sm:$0xff]  ;;  %v376_v42 = vsel %vm315_vm0, %v3032_v40, 0.0  ;;  %v3042_v44 = vld [vmem:[%s2929_s17 + $0xb0] sm:$0xff]  ;;  %v3045_v45 = vld [vmem:[%s2929_s17 + $0xb8] sm:$0xff] }
  0x21   : > { %v379_v43 = vsel %vm315_vm0, %v3035_v41, 0.0  ;;  %v382_v46 = vsel %vm315_vm0, %v3042_v44, 0.0  ;;  %v385_v47 = vsel %vm315_vm0, %v3045_v45, 0.0  ;;  %v3052_v48 = vld [vmem:[%s2929_s17 + $0xc0] sm:$0xff]  ;;  %v3055_v49 = vld [vmem:[%s2929_s17 + $0xc8] sm:$0xff]  ;;  %v3062_v52 = vld [vmem:[%s2929_s17 + $0xd0] sm:$0xff] }
  0x22   : > { %v388_v50 = vsel %vm315_vm0, %v3052_v48, 0.0  ;;  %v391_v51 = vsel %vm315_vm0, %v3055_v49, 0.0  ;;  %v3065_v53 = vld [vmem:[%s2929_s17 + $0xd8] sm:$0xff]  ;;  %v394_v54 = vsel %vm315_vm0, %v3062_v52, 0.0  ;;  %v3072_v56 = vld [vmem:[%s2929_s17 + $0xe0] sm:$0xff]  ;;  %v3075_v57 = vld [vmem:[%s2929_s17 + $0xe8] sm:$0xff] }
  0x23   : > { %329 = vadd.xlane.f32.xlu0 %v328_v10  ;;  %332 = vadd.xlane.f32.xlu1 %v331_v11  ;;  %v397_v55 = vsel %vm315_vm0, %v3065_v53, 0.0  ;;  %v400_v58 = vsel %vm315_vm0, %v3072_v56, 0.0  ;;  %v403_v59 = vsel %vm315_vm0, %v3075_v57, 0.0  ;;  %v3082_v60 = vld [vmem:[%s2929_s17 + $0xf0] sm:$0xff]  ;;  %v3085_v61 = vld [vmem:[%s2929_s17 + $0xf8] sm:$0xff]  ;;  %s2775_s19 = sshll.u32 %s2834_s18, 4  ;;  %s2776_s19 = int_to_ptr.vmem [resolvable:$false] %s2775_s19 }
  0x24   : > { %v406_v62 = vsel %vm315_vm0, %v3082_v60, 0.0  ;;  %v409_v63 = vsel %vm315_vm0, %v3085_v61, 0.0  ;;  %s2777_s21 = scalar_lea.vmem %s2776_s19, 8192  ;;  %p2778_p0 = scmp.lt.s32.totalorder %s4544_s9, %s2776_s19 }
  0x25   : > { %p2779_p1 = scmp.lt.s32.totalorder %s2777_s21, %s2771_s16 }
  0x27   : > { %335 = vadd.xlane.f32.xlu0 %v334_v14  ;;  %338 = vadd.xlane.f32.xlu1 %v337_v15  ;;  %p2780_p2 = por %p2779_p1, %p2778_p0 }
  0x29   : > { %p2781_p3 = pnand %p2780_p2, %p2774_p13 }
  0x2b   : > { %341 = vadd.xlane.f32.xlu0 %v340_v18  ;;  %344 = vadd.xlane.f32.xlu1 %v343_v19 }
  0x2f   : > { %347 = vadd.xlane.f32.xlu0 %v346_v22  ;;  %350 = vadd.xlane.f32.xlu1 %v349_v23 }
  0x33   : > { %353 = vadd.xlane.f32.xlu0 %v352_v26  ;;  %356 = vadd.xlane.f32.xlu1 %v355_v27 }
  0x37   : > { %359 = vadd.xlane.f32.xlu0 %v358_v30  ;;  %362 = vadd.xlane.f32.xlu1 %v361_v31 }
  0x3b   : > { %365 = vadd.xlane.f32.xlu0 %v364_v34  ;;  %368 = vadd.xlane.f32.xlu1 %v367_v35 }
  0x3f   : > { %371 = vadd.xlane.f32.xlu0 %v370_v38  ;;  %374 = vadd.xlane.f32.xlu1 %v373_v39 }
  0x43   : > { %377 = vadd.xlane.f32.xlu0 %v376_v42  ;;  %380 = vadd.xlane.f32.xlu1 %v379_v43 }
  0x47   : > { %383 = vadd.xlane.f32.xlu0 %v382_v46  ;;  %386 = vadd.xlane.f32.xlu1 %v385_v47 }
  0x4b   : > { %389 = vadd.xlane.f32.xlu0 %v388_v50  ;;  %392 = vadd.xlane.f32.xlu1 %v391_v51 }
  0x4f   : > { %395 = vadd.xlane.f32.xlu0 %v394_v54  ;;  %398 = vadd.xlane.f32.xlu1 %v397_v55 }
  0x53   : > { %401 = vadd.xlane.f32.xlu0 %v400_v58  ;;  %404 = vadd.xlane.f32.xlu1 %v403_v59 }
  0x57   : > { %407 = vadd.xlane.f32.xlu0 %v406_v62  ;;  %410 = vadd.xlane.f32.xlu1 %v409_v63 }
  0xa4   : > { %v318_v3 = vpop.xlane.xlu0 %317  ;;  %v324_v4 = vpop.xlane.xlu1 %323 }
  0xa5   : > { %v413_v6 = vmul.f32 0.03125, %v318_v3  ;;  %v415_v7 = vmul.f32 0.03125, %v324_v4 }
  0xa7   : > { %v3092_v10 = vsub.f32 %v2932_v0, %v413_v6  ;;  %v3095_v11 = vsub.f32 %v2935_v1, %v415_v7 }
  0xa8   : > { %v321_v14 = vpop.xlane.xlu0 %320  ;;  %v327_v15 = vpop.xlane.xlu1 %326 }
  0xa9   : > { %v414_v18 = vmul.f32 0.03125, %v321_v14  ;;  %v416_v19 = vmul.f32 0.03125, %v327_v15  ;;  %v477_v22 = vmul.f32 %v3092_v10, %v3092_v10  ;;  %v479_v23 = vmul.f32 %v3095_v11, %v3095_v11 }
  0xab   : > { %v3102_v26 = vsub.f32 %v2938_v2, %v414_v18  ;;  %v3105_v27 = vsub.f32 %v2945_v5, %v416_v19  ;;  %v509_v0 = vsel %vm315_vm0, %v477_v22, 0.0  ;;  %v515_v31 = vsel %vm315_vm0, %v479_v23, 0.0 }
  0xac   : > { %510 = vadd.xlane.f32.xlu0 %v509_v0  ;;  %v330_v1 = vpop.xlane.xlu0 %329  ;;  %v333_v30 = vpop.xlane.xlu1 %332 }
  0xad   : > { %v417_v34 = vmul.f32 0.03125, %v330_v1  ;;  %v418_v35 = vmul.f32 0.03125, %v333_v30  ;;  %v478_v38 = vmul.f32 %v3102_v26, %v3102_v26  ;;  %v480_v39 = vmul.f32 %v3105_v27, %v3105_v27 }
  0xaf   : > { %v3114_v2 = vsub.f32 %v2952_v8, %v417_v34  ;;  %v3117_v5 = vsub.f32 %v2955_v9, %v418_v35  ;;  %v512_v42 = vsel %vm315_vm0, %v478_v38, 0.0  ;;  %v518_v47 = vsel %vm315_vm0, %v480_v39, 0.0 }
  0xb0   : > { %516 = vadd.xlane.f32.xlu0 %v515_v31  ;;  %513 = vadd.xlane.f32.xlu1 %v512_v42  ;;  %v336_v43 = vpop.xlane.xlu0 %335  ;;  %v339_v46 = vpop.xlane.xlu1 %338 }
  0xb1   : > { %v419_v50 = vmul.f32 0.03125, %v336_v43  ;;  %v420_v51 = vmul.f32 0.03125, %v339_v46  ;;  %v481_v54 = vmul.f32 %v3114_v2, %v3114_v2  ;;  %v482_v8 = vmul.f32 %v3117_v5, %v3117_v5 }
  0xb3   : > { %v3126_v55 = vsub.f32 %v2962_v12, %v419_v50  ;;  %v3129_v9 = vsub.f32 %v2965_v13, %v420_v51  ;;  %v521_v58 = vsel %vm315_vm0, %v481_v54, 0.0  ;;  %v524_v63 = vsel %vm315_vm0, %v482_v8, 0.0 }
  0xb4   : > { %519 = vadd.xlane.f32.xlu1 %v518_v47  ;;  %522 = vadd.xlane.f32.xlu0 %v521_v58  ;;  %v342_v59 = vpop.xlane.xlu0 %341  ;;  %v345_v62 = vpop.xlane.xlu1 %344 }
  0xb5   : > { %v421_v3 = vmul.f32 0.03125, %v342_v59  ;;  %v422_v4 = vmul.f32 0.03125, %v345_v62  ;;  %v483_v6 = vmul.f32 %v3126_v55, %v3126_v55  ;;  %v484_v12 = vmul.f32 %v3129_v9, %v3129_v9 }
  0xb7   : > { %v3138_v7 = vsub.f32 %v2972_v16, %v421_v3  ;;  %v3141_v13 = vsub.f32 %v2975_v17, %v422_v4  ;;  %v527_v14 = vsel %vm315_vm0, %v483_v6, 0.0  ;;  %v530_v19 = vsel %vm315_vm0, %v484_v12, 0.0 }
  0xb8   : > { %525 = vadd.xlane.f32.xlu1 %v524_v63  ;;  %528 = vadd.xlane.f32.xlu0 %v527_v14  ;;  %v348_v15 = vpop.xlane.xlu0 %347  ;;  %v351_v18 = vpop.xlane.xlu1 %350 }
  0xb9   : > { %v423_v22 = vmul.f32 0.03125, %v348_v15  ;;  %v424_v23 = vmul.f32 0.03125, %v351_v18  ;;  %v485_v0 = vmul.f32 %v3138_v7, %v3138_v7  ;;  %v486_v16 = vmul.f32 %v3141_v13, %v3141_v13 }
  0xbb   : > { %v3150_v1 = vsub.f32 %v2982_v20, %v423_v22  ;;  %v3153_v17 = vsub.f32 %v2985_v21, %v424_v23  ;;  %v533_v30 = vsel %vm315_vm0, %v485_v0, 0.0  ;;  %v536_v35 = vsel %vm315_vm0, %v486_v16, 0.0 }
  0xbc   : > { %531 = vadd.xlane.f32.xlu1 %v530_v19  ;;  %534 = vadd.xlane.f32.xlu0 %v533_v30  ;;  %v354_v31 = vpop.xlane.xlu0 %353  ;;  %v357_v34 = vpop.xlane.xlu1 %356 }
  0xbd   : > { %v425_v38 = vmul.f32 0.03125, %v354_v31  ;;  %v426_v39 = vmul.f32 0.03125, %v357_v34  ;;  %v487_v42 = vmul.f32 %v3150_v1, %v3150_v1  ;;  %v488_v20 = vmul.f32 %v3153_v17, %v3153_v17 }
  0xbf   : > { %v3162_v43 = vsub.f32 %v2992_v24, %v425_v38  ;;  %v3165_v21 = vsub.f32 %v2995_v25, %v426_v39  ;;  %v539_v46 = vsel %vm315_vm0, %v487_v42, 0.0  ;;  %v542_v51 = vsel %vm315_vm0, %v488_v20, 0.0 }
  0xc0   : > { %537 = vadd.xlane.f32.xlu1 %v536_v35  ;;  %540 = vadd.xlane.f32.xlu0 %v539_v46  ;;  %v360_v47 = vpop.xlane.xlu0 %359  ;;  %v363_v50 = vpop.xlane.xlu1 %362 }
  0xc1   : > { %v427_v54 = vmul.f32 0.03125, %v360_v47  ;;  %v428_v8 = vmul.f32 0.03125, %v363_v50  ;;  %v489_v58 = vmul.f32 %v3162_v43, %v3162_v43  ;;  %v490_v24 = vmul.f32 %v3165_v21, %v3165_v21 }
  0xc3   : > { %v3174_v59 = vsub.f32 %v3002_v28, %v427_v54  ;;  %v3177_v25 = vsub.f32 %v3005_v29, %v428_v8  ;;  %v545_v62 = vsel %vm315_vm0, %v489_v58, 0.0  ;;  %v548_v4 = vsel %vm315_vm0, %v490_v24, 0.0 }
  0xc4   : > { %543 = vadd.xlane.f32.xlu1 %v542_v51  ;;  %546 = vadd.xlane.f32.xlu0 %v545_v62  ;;  %v366_v63 = vpop.xlane.xlu0 %365  ;;  %v369_v3 = vpop.xlane.xlu1 %368  ;;  %v2536_v51 = vld [vmem:[%s4596_s3 + $0x8] sm:$0xff]  }
  0xc5   : > { %v429_v6 = vmul.f32 0.03125, %v366_v63  ;;  %v430_v12 = vmul.f32 0.03125, %v369_v3  ;;  %v491_v14 = vmul.f32 %v3174_v59, %v3174_v59  ;;  %v492_v28 = vmul.f32 %v3177_v25, %v3177_v25  ;;  %2394 = vmatprep.subr.bf16.mxu0 %v2536_v51 }
  0xc6   : > { %2395 = vmatpush3.bf16.msra.mxu0 %v2536_v51 }
  0xc7   : > { %v3186_v15 = vsub.f32 %v3012_v32, %v429_v6  ;;  %v3189_v29 = vsub.f32 %v3015_v33, %v430_v12  ;;  %v551_v18 = vsel %vm315_vm0, %v491_v14, 0.0  ;;  %v554_v23 = vsel %vm315_vm0, %v492_v28, 0.0  ;;  %v2537_v6 = vld [vmem:[%s4596_s3] sm:$0xff]  }
  0xc8   : > { %549 = vadd.xlane.f32.xlu1 %v548_v4  ;;  %552 = vadd.xlane.f32.xlu0 %v551_v18  ;;  %v372_v19 = vpop.xlane.xlu0 %371  ;;  %v375_v22 = vpop.xlane.xlu1 %374 }
  0xc9   : > { %v431_v0 = vmul.f32 0.03125, %v372_v19  ;;  %v432_v16 = vmul.f32 0.03125, %v375_v22  ;;  %v493_v30 = vmul.f32 %v3186_v15, %v3186_v15  ;;  %v494_v32 = vmul.f32 %v3189_v29, %v3189_v29  ;;  %2396 = vmatprep.subr.bf16.mxu0 %v2537_v6 }
  0xca   : > { %2397 = vmatpush3.bf16.msra.mxu0 %v2537_v6 }
  0xcb   : > { %v3198_v31 = vsub.f32 %v3022_v36, %v431_v0  ;;  %v3201_v33 = vsub.f32 %v3025_v37, %v432_v16  ;;  %v557_v34 = vsel %vm315_vm0, %v493_v30, 0.0  ;;  %v560_v39 = vsel %vm315_vm0, %v494_v32, 0.0 }
  0xcc   : > { %555 = vadd.xlane.f32.xlu1 %v554_v23  ;;  %558 = vadd.xlane.f32.xlu0 %v557_v34  ;;  %v378_v35 = vpop.xlane.xlu0 %377  ;;  %v381_v38 = vpop.xlane.xlu1 %380 }
  0xcd   : > { %v433_v42 = vmul.f32 0.03125, %v378_v35  ;;  %v434_v20 = vmul.f32 0.03125, %v381_v38  ;;  %v495_v46 = vmul.f32 %v3198_v31, %v3198_v31  ;;  %v496_v36 = vmul.f32 %v3201_v33, %v3201_v33 }
  0xcf   : > { %v3210_v47 = vsub.f32 %v3032_v40, %v433_v42  ;;  %v3213_v37 = vsub.f32 %v3035_v41, %v434_v20  ;;  %v563_v50 = vsel %vm315_vm0, %v495_v46, 0.0  ;;  %v566_v58 = vsel %vm315_vm0, %v496_v36, 0.0 }
  0xd0   : > { %561 = vadd.xlane.f32.xlu1 %v560_v39  ;;  %564 = vadd.xlane.f32.xlu0 %v563_v50  ;;  %v384_v54 = vpop.xlane.xlu0 %383  ;;  %v387_v8 = vpop.xlane.xlu1 %386 }
  0xd1   : > { %v435_v24 = vmul.f32 0.03125, %v384_v54  ;;  %v436_v62 = vmul.f32 0.03125, %v387_v8  ;;  %v497_v40 = vmul.f32 %v3210_v47, %v3210_v47  ;;  %v498_v41 = vmul.f32 %v3213_v37, %v3213_v37 }
  0xd3   : > { %v3225_v63 = vsub.f32 %v3042_v44, %v435_v24  ;;  %v3228_v3 = vsub.f32 %v3045_v45, %v436_v62  ;;  %v569_v4 = vsel %vm315_vm0, %v497_v40, 0.0  ;;  %v572_v28 = vsel %vm315_vm0, %v498_v41, 0.0 }
  0xd4   : > { %567 = vadd.xlane.f32.xlu1 %v566_v58  ;;  %570 = vadd.xlane.f32.xlu0 %v569_v4  ;;  %v390_v12 = vpop.xlane.xlu0 %389  ;;  %v393_v14 = vpop.xlane.xlu1 %392 }
  0xd5   : > { %v437_v18 = vmul.f32 0.03125, %v390_v12  ;;  %v438_v19 = vmul.f32 0.03125, %v393_v14  ;;  %v499_v44 = vmul.f32 %v3225_v63, %v3225_v63  ;;  %v500_v45 = vmul.f32 %v3228_v3, %v3228_v3 }
  0xd7   : > { %v3240_v22 = vsub.f32 %v3052_v48, %v437_v18  ;;  %v3243_v23 = vsub.f32 %v3055_v49, %v438_v19  ;;  %v575_v0 = vsel %vm315_vm0, %v499_v44, 0.0  ;;  %v578_v32 = vsel %vm315_vm0, %v500_v45, 0.0 }
  0xd8   : > { %573 = vadd.xlane.f32.xlu1 %v572_v28  ;;  %576 = vadd.xlane.f32.xlu0 %v575_v0  ;;  %v396_v16 = vpop.xlane.xlu0 %395  ;;  %v399_v30 = vpop.xlane.xlu1 %398 }
  0xd9   : > { %v439_v34 = vmul.f32 0.03125, %v396_v16  ;;  %v440_v35 = vmul.f32 0.03125, %v399_v30  ;;  %v501_v38 = vmul.f32 %v3240_v22, %v3240_v22  ;;  %v502_v48 = vmul.f32 %v3243_v23, %v3243_v23 }
  0xdb   : > { %v3252_v39 = vsub.f32 %v3062_v52, %v439_v34  ;;  %v3255_v49 = vsub.f32 %v3065_v53, %v440_v35  ;;  %v581_v42 = vsel %vm315_vm0, %v501_v38, 0.0  ;;  %v584_v36 = vsel %vm315_vm0, %v502_v48, 0.0 }
  0xdc   : > { %579 = vadd.xlane.f32.xlu1 %v578_v32  ;;  %582 = vadd.xlane.f32.xlu0 %v581_v42  ;;  %v402_v20 = vpop.xlane.xlu0 %401  ;;  %v405_v46 = vpop.xlane.xlu1 %404 }
  0xdd   : > { %v441_v50 = vmul.f32 0.03125, %v402_v20  ;;  %v442_v51 = vmul.f32 0.03125, %v405_v46  ;;  %v503_v54 = vmul.f32 %v3252_v39, %v3252_v39  ;;  %v504_v52 = vmul.f32 %v3255_v49, %v3255_v49 }
  0xdf   : > { %v3264_v8 = vsub.f32 %v3072_v56, %v441_v50  ;;  %v3267_v53 = vsub.f32 %v3075_v57, %v442_v51  ;;  %v587_v58 = vsel %vm315_vm0, %v503_v54, 0.0  ;;  %v590_v40 = vsel %vm315_vm0, %v504_v52, 0.0 }
  0xe0   : > { %585 = vadd.xlane.f32.xlu1 %v584_v36  ;;  %588 = vadd.xlane.f32.xlu0 %v587_v58  ;;  %v408_v24 = vpop.xlane.xlu0 %407  ;;  %v411_v62 = vpop.xlane.xlu1 %410 }
  0xe1   : > { %v443_v41 = vmul.f32 0.03125, %v408_v24  ;;  %v444_v4 = vmul.f32 0.03125, %v411_v62  ;;  %v505_v6 = vmul.f32 %v3264_v8, %v3264_v8  ;;  %v506_v56 = vmul.f32 %v3267_v53, %v3267_v53 }
  0xe3   : > { %v3276_v12 = vsub.f32 %v3082_v60, %v443_v41  ;;  %v3279_v57 = vsub.f32 %v3085_v61, %v444_v4  ;;  %v593_v14 = vsel %vm315_vm0, %v505_v6, 0.0  ;;  %v596_v28 = vsel %vm315_vm0, %v506_v56, 0.0 }
  0xe4   : > { %591 = vadd.xlane.f32.xlu1 %v590_v40  ;;  %594 = vadd.xlane.f32.xlu0 %v593_v14 }
  0xe5   : > { %v507_v18 = vmul.f32 %v3276_v12, %v3276_v12  ;;  %v508_v19 = vmul.f32 %v3279_v57, %v3279_v57 }
  0xe7   : > { %v599_v44 = vsel %vm315_vm0, %v507_v18, 0.0  ;;  %v602_v60 = vsel %vm315_vm0, %v508_v19, 0.0  ;;  %v3292_v18 = vld [vmem:[%s4594_s1] ss:$0 sm:$0xff] }
  0xe8   : > { %597 = vadd.xlane.f32.xlu1 %v596_v28  ;;  %600 = vadd.xlane.f32.xlu0 %v599_v44 }
  0xec   : > { %603 = vadd.xlane.f32.xlu1 %v602_v60 }
 0x135   : > { %v511_v61 = vpop.xlane.xlu0 %510 }
 0x136   : > { %v605_v45 = vmul.f32 0.03125, %v511_v61 }
 0x138   : > { %v637_v0 = vadd.f32 1e-05, %v605_v45 }
 0x139   : > { %v514_v16 = vpop.xlane.xlu1 %513  ;;  %v517_v30 = vpop.xlane.xlu0 %516 }
 0x13a   : > { %2546 = vrsqrt.f32 %v637_v0  ;;  %v606_v32 = vmul.f32 0.03125, %v514_v16  ;;  %v607_v34 = vmul.f32 0.03125, %v517_v30 }
 0x13c   : > { %v638_v35 = vadd.f32 1e-05, %v606_v32  ;;  %v639_v38 = vadd.f32 1e-05, %v607_v34 }
 0x13d   : > { %v520_v48 = vpop.xlane.xlu1 %519  ;;  %v523_v42 = vpop.xlane.xlu0 %522 }
 0x13e   : > { %2548 = vrsqrt.f32 %v638_v35  ;;  %v608_v20 = vmul.f32 0.03125, %v520_v48  ;;  %v609_v46 = vmul.f32 0.03125, %v523_v42  ;;  %v3299_v35 = vld [vmem:[%s4595_s2] ss:$0 sm:$0xff] }
 0x13f   : > { %2550 = vrsqrt.f32 %v639_v38 }
 0x140   : > { %v640_v36 = vadd.f32 1e-05, %v608_v20  ;;  %v641_v50 = vadd.f32 1e-05, %v609_v46 }
 0x141   : > { %v526_v51 = vpop.xlane.xlu1 %525  ;;  %v529_v54 = vpop.xlane.xlu0 %528 }
 0x142   : > { %2552 = vrsqrt.f32 %v640_v36  ;;  %v610_v52 = vmul.f32 0.03125, %v526_v51  ;;  %v611_v58 = vmul.f32 0.03125, %v529_v54 }
 0x143   : > { %2554 = vrsqrt.f32 %v641_v50 }
 0x144   : > { %v642_v24 = vadd.f32 1e-05, %v610_v52  ;;  %v643_v62 = vadd.f32 1e-05, %v611_v58 }
 0x145   : > { %v532_v40 = vpop.xlane.xlu1 %531  ;;  %v535_v41 = vpop.xlane.xlu0 %534 }
 0x146   : > { %2556 = vrsqrt.f32 %v642_v24  ;;  %v612_v4 = vmul.f32 0.03125, %v532_v40  ;;  %v613_v6 = vmul.f32 0.03125, %v535_v41 }
 0x147   : > { %v2547_v56 = vpop.eup %2546  ;;  %2558 = vrsqrt.f32 %v643_v62 }
 0x148   : > { %v644_v14 = vadd.f32 1e-05, %v612_v4  ;;  %v645_v28 = vadd.f32 1e-05, %v613_v6  ;;  %v701_v19 = vmul.f32 %v2547_v56, %v3092_v10 }
 0x149   : > { %v538_v44 = vpop.xlane.xlu1 %537  ;;  %v541_v60 = vpop.xlane.xlu0 %540 }
 0x14a   : > { %2560 = vrsqrt.f32 %v644_v14  ;;  %v614_v61 = vmul.f32 0.03125, %v538_v44  ;;  %v615_v45 = vmul.f32 0.03125, %v541_v60  ;;  %v739_v16 = vmul.f32 %v3292_v18, %v701_v19 }
 0x14b   : > { %v2549_v0 = vpop.eup %2548  ;;  %2562 = vrsqrt.f32 %v645_v28 }
 0x14c   : > { %v2551_v30 = vpop.eup %2550  ;;  %v646_v32 = vadd.f32 1e-05, %v614_v61  ;;  %v647_v34 = vadd.f32 1e-05, %v615_v45  ;;  %v702_v38 = vmul.f32 %v2549_v0, %v3102_v26  ;;  %v777_v51 = vadd.f32 %v3299_v35, %v739_v16 }
 0x14d   : > { %v544_v10 = vpop.xlane.xlu1 %543  ;;  %v547_v48 = vpop.xlane.xlu0 %546  ;;  %v703_v42 = vmul.f32 %v2551_v30, %v3095_v11 }
 0x14e   : > { %2564 = vrsqrt.f32 %v646_v32  ;;  %v616_v20 = vmul.f32 0.03125, %v544_v10  ;;  %v617_v46 = vmul.f32 0.03125, %v547_v48  ;;  %v740_v36 = vmul.f32 %v3292_v18, %v702_v38 }
 0x14f   : > { %v2553_v50 = vpop.eup %2552  ;;  %2566 = vrsqrt.f32 %v647_v34  ;;  %v741_v11 = vmul.f32 %v3292_v18, %v703_v42 }
 0x150   : > { %v2555_v54 = vpop.eup %2554  ;;  %v648_v52 = vadd.f32 1e-05, %v616_v20  ;;  %v649_v58 = vadd.f32 1e-05, %v617_v46  ;;  %v778_v24 = vadd.f32 %v3299_v35, %v740_v36  ;;  %v704_v26 = vmul.f32 %v2553_v50, %v3105_v27 }
 0x151   : > { %v550_v62 = vpop.xlane.xlu1 %549  ;;  %v553_v40 = vpop.xlane.xlu0 %552  ;;  %v705_v41 = vmul.f32 %v2555_v54, %v3114_v2  ;;  %v779_v2 = vadd.f32 %v3299_v35, %v741_v11 }
 0x152   : > { %2568 = vrsqrt.f32 %v648_v52  ;;  %v618_v4 = vmul.f32 0.03125, %v550_v62  ;;  %v619_v6 = vmul.f32 0.03125, %v553_v40  ;;  %v809_v56 = vpack.c.bf16 %v778_v24, %v777_v51 }
 0x153   : > { %v2557_v14 = vpop.eup %2556  ;;  %2570 = vrsqrt.f32 %v649_v58  ;;  %v742_v28 = vmul.f32 %v3292_v18, %v704_v26  ;;  %v743_v19 = vmul.f32 %v3292_v18, %v705_v41 }
 0x154   : > { %v2559_v44 = vpop.eup %2558  ;;  %v650_v60 = vadd.f32 1e-05, %v618_v4  ;;  %v651_v61 = vadd.f32 1e-05, %v619_v6  ;;  %2398 = vmatprep.mubr.msk.bf16.mxu0 %vm315_vm0, %v809_v56  ;;  %v706_v27 = vmul.f32 %v2557_v14, %v3117_v5 }
 0x155   : > { %v556_v45 = vpop.xlane.xlu1 %555  ;;  %v559_v0 = vpop.xlane.xlu0 %558  ;;  %v780_v16 = vadd.f32 %v3299_v35, %v742_v28  ;;  %v707_v30 = vmul.f32 %v2559_v44, %v3126_v55  ;;  %v781_v42 = vadd.f32 %v3299_v35, %v743_v19 }
 0x156   : > { %2572 = vrsqrt.f32 %v650_v60  ;;  %v620_v32 = vmul.f32 0.03125, %v556_v45  ;;  %v621_v34 = vmul.f32 0.03125, %v559_v0  ;;  %v744_v38 = vmul.f32 %v3292_v18, %v706_v27 }
 0x157   : > { %v2561_v10 = vpop.eup %2560  ;;  %2574 = vrsqrt.f32 %v651_v61  ;;  %v810_v48 = vpack.c.bf16 %v780_v16, %v779_v2  ;;  %v745_v54 = vmul.f32 %v3292_v18, %v707_v30 }
 0x158   : > { %v2563_v20 = vpop.eup %2562  ;;  %v652_v5 = vadd.f32 1e-05, %v620_v32  ;;  %v653_v46 = vadd.f32 1e-05, %v621_v34  ;;  %v782_v36 = vadd.f32 %v3299_v35, %v744_v38  ;;  %v708_v50 = vmul.f32 %v2561_v10, %v3129_v9 }
 0x159   : > { %2399 = vmatmul.mubr.msk.bf16.vlgmr.msra.gmra.mxu0 %vm315_vm0, %v810_v48  ;;  %v562_v55 = vpop.xlane.xlu1 %561  ;;  %v565_v51 = vpop.xlane.xlu0 %564  ;;  %v709_v52 = vmul.f32 %v2563_v20, %v3138_v7  ;;  %v783_v7 = vadd.f32 %v3299_v35, %v745_v54 }
 0x15a   : > { %2576 = vrsqrt.f32 %v652_v5  ;;  %v622_v58 = vmul.f32 0.03125, %v562_v55  ;;  %v623_v24 = vmul.f32 0.03125, %v565_v51  ;;  %v811_v26 = vpack.c.bf16 %v782_v36, %v781_v42 }
 0x15b   : > { %v2565_v62 = vpop.eup %2564  ;;  %2578 = vrsqrt.f32 %v653_v46  ;;  %v746_v40 = vmul.f32 %v3292_v18, %v708_v50  ;;  %v747_v11 = vmul.f32 %v3292_v18, %v709_v52 }
 0x15c   : > { %v2567_v41 = vpop.eup %2566  ;;  %v654_v9 = vadd.f32 1e-05, %v622_v58  ;;  %v655_v4 = vadd.f32 1e-05, %v623_v24  ;;  %2402 = vmatprep.mubr.msk.bf16.mxu0 %vm315_vm0, %v811_v26  ;;  %v710_v6 = vmul.f32 %v2565_v62, %v3141_v13 }
 0x15d   : > { %v568_v56 = vpop.xlane.xlu1 %567  ;;  %v571_v14 = vpop.xlane.xlu0 %570  ;;  %v784_v28 = vadd.f32 %v3299_v35, %v746_v40  ;;  %v711_v19 = vmul.f32 %v2567_v41, %v3150_v1  ;;  %v785_v0 = vadd.f32 %v3299_v35, %v747_v11 }
 0x15e   : > { %2580 = vrsqrt.f32 %v654_v9  ;;  %v624_v44 = vmul.f32 0.03125, %v568_v56  ;;  %v625_v60 = vmul.f32 0.03125, %v571_v14  ;;  %v748_v61 = vmul.f32 %v3292_v18, %v710_v6 }
 0x15f   : > { %v2569_v27 = vpop.eup %2568  ;;  %2582 = vrsqrt.f32 %v655_v4  ;;  %v812_v45 = vpack.c.bf16 %v784_v28, %v783_v7  ;;  %v749_v38 = vmul.f32 %v3292_v18, %v711_v19 }
 0x160   : > { %v2571_v2 = vpop.eup %2570  ;;  %v656_v13 = vadd.f32 1e-05, %v624_v44  ;;  %v657_v16 = vadd.f32 1e-05, %v625_v60  ;;  %v786_v30 = vadd.f32 %v3299_v35, %v748_v61  ;;  %v712_v32 = vmul.f32 %v2569_v27, %v3153_v17 }
 0x161   : > { %2403 = vmatmul.mubr.msk.bf16.gmra.mxu0 %vm315_vm0, %v812_v45  ;;  %v574_v1 = vpop.xlane.xlu1 %573  ;;  %v577_v34 = vpop.xlane.xlu0 %576  ;;  %v713_v10 = vmul.f32 %v2571_v2, %v3162_v43  ;;  %v787_v43 = vadd.f32 %v3299_v35, %v749_v38 }
 0x162   : > { %2584 = vrsqrt.f32 %v656_v13  ;;  %v626_v48 = vmul.f32 0.03125, %v574_v1  ;;  %v627_v42 = vmul.f32 0.03125, %v577_v34  ;;  %v813_v20 = vpack.c.bf16 %v786_v30, %v785_v0 }
 0x163   : > { %v2573_v5 = vpop.eup %2572  ;;  %2586 = vrsqrt.f32 %v657_v16  ;;  %v750_v46 = vmul.f32 %v3292_v18, %v712_v32  ;;  %v751_v36 = vmul.f32 %v3292_v18, %v713_v10 }
 0x164   : > { %v2575_v50 = vpop.eup %2574  ;;  %v658_v17 = vadd.f32 1e-05, %v626_v48  ;;  %v659_v55 = vadd.f32 1e-05, %v627_v42  ;;  %2406 = vmatprep.mubr.msk.bf16.mxu0 %vm315_vm0, %v813_v20  ;;  %v714_v51 = vmul.f32 %v2573_v5, %v3165_v21 }
 0x165   : > { %v580_v54 = vpop.xlane.xlu1 %579  ;;  %v583_v52 = vpop.xlane.xlu0 %582  ;;  %v788_v58 = vadd.f32 %v3299_v35, %v750_v46  ;;  %v715_v24 = vmul.f32 %v2575_v50, %v3174_v59  ;;  %v789_v9 = vadd.f32 %v3299_v35, %v751_v36 }
 0x166   : > { %2588 = vrsqrt.f32 %v658_v17  ;;  %v628_v26 = vmul.f32 0.03125, %v580_v54  ;;  %v629_v62 = vmul.f32 0.03125, %v583_v52  ;;  %v752_v40 = vmul.f32 %v3292_v18, %v714_v51 }
 0x167   : > { %v2577_v11 = vpop.eup %2576  ;;  %2590 = vrsqrt.f32 %v659_v55  ;;  %v814_v41 = vpack.c.bf16 %v788_v58, %v787_v43  ;;  %v753_v28 = vmul.f32 %v3292_v18, %v715_v24 }
 0x168   : > { %v2579_v4 = vpop.eup %2578  ;;  %v660_v21 = vadd.f32 1e-05, %v628_v26  ;;  %v661_v6 = vadd.f32 1e-05, %v629_v62  ;;  %v790_v56 = vadd.f32 %v3299_v35, %v752_v40  ;;  %v716_v14 = vmul.f32 %v2577_v11, %v3177_v25 }
 0x169   : > { %2407 = vmatmul.mubr.msk.bf16.gmra.mxu0 %vm315_vm0, %v814_v41  ;;  %v586_v59 = vpop.xlane.xlu1 %585  ;;  %v589_v7 = vpop.xlane.xlu0 %588  ;;  %v717_v19 = vmul.f32 %v2579_v4, %v3186_v15  ;;  %v791_v15 = vadd.f32 %v3299_v35, %v753_v28 }
 0x16a   : > { %2592 = vrsqrt.f32 %v660_v21  ;;  %v630_v44 = vmul.f32 0.03125, %v586_v59  ;;  %v631_v60 = vmul.f32 0.03125, %v589_v7  ;;  %v815_v61 = vpack.c.bf16 %v790_v56, %v789_v9 }
 0x16b   : > { %v2581_v27 = vpop.eup %2580  ;;  %2594 = vrsqrt.f32 %v661_v6  ;;  %v754_v45 = vmul.f32 %v3292_v18, %v716_v14  ;;  %v755_v0 = vmul.f32 %v3292_v18, %v717_v19 }
 0x16c   : > { %v2583_v2 = vpop.eup %2582  ;;  %v662_v25 = vadd.f32 1e-05, %v630_v44  ;;  %v663_v13 = vadd.f32 1e-05, %v631_v60  ;;  %2410 = vmatprep.mubr.msk.bf16.mxu0 %vm315_vm0, %v815_v61  ;;  %v718_v16 = vmul.f32 %v2581_v27, %v3189_v29 }
 0x16d   : > { %v592_v30 = vpop.xlane.xlu1 %591  ;;  %v595_v32 = vpop.xlane.xlu0 %594  ;;  %v792_v1 = vadd.f32 %v3299_v35, %v754_v45  ;;  %v719_v34 = vmul.f32 %v2583_v2, %v3198_v31  ;;  %v793_v5 = vadd.f32 %v3299_v35, %v755_v0 }
 0x16e   : > { %2596 = vrsqrt.f32 %v662_v25  ;;  %v632_v38 = vmul.f32 0.03125, %v592_v30  ;;  %v633_v10 = vmul.f32 0.03125, %v595_v32  ;;  %v756_v48 = vmul.f32 %v3292_v18, %v718_v16 }
 0x16f   : > { %v2585_v42 = vpop.eup %2584  ;;  %2598 = vrsqrt.f32 %v663_v13  ;;  %v816_v20 = vpack.c.bf16 %v792_v1, %v791_v15  ;;  %v757_v51 = vmul.f32 %v3292_v18, %v719_v34 }
 0x170   : > { %v2587_v46 = vpop.eup %2586  ;;  %v664_v29 = vadd.f32 1e-05, %v632_v38  ;;  %v665_v36 = vadd.f32 1e-05, %v633_v10  ;;  %v794_v50 = vadd.f32 %v3299_v35, %v756_v48  ;;  %v720_v17 = vmul.f32 %v2585_v42, %v3201_v33 }
 0x171   : > { %2411 = vmatmul.mubr.msk.bf16.gmra.mxu0 %vm315_vm0, %v816_v20  ;;  %v598_v31 = vpop.xlane.xlu1 %597  ;;  %v601_v55 = vpop.xlane.xlu0 %600  ;;  %v721_v54 = vmul.f32 %v2587_v46, %v3210_v47  ;;  %v795_v47 = vadd.f32 %v3299_v35, %v757_v51 }
 0x172   : > { %2600 = vrsqrt.f32 %v664_v29  ;;  %v634_v52 = vmul.f32 0.03125, %v598_v31  ;;  %v635_v43 = vmul.f32 0.03125, %v601_v55  ;;  %v817_v58 = vpack.c.bf16 %v794_v50, %v793_v5 }
 0x173   : > { %v2589_v24 = vpop.eup %2588  ;;  %2602 = vrsqrt.f32 %v665_v36  ;;  %v758_v26 = vmul.f32 %v3292_v18, %v720_v17  ;;  %v759_v62 = vmul.f32 %v3292_v18, %v721_v54 }
 0x174   : > { %v2591_v40 = vpop.eup %2590  ;;  %v666_v33 = vadd.f32 1e-05, %v634_v52  ;;  %v667_v11 = vadd.f32 1e-05, %v635_v43  ;;  %2414 = vmatprep.mubr.msk.bf16.mxu0 %vm315_vm0, %v817_v58  ;;  %v722_v41 = vmul.f32 %v2589_v24, %v3213_v37  ;;  %v2541_v24 = vld [vmem:[%s4598_s5 + $0x20] sm:$0xff]  }
 0x175   : > { %v604_v9 = vpop.xlane.xlu1 %603  ;;  %v796_v4 = vadd.f32 %v3299_v35, %v758_v26  ;;  %v723_v21 = vmul.f32 %v2591_v40, %v3225_v63  ;;  %v797_v7 = vadd.f32 %v3299_v35, %v759_v62  ;;  %v2542_v26 = vld [vmem:[%s4598_s5 + $0x18] sm:$0xff]  }
 0x176   : > { %2604 = vrsqrt.f32 %v666_v33  ;;  %v636_v6 = vmul.f32 0.03125, %v604_v9  ;;  %v760_v56 = vmul.f32 %v3292_v18, %v722_v41  ;;  %v3429_v33 = vld [vmem:[%s4597_s4] ss:$0 sm:$0xff]  ;;  %v2543_v41 = vld [vmem:[%s4598_s5 + $0x10] sm:$0xff]  }
 0x177   : > { %v2593_v14 = vpop.eup %2592  ;;  %2606 = vrsqrt.f32 %v667_v11  ;;  %v818_v59 = vpack.c.bf16 %v796_v4, %v795_v47  ;;  %v761_v60 = vmul.f32 %v3292_v18, %v723_v21 }
 0x178   : > { %v2595_v28 = vpop.eup %2594  ;;  %v668_v19 = vadd.f32 1e-05, %v636_v6  ;;  %v798_v37 = vadd.f32 %v3299_v35, %v760_v56  ;;  %v724_v44 = vmul.f32 %v2593_v14, %v3228_v3 }
 0x179   : > { %2415 = vmatmul.mubr.msk.bf16.gmra.mxu0 %vm315_vm0, %v818_v59  ;;  %v725_v63 = vmul.f32 %v2595_v28, %v3240_v22  ;;  %v799_v2 = vadd.f32 %v3299_v35, %v761_v60 }
 0x17a   : > { %2608 = vrsqrt.f32 %v668_v19  ;;  %v819_v61 = vpack.c.bf16 %v798_v37, %v797_v7  ;;  %v762_v27 = vmul.f32 %v3292_v18, %v724_v44 }
 0x17b   : > { %v2597_v45 = vpop.eup %2596  ;;  %v763_v13 = vmul.f32 %v3292_v18, %v725_v63  ;;  %v2544_v63 = vld [vmem:[%s4598_s5 + $0x8] sm:$0xff]  }
 0x17c   : > { %v2599_v0 = vpop.eup %2598  ;;  %2418 = vmatprep.mubr.msk.bf16.mxu0 %vm315_vm0, %v819_v61  ;;  %v800_v25 = vadd.f32 %v3299_v35, %v762_v27  ;;  %v726_v3 = vmul.f32 %v2597_v45, %v3243_v23 }
 0x17d   : > { %v727_v16 = vmul.f32 %v2599_v0, %v3252_v39  ;;  %v801_v1 = vadd.f32 %v3299_v35, %v763_v13 }
 0x17e   : > { %v820_v30 = vpack.c.bf16 %v800_v25, %v799_v2  ;;  %v764_v22 = vmul.f32 %v3292_v18, %v726_v3 }
 0x17f   : > { %v2601_v32 = vpop.eup %2600  ;;  %v765_v10 = vmul.f32 %v3292_v18, %v727_v16 }
 0x180   : > { %v2603_v15 = vpop.eup %2602  ;;  %v802_v34 = vadd.f32 %v3299_v35, %v764_v22  ;;  %v728_v38 = vmul.f32 %v2601_v32, %v3255_v49 }
 0x181   : > { %2419 = vmatmul.mubr.msk.bf16.gmra.mxu0 %vm315_vm0, %v820_v30  ;;  %v729_v23 = vmul.f32 %v2603_v15, %v3264_v8  ;;  %v803_v5 = vadd.f32 %v3299_v35, %v765_v10 }
 0x182   : > { %v821_v48 = vpack.c.bf16 %v802_v34, %v801_v1  ;;  %v766_v39 = vmul.f32 %v3292_v18, %v728_v38 }
 0x183   : > { %v2605_v42 = vpop.eup %2604  ;;  %v767_v49 = vmul.f32 %v3292_v18, %v729_v23 }
 0x184   : > { %v2607_v20 = vpop.eup %2606  ;;  %2422 = vmatprep.mubr.msk.bf16.mxu0 %vm315_vm0, %v821_v48  ;;  %v804_v46 = vadd.f32 %v3299_v35, %v766_v39  ;;  %v730_v29 = vmul.f32 %v2605_v42, %v3267_v53  ;;  %v2545_v42 = vld [vmem:[%s4598_s5] sm:$0xff]  }
 0x185   : > { %v731_v36 = vmul.f32 %v2607_v20, %v3276_v12  ;;  %v805_v31 = vadd.f32 %v3299_v35, %v767_v49 }
 0x186   : > { %v822_v50 = vpack.c.bf16 %v804_v46, %v803_v5  ;;  %v768_v8 = vmul.f32 %v3292_v18, %v730_v29 }
 0x187   : > { %v2609_v17 = vpop.eup %2608  ;;  %v769_v54 = vmul.f32 %v3292_v18, %v731_v36 }
 0x188   : > { %v806_v55 = vadd.f32 %v3299_v35, %v768_v8  ;;  %v732_v51 = vmul.f32 %v2609_v17, %v3279_v57  ;;  %v2538_v57 = vld [vmem:[%s4598_s5 + $0x38] sm:$0xff]  }
 0x189   : > { %2423 = vmatmul.mubr.msk.bf16.gmra.mxu0 %vm315_vm0, %v822_v50  ;;  %v807_v12 = vadd.f32 %v3299_v35, %v769_v54  ;;  %2430 = vmatprep.subr.bf16.mxu0 %v2538_v57 }
 0x18a   : > { %v823_v52 = vpack.c.bf16 %v806_v55, %v805_v31  ;;  %v770_v53 = vmul.f32 %v3292_v18, %v732_v51  ;;  %2478 = vmatprep.subr.bf16.mxu1 %v2538_v57  ;;  %2431 = vmatpush3.bf16.msra.mxu0 %v2538_v57  ;;  %v2539_v18 = vld [vmem:[%s4598_s5 + $0x30] sm:$0xff]  }
 0x18b   : > { %2486 = vmatpush3.bf16.msra.mxu1 %v2538_v57  ;;  %2432 = vmatprep.subr.bf16.mxu0 %v2539_v18 }
 0x18c   : > { %2426 = vmatprep.mubr.msk.bf16.mxu0 %vm315_vm0, %v823_v52  ;;  %v808_v43 = vadd.f32 %v3299_v35, %v770_v53  ;;  %2479 = vmatprep.subr.bf16.mxu1 %v2539_v18  ;;  %v2540_v35 = vld [vmem:[%s4598_s5 + $0x28] sm:$0xff]  }
 0x18e   : > { %v824_v58 = vpack.c.bf16 %v808_v43, %v807_v12  ;;  %2433 = vmatpush3.bf16.msra.mxu0 %v2539_v18 }
 0x18f   : > { %2487 = vmatpush3.bf16.msra.mxu1 %v2539_v18  ;;  %2434 = vmatprep.subr.bf16.mxu0 %v2540_v35 }
 0x190   : > { %2480 = vmatprep.subr.bf16.mxu1 %v2540_v35 }
 0x191   : > { %2427 = vmatmul.mubr.msk.bf16.gmra.mxu0 %vm315_vm0, %v824_v58 }
 0x192   : > { %2435 = vmatpush3.bf16.msra.mxu0 %v2540_v35 }
 0x193   : > { %2488 = vmatpush3.bf16.msra.mxu1 %v2540_v35  ;;  %2436 = vmatprep.subr.bf16.mxu0 %v2541_v24 }
 0x194   : > { %2481 = vmatprep.subr.bf16.mxu1 %v2541_v24 }
 0x196   : > { %2437 = vmatpush3.bf16.msra.mxu0 %v2541_v24 }
 0x197   : > { %2489 = vmatpush3.bf16.msra.mxu1 %v2541_v24  ;;  %2438 = vmatprep.subr.bf16.mxu0 %v2542_v26 }
 0x198   : > { %2482 = vmatprep.subr.bf16.mxu1 %v2542_v26 }
 0x19a   : > { %2439 = vmatpush3.bf16.msra.mxu0 %v2542_v26 }
 0x19b   : > { %2490 = vmatpush3.bf16.msra.mxu1 %v2542_v26  ;;  %2440 = vmatprep.subr.bf16.mxu0 %v2543_v41 }
 0x19c   : > { %2483 = vmatprep.subr.bf16.mxu1 %v2543_v41 }
 0x19e   : > { %2441 = vmatpush3.bf16.msra.mxu0 %v2543_v41 }
 0x19f   : > { %2491 = vmatpush3.bf16.msra.mxu1 %v2543_v41  ;;  %2442 = vmatprep.subr.bf16.mxu0 %v2544_v63 }
 0x1a0   : > { %2484 = vmatprep.subr.bf16.mxu1 %v2544_v63 }
 0x1a2   : > { %2443 = vmatpush3.bf16.msra.mxu0 %v2544_v63 }
 0x1a3   : > { %2492 = vmatpush3.bf16.msra.mxu1 %v2544_v63  ;;  %2444 = vmatprep.subr.bf16.mxu0 %v2545_v42 }
 0x1a4   : > { %2485 = vmatprep.subr.bf16.mxu1 %v2545_v42 }
 0x1a6   : > { %2445 = vmatpush3.bf16.msra.mxu0 %v2545_v42 }
 0x1a7   : > { %2493 = vmatpush3.bf16.msra.mxu1 %v2545_v42 }
 0x219   : > { %v2400_v62 = vpop.f32.mrf.mxu0 }
 0x21a   : > { %v3435_v9 = vadd.f32 %v2400_v62, %v3429_v33 }
 0x21b   : > { %v930_v40 = vpop.f32.mrf.mxu0 }
 0x21c   : > { %v3438_v4 = vmul.f32 0.70710677, %v3435_v9  ;;  %v3441_v21 = vadd.f32 %v3429_v33, %v930_v40  ;;  %v3510_v53 = vmul.f32 0.5, %v3435_v9  ;;  %v4601_v40 = vmov -1.0  }
 0x21d   : > { %v2401_v11 = vpop.f32.mrf.mxu0 }
 0x21e   : > { %v3444_v56 = vadd.f32 %v2401_v11, %v3429_v33  ;;  %v1187_v14 = vand.u32 2147483647, %v3438_v4  ;;  %v3448_v59 = vmul.f32 0.70710677, %v3441_v21  ;;  %vm1123_vm1 = vcmp.ge.f32.partialorder %v3438_v4, 0.0 }
 0x21f   : > { %v933_v47 = vpop.f32.mrf.mxu0  ;;  %v3520_v57 = vmul.f32 0.5, %v3441_v21  ;;  %v3528_v11 = vsel %vm1123_vm1, 1.0, %v4601_v40 }
 0x220   : > { %v3453_v28 = vmul.f32 0.70710677, %v3444_v56  ;;  %v3456_v19 = vadd.f32 %v3429_v33, %v933_v47  ;;  %v1219_v37 = vmul.f32 0.3275911, %v1187_v14  ;;  %v1185_v44 = vand.u32 2147483647, %v3448_v59 }
 0x221   : > { %v2404_v6 = vpop.f32.mrf.mxu0  ;;  %v1635_v29 = vsub.f32 0.0, %v1187_v14  ;;  %vm1121_vm2 = vcmp.ge.f32.partialorder %v3448_v59, 0.0  ;;  %v3535_v4 = vmul.f32 0.5, %v3444_v56 }
 0x222   : > { %v3460_v60 = vadd.f32 %v2404_v6, %v3429_v33  ;;  %v1188_v27 = vand.u32 2147483647, %v3453_v28  ;;  %v3467_v45 = vmul.f32 0.70710677, %v3456_v19  ;;  %v1251_v0 = vadd.f32 1.0, %v1219_v37 }
 0x223   : > { %v3450_v7 = vpop.f32.mrf.mxu0  ;;  %v1217_v2 = vmul.f32 0.3275911, %v1185_v44  ;;  %v1633_v36 = vsub.f32 0.0, %v1185_v44  ;;  %v1667_v55 = vmul.f32 %v1635_v29, %v1187_v14  ;;  %vm1124_vm3 = vcmp.ge.f32.partialorder %v3453_v28, 0.0 }
 0x224   : > { %v3470_v25 = vmul.f32 0.70710677, %v3460_v60  ;;  %v1220_v13 = vmul.f32 0.3275911, %v1188_v27  ;;  %v3476_v16 = vand.u32 2147483647, %v3467_v45  ;;  %2610 = vrcp.f32 %v1251_v0 }
 0x225   : > { %v2405_v61 = vpop.f32.mrf.mxu0  ;;  %v1249_v30 = vadd.f32 1.0, %v1217_v2  ;;  %v1636_v51 = vsub.f32 0.0, %v1188_v27  ;;  %v1665_v54 = vmul.f32 %v1633_v36, %v1185_v44  ;;  %v1701_v35 = vmul.f32 1.442695, %v1667_v55 }
 0x226   : > { %v3473_v3 = vadd.f32 %v2405_v61, %v3429_v33  ;;  %v3479_v22 = vand.u32 2147483647, %v3470_v25  ;;  %v1252_v15 = vadd.f32 1.0, %v1220_v13  ;;  %v1218_v1 = vmul.f32 0.3275911, %v3476_v16 }
 0x227   : > { %v3485_v34 = vpop.f32.mrf.mxu0  ;;  %2612 = vrcp.f32 %v1249_v30  ;;  %v1668_v24 = vmul.f32 %v1636_v51, %v1188_v27  ;;  %v1634_v26 = vsub.f32 0.0, %v3476_v16  ;;  %v947_v62 = vadd.f32 %v3429_v33, %v3450_v7 }
 0x228   : > { %v3482_v32 = vmul.f32 0.70710677, %v3473_v3  ;;  %v1223_v38 = vmul.f32 0.3275911, %v3479_v22  ;;  %2614 = vrcp.f32 %v1252_v15  ;;  %v1250_v23 = vadd.f32 1.0, %v1218_v1 }
 0x229   : > { %v2408_v48 = vpop.f32.mrf.mxu0  ;;  %v3531_v41 = vsel %vm1121_vm2, 1.0, %v4601_v40  ;;  %v1697_v9 = vmul.f32 1.442695, %v1665_v54  ;;  %vm1122_vm4 = vcmp.ge.f32.partialorder %v3467_v45, 0.0  ;;  %v3548_v37 = vsel %vm1124_vm3, 1.0, %v4601_v40 }
 0x22a   : > { %v3489_v10 = vand.u32 2147483647, %v3482_v32  ;;  %v1255_v39 = vadd.f32 1.0, %v1223_v38  ;;  %v3496_v5 = vadd.f32 %v2408_v48, %v3429_v33  ;;  %2616 = vrcp.f32 %v1250_v23 }
 0x22b   : > { %v962_v17 = vpop.f32.mrf.mxu0  ;;  %v3551_v56 = vmul.f32 0.5, %v3456_v19  ;;  %v1703_v63 = vmul.f32 1.442695, %v1668_v24  ;;  %v1666_v61 = vmul.f32 %v1634_v26, %v3476_v16  ;;  %v3556_v27 = vmul.f32 0.70710677, %v947_v62 }
 0x22c   : > { %v1224_v20 = vmul.f32 0.3275911, %v3489_v10  ;;  %2618 = vrcp.f32 %v1255_v39  ;;  %v3501_v50 = vmul.f32 0.70710677, %v3496_v5  ;;  %v3515_v12 = vadd.f32 %v3429_v33, %v962_v17 }
 0x22d   : > { %4638 = vst [vmem:[#allocation5_spill] sm:$0xff] %v3556_v27  ;;  %v3559_v45 = vsel %vm1122_vm4, 1.0, %v4601_v40  ;;  %v1639_v0 = vsub.f32 0.0, %v3479_v22  ;;  %v2409_v2 = vpop.f32.mrf.mxu0  ;;  %v3563_v19 = vmul.f32 0.5, %v3460_v60  ;;  %vm1127_vm5 = vcmp.ge.f32.partialorder %v3470_v25, 0.0 }
 0x22e   : > { %v1256_v49 = vadd.f32 1.0, %v1224_v20  ;;  %v3507_v52 = vand.u32 2147483647, %v3501_v50  ;;  %v3540_v6 = vmul.f32 0.70710677, %v3515_v12  ;;  %v3574_v39 = vadd.f32 %v2409_v2, %v3429_v33 }
 0x22f   : > { %v1699_v23 = vmul.f32 1.442695, %v1666_v61  ;;  %v1189_v48 = vand.u32 2147483647, %v3556_v27  ;;  %v1671_v42 = vmul.f32 %v1639_v0, %v3479_v22  ;;  %v3579_v20 = vmul.f32 0.5, %v947_v62 }
 0x230   : > { %2620 = vrcp.f32 %v1256_v49  ;;  %v1227_v47 = vmul.f32 0.3275911, %v3507_v52  ;;  %v3567_v30 = vand.u32 2147483647, %v3540_v6  ;;  %v950_v29 = vadd.f32 %v3429_v33, %v3485_v34  ;;  %v965_v49 = vpop.f32.mrf.mxu0 }
 0x231   : > { %v3498_v46 = vpop.eup %2610  ;;  %2622 = vpow2.f32 %v1701_v35  ;;  %4639 = vst [vmem:[#allocation6_spill] sm:$0xff] %v3579_v20  ;;  %v3590_v17 = vmul.f32 0.5, %v3473_v3  ;;  %v1637_v34 = vsub.f32 0.0, %v1189_v48  ;;  %v3596_v35 = vmul.f32 0.70710677, %v3574_v39 }
 0x232   : > { %v1347_v8 = vmul.f32 1.0614054, %v3498_v46  ;;  %2624 = vpow2.f32 %v1697_v9  ;;  %v1259_v28 = vadd.f32 1.0, %v1227_v47  ;;  %v1225_v55 = vmul.f32 0.3275911, %v3567_v30  ;;  %v2412_v62 = vpop.f32.mrf.mxu0 }
 0x233   : > { %2626 = vpow2.f32 %v1703_v63  ;;  %v1709_v25 = vmul.f32 1.442695, %v1671_v42  ;;  %v1221_v24 = vmul.f32 0.3275911, %v1189_v48  ;;  %v3598_v26 = vmul.f32 0.70710677, %v950_v29 }
 0x234   : > { %v3504_v31 = vpop.eup %2612  ;;  %v1379_v58 = vadd.f32 -1.4531521, %v1347_v8  ;;  %2628 = vrcp.f32 %v1259_v28  ;;  %v3587_v8 = vsel %vm1127_vm5, 1.0, %v4601_v40  ;;  %v3601_v3 = vadd.f32 %v3429_v33, %v965_v49 }
 0x235   : > { %v3517_v43 = vpop.eup %2614  ;;  %v1345_v18 = vmul.f32 1.0614054, %v3504_v31  ;;  %2630 = vpow2.f32 %v1699_v23  ;;  %4640 = vst [vmem:[#allocation7_spill] sm:$0xff] %v3598_v26  ;;  %vm1128_vm6 = vcmp.ge.f32.partialorder %v3482_v32, 0.0  ;;  %v1640_v47 = vsub.f32 0.0, %v3489_v10  ;;  %v978_v23 = vpop.f32.mrf.mxu0 }
 0x236   : > { %v1348_v21 = vmul.f32 1.0614054, %v3517_v43  ;;  %v1411_v59 = vmul.f32 %v3498_v46, %v1379_v58  ;;  %v1669_v0 = vmul.f32 %v1637_v34, %v1189_v48  ;;  %v3608_v2 = vmul.f32 0.5, %v950_v29 }
 0x237   : > { %v3542_v14 = vpop.eup %2616  ;;  %v1377_v7 = vadd.f32 -1.4531521, %v1345_v18  ;;  %2632 = vpow2.f32 %v1709_v25  ;;  %v3625_v29 = vsel %vm1128_vm6, 1.0, %v4601_v40  ;;  %v1672_v49 = vmul.f32 %v1640_v47, %v3489_v10 }
 0x238   : > { %v1380_v13 = vadd.f32 -1.4531521, %v1348_v21  ;;  %v1443_v16 = vadd.f32 1.4214138, %v1411_v59  ;;  %v1346_v1 = vmul.f32 1.0614054, %v3542_v14 }
 0x239   : > { %v3553_v44 = vpop.eup %2618  ;;  %v1409_v15 = vmul.f32 %v3504_v31, %v1377_v7  ;;  %v1257_v21 = vadd.f32 1.0, %v1225_v55  ;;  %4641 = vst [vmem:[#allocation8_spill] sm:$0xff] %v3608_v2  ;;  %vm1131_vm7 = vcmp.ge.f32.partialorder %v3501_v50, 0.0  ;;  %vm1129_vm8 = vcmp.ge.f32.partialorder %v3540_v6, 0.0 }
 0x23a   : > { %v1351_v38 = vmul.f32 1.0614054, %v3553_v44  ;;  %v1412_v36 = vmul.f32 %v3517_v43, %v1380_v13  ;;  %v1475_v22 = vmul.f32 %v3498_v46, %v1443_v16  ;;  %v1378_v54 = vadd.f32 -1.4531521, %v1346_v1 }
 0x23b   : > { %v1441_v51 = vadd.f32 1.4214138, %v1409_v15  ;;  %v3611_v13 = vand.u32 2147483647, %v3596_v35  ;;  %v1253_v15 = vadd.f32 1.0, %v1221_v24  ;;  %2634 = vrcp.f32 %v1257_v21 }
 0x23c   : > { %v1383_v58 = vadd.f32 -1.4531521, %v1351_v38  ;;  %v1444_v9 = vadd.f32 1.4214138, %v1412_v36  ;;  %v1507_v59 = vadd.f32 -0.28449672, %v1475_v22  ;;  %v1410_v63 = vmul.f32 %v3542_v14, %v1378_v54 }
 0x23d   : > { %v3576_v60 = vpop.eup %2620  ;;  %v1473_v7 = vmul.f32 %v3504_v31, %v1441_v51  ;;  %v1190_v1 = vand.u32 2147483647, %v3598_v26  ;;  %v3617_v38 = vmul.f32 0.70710677, %v3601_v3  ;;  %v1705_v54 = vmul.f32 1.442695, %v1669_v0 }
 0x23e   : > { %v1352_v18 = vmul.f32 1.0614054, %v3576_v60  ;;  %v1415_v61 = vmul.f32 %v3553_v44, %v1383_v58  ;;  %v3613_v16 = vpop.eup %2622  ;;  %v1476_v48 = vmul.f32 %v3517_v43, %v1444_v9  ;;  %v1539_v36 = vmul.f32 %v3498_v46, %v1507_v59  ;;  %v2413_v9 = vpop.f32.mrf.mxu0 }
 0x23f   : > { %v3619_v42 = vpop.eup %2624  ;;  %v1505_v55 = vadd.f32 -0.28449672, %v1473_v7  ;;  %v1442_v22 = vadd.f32 1.4214138, %v1410_v63  ;;  %v1228_v34 = vmul.f32 0.3275911, %v3611_v13  ;;  %2636 = vrcp.f32 %v1253_v15 }
 0x240   : > { %v1384_v28 = vadd.f32 -1.4531521, %v1352_v18  ;;  %v1447_v51 = vadd.f32 1.4214138, %v1415_v61  ;;  %v3632_v18 = vadd.f32 %v2412_v62, %v3429_v33  ;;  %v3634_v25 = vpop.eup %2626  ;;  %v1222_v32 = vmul.f32 0.3275911, %v1190_v1  ;;  %v981_v27 = vpop.f32.mrf.mxu0 }
 0x241   : > { %v3637_v10 = vand.u32 2147483647, %v3617_v38  ;;  %v3640_v24 = vadd.f32 %v3429_v33, %v978_v23  ;;  %v3642_v47 = vpop.eup %2628  ;;  %v1508_v21 = vadd.f32 -0.28449672, %v1476_v48  ;;  %v1711_v59 = vmul.f32 1.442695, %v1672_v49 }
 0x242   : > { %v1416_v58 = vmul.f32 %v3576_v60, %v1384_v28  ;;  %v1638_v7 = vsub.f32 0.0, %v1190_v1  ;;  %v3645_v63 = vmul.f32 0.5, %v3496_v5  ;;  %v1571_v62 = vadd.f32 0.2548296, %v1539_v36  ;;  %v3656_v48 = vpop.eup %2630 }
 0x243   : > { %v1537_v61 = vmul.f32 %v3504_v31, %v1505_v55  ;;  %v1474_v0 = vmul.f32 %v3542_v14, %v1442_v22  ;;  %v1479_v28 = vmul.f32 %v3553_v44, %v1447_v51  ;;  %v1260_v40 = vadd.f32 1.0, %v1228_v34 }
 0x244   : > { %4642 = vst [vmem:[#allocation9_spill] sm:$0xff] %v3645_v63  ;;  %v1448_v15 = vadd.f32 1.4214138, %v1416_v58  ;;  %v3651_v23 = vmul.f32 0.70710677, %v3632_v18  ;;  %v3654_v2 = vadd.f32 %v2413_v9, %v3429_v33  ;;  %2638 = vpow2.f32 %v1705_v54 }
 0x245   : > { %v1355_v5 = vmul.f32 1.0614054, %v3642_v47  ;;  %v1226_v49 = vmul.f32 0.3275911, %v3637_v10  ;;  %v3661_v36 = vmul.f32 0.70710677, %v3640_v24  ;;  %v1540_v55 = vmul.f32 %v3517_v43, %v1508_v21 }
 0x246   : > { %4643 = vst [vmem:[#allocation10_spill] sm:$0xff] %v3654_v2  ;;  %v1254_v22 = vadd.f32 1.0, %v1222_v32  ;;  %v1670_v51 = vmul.f32 %v1638_v7, %v1190_v1  ;;  %v1569_v58 = vadd.f32 0.2548296, %v1537_v61  ;;  %v1506_v34 = vadd.f32 -0.28449672, %v1474_v0  ;;  %v2633_v61 = vpop.eup %2632 }
 0x247   : > { %4644 = vst [vmem:[#allocation11_spill] sm:$0xff] %v3661_v36  ;;  %v1511_v9 = vadd.f32 -0.28449672, %v1479_v28  ;;  %2640 = vpow2.f32 %v1711_v59  ;;  %v1480_v20 = vmul.f32 %v3576_v60, %v1448_v15  ;;  %v3667_v54 = vand.u32 2147483647, %v3651_v23 }
 0x248   : > { %2642 = vrcp.f32 %v1260_v40  ;;  %v3670_v26 = vmul.f32 0.70710677, %v3654_v2  ;;  %v1603_v21 = vmul.f32 %v3498_v46, %v1571_v62  ;;  %v1387_v32 = vadd.f32 -1.4531521, %v1355_v5  ;;  %v3681_v15 = vpop.eup %2634 }
 0x249   : > { %v1258_v1 = vadd.f32 1.0, %v1226_v49  ;;  %v3674_v7 = vand.u32 2147483647, %v3661_v36  ;;  %v1572_v0 = vadd.f32 0.2548296, %v1540_v55  ;;  %2644 = vrcp.f32 %v1254_v22 }
 0x24a   : > { %4645 = vst [vmem:[#allocation12_spill] sm:$0xff] %v3670_v26  ;;  %v1707_v59 = vmul.f32 1.442695, %v1670_v51  ;;  %v4647_v28 = vmov -1.0   ;;  %v1538_v63 = vmul.f32 %v3542_v14, %v1506_v34  ;;  %v1543_v46 = vmul.f32 %v3553_v44, %v1511_v9 }
 0x24b   : > { %4646 = vst [vmem:[#allocation13_spill] sm:$0xff] %v3674_v7  ;;  %v3679_v40 = vsel %vm1131_vm7, 1.0, %v4647_v28  ;;  %v1643_v62 = vsub.f32 0.0, %v3507_v52  ;;  %v3687_v5 = vadd.f32 %v3429_v33, %v981_v27  ;;  %v1601_v49 = vmul.f32 %v3504_v31, %v1569_v58 }
 0x24c   : > { %4648 = vst [vmem:[#allocation14_spill] sm:$0xff] %v3679_v40  ;;  %v1512_v55 = vadd.f32 -0.28449672, %v1480_v20  ;;  %v1231_v22 = vmul.f32 0.3275911, %v3667_v54  ;;  %v1763_v51 = vmul.f32 %v3613_v16, %v1603_v21  ;;  %v1419_v2 = vmul.f32 %v3642_v47, %v1387_v32  ;;  %v3697_v9 = vpop.eup %2636  ;;  %v2416_v21 = vpop.f32.mrf.mxu0 }
 0x24d   : > { %v3692_v50 = vand.u32 2147483647, %v3670_v26  ;;  %2646 = vrcp.f32 %v1258_v1  ;;  %v1229_v34 = vmul.f32 0.3275911, %v3674_v7  ;;  %4649 = vst [vmem:[#allocation15_spill] sm:$0xff] %v3697_v9  ;;  %v1604_v27 = vmul.f32 %v3517_v43, %v1572_v0 }
 0x24e   : > { %v3701_v40 = vmul.f32 0.5, %v3515_v12  ;;  %v1353_v31 = vmul.f32 1.0614054, %v3681_v15  ;;  %v1641_v20 = vsub.f32 0.0, %v3567_v30  ;;  %v1570_v58 = vadd.f32 0.2548296, %v1538_v63 }
 0x24f   : > { %v1575_v26 = vadd.f32 0.2548296, %v1543_v46  ;;  %2648 = vpow2.f32 %v1707_v59  ;;  %v3706_v16 = vmul.f32 0.70710677, %v3687_v5  ;;  %v1761_v32 = vmul.f32 %v3619_v42, %v1601_v49 }
 0x250   : > { %4650 = vst [vmem:[#allocation16_spill] sm:$0xff] %v3701_v40  ;;  %v1544_v1 = vmul.f32 %v3576_v60, %v1512_v55  ;;  %v1263_v9 = vadd.f32 1.0, %v1231_v22  ;;  %v1232_v43 = vmul.f32 0.3275911, %v3692_v50  ;;  %v1795_v12 = vsub.f32 1.0, %v1763_v51 }
 0x251   : > { %v1451_v0 = vadd.f32 1.4214138, %v1419_v2  ;;  %v1675_v40 = vmul.f32 %v1643_v62, %v3507_v52  ;;  %v1261_v36 = vadd.f32 1.0, %v1229_v34  ;;  %v3712_v7 = vpop.eup %2638  ;;  %v1764_v63 = vmul.f32 %v3634_v25, %v1604_v27  ;;  %v994_v52 = vpop.f32.mrf.mxu0 }
 0x252   : > { %4651 = vst [vmem:[#allocation17_spill] sm:$0xff] %v3712_v7  ;;  %v1385_v59 = vadd.f32 -1.4531521, %v1353_v31  ;;  %v3717_v46 = vadd.f32 %v2416_v21, %v3429_v33  ;;  %v1602_v42 = vmul.f32 %v3542_v14, %v1570_v58  ;;  %v1607_v49 = vmul.f32 %v3553_v44, %v1575_v26 }
 0x253   : > { %v1673_v55 = vmul.f32 %v1641_v20, %v3567_v30  ;;  %v3723_v2 = vand.u32 2147483647, %v3706_v16  ;;  %v1793_v22 = vsub.f32 1.0, %v1761_v32  ;;  %v1576_v51 = vadd.f32 0.2548296, %v1544_v1 }
 0x254   : > { %v2641_v62 = vpop.eup %2640  ;;  %2650 = vrcp.f32 %v1263_v9  ;;  %v1264_v25 = vadd.f32 1.0, %v1232_v43  ;;  %v1827_v27 = vmul.f32 %v1795_v12, %v3528_v11  ;;  %v1483_v31 = vmul.f32 %v3642_v47, %v1451_v0 }
 0x255   : > { %v3725_v34 = vpop.eup %2642  ;;  %v1717_v14 = vmul.f32 1.442695, %v1675_v40  ;;  %2652 = vrcp.f32 %v1261_v36  ;;  %v1796_v44 = vsub.f32 1.0, %v1764_v63  ;;  %v1417_v30 = vmul.f32 %v3681_v15, %v1385_v59 }
 0x256   : > { %v3731_v26 = vmul.f32 0.70710677, %v3717_v46  ;;  %v3734_v20 = vadd.f32 %v3429_v33, %v994_v52  ;;  %v3736_v58 = vpop.eup %2644  ;;  %v1762_v9 = vmul.f32 %v3656_v48, %v1602_v42  ;;  %v1767_v21 = vmul.f32 %v2633_v61, %v1607_v49 }
 0x257   : > { %4652 = vst [vmem:[#allocation18_spill] sm:$0xff] %v3736_v58  ;;  %v1713_v32 = vmul.f32 1.442695, %v1673_v55  ;;  %v1230_v11 = vmul.f32 0.3275911, %v3723_v2  ;;  %v1825_v40 = vmul.f32 %v1793_v22, %v3531_v41  ;;  %v1608_v36 = vmul.f32 %v3576_v60, %v1576_v51 }
 0x258   : > { %v1356_v1 = vmul.f32 1.0614054, %v3725_v34  ;;  %2654 = vrcp.f32 %v1264_v25  ;;  %v1859_v43 = vadd.f32 1.0, %v1827_v27  ;;  %v1515_v12 = vadd.f32 -0.28449672, %v1483_v31 }
 0x259   : > { %2656 = vpow2.f32 %v1717_v14  ;;  %v3746_v0 = vsel %vm1129_vm8, 1.0, %v4647_v28  ;;  %v1828_v61 = vmul.f32 %v1796_v44, %v3548_v37  ;;  %v1449_v63 = vadd.f32 1.4214138, %v1417_v30 }
 0x25a   : > { %v3748_v48 = vpop.eup %2646  ;;  %v3752_v41 = vand.u32 2147483647, %v3731_v26  ;;  %v3755_v60 = vmul.f32 0.70710677, %v3734_v20  ;;  %v1794_v59 = vsub.f32 1.0, %v1762_v9  ;;  %v1799_v42 = vsub.f32 1.0, %v1767_v21 }
 0x25b   : > { %v3758_v49 = vmul.f32 0.5, %v3574_v39  ;;  %v1262_v55 = vadd.f32 1.0, %v1230_v11  ;;  %v1857_v52 = vadd.f32 1.0, %v1825_v40  ;;  %v1768_v22 = vmul.f32 %v2641_v62, %v1608_v36 }
 0x25c   : > { %v3760_v6 = vpop.eup %2648  ;;  %2658 = vpow2.f32 %v1713_v32  ;;  %v1388_v51 = vadd.f32 -1.4531521, %v1356_v1  ;;  %v1547_v37 = vmul.f32 %v3642_v47, %v1515_v12  ;;  %vm1132_vm9 = vcmp.ge.f32.partialorder %v3596_v35, 0.0 }
 0x25d   : > { %4653 = vst [vmem:[#allocation19_spill] sm:$0xff] %v3760_v6  ;;  %v1644_v25 = vsub.f32 0.0, %v3611_v13  ;;  %v1354_v27 = vmul.f32 1.0614054, %v3748_v48  ;;  %v1860_v31 = vadd.f32 1.0, %v1828_v61  ;;  %v1481_v14 = vmul.f32 %v3681_v15, %v1449_v63 }
 0x25e   : > { %v1235_v39 = vmul.f32 0.3275911, %v3752_v41  ;;  %v3769_v44 = vand.u32 2147483647, %v3755_v60  ;;  %v1826_v62 = vmul.f32 %v1794_v59, %v3559_v45  ;;  %v1831_v30 = vmul.f32 %v1799_v42, %v3587_v8 }
 0x25f   : > { %v1642_v9 = vsub.f32 0.0, %v3637_v10  ;;  %2660 = vrcp.f32 %v1262_v55  ;;  %v3775_v21 = vmul.f32 %v1859_v43, %v3510_v53  ;;  %v3778_v32 = vmul.f32 %v1857_v52, %v3520_v57 }
 0x260   : > { %v1800_v11 = vsub.f32 1.0, %v1768_v22  ;;  %v1420_v40 = vmul.f32 %v3725_v34, %v1388_v51  ;;  %v1579_v1 = vadd.f32 0.2548296, %v1547_v37  ;;  %v3786_v45 = vsel %vm1132_vm9, 1.0, %v4647_v28 }
 0x261   : > { %4654 = vst [vmem:[#allocation20_spill] sm:$0xff] %v3775_v21  ;;  %4655 = vst [vmem:[#allocation21_spill] sm:$0xff] %v3778_v32  ;;  %v3781_v36 = vpop.eup %2650  ;;  %v1676_v8 = vmul.f32 %v1644_v25, %v3611_v13  ;;  %v1386_v12 = vadd.f32 -1.4531521, %v1354_v27  ;;  %v3792_v53 = vmul.f32 %v1860_v31, %v3535_v4  ;;  %v1513_v57 = vadd.f32 -0.28449672, %v1481_v14 }
 0x262   : > { %v3789_v61 = vpop.eup %2652  ;;  %v1267_v43 = vadd.f32 1.0, %v1235_v39  ;;  %v1233_v63 = vmul.f32 0.3275911, %v3769_v44  ;;  %v1858_v59 = vadd.f32 1.0, %v1826_v62  ;;  %v1863_v42 = vadd.f32 1.0, %v1831_v30  ;;  %v4665_v21 = vld [vmem:[#allocation9_spill] sm:$0xff] }
 0x263   : > { %4656 = vst [vmem:[#allocation22_spill] sm:$0xff] %v3792_v53  ;;  %v3796_v55 = vmul.f32 0.5, %v3601_v3  ;;  %v1674_v35 = vmul.f32 %v1642_v9, %v3637_v10  ;;  %v1832_v52 = vmul.f32 %v1800_v11, %v3625_v29  ;;  %v1452_v13 = vadd.f32 1.4214138, %v1420_v40  ;;  %v4664_v10 = vld [vmem:[#allocation10_spill] sm:$0xff] }
 0x264   : > { %vm1130_vm10 = vcmp.ge.f32.partialorder %v3617_v38, 0.0  ;;  %v1359_v22 = vmul.f32 1.0614054, %v3781_v36  ;;  %v1611_v51 = vmul.f32 %v3642_v47, %v1579_v1  ;;  %v1719_v37 = vmul.f32 1.442695, %v1676_v8  ;;  %v2417_v38 = vpop.f32.mrf.mxu0 }
 0x265   : > { %v3802_v4 = vpop.eup %2654  ;;  %v1418_v25 = vmul.f32 %v3748_v48, %v1386_v12  ;;  %v1357_v27 = vmul.f32 1.0614054, %v3789_v61  ;;  %v1545_v29 = vmul.f32 %v3681_v15, %v1513_v57  ;;  %2662 = vrcp.f32 %v1267_v43 }
 0x266   : > { %v2657_v3 = vpop.eup %2656  ;;  %v1265_v31 = vadd.f32 1.0, %v1233_v63  ;;  %v3811_v14 = vmul.f32 %v1858_v59, %v3551_v56  ;;  %v3814_v39 = vmul.f32 %v1863_v42, %v3563_v19  ;;  %v3817_v47 = vsel %vm1130_vm10, 1.0, %v4647_v28  ;;  %v997_v63 = vpop.f32.mrf.mxu0 }
 0x267   : > { %v1715_v62 = vmul.f32 1.442695, %v1674_v35  ;;  %v1864_v30 = vadd.f32 1.0, %v1832_v52  ;;  %v1484_v9 = vmul.f32 %v3725_v34, %v1452_v13  ;;  %v1391_v11 = vadd.f32 -1.4531521, %v1359_v22 }
 0x268   : > { %4657 = vst [vmem:[#allocation23_spill] sm:$0xff] %v3811_v14  ;;  %4658 = vst [vmem:[#allocation24_spill] sm:$0xff] %v3814_v39  ;;  %v1360_v40 = vmul.f32 1.0614054, %v3802_v4  ;;  %v1771_v8 = vmul.f32 %v2657_v3, %v1611_v51  ;;  %2664 = vpow2.f32 %v1719_v37  ;;  %v1450_v12 = vadd.f32 1.4214138, %v1418_v25 }
 0x269   : > { %v2659_v1 = vpop.eup %2658  ;;  %v1389_v57 = vadd.f32 -1.4531521, %v1357_v27  ;;  %v1577_v56 = vadd.f32 0.2548296, %v1545_v29  ;;  %v3822_v43 = vmul.f32 0.5, %v3632_v18  ;;  %v1647_v19 = vsub.f32 0.0, %v3667_v54 }
 0x26a   : > { %2666 = vrcp.f32 %v1265_v31  ;;  %vm1135_vm11 = vcmp.ge.f32.partialorder %v3651_v23, 0.0  ;;  %v3827_v59 = vmul.f32 0.5, %v3640_v24  ;;  %v3830_v42 = vadd.f32 %v2417_v38, %v3429_v33  ;;  %v4660_v3 = vld [vmem:[#allocation13_spill] sm:$0xff]  ;;  %v4661_v31 = vld [vmem:[#allocation11_spill] sm:$0xff] }
 0x26b   : > { %2668 = vpow2.f32 %v1715_v62  ;;  %v3835_v52 = vmul.f32 %v1864_v30, %v3590_v17  ;;  %v1516_v18 = vadd.f32 -0.28449672, %v1484_v9  ;;  %v1423_v13 = vmul.f32 %v3781_v36, %v1391_v11 }
 0x26c   : > { %v3832_v35 = vpop.eup %2660  ;;  %v1392_v22 = vadd.f32 -1.4531521, %v1360_v40  ;;  %v1803_v51 = vsub.f32 1.0, %v1771_v8  ;;  %v1482_v37 = vmul.f32 %v3748_v48, %v1450_v12  ;;  %v1421_v23 = vmul.f32 %v3789_v61, %v1389_v57  ;;  %v4663_v8 = vld [vmem:[#allocation14_spill] sm:$0xff] }
 0x26d   : > { %4659 = vst [vmem:[#allocation25_spill] sm:$0xff] %v3835_v52  ;;  %v3841_v24 = vadd.f32 %v3429_v33, %v997_v63  ;;  %v1609_v25 = vmul.f32 %v3681_v15, %v1577_v56  ;;  %v3845_v27 = vsel %vm1135_vm11, 1.0, %v4647_v28  ;;  %v1679_v17 = vmul.f32 %v1647_v19, %v3667_v54  ;;  %v4662_v15 = vld [vmem:[#allocation12_spill] sm:$0xff] }
 0x26e   : > { %v1645_v29 = vsub.f32 0.0, %v4660_v3  ;;  %vm1133_vm12 = vcmp.ge.f32.partialorder %v4661_v31, 0.0  ;;  %v1648_v38 = vsub.f32 0.0, %v3692_v50  ;;  %v1358_v62 = vmul.f32 1.0614054, %v3832_v35 }
 0x26f   : > { %v3853_v30 = vmul.f32 0.70710677, %v3830_v42  ;;  %v1548_v9 = vmul.f32 %v3725_v34, %v1516_v18  ;;  %v1455_v11 = vadd.f32 1.4214138, %v1423_v13  ;;  %vm1136_vm13 = vcmp.ge.f32.partialorder %v4662_v15, 0.0 }
 0x270   : > { %v1424_v40 = vmul.f32 %v3802_v4, %v1392_v22  ;;  %v1835_v54 = vmul.f32 %v1803_v51, %v4663_v8  ;;  %v1514_v12 = vadd.f32 -0.28449672, %v1482_v37  ;;  %v1453_v57 = vadd.f32 1.4214138, %v1421_v23 }
 0x271   : > { %v3860_v56 = vmul.f32 0.70710677, %v3841_v24  ;;  %v1769_v19 = vmul.f32 %v2659_v1, %v1609_v25  ;;  %v3863_v63 = vsel %vm1133_vm12, 1.0, %v4647_v28  ;;  %v1677_v31 = vmul.f32 %v1645_v29, %v4660_v3 }
 0x272   : > { %v3867_v18 = vmul.f32 0.5, %v4664_v10  ;;  %v3869_v13 = vpop.eup %2662  ;;  %v1725_v52 = vmul.f32 1.442695, %v1679_v17  ;;  %v1680_v22 = vmul.f32 %v1648_v38, %v3692_v50  ;;  %v1390_v51 = vadd.f32 -1.4531521, %v1358_v62 }
 0x273   : > { %v3873_v37 = vand.u32 2147483647, %v3853_v30  ;;  %v1580_v23 = vadd.f32 0.2548296, %v1548_v9  ;;  %v1487_v1 = vmul.f32 %v3781_v36, %v1455_v11  ;;  %v3879_v25 = vsel %vm1136_vm13, 1.0, %v4647_v28 }
 0x274   : > { %v1456_v3 = vadd.f32 1.4214138, %v1424_v40  ;;  %v1867_v10 = vadd.f32 1.0, %v1835_v54  ;;  %v1546_v29 = vmul.f32 %v3748_v48, %v1514_v12  ;;  %v1485_v17 = vmul.f32 %v3789_v61, %v1453_v57 }
 0x275   : > { %v3884_v50 = vand.u32 2147483647, %v3860_v56  ;;  %v2665_v38 = vpop.eup %2664  ;;  %v1801_v62 = vsub.f32 1.0, %v1769_v19  ;;  %v1721_v8 = vmul.f32 1.442695, %v1677_v31  ;;  %v3887_v9 = vmul.f32 0.5, %v3687_v5  ;;  %v2420_v31 = vpop.f32.mrf.mxu0 }
 0x276   : > { %v1363_v11 = vmul.f32 1.0614054, %v3869_v13  ;;  %v1727_v39 = vmul.f32 1.442695, %v1680_v22  ;;  %vm1134_vm14 = vcmp.ge.f32.partialorder %v3706_v16, 0.0  ;;  %v1422_v40 = vmul.f32 %v3832_v35, %v1390_v51 }
 0x277   : > { %v3890_v15 = vpop.eup %2666  ;;  %v1236_v54 = vmul.f32 0.3275911, %v3873_v37  ;;  %v1612_v57 = vmul.f32 %v3725_v34, %v1580_v23  ;;  %v1519_v6 = vadd.f32 -0.28449672, %v1487_v1  ;;  %v1488_v19 = vmul.f32 %v3802_v4, %v1456_v3 }
 0x278   : > { %v2669_v12 = vpop.eup %2668  ;;  %v1646_v5 = vsub.f32 0.0, %v3723_v2  ;;  %v1578_v7 = vadd.f32 0.2548296, %v1546_v29  ;;  %2670 = vpow2.f32 %v1725_v52  ;;  %v1517_v58 = vadd.f32 -0.28449672, %v1485_v17 }
 0x279   : > { %v1234_v22 = vmul.f32 0.3275911, %v3884_v50  ;;  %v3900_v53 = vmul.f32 %v1867_v10, %v4665_v21  ;;  %v1833_v51 = vmul.f32 %v1801_v62, %v3746_v0  ;;  %v1395_v14 = vadd.f32 -1.4531521, %v1363_v11  ;;  %v1010_v21 = vpop.f32.mrf.mxu0 }
 0x27a   : > { %v1361_v32 = vmul.f32 1.0614054, %v3890_v15  ;;  %2672 = vpow2.f32 %v1721_v8  ;;  %v3907_v34 = vsel %vm1134_vm14, 1.0, %v4647_v28  ;;  %v1454_v23 = vadd.f32 1.4214138, %v1422_v40 }
 0x27b   : > { %v1268_v1 = vadd.f32 1.0, %v1236_v54  ;;  %v1772_v52 = vmul.f32 %v2665_v38, %v1612_v57  ;;  %v1551_v3 = vmul.f32 %v3781_v36, %v1519_v6  ;;  %v1520_v29 = vadd.f32 -0.28449672, %v1488_v19  ;;  %v3924_v54 = vpop.f32.mrf.mxu0 }
 0x27c   : > { %2674 = vpow2.f32 %v1727_v39  ;;  %v1610_v10 = vmul.f32 %v3748_v48, %v1578_v7  ;;  %v1549_v0 = vmul.f32 %v3789_v61, %v1517_v58  ;;  %v1678_v17 = vmul.f32 %v1646_v5, %v3723_v2 }
 0x27d   : > { %v1266_v62 = vadd.f32 1.0, %v1234_v22  ;;  %v1865_v8 = vadd.f32 1.0, %v1833_v51  ;;  %v3914_v16 = vmul.f32 0.5, %v3717_v46  ;;  %v1427_v11 = vmul.f32 %v3869_v13, %v1395_v14 }
 0x27e   : > { %v1393_v40 = vadd.f32 -1.4531521, %v1361_v32  ;;  %v1486_v38 = vmul.f32 %v3832_v35, %v1454_v23  ;;  %v1651_v6 = vsub.f32 0.0, %v3752_v41  ;;  %2676 = vrcp.f32 %v1268_v1 }
 0x27f   : > { %v3920_v39 = vadd.f32 %v2420_v31, %v3429_v33  ;;  %v1804_v7 = vsub.f32 1.0, %v1772_v52  ;;  %v1583_v58 = vadd.f32 0.2548296, %v1551_v3  ;;  %v1552_v2 = vmul.f32 %v3802_v4, %v1520_v29  ;;  %v4666_v29 = vld [vmem:[#allocation16_spill] sm:$0xff] }
 0x280   : > { %v1649_v48 = vsub.f32 0.0, %v3769_v44  ;;  %v1770_v46 = vmul.f32 %v2669_v12, %v1610_v10  ;;  %v1581_v57 = vadd.f32 0.2548296, %v1549_v0  ;;  %v1723_v14 = vmul.f32 1.442695, %v1678_v17 }
 0x281   : > { %2678 = vrcp.f32 %v1266_v62  ;;  %vm1139_vm15 = vcmp.ge.f32.partialorder %v3731_v26, 0.0  ;;  %v1459_v32 = vadd.f32 1.4214138, %v1427_v11  ;;  %v3928_v19 = vmul.f32 0.5, %v3734_v20  ;;  %v1013_v20 = vpop.f32.mrf.mxu0 }
 0x282   : > { %v1425_v5 = vmul.f32 %v3890_v15, %v1393_v40  ;;  %v1518_v31 = vadd.f32 -0.28449672, %v1486_v38  ;;  %v1683_v22 = vmul.f32 %v1651_v6, %v3752_v41  ;;  %v3933_v51 = vmul.f32 0.70710677, %v3920_v39 }
 0x283   : > { %v3936_v23 = vadd.f32 %v3429_v33, %v1010_v21  ;;  %v1836_v12 = vmul.f32 %v1804_v7, %v3786_v45  ;;  %v1615_v1 = vmul.f32 %v3781_v36, %v1583_v58  ;;  %v1584_v52 = vadd.f32 0.2548296, %v1552_v2  ;;  %v3960_v6 = vpop.f32.mrf.mxu0 }
 0x284   : > { %v1681_v3 = vmul.f32 %v1649_v48, %v3769_v44  ;;  %v3942_v10 = vmul.f32 %v1865_v8, %v4666_v29  ;;  %v1802_v0 = vsub.f32 1.0, %v1770_v46  ;;  %v1613_v41 = vmul.f32 %v3789_v61, %v1581_v57 }
 0x285   : > { %2680 = vpow2.f32 %v1723_v14  ;;  %v2671_v17 = vpop.eup %2670  ;;  %v3948_v33 = vsel %vm1139_vm15, 1.0, %v4647_v28  ;;  %v1491_v45 = vmul.f32 %v3869_v13, %v1459_v32  ;;  %vm1137_vm1 = vcmp.ge.f32.partialorder %v3755_v60, 0.0 }
 0x286   : > { %v1457_v36 = vadd.f32 1.4214138, %v1425_v5  ;;  %v1550_v44 = vmul.f32 %v3832_v35, %v1518_v31  ;;  %v1733_v21 = vmul.f32 1.442695, %v1683_v22  ;;  %v3954_v62 = vand.u32 2147483647, %v3933_v51 }
 0x287   : > { %v3957_v61 = vmul.f32 0.70710677, %v3936_v23  ;;  %v2673_v8 = vpop.eup %2672  ;;  %v1868_v11 = vadd.f32 1.0, %v1836_v12  ;;  %v1775_v40 = vmul.f32 %v2671_v17, %v1615_v1  ;;  %v1616_v26 = vmul.f32 %v3802_v4, %v1584_v52  ;;  %v1026_v1 = vpop.f32.mrf.mxu0 }
 0x288   : > { %v1729_v38 = vmul.f32 1.442695, %v1681_v3  ;;  %v1834_v60 = vmul.f32 %v1802_v0, %v3817_v47  ;;  %v1773_v58 = vmul.f32 %v2673_v8, %v1613_v41  ;;  %v3964_v2 = vsel %vm1137_vm1, 1.0, %v4647_v28 }
 0x289   : > { %v2675_v7 = vpop.eup %2674  ;;  %v1652_v48 = vsub.f32 0.0, %v3873_v37  ;;  %v1523_v46 = vadd.f32 -0.28449672, %v1491_v45  ;;  %v1489_v57 = vmul.f32 %v3890_v15, %v1457_v36  ;;  %v3969_v14 = vmul.f32 0.5, %v3830_v42 }
 0x28a   : > { %vm1140_vm2 = vcmp.ge.f32.partialorder %v3853_v30, 0.0  ;;  %v1582_v4 = vadd.f32 0.2548296, %v1550_v44  ;;  %2682 = vpow2.f32 %v1733_v21  ;;  %v1239_v32 = vmul.f32 0.3275911, %v3954_v62 }
 0x28b   : > { %4667 = vst [vmem:[#allocation13_spill] sm:$0xff] %v3969_v14  ;;  %v3974_v47 = vand.u32 2147483647, %v3957_v61  ;;  %v3976_v5 = vpop.eup %2676  ;;  %v3979_v31 = vmul.f32 %v1868_v11, %v3758_v49  ;;  %v1807_v22 = vsub.f32 1.0, %v1775_v40  ;;  %v1776_v12 = vmul.f32 %v2675_v7, %v1616_v26  ;;  %v3992_v49 = vld [vmem:[%s4597_s4] ss:$0 sm:$0xff] }
 0x28c   : > { %2684 = vpow2.f32 %v1729_v38  ;;  %v1866_v42 = vadd.f32 1.0, %v1834_v60  ;;  %v1805_v52 = vsub.f32 1.0, %v1773_v58  ;;  %v3982_v30 = vsel %vm1140_vm2, 1.0, %v4647_v28  ;;  %v2425_v38 = vpop.f32.mrf.mxu0  ;;  %v4702_v14 = vld [vmem:[#allocation17_spill] sm:$0xff] }
 0x28d   : > { %v1684_v3 = vmul.f32 %v1652_v48, %v3873_v37  ;;  %v1555_v0 = vmul.f32 %v3869_v13, %v1523_v46  ;;  %v1521_v41 = vadd.f32 -0.28449672, %v1489_v57  ;;  %v1650_v17 = vsub.f32 0.0, %v3884_v50 }
 0x28e   : > { %v3985_v29 = vpop.eup %2678  ;;  %v3995_v45 = vadd.f32 %v3992_v49, %v1013_v20  ;;  %v1614_v36 = vmul.f32 %v3832_v35, %v1582_v4  ;;  %v1364_v44 = vmul.f32 1.0614054, %v3976_v5  ;;  %v1271_v37 = vadd.f32 1.0, %v1239_v32 }
 0x28f   : > { %v1237_v21 = vmul.f32 0.3275911, %v3974_v47  ;;  %v1839_v8 = vmul.f32 %v1807_v22, %v3845_v27  ;;  %v1808_v11 = vsub.f32 1.0, %v1776_v12  ;;  %v4002_v40 = vmul.f32 0.5, %v3841_v24  ;;  %v1029_v12 = vpop.f32.mrf.mxu0 }
 0x290   : > { %v4006_v26 = vadd.f32 %v3992_v49, %v3924_v54  ;;  %v1837_v20 = vmul.f32 %v1805_v52, %v3863_v63  ;;  %v1735_v7 = vmul.f32 1.442695, %v1684_v3  ;;  %vm1138_vm3 = vcmp.ge.f32.partialorder %v3860_v56, 0.0 }
 0x291   : > { %v1362_v35 = vmul.f32 1.0614054, %v3985_v29  ;;  %v1587_v58 = vadd.f32 0.2548296, %v1555_v0  ;;  %v1553_v27 = vmul.f32 %v3890_v15, %v1521_v41  ;;  %v1682_v48 = vmul.f32 %v1650_v17, %v3884_v50 }
 0x292   : > { %v2681_v60 = vpop.eup %2680  ;;  %v4014_v24 = vmul.f32 0.70710677, %v3995_v45  ;;  %v1396_v54 = vadd.f32 -1.4531521, %v1364_v44  ;;  %2686 = vrcp.f32 %v1271_v37  ;;  %v1269_v57 = vadd.f32 1.0, %v1237_v21 }
 0x293   : > { %v1774_v46 = vmul.f32 %v2681_v60, %v1614_v36  ;;  %v4017_v63 = vmul.f32 %v1866_v42, %v3796_v55  ;;  %v1871_v4 = vadd.f32 1.0, %v1839_v8  ;;  %v1840_v32 = vmul.f32 %v1808_v11, %v3879_v25 }
 0x294   : > { %v4021_v22 = vmul.f32 0.70710677, %v4006_v26  ;;  %v1869_v52 = vadd.f32 1.0, %v1837_v20  ;;  %2688 = vpow2.f32 %v1735_v7  ;;  %v4026_v50 = vsel %vm1138_vm3, 1.0, %v4647_v28 }
 0x295   : > { %v1394_v3 = vadd.f32 -1.4531521, %v1362_v35  ;;  %v1619_v0 = vmul.f32 %v3869_v13, %v1587_v58  ;;  %v1585_v41 = vadd.f32 0.2548296, %v1553_v27  ;;  %v1731_v55 = vmul.f32 1.442695, %v1682_v48 }
 0x296   : > { %v4030_v42 = vand.u32 2147483647, %v4014_v24  ;;  %v1806_v25 = vsub.f32 1.0, %v1774_v46  ;;  %v1428_v17 = vmul.f32 %v3976_v5, %v1396_v54  ;;  %2690 = vrcp.f32 %v1269_v57 }
 0x297   : > { %v4034_v36 = vadd.f32 %v3992_v49, %v1029_v12  ;;  %v2683_v44 = vpop.eup %2682  ;;  %v4037_v56 = vmul.f32 %v1871_v4, %v3822_v43  ;;  %v1872_v37 = vadd.f32 1.0, %v1840_v32  ;;  %v4040_v21 = vand.u32 2147483647, %v4021_v22 }
 0x298   : > { %v4043_v13 = vadd.f32 %v3992_v49, %v1026_v1  ;;  %v4046_v11 = vmul.f32 %v1869_v52, %v3827_v59  ;;  %v1426_v20 = vmul.f32 %v3985_v29, %v1394_v3  ;;  %vm1143_vm4 = vcmp.ge.f32.partialorder %v3933_v51, 0.0  ;;  %v4056_v1 = vpop.f32.mrf.mxu0 }
 0x299   : > { %4668 = vst [vmem:[#allocation11_spill] sm:$0xff] %v4034_v36  ;;  %4669 = vst [vmem:[#allocation12_spill] sm:$0xff] %v4037_v56  ;;  %v2685_v8 = vpop.eup %2684  ;;  %v1655_v7 = vsub.f32 0.0, %v3954_v62  ;;  %v1779_v35 = vmul.f32 %v2683_v44, %v1619_v0  ;;  %v1617_v43 = vmul.f32 %v3890_v15, %v1585_v41  ;;  %v4053_v60 = vmul.f32 0.5, %v3920_v39 }
 0x29a   : > { %4670 = vst [vmem:[#allocation14_spill] sm:$0xff] %v4043_v13  ;;  %v1238_v58 = vmul.f32 0.3275911, %v4030_v42  ;;  %v1838_v27 = vmul.f32 %v1806_v25, %v3907_v34  ;;  %v1460_v59 = vadd.f32 1.4214138, %v1428_v17  ;;  %2692 = vpow2.f32 %v1731_v55  ;;  %v1042_v52 = vpop.f32.mrf.mxu0 }
 0x29b   : > { %4671 = vst [vmem:[#allocation10_spill] sm:$0xff] %v4053_v60  ;;  %v4060_v48 = vmul.f32 0.70710677, %v4034_v36  ;;  %v4063_v51 = vmul.f32 %v1872_v37, %v3867_v18  ;;  %v4066_v46 = vsel %vm1143_vm4, 1.0, %v4647_v28  ;;  %v1240_v15 = vmul.f32 0.3275911, %v4040_v21 }
 0x29c   : > { %4673 = vst [vmem:[#allocation16_spill] sm:$0xff] %v4066_v46  ;;  %v4070_v39 = vmul.f32 0.70710677, %v4043_v13  ;;  %v1458_v54 = vadd.f32 1.4214138, %v1426_v20  ;;  %v1687_v57 = vmul.f32 %v1655_v7, %v3954_v62  ;;  %v4074_v34 = vmul.f32 0.5, %v3936_v23 }
 0x29d   : > { %4672 = vst [vmem:[#allocation9_spill] sm:$0xff] %v4063_v51  ;;  %vm1141_vm5 = vcmp.ge.f32.partialorder %v3957_v61, 0.0  ;;  %v1811_v4 = vsub.f32 1.0, %v1779_v35  ;;  %v1777_v32 = vmul.f32 %v2685_v8, %v1617_v43  ;;  %v1270_v18 = vadd.f32 1.0, %v1238_v58 }
 0x29e   : > { %4674 = vst [vmem:[#allocation26_spill] sm:$0xff] %v4070_v39  ;;  %4675 = vst [vmem:[#allocation27_spill] sm:$0xff] %v4074_v34  ;;  %v4078_v12 = vadd.f32 %v3992_v49, %v2425_v38  ;;  %v1870_v3 = vadd.f32 1.0, %v1838_v27  ;;  %v1492_v0 = vmul.f32 %v3976_v5, %v1460_v59  ;;  %v4082_v41 = vmul.f32 0.5, %v4006_v26 }
 0x29f   : > { %v4085_v62 = vand.u32 2147483647, %v4060_v48  ;;  %v4087_v23 = vpop.eup %2686  ;;  %v1653_v55 = vsub.f32 0.0, %v3974_v47  ;;  %v1272_v25 = vadd.f32 1.0, %v1240_v15  ;;  %v4092_v17 = vadd.f32 %v3992_v49, %v3960_v6 }
 0x2a0   : > { %4676 = vst [vmem:[#allocation28_spill] sm:$0xff] %v4078_v12  ;;  %4677 = vst [vmem:[#allocation29_spill] sm:$0xff] %v4082_v41  ;;  %v4095_v38 = vand.u32 2147483647, %v4070_v39  ;;  %v1490_v44 = vmul.f32 %v3985_v29, %v1458_v54  ;;  %v1741_v37 = vmul.f32 1.442695, %v1687_v57  ;;  %v4104_v8 = vadd.f32 %v3992_v49, %v1042_v52 }
 0x2a1   : > { %4678 = vst [vmem:[#allocation30_spill] sm:$0xff] %v4092_v17  ;;  %v4101_v26 = vsel %vm1141_vm5, 1.0, %v4647_v28  ;;  %v4106_v20 = vpop.eup %2688  ;;  %v1843_v7 = vmul.f32 %v1811_v4, %v3948_v33  ;;  %v1809_v6 = vsub.f32 1.0, %v1777_v32  ;;  %2694 = vrcp.f32 %v1270_v18  ;;  %v2429_v32 = vpop.f32.mrf.mxu0 }
 0x2a2   : > { %4679 = vst [vmem:[#allocation31_spill] sm:$0xff] %v4104_v8  ;;  %v4110_v35 = vmul.f32 0.70710677, %v4078_v12  ;;  %v4113_v43 = vmul.f32 %v1870_v3, %v3887_v9  ;;  %v1524_v58 = vadd.f32 -0.28449672, %v1492_v0  ;;  %v1685_v15 = vmul.f32 %v1653_v55, %v3974_v47 }
 0x2a3   : > { %v1367_v61 = vmul.f32 1.0614054, %v4087_v23  ;;  %v1242_v27 = vmul.f32 0.3275911, %v4085_v62  ;;  %v4117_v59 = vpop.eup %2690  ;;  %2696 = vrcp.f32 %v1272_v25  ;;  %v4121_v33 = vmul.f32 0.70710677, %v4092_v17 }
 0x2a4   : > { %4680 = vst [vmem:[#allocation32_spill] sm:$0xff] %v4110_v35  ;;  %v1241_v54 = vmul.f32 0.3275911, %v4095_v38  ;;  %v1522_v57 = vadd.f32 -0.28449672, %v1490_v44  ;;  %vm1144_vm6 = vcmp.ge.f32.partialorder %v4021_v22, 0.0  ;;  %v1841_v52 = vmul.f32 %v1809_v6, %v3964_v2 }
 0x2a5   : > { %4681 = vst [vmem:[#allocation33_spill] sm:$0xff] %v4121_v33  ;;  %v1656_v9 = vsub.f32 0.0, %v4040_v21  ;;  %v4127_v4 = vmul.f32 0.70710677, %v4104_v8  ;;  %v1875_v18 = vadd.f32 1.0, %v1843_v7  ;;  %2698 = vpow2.f32 %v1741_v37 }
 0x2a6   : > { %v4131_v47 = vand.u32 2147483647, %v4110_v35  ;;  %v1556_v3 = vmul.f32 %v3976_v5, %v1524_v58  ;;  %v1399_v0 = vadd.f32 -1.4531521, %v1367_v61  ;;  %v1365_v55 = vmul.f32 1.0614054, %v4117_v59 }
 0x2a7   : > { %4682 = vst [vmem:[#allocation34_spill] sm:$0xff] %v4127_v4  ;;  %v1274_v25 = vadd.f32 1.0, %v1242_v27  ;;  %v2693_v22 = vpop.eup %2692  ;;  %v4136_v44 = vsel %vm1144_vm6, 1.0, %v4647_v28  ;;  %v4139_v17 = vand.u32 2147483647, %v4121_v33  ;;  %v1273_v7 = vadd.f32 1.0, %v1241_v54 }
 0x2a8   : > { %4683 = vst [vmem:[#allocation35_spill] sm:$0xff] %v4136_v44  ;;  %v4142_v2 = vadd.f32 %v3992_v49, %v2429_v32  ;;  %v1554_v37 = vmul.f32 %v3985_v29, %v1522_v57  ;;  %v1737_v6 = vmul.f32 1.442695, %v1685_v15  ;;  %v1688_v58 = vmul.f32 %v1656_v9, %v4040_v21  ;;  %v1045_v15 = vpop.f32.mrf.mxu0 }
 0x2a9   : > { %v4147_v61 = vand.u32 2147483647, %v4127_v4  ;;  %v1873_v27 = vadd.f32 1.0, %v1841_v52  ;;  %v4150_v8 = vmul.f32 0.5, %v3995_v45  ;;  %v1244_v12 = vmul.f32 0.3275911, %v4131_v47 }
 0x2aa   : > { %4684 = vst [vmem:[#allocation36_spill] sm:$0xff] %v4142_v2  ;;  %v4155_v54 = vadd.f32 %v3992_v49, %v4056_v1  ;;  %v1588_v32 = vadd.f32 0.2548296, %v1556_v3  ;;  %v1431_v60 = vmul.f32 %v4087_v23, %v1399_v0  ;;  %v1397_v57 = vadd.f32 -1.4531521, %v1365_v55  ;;  %v4688_v45 = vld [vmem:[#allocation21_spill] sm:$0xff] }
 0x2ab   : > { %4685 = vst [vmem:[#allocation37_spill] sm:$0xff] %v4150_v8  ;;  %2700 = vrcp.f32 %v1274_v25  ;;  %v1243_v21 = vmul.f32 0.3275911, %v4139_v17  ;;  %v4160_v9 = vmul.f32 0.70710677, %v4142_v2  ;;  %v4689_v52 = vld [vmem:[#allocation23_spill] sm:$0xff]  ;;  %v4165_v13 = vmul.f32 %v1875_v18, %v3914_v16 }
 0x2ac   : > { %4686 = vst [vmem:[#allocation38_spill] sm:$0xff] %v4155_v54  ;;  %2702 = vrcp.f32 %v1273_v7  ;;  %v1921_v41 = vpack.c.bf16 %v4689_v52, %v4688_v45  ;;  %v1586_v1 = vadd.f32 0.2548296, %v1554_v37  ;;  %v1743_v4 = vmul.f32 1.442695, %v1688_v58  ;;  %v4693_v37 = vld [vmem:[#allocation22_spill] sm:$0xff] }
 0x2ad   : > { %4687 = vst [vmem:[#allocation39_spill] sm:$0xff] %v4160_v9  ;;  %4690 = vst [vmem:[#allocation21_spill] sm:$0xff] %v4165_v13  ;;  %v1245_v3 = vmul.f32 0.3275911, %v4147_v61  ;;  %vm1142_vm7 = vcmp.ge.f32.partialorder %v4014_v24, 0.0  ;;  %v1276_v0 = vadd.f32 1.0, %v1244_v12  ;;  %v4173_v25 = vadd.f32 %v3992_v49, %v1045_v15 }
 0x2ae   : > { %v4170_v55 = vmul.f32 0.70710677, %v4155_v54  ;;  %2446 = vmatprep.mubr.bf16.mxu0 %v1921_v41  ;;  %v4175_v7 = vpop.eup %2694  ;;  %v1620_v45 = vmul.f32 %v3976_v5, %v1588_v32  ;;  %v1463_v16 = vadd.f32 1.4214138, %v1431_v60  ;;  %v1429_v18 = vmul.f32 %v4117_v59, %v1397_v57  ;;  %v4694_v58 = vld [vmem:[#allocation20_spill] sm:$0xff] }
 0x2af   : > { %4692 = vst [vmem:[#allocation40_spill] sm:$0xff] %v4173_v25  ;;  %2704 = vpow2.f32 %v1737_v6  ;;  %v4695_v52 = vpack.c.bf16 %v4693_v37, %v4694_v58  ;;  %v4183_v12 = vmul.f32 %v1873_v27, %v3928_v19  ;;  %v1275_v54 = vadd.f32 1.0, %v1243_v21 }
 0x2b0   : > { %4691 = vst [vmem:[#allocation23_spill] sm:$0xff] %v4170_v55  ;;  %v4186_v41 = vand.u32 2147483647, %v4160_v9  ;;  %v4189_v49 = vmul.f32 0.70710677, %v4173_v25  ;;  %v4191_v15 = vpop.eup %2696  ;;  %v1618_v5 = vmul.f32 %v3985_v29, %v1586_v1  ;;  %2706 = vpow2.f32 %v1743_v4 }
 0x2b1   : > { %2447 = vmatmul.mubr.bf16.vlgmr.msra.gmra.mxu0 %v4695_v52  ;;  %4696 = vst [vmem:[#allocation22_spill] sm:$0xff] %v4183_v12  ;;  %v4197_v60 = vsel %vm1142_vm7, 1.0, %v4647_v28  ;;  %v1277_v6 = vadd.f32 1.0, %v1245_v3  ;;  %v1366_v19 = vmul.f32 1.0614054, %v4175_v7  ;;  %v1654_v27 = vsub.f32 0.0, %v4030_v42 }
 0x2b2   : > { %4697 = vst [vmem:[#allocation20_spill] sm:$0xff] %v4189_v49  ;;  %2708 = vrcp.f32 %v1276_v0  ;;  %v4202_v32 = vand.u32 2147483647, %v4170_v55  ;;  %v4204_v57 = vpop.eup %2698  ;;  %v1780_v21 = vmul.f32 %v4106_v20, %v1620_v45  ;;  %v1495_v29 = vmul.f32 %v4087_v23, %v1463_v16  ;;  %v4698_v52 = vld [vmem:[#allocation15_spill] sm:$0xff] }
 0x2b3   : > { %v1461_v4 = vadd.f32 1.4214138, %v1429_v18  ;;  %v4209_v24 = vand.u32 2147483647, %v4189_v49  ;;  %v1368_v1 = vmul.f32 1.0614054, %v4191_v15  ;;  %2710 = vrcp.f32 %v1275_v54 }
 0x2b4   : > { %v1659_v3 = vsub.f32 0.0, %v4139_v17  ;;  %v1248_v0 = vmul.f32 0.3275911, %v4186_v41  ;;  %v1778_v37 = vmul.f32 %v2693_v22, %v1618_v5  ;;  %2712 = vrcp.f32 %v1277_v6  ;;  %v4699_v18 = vld [vmem:[#allocation18_spill] sm:$0xff] }
 0x2b5   : > { %v1246_v58 = vmul.f32 0.3275911, %v4209_v24  ;;  %v1349_v2 = vmul.f32 1.0614054, %v4698_v52  ;;  %v1398_v20 = vadd.f32 -1.4531521, %v1366_v19  ;;  %v1686_v45 = vmul.f32 %v1654_v27, %v4030_v42 }
 0x2b6   : > { %v1247_v16 = vmul.f32 0.3275911, %v4202_v32  ;;  %v1350_v55 = vmul.f32 1.0614054, %v4699_v18  ;;  %v1527_v25 = vadd.f32 -0.28449672, %v1495_v29  ;;  %v1493_v54 = vmul.f32 %v4117_v59, %v1461_v4 }
 0x2b7   : > { %v1278_v9 = vadd.f32 1.0, %v1246_v58  ;;  %v1381_v36 = vadd.f32 -1.4531521, %v1349_v2  ;;  %v1812_v22 = vsub.f32 1.0, %v1780_v21  ;;  %v1400_v5 = vadd.f32 -1.4531521, %v1368_v1 }
 0x2b8   : > { %v4220_v13 = vpop.eup %2700  ;;  %v1280_v6 = vadd.f32 1.0, %v1248_v0  ;;  %v1382_v49 = vadd.f32 -1.4531521, %v1350_v55  ;;  %v1810_v19 = vsub.f32 1.0, %v1778_v37  ;;  %v1691_v42 = vmul.f32 %v1659_v3, %v4139_v17 }
 0x2b9   : > { %v4222_v35 = vpop.eup %2702  ;;  %v1657_v27 = vsub.f32 0.0, %v4095_v38  ;;  %2714 = vrcp.f32 %v1278_v9  ;;  %v1430_v29 = vmul.f32 %v4175_v7, %v1398_v20  ;;  %v1279_v46 = vadd.f32 1.0, %v1247_v16 }
 0x2ba   : > { %v1413_v4 = vmul.f32 %v4698_v52, %v1381_v36  ;;  %v1414_v2 = vmul.f32 %v4699_v18, %v1382_v49  ;;  %v1559_v21 = vmul.f32 %v4087_v23, %v1527_v25  ;;  %v1525_v1 = vadd.f32 -0.28449672, %v1493_v54 }
 0x2bb   : > { %v1739_v0 = vmul.f32 1.442695, %v1686_v45  ;;  %v1370_v55 = vmul.f32 1.0614054, %v4220_v13  ;;  %v1432_v17 = vmul.f32 %v4191_v15, %v1400_v5  ;;  %v1369_v3 = vmul.f32 1.0614054, %v4222_v35 }
 0x2bc   : > { %v4231_v58 = vpop.eup %2704  ;;  %2716 = vrcp.f32 %v1280_v6  ;;  %v1445_v9 = vadd.f32 1.4214138, %v1413_v4  ;;  %v1842_v37 = vmul.f32 %v1810_v19, %v4026_v50  ;;  %v1749_v20 = vmul.f32 1.442695, %v1691_v42  ;;  %v4700_v19 = vld [vmem:[#allocation5_spill] sm:$0xff] }
 0x2bd   : > { %v1689_v36 = vmul.f32 %v1657_v27, %v4095_v38  ;;  %v1446_v49 = vadd.f32 1.4214138, %v1414_v2  ;;  %v4237_v16 = vpop.eup %2706  ;;  %v4240_v25 = vmul.f32 %v1812_v22, %v3982_v30  ;;  %v1462_v45 = vadd.f32 1.4214138, %v1430_v29  ;;  %v4701_v22 = vld [vmem:[#allocation7_spill] sm:$0xff] }
 0x2be   : > { %2718 = vrcp.f32 %v1279_v46  ;;  %v1477_v54 = vmul.f32 %v4698_v52, %v1445_v9  ;;  %v1591_v33 = vadd.f32 0.2548296, %v1559_v21  ;;  %v1402_v6 = vadd.f32 -1.4531521, %v1370_v55 }
 0x2bf   : > { %v4243_v5 = vpop.eup %2708  ;;  %2720 = vpow2.f32 %v1739_v0  ;;  %v1478_v50 = vmul.f32 %v4699_v18, %v1446_v49  ;;  %vm1125_vm8 = vcmp.ge.f32.partialorder %v4700_v19, 0.0  ;;  %v1557_v38 = vmul.f32 %v4117_v59, %v1525_v1 }
 0x2c0   : > { %v1464_v42 = vadd.f32 1.4214138, %v1432_v17  ;;  %v1401_v27 = vadd.f32 -1.4531521, %v1369_v3  ;;  %v1509_v4 = vadd.f32 -0.28449672, %v1477_v54  ;;  %v4248_v30 = vpop.eup %2710  ;;  %2722 = vpow2.f32 %v1749_v20 }
 0x2c1   : > { %vm1126_vm9 = vcmp.ge.f32.partialorder %v4701_v22, 0.0  ;;  %v4251_v46 = vadd.f32 1.0, %v1842_v37  ;;  %v1745_v29 = vmul.f32 1.442695, %v1689_v36  ;;  %v1510_v2 = vadd.f32 -0.28449672, %v1478_v50  ;;  %v4253_v21 = vpop.eup %2712 }
 0x2c2   : > { %v1494_v0 = vmul.f32 %v4175_v7, %v1462_v45  ;;  %v1372_v55 = vmul.f32 1.0614054, %v4243_v5  ;;  %v1658_v1 = vsub.f32 0.0, %v4085_v62  ;;  %v1541_v17 = vmul.f32 %v4698_v52, %v1509_v4 }
 0x2c3   : > { %v4260_v3 = vmul.f32 %v4087_v23, %v1591_v33  ;;  %v1660_v9 = vsub.f32 0.0, %v4131_v47  ;;  %v1434_v37 = vmul.f32 %v4220_v13, %v1402_v6  ;;  %v1542_v20 = vmul.f32 %v4699_v18, %v1510_v2 }
 0x2c4   : > { %v1589_v36 = vadd.f32 0.2548296, %v1557_v38  ;;  %v1496_v49 = vmul.f32 %v4191_v15, %v1464_v42  ;;  %v1433_v45 = vmul.f32 %v4222_v35, %v1401_v27  ;;  %v1573_v54 = vadd.f32 0.2548296, %v1541_v17 }
 0x2c5   : > { %v1371_v50 = vmul.f32 1.0614054, %v4248_v30  ;;  %2724 = vpow2.f32 %v1745_v29  ;;  %v1373_v4 = vmul.f32 1.0614054, %v4253_v21  ;;  %v1574_v34 = vadd.f32 0.2548296, %v1542_v20 }
 0x2c6   : > { %v4269_v23 = vpop.eup %2714  ;;  %v1526_v33 = vadd.f32 -0.28449672, %v1494_v0  ;;  %v1404_v44 = vadd.f32 -1.4531521, %v1372_v55  ;;  %v1690_v6 = vmul.f32 %v1658_v1, %v4085_v62  ;;  %v1605_v2 = vmul.f32 %v4698_v52, %v1573_v54  ;;  %v4703_v52 = vld [vmem:[#allocation19_spill] sm:$0xff] }
 0x2c7   : > { %v1692_v38 = vmul.f32 %v1660_v9, %v4131_v47  ;;  %v1466_v42 = vadd.f32 1.4214138, %v1434_v37  ;;  %v1374_v27 = vmul.f32 1.0614054, %v4269_v23  ;;  %v1606_v17 = vmul.f32 %v4699_v18, %v1574_v34 }
 0x2c8   : > { %v4277_v29 = vmul.f32 %v4117_v59, %v1589_v36  ;;  %v1528_v8 = vadd.f32 -0.28449672, %v1496_v49  ;;  %v1465_v20 = vadd.f32 1.4214138, %v1433_v45  ;;  %v1765_v39 = vmul.f32 %v4702_v14, %v1605_v2 }
 0x2c9   : > { %v4280_v0 = vpop.eup %2716  ;;  %v1403_v55 = vadd.f32 -1.4531521, %v1371_v50  ;;  %v1405_v62 = vadd.f32 -1.4531521, %v1373_v4  ;;  %v1406_v1 = vadd.f32 -1.4531521, %v1374_v27  ;;  %v1766_v54 = vmul.f32 %v4703_v52, %v1606_v17 }
 0x2ca   : > { %v1558_v47 = vmul.f32 %v4175_v7, %v1526_v33  ;;  %v1436_v9 = vmul.f32 %v4243_v5, %v1404_v44  ;;  %v1747_v37 = vmul.f32 1.442695, %v1690_v6  ;;  %v1797_v34 = vsub.f32 1.0, %v1765_v39 }
 0x2cb   : > { %v4285_v18 = vpop.eup %2718  ;;  %v1498_v59 = vmul.f32 %v4220_v13, %v1466_v42  ;;  %v1438_v36 = vmul.f32 %v4269_v23, %v1406_v1  ;;  %v1157_v14 = vsel %vm1125_vm8, 1.0, %v4647_v28  ;;  %v1798_v49 = vsub.f32 1.0, %v1766_v54 }
 0x2cc   : > { %v2721_v45 = vpop.eup %2720  ;;  %v1497_v50 = vmul.f32 %v4222_v35, %v1465_v20  ;;  %v1376_v4 = vmul.f32 1.0614054, %v4280_v0  ;;  %v1158_v39 = vsel %vm1126_vm9, 1.0, %v4647_v28  ;;  %v1829_v44 = vmul.f32 %v1797_v34, %v1157_v14 }
 0x2cd   : > { %v1435_v33 = vmul.f32 %v4248_v30, %v1403_v55  ;;  %v1437_v6 = vmul.f32 %v4253_v21, %v1405_v62  ;;  %v1662_v2 = vsub.f32 0.0, %v4209_v24  ;;  %v1830_v42 = vmul.f32 %v1798_v49, %v1158_v39  ;;  %v4300_v19 = vpop.eup %2722  ;;  %v4705_v39 = vld [vmem:[#allocation6_spill] sm:$0xff] }
 0x2ce   : > { %4704 = vst [vmem:[#allocation15_spill] sm:$0xff] %v4300_v19  ;;  %v1590_v27 = vadd.f32 0.2548296, %v1558_v47  ;;  %v1375_v17 = vmul.f32 1.0614054, %v4285_v18  ;;  %v1661_v20 = vsub.f32 0.0, %v4147_v61  ;;  %v1560_v52 = vmul.f32 %v4191_v15, %v1528_v8 }
 0x2cf   : > { %v1861_v1 = vadd.f32 1.0, %v1829_v44  ;;  %v1530_v22 = vadd.f32 -0.28449672, %v1498_v59  ;;  %v1470_v54 = vadd.f32 1.4214138, %v1438_v36  ;;  %v1862_v34 = vadd.f32 1.0, %v1830_v42 }
 0x2d0   : > { %v1529_v14 = vadd.f32 -0.28449672, %v1497_v50  ;;  %v1468_v55 = vadd.f32 1.4214138, %v1436_v9  ;;  %2726 = vpow2.f32 %v1747_v37  ;;  %v1408_v62 = vadd.f32 -1.4531521, %v1376_v4 }
 0x2d1   : > { %v1469_v28 = vadd.f32 1.4214138, %v1437_v6  ;;  %v1694_v49 = vmul.f32 %v1662_v2, %v4209_v24  ;;  %v1893_v19 = vmul.f32 %v1861_v1, %v4705_v39  ;;  %v4706_v47 = vld [vmem:[#allocation8_spill] sm:$0xff]  ;;  %v1622_v44 = vmul.f32 %v4175_v7, %v1590_v27  ;;  %v4708_v42 = vld [vmem:[#allocation25_spill] sm:$0xff] }
 0x2d2   : > { %v1894_v51 = vmul.f32 %v1862_v34, %v4706_v47  ;;  %v4308_v56 = vpop.eup %2724  ;;  %v1467_v12 = vadd.f32 1.4214138, %v1435_v33  ;;  %v1407_v8 = vadd.f32 -1.4531521, %v1375_v17  ;;  %v1693_v59 = vmul.f32 %v1661_v20, %v4147_v61  ;;  %v4707_v2 = vld [vmem:[#allocation24_spill] sm:$0xff] }
 0x2d3   : > { %v1562_v36 = vmul.f32 %v4220_v13, %v1530_v22  ;;  %v1502_v9 = vmul.f32 %v4269_v23, %v1470_v54  ;;  %v1925_v24 = vpack.c.bf16 %v4017_v63, %v3942_v10  ;;  %v1500_v50 = vmul.f32 %v4243_v5, %v1468_v55 }
 0x2d4   : > { %v1923_v37 = vpack.c.bf16 %v1894_v51, %v1893_v19  ;;  %v1751_v4 = vmul.f32 1.442695, %v1692_v38  ;;  %v1440_v6 = vmul.f32 %v4280_v0, %v1408_v62  ;;  %v1924_v7 = vpack.c.bf16 %v4708_v42, %v4707_v2 }
 0x2d5   : > { %v1592_v33 = vadd.f32 0.2548296, %v1560_v52  ;;  %v1561_v27 = vmul.f32 %v4222_v35, %v1529_v14  ;;  %v1501_v61 = vmul.f32 %v4253_v21, %v1469_v28  ;;  %v1755_v17 = vmul.f32 1.442695, %v1694_v49 }
 0x2d6   : > { %2450 = vmatprep.mubr.bf16.mxu1 %v1923_v37  ;;  %v1782_v20 = vmul.f32 %v2721_v45, %v1622_v44  ;;  %v1499_v51 = vmul.f32 %v4248_v30, %v1467_v12  ;;  %v1439_v10 = vmul.f32 %v4285_v18, %v1407_v8  ;;  %v1664_v63 = vsub.f32 0.0, %v4186_v41 }
 0x2d7   : > { %2451 = vmatmul.mubr.bf16.vlgmr.msra.gmra.mxu1 %v1924_v7  ;;  %v1781_v38 = vmul.f32 %v4231_v58, %v4277_v29  ;;  %v1594_v19 = vadd.f32 0.2548296, %v1562_v36  ;;  %v1753_v1 = vmul.f32 1.442695, %v1693_v59  ;;  %v1534_v52 = vadd.f32 -0.28449672, %v1502_v9 }
 0x2d8   : > { %2454 = vmatprep.mubr.bf16.mxu1 %v1925_v24  ;;  %v1532_v22 = vadd.f32 -0.28449672, %v1500_v50  ;;  %2728 = vpow2.f32 %v1751_v4  ;;  %v1663_v28 = vsub.f32 0.0, %v4202_v32  ;;  %v1472_v54 = vadd.f32 1.4214138, %v1440_v6 }
 0x2d9   : > { %v1624_v45 = vmul.f32 %v4191_v15, %v1592_v33  ;;  %v1593_v12 = vadd.f32 0.2548296, %v1561_v27  ;;  %v1533_v34 = vadd.f32 -0.28449672, %v1501_v61  ;;  %2730 = vpow2.f32 %v1755_v17  ;;  %v4709_v61 = vld [vmem:[#allocation22_spill] sm:$0xff]  ;;  %v4710_v17 = vld [vmem:[#allocation12_spill] sm:$0xff] }
 0x2da   : > { %v1814_v14 = vsub.f32 1.0, %v1782_v20  ;;  %v1531_v55 = vadd.f32 -0.28449672, %v1499_v51  ;;  %v1471_v62 = vadd.f32 1.4214138, %v1439_v10  ;;  %v1696_v49 = vmul.f32 %v1664_v63, %v4186_v41  ;;  %v4712_v63 = vld [vmem:[#allocation26_spill] sm:$0xff] }
 0x2db   : > { %v1626_v58 = vmul.f32 %v4220_v13, %v1594_v19  ;;  %2732 = vpow2.f32 %v1753_v1  ;;  %v1566_v29 = vmul.f32 %v4269_v23, %v1534_v52  ;;  %v1927_v39 = vpack.c.bf16 %v4113_v43, %v4046_v11 }
 0x2dc   : > { %v1564_v47 = vmul.f32 %v4243_v5, %v1532_v22  ;;  %v1695_v15 = vmul.f32 %v1663_v28, %v4202_v32  ;;  %v1504_v44 = vmul.f32 %v4280_v0, %v1472_v54  ;;  %v1926_v8 = vpack.c.bf16 %v3979_v31, %v3900_v53  ;;  %v4714_v54 = vld [vmem:[#allocation13_spill] sm:$0xff] }
 0x2dd   : > { %v2727_v59 = vpop.eup %2726  ;;  %v1876_v41 = vadd.f32 1.0, %v4240_v25  ;;  %v1813_v36 = vsub.f32 1.0, %v1781_v38  ;;  %v1625_v13 = vmul.f32 %v4222_v35, %v1593_v12  ;;  %v1565_v9 = vmul.f32 %v4253_v21, %v1533_v34  ;;  %v4715_v12 = vld [vmem:[#allocation37_spill] sm:$0xff] }
 0x2de   : > { %v1784_v37 = vmul.f32 %v4237_v16, %v1624_v45  ;;  %v1563_v11 = vmul.f32 %v4248_v30, %v1531_v55  ;;  %v1503_v43 = vmul.f32 %v4285_v18, %v1471_v62  ;;  %v1759_v32 = vmul.f32 1.442695, %v1696_v49 }
 0x2df   : > { %2455 = vmatmul.mubr.bf16.gmra.mxu1 %v1926_v8  ;;  %v1906_v24 = vmul.f32 %v4251_v46, %v4002_v40  ;;  %v1846_v53 = vmul.f32 %v1814_v14, %v4197_v60  ;;  %v1786_v31 = vmul.f32 %v2727_v59, %v1626_v58  ;;  %v1598_v25 = vadd.f32 0.2548296, %v1566_v29  ;;  %v4717_v29 = vld [vmem:[#allocation27_spill] sm:$0xff]  ;;  %v4719_v8 = vld [vmem:[#allocation16_spill] sm:$0xff] }
 0x2e0   : > { %2458 = vmatprep.mubr.bf16.mxu1 %v1927_v39  ;;  %v1783_v35 = vmul.f32 %v4204_v57, %v4260_v3  ;;  %v1596_v50 = vadd.f32 0.2548296, %v1564_v47  ;;  %v1757_v4 = vmul.f32 1.442695, %v1695_v15  ;;  %v1536_v16 = vadd.f32 -0.28449672, %v1504_v44 }
 0x2e1   : > { %v1845_v6 = vmul.f32 %v1813_v36, %v4101_v26  ;;  %v1785_v2 = vmul.f32 %v4308_v56, %v1625_v13  ;;  %vm1146_vm10 = vcmp.ge.f32.partialorder %v4060_v48, 0.0  ;;  %v1597_v42 = vadd.f32 0.2548296, %v1565_v9  ;;  %v4711_v56 = vld [vmem:[#allocation9_spill] sm:$0xff]  ;;  %v4721_v13 = vld [vmem:[#allocation32_spill] sm:$0xff] }
 0x2e2   : > { %v1816_v7 = vsub.f32 1.0, %v1784_v37  ;;  %v1595_v40 = vadd.f32 0.2548296, %v1563_v11  ;;  %v1535_v46 = vadd.f32 -0.28449672, %v1503_v43  ;;  %2734 = vpow2.f32 %v1759_v32  ;;  %v4718_v47 = vld [vmem:[#allocation33_spill] sm:$0xff] }
 0x2e3   : > { %v1878_v60 = vadd.f32 1.0, %v1846_v53  ;;  %v1818_v33 = vsub.f32 1.0, %v1786_v31  ;;  %v1630_v27 = vmul.f32 %v4269_v23, %v1598_v25  ;;  %v1929_v57 = vpack.c.bf16 %v1906_v24, %v4709_v61  ;;  %v4722_v11 = vld [vmem:[#allocation20_spill] sm:$0xff]  ;;  %v4723_v25 = vld [vmem:[#allocation21_spill] sm:$0xff] }
 0x2e4   : > { %v1628_v3 = vmul.f32 %v4243_v5, %v1596_v50  ;;  %2736 = vpow2.f32 %v1757_v4  ;;  %v1568_v26 = vmul.f32 %v4280_v0, %v1536_v16  ;;  %v1928_v20 = vpack.c.bf16 %v4711_v56, %v4710_v17  ;;  %v4724_v4 = vld [vmem:[#allocation11_spill] sm:$0xff] }
 0x2e5   : > { %v2729_v51 = vpop.eup %2728  ;;  %v1877_v10 = vadd.f32 1.0, %v1845_v6  ;;  %vm1145_vm11 = vcmp.ge.f32.partialorder %v4712_v63, 0.0  ;;  %v1817_v38 = vsub.f32 1.0, %v1785_v2  ;;  %v1629_v19 = vmul.f32 %v4253_v21, %v1597_v42  ;;  %v4716_v21 = vld [vmem:[#allocation35_spill] sm:$0xff]  ;;  %v4725_v6 = vld [vmem:[#allocation34_spill] sm:$0xff] }
 0x2e6   : > { %v2731_v1 = vpop.eup %2730  ;;  %v1815_v52 = vsub.f32 1.0, %v1783_v35  ;;  %v1627_v23 = vmul.f32 %v4248_v30, %v1595_v40  ;;  %v4713_v22 = vmov -1.0   ;;  %v1567_v28 = vmul.f32 %v4285_v18, %v1535_v46 }
 0x2e7   : > { %v1178_v5 = vsel %vm1146_vm10, 1.0, %v4713_v22  ;;  %2459 = vmatmul.mubr.bf16.gmra.mxu1 %v1928_v20  ;;  %v1908_v45 = vmul.f32 %v1876_v41, %v4714_v54  ;;  %v1910_v34 = vmul.f32 %v1878_v60, %v4715_v12  ;;  %v1790_v55 = vmul.f32 %v2731_v1, %v1630_v27  ;;  %v4720_v41 = vld [vmem:[#allocation15_spill] sm:$0xff] }
 0x2e8   : > { %v1850_v14 = vmul.f32 %v1818_v33, %v1178_v5  ;;  %2462 = vmatprep.mubr.bf16.mxu1 %v1929_v57  ;;  %v2733_v62 = vpop.eup %2732  ;;  %v1848_v49 = vmul.f32 %v1816_v7, %v4716_v21  ;;  %v1177_v30 = vsel %vm1145_vm11, 1.0, %v4713_v22  ;;  %v1788_v58 = vmul.f32 %v2729_v51, %v1628_v3  ;;  %v4726_v33 = vld [vmem:[#allocation14_spill] sm:$0xff]  ;;  %v4727_v3 = vld [vmem:[#allocation29_spill] sm:$0xff]  ;;  %v4729_v54 = vld [vmem:[#allocation39_spill] sm:$0xff] }
 0x2e9   : > { %v1600_v48 = vadd.f32 0.2548296, %v1568_v26  ;;  %v1909_v39 = vmul.f32 %v1877_v10, %v4717_v29  ;;  %vm1147_vm12 = vcmp.ge.f32.partialorder %v4718_v47, 0.0  ;;  %v1849_v15 = vmul.f32 %v1817_v38, %v1177_v30  ;;  %v4728_v38 = vld [vmem:[#allocation10_spill] sm:$0xff]  ;;  %v4731_v21 = vld [vmem:[#allocation28_spill] sm:$0xff]  ;;  %v4732_v30 = vld [vmem:[#allocation23_spill] sm:$0xff] }
 0x2ea   : > { %v1789_v44 = vmul.f32 %v2733_v62, %v1629_v19  ;;  %v1847_v59 = vmul.f32 %v1815_v52, %v4719_v8  ;;  %v1787_v36 = vmul.f32 %v4720_v41, %v1627_v23  ;;  %vm1148_vm13 = vcmp.ge.f32.partialorder %v4721_v13, 0.0 }
 0x2eb   : > { %v1599_v9 = vadd.f32 0.2548296, %v1567_v28  ;;  %v1882_v37 = vadd.f32 1.0, %v1850_v14  ;;  %vm1150_vm14 = vcmp.ge.f32.partialorder %v4722_v11, 0.0  ;;  %v1822_v43 = vsub.f32 1.0, %v1790_v55  ;;  %v4730_v14 = vld [vmem:[#allocation40_spill] sm:$0xff] }
 0x2ec   : > { %v1931_v32 = vpack.c.bf16 %v1910_v34, %v1909_v39  ;;  %v1880_v24 = vadd.f32 1.0, %v1848_v49  ;;  %v1820_v53 = vsub.f32 1.0, %v1788_v58  ;;  %v1632_v31 = vmul.f32 %v4280_v0, %v1600_v48  ;;  %v4733_v48 = vld [vmem:[#allocation31_spill] sm:$0xff] }
 0x2ed   : > { %v1930_v35 = vpack.c.bf16 %v1908_v45, %v4723_v25  ;;  %v1881_v50 = vadd.f32 1.0, %v1849_v15  ;;  %v1082_v16 = vmul.f32 0.5, %v4724_v4  ;;  %vm1149_vm15 = vcmp.ge.f32.partialorder %v4725_v6, 0.0  ;;  %v4734_v15 = vld [vmem:[#allocation30_spill] sm:$0xff]  ;;  %v4408_v4 = vld [vmem:[%s4599_s6] ss:$0 sm:$0xff] }
 0x2ee   : > { %v1821_v2 = vsub.f32 1.0, %v1789_v44  ;;  %v1879_v42 = vadd.f32 1.0, %v1847_v59  ;;  %v1819_v7 = vsub.f32 1.0, %v1787_v36  ;;  %v1631_v40 = vmul.f32 %v4285_v18, %v1599_v9 }
 0x2ef   : > { %v1182_v46 = vsel %vm1150_vm14, 1.0, %v4713_v22  ;;  %2463 = vmatmul.mubr.bf16.gmra.mxu1 %v1930_v35  ;;  %v2735_v60 = vpop.eup %2734  ;;  %v1081_v27 = vmul.f32 0.5, %v4726_v33  ;;  %v1180_v0 = vsel %vm1148_vm13, 1.0, %v4713_v22  ;;  %v1914_v61 = vmul.f32 %v1882_v37, %v1082_v16 }
 0x2f0   : > { %v1854_v57 = vmul.f32 %v1822_v43, %v1182_v46  ;;  %2466 = vmatprep.mubr.bf16.mxu1 %v1931_v32  ;;  %v1912_v26 = vmul.f32 %v1880_v24, %v4727_v3  ;;  %v1852_v17 = vmul.f32 %v1820_v53, %v1180_v0  ;;  %v1181_v56 = vsel %vm1149_vm15, 1.0, %v4713_v22  ;;  %v4735_v24 = vld [vmem:[#allocation36_spill] sm:$0xff] }
 0x2f1   : > { %v1792_v20 = vmul.f32 %v2735_v60, %v1632_v31  ;;  %v2737_v18 = vpop.eup %2736  ;;  %v1179_v51 = vsel %vm1147_vm12, 1.0, %v4713_v22  ;;  %v1913_v10 = vmul.f32 %v1881_v50, %v1081_v27  ;;  %v1853_v63 = vmul.f32 %v1821_v2, %v1181_v56  ;;  %v4736_v31 = vld [vmem:[#allocation38_spill] sm:$0xff]  ;;  %v2740_v60 = vld [vmem:[%s2929_s17] sm:$0xff] }
 0x2f2   : > { %v1911_v19 = vmul.f32 %v1879_v42, %v4728_v38  ;;  %v1851_v1 = vmul.f32 %v1819_v7, %v1179_v51  ;;  %v1791_v52 = vmul.f32 %v2737_v18, %v1631_v40  ;;  %v1886_v23 = vadd.f32 1.0, %v1854_v57  ;;  %v2739_v42 = vld [vmem:[%s2929_s17 + $0x10] sm:$0xff] }
 0x2f3   : > { %v1933_v5 = vpack.c.bf16 %v1914_v61, %v1913_v10  ;;  %v1884_v28 = vadd.f32 1.0, %v1852_v17  ;;  %vm1152_vm1 = vcmp.ge.f32.partialorder %v4729_v54, 0.0  ;;  %v1824_v45 = vsub.f32 1.0, %v1792_v20  ;;  %v2741_v61 = vld [vmem:[%s2929_s17 + $0x18] sm:$0xff]  ;;  %v2743_v51 = vld [vmem:[%s2929_s17 + $0x30] sm:$0xff] }
 0x2f4   : > { %v1932_v12 = vpack.c.bf16 %v1912_v26, %v1911_v19  ;;  %v1885_v34 = vadd.f32 1.0, %v1853_v63  ;;  %v1086_v55 = vmul.f32 0.5, %v4730_v14  ;;  %v1883_v62 = vadd.f32 1.0, %v1851_v1  ;;  %v2742_v26 = vld [vmem:[%s2929_s17 + $0x8] sm:$0xff]  ;;  %v2744_v19 = vld [vmem:[%s2929_s17 + $0x20] sm:$0xff] }
 0x2f5   : > { %v1084_v49 = vmul.f32 0.5, %v4731_v21  ;;  %vm1151_vm2 = vcmp.ge.f32.partialorder %v4732_v30, 0.0  ;;  %v1823_v58 = vsub.f32 1.0, %v1791_v52  ;;  %v1085_v29 = vmul.f32 0.5, %v4733_v48 }
 0x2f6   : > { %v1184_v39 = vsel %vm1152_vm1, 1.0, %v4713_v22  ;;  %v1918_v47 = vmul.f32 %v1886_v23, %v1086_v55  ;;  %v1083_v44 = vmul.f32 0.5, %v4734_v15  ;;  %v1183_v41 = vsel %vm1151_vm2, 1.0, %v4713_v22 }
 0x2f7   : > { %2467 = vmatmul.mubr.bf16.gmra.mxu1 %v1932_v12  ;;  %v1916_v8 = vmul.f32 %v1884_v28, %v1084_v49  ;;  %v1856_v59 = vmul.f32 %v1824_v45, %v1184_v39  ;;  %v1917_v36 = vmul.f32 %v1885_v34, %v1085_v29  ;;  %v1855_v9 = vmul.f32 %v1823_v58, %v1183_v41  ;;  %v2746_v12 = vld [vmem:[%s2929_s17 + $0x28] sm:$0xff]  ;;  %v2748_v58 = vld [vmem:[%s2929_s17 + $0x40] sm:$0xff] }
 0x2f8   : > { %2470 = vmatprep.mubr.bf16.mxu1 %v1933_v5  ;;  %v1915_v13 = vmul.f32 %v1883_v62, %v1083_v44  ;;  %v1088_v53 = vmul.f32 0.5, %v4735_v24  ;;  %v1087_v25 = vmul.f32 0.5, %v4736_v31  ;;  %v2745_v5 = vld [vmem:[%s2929_s17 + $0x38] sm:$0xff]  ;;  %v2747_v62 = vld [vmem:[%s2929_s17 + $0x50] sm:$0xff] }
 0x2f9   : > { %v1935_v37 = vpack.c.bf16 %v1918_v47, %v1917_v36  ;;  %v1888_v11 = vadd.f32 1.0, %v1856_v59  ;;  %v1887_v32 = vadd.f32 1.0, %v1855_v9  ;;  %v2749_v47 = vld [vmem:[%s2929_s17 + $0x58] sm:$0xff]  ;;  %v2750_v59 = vld [vmem:[%s2929_s17 + $0x48] sm:$0xff]  ;;  %v2751_v9 = vld [vmem:[%s2929_s17 + $0x70] sm:$0xff] }
 0x2fa   : > { %v1934_v43 = vpack.c.bf16 %v1916_v8, %v1915_v13 }
 0x2fb   : > { %v1920_v35 = vmul.f32 %v1888_v11, %v1088_v53  ;;  %v1919_v50 = vmul.f32 %v1887_v32, %v1087_v25  ;;  %v2752_v32 = vld [vmem:[%s2929_s17 + $0x60] sm:$0xff]  ;;  %v2753_v25 = vld [vmem:[%s2929_s17 + $0x78] sm:$0xff] }
 0x2fd   : > { %v1936_v22 = vpack.c.bf16 %v1920_v35, %v1919_v50 }
 0x2ff   : > { %2471 = vmatmul.mubr.bf16.gmra.mxu1 %v1934_v43 }
 0x300   : > { %2474 = vmatprep.mubr.bf16.mxu1 %v1935_v37 }
 0x307   : > { %2475 = vmatmul.mubr.bf16.gmra.mxu1 %v1936_v22 }
 0x371   : > { %v2448_v16 = vpop.f32.mrf.mxu0 }
 0x372   : > { %v2051_v6 = vadd.f32 %v2448_v16, %v4408_v4  ;;  %v2754_v16 = vld [vmem:[%s2929_s17 + $0x68] sm:$0xff] }
 0x373   : > { %v2042_v2 = vpop.f32.mrf.mxu0 }
 0x374   : > { %v2171_v7 = vadd.f32 %v2739_v42, %v2051_v6  ;;  %v2043_v40 = vadd.f32 %v4408_v4, %v2042_v2 }
 0x375   : > { %v2449_v46 = vpop.f32.mrf.mxu0 }
 0x376   : > { %2203 = vst.msk [vmem:[%s4415_s29 + $0x10] sm:$0xff] %vm315_vm0, %v2171_v7  ;;  %v2169_v33 = vadd.f32 %v2740_v60, %v2043_v40  ;;  %v2054_v27 = vadd.f32 %v2449_v46, %v4408_v4  ;;  %v2755_v7 = vld [vmem:[%s2929_s17 + $0x90] sm:$0xff] }
 0x377   : > { %v2045_v0 = vpop.f32.mrf.mxu0 }
 0x378   : > { %2201 = vst.msk [vmem:[%s4415_s29] sm:$0xff] %vm315_vm0, %v2169_v33  ;;  %v2172_v57 = vadd.f32 %v2741_v61, %v2054_v27  ;;  %v2046_v3 = vadd.f32 %v4408_v4, %v2045_v0  ;;  %v2756_v33 = vld [vmem:[%s2929_s17 + $0x80] sm:$0xff] }
 0x37a   : > { %2204 = vst.msk [vmem:[%s4415_s29 + $0x18] sm:$0xff] %vm315_vm0, %v2172_v57  ;;  %v2170_v17 = vadd.f32 %v2742_v26, %v2046_v3  ;;  %v2757_v57 = vld [vmem:[%s2929_s17 + $0x98] sm:$0xff] }
 0x37c   : > { %2202 = vst.msk [vmem:[%s4415_s29 + $0x8] sm:$0xff] %vm315_vm0, %v2170_v17 }
 0x397   : > { %v2452_v56 = vpop.f32.mrf.mxu1 }
 0x398   : > { %v2067_v20 = vadd.f32 %v2452_v56, %v4408_v4  ;;  %v2758_v56 = vld [vmem:[%s2929_s17 + $0x88] sm:$0xff] }
 0x399   : > { %v2058_v18 = vpop.f32.mrf.mxu1 }
 0x39a   : > { %v2175_v10 = vadd.f32 %v2743_v51, %v2067_v20  ;;  %v2059_v63 = vadd.f32 %v4408_v4, %v2058_v18 }
 0x39b   : > { %v2453_v38 = vpop.f32.mrf.mxu1 }
 0x39c   : > { %2207 = vst.msk [vmem:[%s4415_s29 + $0x30] sm:$0xff] %vm315_vm0, %v2175_v10  ;;  %v2173_v1 = vadd.f32 %v2744_v19, %v2059_v63  ;;  %v2070_v52 = vadd.f32 %v2453_v38, %v4408_v4  ;;  %v2759_v10 = vld [vmem:[%s2929_s17 + $0xb0] sm:$0xff] }
 0x39d   : > { %v2061_v23 = vpop.f32.mrf.mxu1 }
 0x39e   : > { %2205 = vst.msk [vmem:[%s4415_s29 + $0x20] sm:$0xff] %vm315_vm0, %v2173_v1  ;;  %v2176_v28 = vadd.f32 %v2745_v5, %v2070_v52  ;;  %v2062_v54 = vadd.f32 %v4408_v4, %v2061_v23  ;;  %v2760_v1 = vld [vmem:[%s2929_s17 + $0xa0] sm:$0xff] }
 0x39f   : > { %v2456_v45 = vpop.f32.mrf.mxu1 }
 0x3a0   : > { %2208 = vst.msk [vmem:[%s4415_s29 + $0x38] sm:$0xff] %vm315_vm0, %v2176_v28  ;;  %v2174_v34 = vadd.f32 %v2746_v12, %v2062_v54  ;;  %v2083_v14 = vadd.f32 %v2456_v45, %v4408_v4  ;;  %v2761_v28 = vld [vmem:[%s2929_s17 + $0xb8] sm:$0xff] }
 0x3a1   : > { %v2074_v55 = vpop.f32.mrf.mxu1 }
 0x3a2   : > { %2206 = vst.msk [vmem:[%s4415_s29 + $0x28] sm:$0xff] %vm315_vm0, %v2174_v34  ;;  %v2179_v21 = vadd.f32 %v2747_v62, %v2083_v14  ;;  %v2075_v49 = vadd.f32 %v4408_v4, %v2074_v55  ;;  %v2762_v34 = vld [vmem:[%s2929_s17 + $0xa8] sm:$0xff] }
 0x3a3   : > { %v2457_v30 = vpop.f32.mrf.mxu1 }
 0x3a4   : > { %2211 = vst.msk [vmem:[%s4415_s29 + $0x50] sm:$0xff] %vm315_vm0, %v2179_v21  ;;  %v2177_v48 = vadd.f32 %v2748_v58, %v2075_v49  ;;  %v2086_v29 = vadd.f32 %v2457_v30, %v4408_v4  ;;  %v2763_v21 = vld [vmem:[%s2929_s17 + $0xd0] sm:$0xff] }
 0x3a5   : > { %v2077_v39 = vpop.f32.mrf.mxu1 }
 0x3a6   : > { %2209 = vst.msk [vmem:[%s4415_s29 + $0x40] sm:$0xff] %vm315_vm0, %v2177_v48  ;;  %v2180_v15 = vadd.f32 %v2749_v47, %v2086_v29  ;;  %v2078_v44 = vadd.f32 %v4408_v4, %v2077_v39  ;;  %v2764_v48 = vld [vmem:[%s2929_s17 + $0xc0] sm:$0xff] }
 0x3a7   : > { %v2460_v8 = vpop.f32.mrf.mxu1 }
 0x3a8   : > { %2212 = vst.msk [vmem:[%s4415_s29 + $0x58] sm:$0xff] %vm315_vm0, %v2180_v15  ;;  %v2178_v41 = vadd.f32 %v2750_v59, %v2078_v44  ;;  %v2099_v36 = vadd.f32 %v2460_v8, %v4408_v4  ;;  %v2765_v15 = vld [vmem:[%s2929_s17 + $0xd8] sm:$0xff] }
 0x3a9   : > { %v2090_v13 = vpop.f32.mrf.mxu1 }
 0x3aa   : > { %2210 = vst.msk [vmem:[%s4415_s29 + $0x48] sm:$0xff] %vm315_vm0, %v2178_v41  ;;  %v2183_v37 = vadd.f32 %v2751_v9, %v2099_v36  ;;  %v2091_v11 = vadd.f32 %v4408_v4, %v2090_v13  ;;  %v2766_v41 = vld [vmem:[%s2929_s17 + $0xc8] sm:$0xff] }
 0x3ab   : > { %v2461_v43 = vpop.f32.mrf.mxu1 }
 0x3ac   : > { %2215 = vst.msk [vmem:[%s4415_s29 + $0x70] sm:$0xff] %vm315_vm0, %v2183_v37  ;;  %v2181_v24 = vadd.f32 %v2752_v32, %v2091_v11  ;;  %v2102_v53 = vadd.f32 %v2461_v43, %v4408_v4  ;;  %v2767_v37 = vld [vmem:[%s2929_s17 + $0xf0] sm:$0xff] }
 0x3ad   : > { %v2093_v31 = vpop.f32.mrf.mxu1 }
 0x3ae   : > { %2213 = vst.msk [vmem:[%s4415_s29 + $0x60] sm:$0xff] %vm315_vm0, %v2181_v24  ;;  %v2184_v35 = vadd.f32 %v2753_v25, %v2102_v53  ;;  %v2094_v50 = vadd.f32 %v4408_v4, %v2093_v31  ;;  %v2768_v24 = vld [vmem:[%s2929_s17 + $0xe0] sm:$0xff] }
 0x3af   : > { %v2464_v22 = vpop.f32.mrf.mxu1 }
 0x3b0   : > { %2216 = vst.msk [vmem:[%s4415_s29 + $0x78] sm:$0xff] %vm315_vm0, %v2184_v35  ;;  %v2182_v6 = vadd.f32 %v2754_v16, %v2094_v50  ;;  %v2115_v2 = vadd.f32 %v2464_v22, %v4408_v4  ;;  %v2769_v35 = vld [vmem:[%s2929_s17 + $0xf8] sm:$0xff]  ;;  %v2770_v16 = vld [vmem:[%s2929_s17 + $0xe8] sm:$0xff] }
 0x3b1   : > { %v2106_v42 = vpop.f32.mrf.mxu1 }
 0x3b2   : > { %2214 = vst.msk [vmem:[%s4415_s29 + $0x68] sm:$0xff] %vm315_vm0, %v2182_v6  ;;  %v2187_v40 = vadd.f32 %v2755_v7, %v2115_v2  ;;  %v2107_v46 = vadd.f32 %v4408_v4, %v2106_v42 }
 0x3b3   : > { %v2465_v60 = vpop.f32.mrf.mxu1 }
 0x3b4   : > { %2219 = vst.msk [vmem:[%s4415_s29 + $0x90] sm:$0xff] %vm315_vm0, %v2187_v40  ;;  %v2185_v27 = vadd.f32 %v2756_v33, %v2107_v46  ;;  %v2118_v0 = vadd.f32 %v2465_v60, %v4408_v4 }
 0x3b5   : > { %v2109_v61 = vpop.f32.mrf.mxu1 }
 0x3b6   : > { %2217 = vst.msk [vmem:[%s4415_s29 + $0x80] sm:$0xff] %vm315_vm0, %v2185_v27  ;;  %v2188_v3 = vadd.f32 %v2757_v57, %v2118_v0  ;;  %v2110_v26 = vadd.f32 %v4408_v4, %v2109_v61 }
 0x3b7   : > { %v2468_v17 = vpop.f32.mrf.mxu1 }
 0x3b8   : > { %2220 = vst.msk [vmem:[%s4415_s29 + $0x98] sm:$0xff] %vm315_vm0, %v2188_v3  ;;  %v2186_v20 = vadd.f32 %v2758_v56, %v2110_v26  ;;  %v2131_v18 = vadd.f32 %v2468_v17, %v4408_v4 }
 0x3b9   : > { %v2122_v51 = vpop.f32.mrf.mxu1 }
 0x3ba   : > { %2218 = vst.msk [vmem:[%s4415_s29 + $0x88] sm:$0xff] %vm315_vm0, %v2186_v20  ;;  %v2191_v63 = vadd.f32 %v2759_v10, %v2131_v18  ;;  %v2123_v38 = vadd.f32 %v4408_v4, %v2122_v51 }
 0x3bb   : > { %v2469_v19 = vpop.f32.mrf.mxu1 }
 0x3bc   : > { %2223 = vst.msk [vmem:[%s4415_s29 + $0xb0] sm:$0xff] %vm315_vm0, %v2191_v63  ;;  %v2189_v52 = vadd.f32 %v2760_v1, %v2123_v38  ;;  %v2134_v23 = vadd.f32 %v2469_v19, %v4408_v4 }
 0x3bd   : > { %v2125_v5 = vpop.f32.mrf.mxu1 }
 0x3be   : > { %2221 = vst.msk [vmem:[%s4415_s29 + $0xa0] sm:$0xff] %vm315_vm0, %v2189_v52  ;;  %v2192_v54 = vadd.f32 %v2761_v28, %v2134_v23  ;;  %v2126_v45 = vadd.f32 %v4408_v4, %v2125_v5 }
 0x3bf   : > { %v2472_v12 = vpop.f32.mrf.mxu1 }
 0x3c0   : > { %2224 = vst.msk [vmem:[%s4415_s29 + $0xb8] sm:$0xff] %vm315_vm0, %v2192_v54  ;;  %v2190_v14 = vadd.f32 %v2762_v34, %v2126_v45  ;;  %v2147_v55 = vadd.f32 %v2472_v12, %v4408_v4 }
 0x3c1   : > { %v2138_v62 = vpop.f32.mrf.mxu1 }
 0x3c2   : > { %2222 = vst.msk [vmem:[%s4415_s29 + $0xa8] sm:$0xff] %vm315_vm0, %v2190_v14  ;;  %v2195_v49 = vadd.f32 %v2763_v21, %v2147_v55  ;;  %v2139_v30 = vadd.f32 %v4408_v4, %v2138_v62 }
 0x3c3   : > { %v2473_v58 = vpop.f32.mrf.mxu1 }
 0x3c4   : > { %2227 = vst.msk [vmem:[%s4415_s29 + $0xd0] sm:$0xff] %vm315_vm0, %v2195_v49  ;;  %v2193_v29 = vadd.f32 %v2764_v48, %v2139_v30  ;;  %v2150_v39 = vadd.f32 %v2473_v58, %v4408_v4 }
 0x3c5   : > { %v2141_v47 = vpop.f32.mrf.mxu1 }
 0x3c6   : > { %2225 = vst.msk [vmem:[%s4415_s29 + $0xc0] sm:$0xff] %vm315_vm0, %v2193_v29  ;;  %v2196_v44 = vadd.f32 %v2765_v15, %v2150_v39  ;;  %v2142_v8 = vadd.f32 %v4408_v4, %v2141_v47 }
 0x3c7   : > { %v2476_v59 = vpop.f32.mrf.mxu1 }
 0x3c8   : > { %2228 = vst.msk [vmem:[%s4415_s29 + $0xd8] sm:$0xff] %vm315_vm0, %v2196_v44  ;;  %v2194_v36 = vadd.f32 %v2766_v41, %v2142_v8  ;;  %v2163_v13 = vadd.f32 %v2476_v59, %v4408_v4 }
 0x3c9   : > { %v2154_v9 = vpop.f32.mrf.mxu1 }
 0x3ca   : > { %2226 = vst.msk [vmem:[%s4415_s29 + $0xc8] sm:$0xff] %vm315_vm0, %v2194_v36  ;;  %v2199_v11 = vadd.f32 %v2767_v37, %v2163_v13  ;;  %v2155_v43 = vadd.f32 %v4408_v4, %v2154_v9 }
 0x3cb   : > { %v2477_v32 = vpop.f32.mrf.mxu1 }
 0x3cc   : > { %2231 = vst.msk [vmem:[%s4415_s29 + $0xf0] sm:$0xff] %vm315_vm0, %v2199_v11  ;;  %v2197_v53 = vadd.f32 %v2768_v24, %v2155_v43  ;;  %v2166_v31 = vadd.f32 %v2477_v32, %v4408_v4 }
 0x3cd   : > { %v2157_v25 = vpop.f32.mrf.mxu1 }
 0x3ce   : > { %2229 = vst.msk [vmem:[%s4415_s29 + $0xe0] sm:$0xff] %vm315_vm0, %v2197_v53  ;;  %v2200_v50 = vadd.f32 %v2769_v35, %v2166_v31  ;;  %v2158_v22 = vadd.f32 %v4408_v4, %v2157_v25 }
 0x3d0   : > { %2232 = vst.msk [vmem:[%s4415_s29 + $0xf8] sm:$0xff] %vm315_vm0, %v2200_v50  ;;  %v2198_v6 = vadd.f32 %v2770_v16, %v2158_v22 }
 0x3d2   : > { %2230 = vst.msk [vmem:[%s4415_s29 + $0xe8] sm:$0xff] %vm315_vm0, %v2198_v6 }
 0x3d3   : > { %2784 = shalt.err (!%p2781_p3)
}
 0x3d4   : > { %s2785_s17 = scalar_lea.hbm %s4542_s15, 4096  ;;  %s2789_s23 = scalar_lea.hbm %s4600_s7, 8192 }
 0x3d5   : > { %p2786_p4 = scmp.ne.s32.totalorder %s4542_s15, %s2785_s17  ;;  %p2790_p9 = scmp.lt.s32.totalorder %s4542_s15, %s4600_s7 }
 0x3d6   : > { %p2791_p10 = scmp.lt.s32.totalorder %s2789_s23, %s2785_s17 }
 0x3d7   : > { %p2787_p7 = pnand %p2786_p4, %p2915_p5 }
 0x3d8   : > { %p2792_p11 = por %p2791_p10, %p2790_p9 }
 0x3d9   : > { %p2788_p8 = pneg %p2787_p7 }
 0x3db   : > { %p2793_p12 = pnand %p2792_p11, %p2788_p8 }
 0x3dd   : > { %2796 = shalt.err (!%p2793_p12)
}
 0x3de   : > { %s2835_s13 = smov 128   ;;  %s2836_s14 = smov 8  }
 0x3df   : > { %2494 = dma.vmem_to_hbm [thread:$0]  (%p2915_p5), %s4544_s9, 4096, %s4542_s15, %s4553_s28, %s2835_s13, %s2835_s13, %s2836_s14  }
 0x3e0 PF: > { %p2500_p13 = scmp.ge.s32.totalorder %s2831_s27, 2  ;;  %s2262_s16 = sand.u32 1, %s2819_s24  }
 0x3e1   : > { %s2263_s18 = scalar_lea.sflag [#allocation3], %s2262_s16 }
 0x3e2   : > { %p2497_p0 = pnand %p2500_p13, %p2919_p6 }
 0x3e4   : > { %p2498_p1 = pneg %p2497_p0 }
 0x3e6   : > { %2814 = dma.done.wait (%p2498_p1), %s2263_s18, 4096  }
 0x3e7   : > { %2816 = vsyncadd (%p2498_p1), %s2263_s18, 4294963200  ;;  %p17_p2 = scmp.ge.s32.totalorder %s2902_s30, 4   ;;  %s4737_s24 = smov %s2823_s25 }
 0x3e8   : > { %s4738_s25 = smov %s2827_s26  ;;  %s4739_s26 = smov %s2913_s10 }
 0x3e9   : > { %s4740_s27 = smov %s2902_s30  ;;  %19 = sbr.rel (!%p17_p2) target bundleno = 3 (0x3), region = 83 }
 0x3ee   :  { %2268 = vsyncpa [#allocation3], 1 }
 0x3ef   :  { %2270 = vsyncpa [#allocation3 + $0x1], 1 }

// kernel: swint_block_forward.6
= control target key start
LH: loop header
LB: loop body
LE: loop exit
PB: predicated region body
PF: predicated region fallthrough
CT: control target
= control target key end

     0   :  { %s6088_s24 = smov 0   ;;  %s7667_s0 = inlined_call_operand.vmem [shape: bf16[32,4,16,8], index: 0, kind: input, shape index: {}]   ;;  %s7668_s1 = inlined_call_operand.vmem [shape: bf16[32,4,4,8], index: 1, kind: input, shape index: {}]   ;;  %s7669_s2 = inlined_call_operand.vmem [shape: bf16[32,4,4,8], index: 2, kind: input, shape index: {}]   ;;  %s7670_s3 = inlined_call_operand.vmem [shape: f32[1,4,16,4], index: 3, kind: input, shape index: {}]   ;;  %s7671_s4 = inlined_call_operand.vmem [shape: bf16[32,32], index: 4, kind: input, shape index: {}]   ;;  %s7672_s5 = inlined_call_operand.vmem [shape: f32[1,32], index: 5, kind: input, shape index: {}]   ;;  %s7673_s6 = inlined_call_operand.vmem [shape: f32[512,32], index: 6, kind: input, shape index: {}]   ;;  %s7674_s7 = inlined_call_operand.vmem [shape: f32[512,32], index: 7, kind: output, shape index: {}]  }
   0x1 LB: > { %s4936_s25 = sadd.s32 4294967295, %s6041_s24   ;;  %p4940_p0 = scmp.ge.s32.totalorder %s6041_s24, 1  ;;  %s6041_s24 = sphi %s6088_s24, %s17_s24  }
   0x2   : > { %p274_p1 = scmp.lt.s32.totalorder %s6041_s24, 5 }
   0x4   : > { %p275_p2 = pnand %p4940_p0, %p274_p1 }
   0x6   : > { %278 = sbr.rel (%p275_p2) target bundleno = 2729 (0xaa9), region = 48 }
   0xb   : > { %s4941_s26 = sshll.u32 %s4936_s25, 3  ;;  %v7675_v0 = vmov 0.0   ;;  %vm6044_vm0 = vmmov 0   ;;  %vm499_vm1 = vcmask 64512   ;;  %v6179_v25 = vld [vmem:[%s7670_s3] sm:$0xff]  ;;  %vm911_vm2 = vcmask 31744  }
   0xc   : > { %5204 = vmatprep.subr.bf16.mxu0 %v7675_v0  ;;  %5210 = vmatprep.subr.bf16.mxu1 %v7675_v0  ;;  %p325_p3 = scmp.lt.s32.totalorder %s4941_s26, 31  ;;  %v6190_v32 = vld [vmem:[%s7670_s3 + $0x8] sm:$0xff]  ;;  %vm1099_vm3 = vcmask 1041408   ;;  %s6045_s10 = smov 8   ;;  %vm4609_vm4 = vcmask 130048   ;;  %vm4626_vm5 = vcmask 195584  }
   0xd   : > { %5206 = vmatprep.mubr.msk.bf16.mxu0 %vm6044_vm0, %v7675_v0  ;;  %5212 = vmatprep.mubr.msk.bf16.mxu1 %vm6044_vm0, %v7675_v0  ;;  %s6047_s16 = smov 24   ;;  %vm4674_vm6 = vcmask 261120   ;;  %s4950_s17 = sshll.u32 %s4936_s25, 4 }
   0xe   : > { %s7723_s26 = smov (!%p325_p3, %s4941_s26), 31  ;;  %p346_p4 = scmp.lt.s32.totalorder %s4950_s17, 63 }
   0xf   : > { %s5063_s27 = sshll.u32 %s7723_s26, 5  ;;  %s5064_s28 = sshll.u32 %s7723_s26, 3 }
  0x10   : > { %s6111_s8 = scalar_lea.vmem %s7667_s0, %s5063_s27  ;;  %s6118_s11 = scalar_lea.vmem %s7668_s1, %s5064_s28 }
  0x11   : > { %v422_v1 = vld [vmem:[%s6118_s11] sm:$0x3]  ;;  %v426_v2 = vld [vmem:[%s6118_s11 + $0x8] sm:$0x3]  ;;  %v430_v5 = vld [vmem:[%s6118_s11 + $0x10] sm:$0x3]  ;;  %s6331_s18 = scalar_lea.vmem %s7669_s2, %s5064_s28 }
  0x12   : > { %v504_v3 = vsel %vm499_vm1, %v422_v1, 0  ;;  %v556_v4 = vsel %vm499_vm1, %v426_v2, 0  ;;  %v434_v6 = vld [vmem:[%s6118_s11 + $0x18] sm:$0x3]  ;;  %v5745_v7 = vld [vmem:[%s6111_s8] sm:$0xff]   ;;  %v608_v9 = vsel %vm499_vm1, %v430_v5, 0 }
  0x13   : > { %5205 = vmatpush3.bf16.xpose.msra.mxu0 %v504_v3  ;;  %5211 = vmatpush3.bf16.xpose.msra.mxu1 %v556_v4  ;;  %v5746_v8 = vld [vmem:[%s6111_s8 + $0x20] sm:$0xff]   ;;  %v660_v10 = vsel %vm499_vm1, %v434_v6, 0  ;;  %v442_v12 = vld [vmem:[%s6118_s11 + $0x28] sm:$0x3]  ;;  %v446_v13 = vld [vmem:[%s6118_s11 + $0x30] sm:$0x3] }
  0x14   : > { %5216 = vmatprep.subr.bf16.mxu0 %v7675_v0  ;;  %5222 = vmatprep.subr.bf16.mxu1 %v7675_v0  ;;  %v438_v11 = vld [vmem:[%s6118_s11 + $0x20] sm:$0x3]  ;;  %v450_v14 = vld [vmem:[%s6118_s11 + $0x38] sm:$0x3]  ;;  %v764_v16 = vsel %vm499_vm1, %v442_v12, 0  ;;  %v816_v19 = vsel %vm499_vm1, %v446_v13, 0 }
  0x15   : > { %v712_v15 = vsel %vm499_vm1, %v438_v11, 0  ;;  %v5747_v17 = vld [vmem:[%s6111_s8 + $0x40] sm:$0xff]   ;;  %v868_v20 = vsel %vm499_vm1, %v450_v14, 0  ;;  %s7725_s17 = smov (!%p346_p4, %s4950_s17), 63 }
  0x16   : > { %v5748_v18 = vld [vmem:[%s6111_s8 + $0x60] sm:$0xff]  }
  0x17   : > { %v5749_v21 = vld [vmem:[%s6111_s8 + $0x80] sm:$0xff]  }
  0x18   : > { %v5750_v22 = vld [vmem:[%s6111_s8 + $0xa0] sm:$0xff]  }
  0x19   : > { %v5751_v23 = vld [vmem:[%s6111_s8 + $0xc0] sm:$0xff]  }
  0x1a   : > { %5207 = vmatmul.mubr.msk.bf16.vlgmr.msra.gmra.mxu0 %vm499_vm1, %v5745_v7  ;;  %5213 = vmatmul.mubr.msk.bf16.vlgmr.msra.gmra.mxu1 %vm499_vm1, %v5746_v8  ;;  %v5752_v24 = vld [vmem:[%s6111_s8 + $0xe0] sm:$0xff]  }
  0x1b   : > { %5217 = vmatpush3.bf16.xpose.msra.mxu0 %v608_v9  ;;  %5223 = vmatpush3.bf16.xpose.msra.mxu1 %v660_v10 }
  0x1c   : > { %5218 = vmatprep.mubr.msk.bf16.mxu0 %vm6044_vm0, %v7675_v0  ;;  %5224 = vmatprep.mubr.msk.bf16.mxu1 %vm6044_vm0, %v7675_v0 }
  0x1d   : > { %5228 = vmatprep.subr.bf16.mxu0 %v7675_v0  ;;  %5234 = vmatprep.subr.bf16.mxu1 %v7675_v0 }
  0x22   : > { %5219 = vmatmul.mubr.msk.bf16.vlgmr.msra.gmra.mxu0 %vm499_vm1, %v5747_v17  ;;  %5225 = vmatmul.mubr.msk.bf16.vlgmr.msra.gmra.mxu1 %vm499_vm1, %v5748_v18 }
  0x23   : > { %5229 = vmatpush3.bf16.xpose.msra.mxu0 %v712_v15  ;;  %5235 = vmatpush3.bf16.xpose.msra.mxu1 %v764_v16 }
  0x24   : > { %5230 = vmatprep.mubr.msk.bf16.mxu0 %vm6044_vm0, %v7675_v0  ;;  %5236 = vmatprep.mubr.msk.bf16.mxu1 %vm6044_vm0, %v7675_v0 }
  0x25   : > { %5240 = vmatprep.subr.bf16.mxu0 %v7675_v0  ;;  %5246 = vmatprep.subr.bf16.mxu1 %v7675_v0 }
  0x2a   : > { %5231 = vmatmul.mubr.msk.bf16.vlgmr.msra.gmra.mxu0 %vm499_vm1, %v5749_v21  ;;  %5237 = vmatmul.mubr.msk.bf16.vlgmr.msra.gmra.mxu1 %vm499_vm1, %v5750_v22 }
  0x2b   : > { %5241 = vmatpush3.bf16.xpose.msra.mxu0 %v816_v19  ;;  %5247 = vmatpush3.bf16.xpose.msra.mxu1 %v868_v20 }
  0x2c   : > { %5242 = vmatprep.mubr.msk.bf16.mxu0 %vm6044_vm0, %v7675_v0  ;;  %5248 = vmatprep.mubr.msk.bf16.mxu1 %vm6044_vm0, %v7675_v0 }
  0x2d   : > { %5252 = vmatprep.subr.bf16.mxu0 %v7675_v0  ;;  %5258 = vmatprep.subr.bf16.mxu1 %v7675_v0 }
  0x32   : > { %5243 = vmatmul.mubr.msk.bf16.vlgmr.msra.gmra.mxu0 %vm499_vm1, %v5751_v23  ;;  %5249 = vmatmul.mubr.msk.bf16.vlgmr.msra.gmra.mxu1 %vm499_vm1, %v5752_v24 }
  0x33   : > { %5254 = vmatprep.mubr.msk.bf16.mxu0 %vm6044_vm0, %v7675_v0  ;;  %5260 = vmatprep.mubr.msk.bf16.mxu1 %vm6044_vm0, %v7675_v0 }
  0xda   : > { %v540_v26 = vpop.f32.mrf.mxu0  ;;  %v592_v27 = vpop.f32.mrf.mxu1 }
  0xdb   : > { %v6182_v28 = vadd.f32 %v540_v26, %v6179_v25  ;;  %v6185_v29 = vadd.f32 %v592_v27, %v6179_v25 }
  0xdc   : > { %v5208_v30 = vpop.f32.mrf.mxu0  ;;  %v5214_v31 = vpop.f32.mrf.mxu1 }
  0xdd   : > { %v918_v33 = vsel %vm911_vm2, %v6185_v29, -inf  ;;  %v912_v34 = vsel %vm911_vm2, %v6182_v28, -inf }
  0xde   : > { %919 = vmax.xlane.f32.xlu1 %v918_v33  ;;  %v595_v35 = vpop.f32.mrf.mxu1  ;;  %913 = vmax.xlane.f32.xlu0 %v912_v34  ;;  %v543_v36 = vpop.f32.mrf.mxu0 }
  0xdf   : > { %v6197_v37 = vadd.f32 %v595_v35, %v6190_v32  ;;  %v6200_v38 = vadd.f32 %v543_v36, %v6190_v32 }
  0xe0   : > { %v5209_v39 = vpop.f32.mrf.mxu0  ;;  %v5215_v40 = vpop.f32.mrf.mxu1 }
  0xe1   : > { %v921_v41 = vsel %vm911_vm2, %v6197_v37, -inf  ;;  %v915_v42 = vsel %vm911_vm2, %v6200_v38, -inf }
  0xe2   : > { %922 = vmax.xlane.f32.xlu1 %v921_v41  ;;  %v696_v43 = vpop.f32.mrf.mxu1  ;;  %916 = vmax.xlane.f32.xlu0 %v915_v42  ;;  %v644_v44 = vpop.f32.mrf.mxu0 }
  0xe3   : > { %v6207_v45 = vadd.f32 %v696_v43, %v6179_v25  ;;  %v6210_v46 = vadd.f32 %v644_v44, %v6179_v25 }
  0xe4   : > { %v5220_v47 = vpop.f32.mrf.mxu0  ;;  %v5226_v48 = vpop.f32.mrf.mxu1 }
  0xe5   : > { %v924_v49 = vsel %vm911_vm2, %v6210_v46, -inf  ;;  %v930_v53 = vsel %vm911_vm2, %v6207_v45, -inf }
  0xe6   : > { %v699_v50 = vpop.f32.mrf.mxu1  ;;  %925 = vmax.xlane.f32.xlu0 %v924_v49  ;;  %v647_v51 = vpop.f32.mrf.mxu0 }
  0xe7   : > { %v6215_v52 = vadd.f32 %v647_v51, %v6190_v32  ;;  %v6220_v56 = vadd.f32 %v699_v50, %v6190_v32 }
  0xe8   : > { %v5221_v54 = vpop.f32.mrf.mxu0  ;;  %v5227_v55 = vpop.f32.mrf.mxu1 }
  0xe9   : > { %v927_v57 = vsel %vm911_vm2, %v6215_v52, -inf  ;;  %v933_v1 = vsel %vm911_vm2, %v6220_v56, -inf }
  0xea   : > { %v800_v58 = vpop.f32.mrf.mxu1  ;;  %931 = vmax.xlane.f32.xlu0 %v930_v53  ;;  %928 = vmax.xlane.f32.xlu1 %v927_v57  ;;  %v748_v59 = vpop.f32.mrf.mxu0 }
  0xeb   : > { %v6225_v60 = vadd.f32 %v800_v58, %v6179_v25  ;;  %v6228_v61 = vadd.f32 %v748_v59, %v6179_v25 }
  0xec   : > { %v5232_v62 = vpop.f32.mrf.mxu0  ;;  %v5238_v63 = vpop.f32.mrf.mxu1 }
  0xed   : > { %v936_v2 = vsel %vm911_vm2, %v6228_v61, -inf  ;;  %v942_v6 = vsel %vm911_vm2, %v6225_v60, -inf }
  0xee   : > { %v803_v3 = vpop.f32.mrf.mxu1  ;;  %934 = vmax.xlane.f32.xlu1 %v933_v1  ;;  %937 = vmax.xlane.f32.xlu0 %v936_v2  ;;  %v751_v4 = vpop.f32.mrf.mxu0 }
  0xef   : > { %v6235_v5 = vadd.f32 %v751_v4, %v6190_v32  ;;  %v6240_v9 = vadd.f32 %v803_v3, %v6190_v32 }
  0xf0   : > { %v5233_v7 = vpop.f32.mrf.mxu0  ;;  %v5239_v8 = vpop.f32.mrf.mxu1 }
  0xf1   : > { %v939_v10 = vsel %vm911_vm2, %v6235_v5, -inf  ;;  %v945_v17 = vsel %vm911_vm2, %v6240_v9, -inf }
  0xf2   : > { %v904_v11 = vpop.f32.mrf.mxu1  ;;  %943 = vmax.xlane.f32.xlu0 %v942_v6  ;;  %940 = vmax.xlane.f32.xlu1 %v939_v10  ;;  %v852_v12 = vpop.f32.mrf.mxu0 }
  0xf3   : > { %v6245_v13 = vadd.f32 %v904_v11, %v6179_v25  ;;  %v6248_v14 = vadd.f32 %v852_v12, %v6179_v25 }
  0xf4   : > { %v5244_v15 = vpop.f32.mrf.mxu0  ;;  %v5250_v16 = vpop.f32.mrf.mxu1 }
  0xf5   : > { %v948_v18 = vsel %vm911_vm2, %v6248_v14, -inf  ;;  %v954_v22 = vsel %vm911_vm2, %v6245_v13, -inf }
  0xf6   : > { %v907_v19 = vpop.f32.mrf.mxu1  ;;  %946 = vmax.xlane.f32.xlu1 %v945_v17  ;;  %949 = vmax.xlane.f32.xlu0 %v948_v18  ;;  %v855_v20 = vpop.f32.mrf.mxu0 }
  0xf7   : > { %v6255_v21 = vadd.f32 %v855_v20, %v6190_v32  ;;  %v6260_v25 = vadd.f32 %v907_v19, %v6190_v32 }
  0xf8   : > { %v5245_v23 = vpop.f32.mrf.mxu0  ;;  %v5251_v24 = vpop.f32.mrf.mxu1 }
  0xf9   : > { %v951_v26 = vsel %vm911_vm2, %v6255_v21, -inf  ;;  %v957_v27 = vsel %vm911_vm2, %v6260_v25, -inf }
  0xfa   : > { %955 = vmax.xlane.f32.xlu0 %v954_v22  ;;  %952 = vmax.xlane.f32.xlu1 %v951_v26 }
  0xfe   : > { %958 = vmax.xlane.f32.xlu1 %v957_v27 }
 0x167   : > { %v920_v30 = vpop.xlane.xlu1 %919  ;;  %v914_v31 = vpop.xlane.xlu0 %913 }
 0x168   : > { %v962_v33 = vsub.f32 %v6185_v29, %v920_v30  ;;  %v960_v34 = vsub.f32 %v6182_v28, %v914_v31 }
 0x16a   : > { %v976_v35 = vmul.f32 1.442695, %v960_v34  ;;  %v980_v36 = vmul.f32 1.442695, %v962_v33 }
 0x16b   : > { %v923_v39 = vpop.xlane.xlu1 %922  ;;  %v917_v32 = vpop.xlane.xlu0 %916 }
 0x16c   : > { %v963_v40 = vsub.f32 %v6197_v37, %v923_v39  ;;  %v961_v41 = vsub.f32 %v6200_v38, %v917_v32  ;;  %5779 = vpow2.f32 %v976_v35 }
 0x16d   : > { %5781 = vpow2.f32 %v980_v36 }
 0x16e   : > { %v978_v42 = vmul.f32 1.442695, %v961_v41  ;;  %v982_v43 = vmul.f32 1.442695, %v963_v40 }
 0x16f   : > { %v926_v44 = vpop.xlane.xlu0 %925 }
 0x170   : > { %v964_v47 = vsub.f32 %v6210_v46, %v926_v44  ;;  %5783 = vpow2.f32 %v978_v42 }
 0x171   : > { %5785 = vpow2.f32 %v982_v43  ;;  %v454_v43 = vld [vmem:[%s6331_s18] sm:$0x3] }
 0x172   : > { %v984_v48 = vmul.f32 1.442695, %v964_v47  ;;  %v1101_v44 = vsel %vm1099_vm3, %v454_v43, 0  ;;  %v478_v43 = vld [vmem:[%s6331_s18 + $0x30] sm:$0x3] }
 0x173   : > { %v932_v29 = vpop.xlane.xlu0 %931  ;;  %v929_v28 = vpop.xlane.xlu1 %928  ;;  %5253 = vmatpush3.bf16.msra.mxu0 %v1101_v44 }
 0x174   : > { %5787 = vpow2.f32 %v984_v48  ;;  %v966_v49 = vsub.f32 %v6207_v45, %v932_v29  ;;  %v965_v50 = vsub.f32 %v6215_v52, %v929_v28  ;;  %5264 = vmatprep.subr.bf16.mxu0 %v7675_v0 }
 0x176   : > { %v988_v37 = vmul.f32 1.442695, %v966_v49  ;;  %v986_v51 = vmul.f32 1.442695, %v965_v50  ;;  %v458_v49 = vld [vmem:[%s6331_s18 + $0x8] sm:$0x3] }
 0x177   : > { %v935_v38 = vpop.xlane.xlu1 %934  ;;  %v938_v53 = vpop.xlane.xlu0 %937  ;;  %v1148_v50 = vsel %vm1099_vm3, %v458_v49, 0 }
 0x178   : > { %5789 = vpow2.f32 %v988_v37  ;;  %v967_v54 = vsub.f32 %v6220_v56, %v935_v38  ;;  %v968_v55 = vsub.f32 %v6228_v61, %v938_v53  ;;  %5259 = vmatpush3.bf16.msra.mxu1 %v1148_v50  ;;  %v482_v50 = vld [vmem:[%s6331_s18 + $0x38] sm:$0x3] }
 0x179   : > { %5791 = vpow2.f32 %v986_v51  ;;  %v6275_v46 = vpop.eup %5779  ;;  %5270 = vmatprep.subr.bf16.mxu1 %v7675_v0 }
 0x17a   : > { %v990_v57 = vmul.f32 1.442695, %v967_v54  ;;  %v992_v58 = vmul.f32 1.442695, %v968_v55  ;;  %v1008_v45 = vsel %vm911_vm2, %v6275_v46, 0.0  ;;  %v6279_v52 = vpop.eup %5781 }
 0x17b   : > { %v944_v59 = vpop.xlane.xlu0 %943  ;;  %v941_v62 = vpop.xlane.xlu1 %940  ;;  %1009 = vadd.xlane.f32.xlu0 %v1008_v45  ;;  %v1014_v4 = vsel %vm911_vm2, %v6279_v52, 0.0 }
 0x17c   : > { %5793 = vpow2.f32 %v990_v57  ;;  %v970_v63 = vsub.f32 %v6225_v60, %v944_v59  ;;  %v969_v1 = vsub.f32 %v6235_v5, %v941_v62 }
 0x17d   : > { %5795 = vpow2.f32 %v992_v58  ;;  %v6283_v56 = vpop.eup %5783 }
 0x17e   : > { %v996_v61 = vmul.f32 1.442695, %v970_v63  ;;  %v994_v2 = vmul.f32 1.442695, %v969_v1  ;;  %v1011_v7 = vsel %vm911_vm2, %v6283_v56, 0.0  ;;  %v6289_v8 = vpop.eup %5785 }
 0x17f   : > { %v947_v3 = vpop.xlane.xlu1 %946  ;;  %v950_v6 = vpop.xlane.xlu0 %949  ;;  %1015 = vadd.xlane.f32.xlu0 %v1014_v4  ;;  %1012 = vadd.xlane.f32.xlu1 %v1011_v7  ;;  %v1017_v17 = vsel %vm911_vm2, %v6289_v8, 0.0 }
 0x180   : > { %5797 = vpow2.f32 %v996_v61  ;;  %v971_v60 = vsub.f32 %v6240_v9, %v947_v3  ;;  %v972_v5 = vsub.f32 %v6248_v14, %v950_v6  ;;  %v462_v61 = vld [vmem:[%s6331_s18 + $0x10] sm:$0x3] }
 0x181   : > { %v6293_v10 = vpop.eup %5787  ;;  %5799 = vpow2.f32 %v994_v2 }
 0x182   : > { %v998_v11 = vmul.f32 1.442695, %v971_v60  ;;  %v1000_v12 = vmul.f32 1.442695, %v972_v5  ;;  %v1020_v15 = vsel %vm911_vm2, %v6293_v10, 0.0  ;;  %v1195_v5 = vsel %vm1099_vm3, %v462_v61, 0 }
 0x183   : > { %v956_v16 = vpop.xlane.xlu0 %955  ;;  %v953_v18 = vpop.xlane.xlu1 %952  ;;  %1021 = vadd.xlane.f32.xlu0 %v1020_v15  ;;  %1018 = vadd.xlane.f32.xlu1 %v1017_v17  ;;  %v431_v61 = vld [vmem:[%s6118_s11 + $0x12] sm:$0x3] }
 0x184   : > { %5801 = vpow2.f32 %v998_v11  ;;  %v974_v9 = vsub.f32 %v6245_v13, %v956_v16  ;;  %v973_v14 = vsub.f32 %v6255_v21, %v953_v18 }
 0x185   : > { %v6301_v19 = vpop.eup %5789  ;;  %5803 = vpow2.f32 %v1000_v12  ;;  %v466_v12 = vld [vmem:[%s6331_s18 + $0x18] sm:$0x3] }
 0x186   : > { %v6303_v20 = vpop.eup %5791  ;;  %v1004_v22 = vmul.f32 1.442695, %v974_v9  ;;  %v1002_v23 = vmul.f32 1.442695, %v973_v14  ;;  %v1026_v24 = vsel %vm911_vm2, %v6301_v19, 0.0  ;;  %v1242_v9 = vsel %vm1099_vm3, %v466_v12, 0 }
 0x187   : > { %v1023_v26 = vsel %vm911_vm2, %v6303_v20, 0.0  ;;  %v959_v27 = vpop.xlane.xlu1 %958  ;;  %1027 = vadd.xlane.f32.xlu0 %v1026_v24 }
 0x188   : > { %5805 = vpow2.f32 %v1004_v22  ;;  %1024 = vadd.xlane.f32.xlu1 %v1023_v26  ;;  %v975_v13 = vsub.f32 %v6260_v25, %v959_v27  ;;  %v470_v22 = vld [vmem:[%s6331_s18 + $0x20] sm:$0x3] }
 0x189   : > { %v6310_v21 = vpop.eup %5793  ;;  %5807 = vpow2.f32 %v1002_v23 }
 0x18a   : > { %v6312_v30 = vpop.eup %5795  ;;  %v1006_v31 = vmul.f32 1.442695, %v975_v13  ;;  %v1029_v33 = vsel %vm911_vm2, %v6310_v21, 0.0  ;;  %v1289_v13 = vsel %vm1099_vm3, %v470_v22, 0 }
 0x18b   : > { %v1032_v34 = vsel %vm911_vm2, %v6312_v30, 0.0 }
 0x18c   : > { %5809 = vpow2.f32 %v1006_v31  ;;  %1033 = vadd.xlane.f32.xlu0 %v1032_v34  ;;  %1030 = vadd.xlane.f32.xlu1 %v1029_v33  ;;  %v474_v33 = vld [vmem:[%s6331_s18 + $0x28] sm:$0x3] }
 0x18d   : > { %v6318_v35 = vpop.eup %5797 }
 0x18e   : > { %v6320_v36 = vpop.eup %5799  ;;  %v1038_v25 = vsel %vm911_vm2, %v6318_v35, 0.0 }
 0x18f   : > { %v1035_v39 = vsel %vm911_vm2, %v6320_v36, 0.0 }
 0x190   : > { %1039 = vadd.xlane.f32.xlu0 %v1038_v25  ;;  %1036 = vadd.xlane.f32.xlu1 %v1035_v39 }
 0x191   : > { %v6333_v32 = vpop.eup %5801 }
 0x192   : > { %v6335_v40 = vpop.eup %5803  ;;  %v1041_v41 = vsel %vm911_vm2, %v6333_v32, 0.0 }
 0x193   : > { %v1044_v42 = vsel %vm911_vm2, %v6335_v40, 0.0 }
 0x194   : > { %1045 = vadd.xlane.f32.xlu0 %v1044_v42  ;;  %1042 = vadd.xlane.f32.xlu1 %v1041_v41  ;;  %v1336_v41 = vsel %vm1099_vm3, %v474_v33, 0 }
 0x195   : > { %v6343_v47 = vpop.eup %5805 }
 0x196   : > { %v6345_v48 = vpop.eup %5807  ;;  %v1050_v29 = vsel %vm911_vm2, %v6343_v47, 0.0 }
 0x197   : > { %v1047_v28 = vsel %vm911_vm2, %v6345_v48, 0.0 }
 0x198   : > { %1051 = vadd.xlane.f32.xlu0 %v1050_v29  ;;  %1048 = vadd.xlane.f32.xlu1 %v1047_v28  ;;  %v1383_v28 = vsel %vm1099_vm3, %v478_v43, 0 }
 0x199   : > { %v6354_v37 = vpop.eup %5809 }
 0x19a   : > { %v1053_v51 = vsel %vm911_vm2, %v6354_v37, 0.0 }
 0x19c   : > { %1054 = vadd.xlane.f32.xlu1 %v1053_v51 }
 0x204   : > { %v1010_v38 = vpop.xlane.xlu0 %1009 }
 0x205   : > { %5811 = vrcp.f32 %v1010_v38 }
 0x208   : > { %v1016_v53 = vpop.xlane.xlu0 %1015  ;;  %v1013_v54 = vpop.xlane.xlu1 %1012 }
 0x209   : > { %5813 = vrcp.f32 %v1013_v54 }
 0x20a   : > { %5815 = vrcp.f32 %v1016_v53  ;;  %v1430_v53 = vsel %vm1099_vm3, %v482_v50, 0 }
 0x20c   : > { %v1022_v55 = vpop.xlane.xlu0 %1021  ;;  %v1019_v57 = vpop.xlane.xlu1 %1018 }
 0x20d   : > { %5817 = vrcp.f32 %v1019_v57 }
 0x20e   : > { %5819 = vrcp.f32 %v1022_v55  ;;  %v423_v55 = vld [vmem:[%s6118_s11 + $0x2] sm:$0x3] }
 0x210   : > { %v1028_v58 = vpop.xlane.xlu0 %1027 }
 0x211   : > { %v1025_v59 = vpop.xlane.xlu1 %1024 }
 0x212   : > { %5821 = vrcp.f32 %v1025_v59  ;;  %v5812_v63 = vpop.eup %5811 }
 0x213   : > { %5823 = vrcp.f32 %v1028_v58  ;;  %v1072_v4 = vmul.f32 %v5812_v63, %v6275_v46 }
 0x215   : > { %v1034_v62 = vpop.xlane.xlu0 %1033  ;;  %v1031_v45 = vpop.xlane.xlu1 %1030 }
 0x216   : > { %5825 = vrcp.f32 %v1031_v45  ;;  %v5814_v1 = vpop.eup %5813 }
 0x217   : > { %5827 = vrcp.f32 %v1034_v62  ;;  %v1073_v6 = vmul.f32 %v5814_v1, %v6283_v56  ;;  %v5816_v7 = vpop.eup %5815  ;;  %v1482_v62 = vsel %vm499_vm1, %v423_v55, 0 }
 0x218   : > { %v1074_v17 = vmul.f32 %v5816_v7, %v6279_v52  ;;  %v5755_v7 = vld [vmem:[%s6111_s8 + $0x48] sm:$0xff]  }
 0x219   : > { %v1040_v2 = vpop.xlane.xlu0 %1039  ;;  %v1037_v3 = vpop.xlane.xlu1 %1036  ;;  %v1088_v60 = vpack.c.bf16 %v1073_v6, %v1072_v4  ;;  %v439_v6 = vld [vmem:[%s6118_s11 + $0x22] sm:$0x3] }
 0x21a   : > { %5829 = vrcp.f32 %v1037_v3  ;;  %v5818_v11 = vpop.eup %5817  ;;  %v5754_v3 = vld [vmem:[%s6111_s8 + $0x28] sm:$0xff]  }
 0x21b   : > { %5831 = vrcp.f32 %v1040_v2  ;;  %5255 = vmatmul.mubr.msk.bf16.vlgmr.msra.gmra.mxu0 %vm911_vm2, %v1088_v60  ;;  %v1075_v18 = vmul.f32 %v5818_v11, %v6289_v8  ;;  %v5820_v46 = vpop.eup %5819  ;;  %v435_v2 = vld [vmem:[%s6118_s11 + $0x1a] sm:$0x3]  ;;  %v1690_v60 = vsel %vm499_vm1, %v439_v6, 0  ;;  %v5756_v11 = vld [vmem:[%s6111_s8 + $0x68] sm:$0xff]  }
 0x21c   : > { %5265 = vmatpush3.bf16.msra.mxu0 %v1195_v5  ;;  %5266 = vmatprep.mubr.msk.bf16.mxu0 %vm6044_vm0, %v7675_v0  ;;  %v1076_v8 = vmul.f32 %v5820_v46, %v6293_v10  ;;  %v1638_v4 = vsel %vm499_vm1, %v435_v2, 0  ;;  %v443_v5 = vld [vmem:[%s6118_s11 + $0x2a] sm:$0x3] }
 0x21d   : > { %v1046_v15 = vpop.xlane.xlu0 %1045  ;;  %v1043_v16 = vpop.xlane.xlu1 %1042  ;;  %v1089_v56 = vpack.c.bf16 %v1075_v18, %v1074_v17  ;;  %5276 = vmatprep.subr.bf16.mxu0 %v7675_v0  ;;  %v1742_v12 = vsel %vm499_vm1, %v443_v5, 0  ;;  %v451_v18 = vld [vmem:[%s6118_s11 + $0x3a] sm:$0x3]  ;;  %v5758_v46 = vld [vmem:[%s6111_s8 + $0xa8] sm:$0xff]  }
 0x21e   : > { %5833 = vrcp.f32 %v1043_v16  ;;  %v5757_v16 = vld [vmem:[%s6111_s8 + $0x88] sm:$0xff]  }
 0x21f   : > { %v5822_v14 = vpop.eup %5821  ;;  %5835 = vrcp.f32 %v1046_v15  ;;  %5261 = vmatmul.mubr.msk.bf16.vlgmr.msra.gmra.mxu1 %vm911_vm2, %v1089_v56  ;;  %v447_v15 = vld [vmem:[%s6118_s11 + $0x32] sm:$0x3]  ;;  %v1846_v56 = vsel %vm499_vm1, %v451_v18, 0 }
 0x220   : > { %v1077_v24 = vmul.f32 %v5822_v14, %v6303_v20  ;;  %v5824_v26 = vpop.eup %5823  ;;  %5271 = vmatpush3.bf16.msra.mxu1 %v1242_v9  ;;  %5272 = vmatprep.mubr.msk.bf16.mxu1 %vm6044_vm0, %v7675_v0  ;;  %v1794_v17 = vsel %vm499_vm1, %v447_v15, 0  ;;  %v5759_v9 = vld [vmem:[%s6111_s8 + $0xc8] sm:$0xff]  }
 0x221   : > { %v1052_v52 = vpop.xlane.xlu0 %1051  ;;  %v1049_v23 = vpop.xlane.xlu1 %1048  ;;  %5282 = vmatprep.subr.bf16.mxu1 %v7675_v0  ;;  %v1078_v20 = vmul.f32 %v5824_v26, %v6301_v19  ;;  %v5760_v14 = vld [vmem:[%s6111_s8 + $0xe8] sm:$0xff]  }
 0x222   : > { %5837 = vrcp.f32 %v1049_v23  ;;  %v1090_v27 = vpack.c.bf16 %v1077_v24, %v1076_v8 }
 0x223   : > { %v5826_v31 = vpop.eup %5825  ;;  %5839 = vrcp.f32 %v1052_v52 }
 0x224   : > { %5267 = vmatmul.mubr.msk.bf16.vlgmr.msra.gmra.mxu0 %vm911_vm2, %v1090_v27  ;;  %v1079_v34 = vmul.f32 %v5826_v31, %v6310_v21  ;;  %v5828_v25 = vpop.eup %5827 }
 0x225   : > { %v1055_v10 = vpop.xlane.xlu1 %1054  ;;  %5277 = vmatpush3.bf16.msra.mxu0 %v1289_v13  ;;  %5278 = vmatprep.mubr.msk.bf16.mxu0 %vm6044_vm0, %v7675_v0  ;;  %v1080_v19 = vmul.f32 %v5828_v25, %v6312_v30 }
 0x226   : > { %5841 = vrcp.f32 %v1055_v10  ;;  %v1091_v39 = vpack.c.bf16 %v1079_v34, %v1078_v20  ;;  %5288 = vmatprep.subr.bf16.mxu0 %v7675_v0 }
 0x227   : > { %v5830_v42 = vpop.eup %5829 }
 0x228   : > { %5273 = vmatmul.mubr.msk.bf16.vlgmr.msra.gmra.mxu1 %vm911_vm2, %v1091_v39  ;;  %v1081_v21 = vmul.f32 %v5830_v42, %v6320_v36  ;;  %v5832_v44 = vpop.eup %5831 }
 0x229   : > { %5283 = vmatpush3.bf16.msra.mxu1 %v1336_v41  ;;  %5284 = vmatprep.mubr.msk.bf16.mxu1 %vm6044_vm0, %v7675_v0  ;;  %v1082_v51 = vmul.f32 %v5832_v44, %v6318_v35 }
 0x22a   : > { %v1092_v29 = vpack.c.bf16 %v1081_v21, %v1080_v19  ;;  %5294 = vmatprep.subr.bf16.mxu1 %v7675_v0 }
 0x22b   : > { %v5834_v49 = vpop.eup %5833 }
 0x22c   : > { %5279 = vmatmul.mubr.msk.bf16.vlgmr.msra.gmra.mxu0 %vm911_vm2, %v1092_v29  ;;  %v1083_v30 = vmul.f32 %v5834_v49, %v6333_v32  ;;  %v5836_v36 = vpop.eup %5835 }
 0x22d   : > { %5289 = vmatpush3.bf16.msra.mxu0 %v1383_v28  ;;  %5290 = vmatprep.mubr.msk.bf16.mxu0 %vm6044_vm0, %v7675_v0  ;;  %v1084_v35 = vmul.f32 %v5836_v36, %v6335_v40  ;;  %v427_v40 = vld [vmem:[%s6118_s11 + $0xa] sm:$0x3] }
 0x22e   : > { %v1093_v38 = vpack.c.bf16 %v1083_v30, %v1082_v51  ;;  %5300 = vmatprep.subr.bf16.mxu0 %v7675_v0  ;;  %v1534_v1 = vsel %vm499_vm1, %v427_v40, 0 }
 0x22f   : > { %v5838_v54 = vpop.eup %5837 }
 0x230   : > { %v5840_v57 = vpop.eup %5839  ;;  %5285 = vmatmul.mubr.msk.bf16.vlgmr.msra.gmra.mxu1 %vm911_vm2, %v1093_v38  ;;  %v1085_v32 = vmul.f32 %v5838_v54, %v6345_v48  ;;  %v6506_v54 = vld [vmem:[%s7670_s3 + $0x10] sm:$0xff] }
 0x231   : > { %5295 = vmatpush3.bf16.msra.mxu1 %v1430_v53  ;;  %5296 = vmatprep.mubr.msk.bf16.mxu1 %vm6044_vm0, %v7675_v0  ;;  %v1086_v45 = vmul.f32 %v5840_v57, %v6343_v47  ;;  %v5753_v47 = vld [vmem:[%s6111_s8 + $0x8] sm:$0xff]  }
 0x232   : > { %v1094_v59 = vpack.c.bf16 %v1085_v32, %v1084_v35  ;;  %5306 = vmatprep.subr.bf16.mxu1 %v7675_v0 }
 0x233   : > { %v5842_v58 = vpop.eup %5841 }
 0x234   : > { %v1087_v63 = vmul.f32 %v5842_v58, %v6354_v37  ;;  %5291 = vmatmul.mubr.msk.bf16.vlgmr.msra.gmra.mxu0 %vm911_vm2, %v1094_v59  ;;  %v1586_v37 = vsel %vm499_vm1, %v431_v61, 0  ;;  %v6516_v59 = vld [vmem:[%s7670_s3 + $0x18] sm:$0xff] }
 0x235   : > { %5301 = vmatpush3.bf16.xpose.msra.mxu0 %v1482_v62  ;;  %5302 = vmatprep.mubr.msk.bf16.mxu0 %vm6044_vm0, %v7675_v0 }
 0x236   : > { %v1095_v48 = vpack.c.bf16 %v1087_v63, %v1086_v45  ;;  %5312 = vmatprep.subr.bf16.mxu0 %v7675_v0 }
 0x238   : > { %5297 = vmatmul.mubr.msk.bf16.vlgmr.msra.gmra.mxu1 %vm911_vm2, %v1095_v48 }
 0x239   : > { %5307 = vmatpush3.bf16.xpose.msra.mxu1 %v1534_v1  ;;  %5308 = vmatprep.mubr.msk.bf16.mxu1 %vm6044_vm0, %v7675_v0 }
 0x23a   : > { %5318 = vmatprep.subr.bf16.mxu1 %v7675_v0 }
 0x23c   : > { %5303 = vmatmul.mubr.msk.bf16.vlgmr.msra.gmra.mxu0 %vm499_vm1, %v5753_v47 }
 0x23d   : > { %5313 = vmatpush3.bf16.xpose.msra.mxu0 %v1586_v37  ;;  %5314 = vmatprep.mubr.msk.bf16.mxu0 %vm6044_vm0, %v7675_v0 }
 0x23e   : > { %5324 = vmatprep.subr.bf16.mxu0 %v7675_v0 }
 0x240   : > { %5309 = vmatmul.mubr.msk.bf16.vlgmr.msra.gmra.mxu1 %vm499_vm1, %v5754_v3 }
 0x241   : > { %5319 = vmatpush3.bf16.xpose.msra.mxu1 %v1638_v4  ;;  %5320 = vmatprep.mubr.msk.bf16.mxu1 %vm6044_vm0, %v7675_v0 }
 0x242   : > { %5330 = vmatprep.subr.bf16.mxu1 %v7675_v0 }
 0x244   : > { %5315 = vmatmul.mubr.msk.bf16.vlgmr.msra.gmra.mxu0 %vm499_vm1, %v5755_v7 }
 0x245   : > { %5325 = vmatpush3.bf16.xpose.msra.mxu0 %v1690_v60  ;;  %5326 = vmatprep.mubr.msk.bf16.mxu0 %vm6044_vm0, %v7675_v0 }
 0x246   : > { %5336 = vmatprep.subr.bf16.mxu0 %v7675_v0 }
 0x248   : > { %5321 = vmatmul.mubr.msk.bf16.vlgmr.msra.gmra.mxu1 %vm499_vm1, %v5756_v11 }
 0x249   : > { %5331 = vmatpush3.bf16.xpose.msra.mxu1 %v1742_v12  ;;  %5332 = vmatprep.mubr.msk.bf16.mxu1 %vm6044_vm0, %v7675_v0 }
 0x24a   : > { %5342 = vmatprep.subr.bf16.mxu1 %v7675_v0 }
 0x24c   : > { %5327 = vmatmul.mubr.msk.bf16.vlgmr.msra.gmra.mxu0 %vm499_vm1, %v5757_v16 }
 0x24d   : > { %5337 = vmatpush3.bf16.xpose.msra.mxu0 %v1794_v17  ;;  %5338 = vmatprep.mubr.msk.bf16.mxu0 %vm6044_vm0, %v7675_v0 }
 0x24e   : > { %5348 = vmatprep.subr.bf16.mxu0 %v7675_v0 }
 0x250   : > { %5333 = vmatmul.mubr.msk.bf16.vlgmr.msra.gmra.mxu1 %vm499_vm1, %v5758_v46 }
 0x251   : > { %5343 = vmatpush3.bf16.xpose.msra.mxu1 %v1846_v56  ;;  %5344 = vmatprep.mubr.msk.bf16.mxu1 %vm6044_vm0, %v7675_v0 }
 0x252   : > { %5354 = vmatprep.subr.bf16.mxu1 %v7675_v0 }
 0x254   : > { %5339 = vmatmul.mubr.msk.bf16.vlgmr.msra.gmra.mxu0 %vm499_vm1, %v5759_v9 }
 0x255   : > { %5350 = vmatprep.mubr.msk.bf16.mxu0 %vm6044_vm0, %v7675_v0 }
 0x258   : > { %5345 = vmatmul.mubr.msk.bf16.vlgmr.msra.gmra.mxu1 %vm499_vm1, %v5760_v14 }
 0x259   : > { %5356 = vmatprep.mubr.msk.bf16.mxu1 %vm6044_vm0, %v7675_v0 }
 0x2db   : > { %v6473_v22 = vpop.f32.mrf.mxu0 }
 0x2dd   : > { %v5256_v52 = vpop.f32.mrf.mxu0 }
 0x2df   : > { %v6475_v23 = vpop.f32.mrf.mxu0  ;;  %v6477_v8 = vpop.f32.mrf.mxu1 }
 0x2e0   : > { %7677 = vst [vmem:[#allocation2_spill] sm:$0xff] %v6477_v8 }
 0x2e1   : > { %v5257_v24 = vpop.f32.mrf.mxu0  ;;  %v5262_v26 = vpop.f32.mrf.mxu1 }
 0x2e3   : > { %v6479_v27 = vpop.f32.mrf.mxu1 }
 0x2e4   : > { %7678 = vst [vmem:[#allocation3_spill] sm:$0xff] %v6479_v27  ;;  %v6481_v13 = vpop.f32.mrf.mxu0 }
 0x2e5   : > { %7679 = vst [vmem:[#allocation4_spill] sm:$0xff] %v6481_v13  ;;  %v5263_v31 = vpop.f32.mrf.mxu1 }
 0x2e6   : > { %v5268_v33 = vpop.f32.mrf.mxu0 }
 0x2e8   : > { %v6483_v10 = vpop.f32.mrf.mxu0  ;;  %v6485_v20 = vpop.f32.mrf.mxu1 }
 0x2e9   : > { %7680 = vst [vmem:[#allocation5_spill] sm:$0xff] %v6483_v10  ;;  %7681 = vst [vmem:[#allocation6_spill] sm:$0xff] %v6485_v20 }
 0x2ea   : > { %v5269_v34 = vpop.f32.mrf.mxu0  ;;  %v5274_v25 = vpop.f32.mrf.mxu1 }
 0x2ec   : > { %v6487_v39 = vpop.f32.mrf.mxu1  ;;  %v6489_v41 = vpop.f32.mrf.mxu0 }
 0x2ed   : > { %7682 = vst [vmem:[#allocation7_spill] sm:$0xff] %v6487_v39  ;;  %7683 = vst [vmem:[#allocation8_spill] sm:$0xff] %v6489_v41 }
 0x2ee   : > { %v5275_v42 = vpop.f32.mrf.mxu1  ;;  %v5280_v43 = vpop.f32.mrf.mxu0 }
 0x2f0   : > { %v6491_v19 = vpop.f32.mrf.mxu0  ;;  %v6493_v21 = vpop.f32.mrf.mxu1 }
 0x2f1   : > { %7684 = vst [vmem:[#allocation9_spill] sm:$0xff] %v6491_v19  ;;  %7685 = vst [vmem:[#allocation10_spill] sm:$0xff] %v6493_v21 }
 0x2f2   : > { %v5281_v44 = vpop.f32.mrf.mxu0  ;;  %v5286_v29 = vpop.f32.mrf.mxu1 }
 0x2f4   : > { %v6495_v28 = vpop.f32.mrf.mxu1  ;;  %v6497_v49 = vpop.f32.mrf.mxu0 }
 0x2f5   : > { %7686 = vst [vmem:[#allocation11_spill] sm:$0xff] %v6495_v28  ;;  %7687 = vst [vmem:[#allocation12_spill] sm:$0xff] %v6497_v49 }
 0x2f6   : > { %v5287_v50 = vpop.f32.mrf.mxu1  ;;  %v5292_v51 = vpop.f32.mrf.mxu0 }
 0x2f8   : > { %v6499_v30 = vpop.f32.mrf.mxu0  ;;  %v6501_v36 = vpop.f32.mrf.mxu1 }
 0x2f9   : > { %7688 = vst [vmem:[#allocation13_spill] sm:$0xff] %v6499_v30  ;;  %7689 = vst [vmem:[#allocation14_spill] sm:$0xff] %v6501_v36 }
 0x2fa   : > { %v5293_v38 = vpop.f32.mrf.mxu0  ;;  %v5298_v53 = vpop.f32.mrf.mxu1 }
 0x2fc   : > { %v6508_v55 = vpop.f32.mrf.mxu1  ;;  %v1518_v57 = vpop.f32.mrf.mxu0 }
 0x2fd   : > { %7690 = vst [vmem:[#allocation15_spill] sm:$0xff] %v6508_v55  ;;  %v6511_v35 = vadd.f32 %v1518_v57, %v6506_v54 }
 0x2fe   : > { %v5299_v32 = vpop.f32.mrf.mxu1  ;;  %v5304_v58 = vpop.f32.mrf.mxu0 }
 0x2ff   : > { %v1889_v62 = vsel %vm911_vm2, %v6511_v35, -inf }
 0x300   : > { %v1570_v45 = vpop.f32.mrf.mxu1  ;;  %1890 = vmax.xlane.f32.xlu0 %v1889_v62  ;;  %v1521_v63 = vpop.f32.mrf.mxu0 }
 0x301   : > { %v6521_v40 = vadd.f32 %v1570_v45, %v6506_v54  ;;  %v6524_v48 = vadd.f32 %v1521_v63, %v6516_v59 }
 0x302   : > { %v5305_v1 = vpop.f32.mrf.mxu0  ;;  %v5310_v61 = vpop.f32.mrf.mxu1 }
 0x303   : > { %v1895_v47 = vsel %vm911_vm2, %v6521_v40, -inf  ;;  %v1892_v37 = vsel %vm911_vm2, %v6524_v48, -inf }
 0x304   : > { %v1573_v2 = vpop.f32.mrf.mxu1  ;;  %1896 = vmax.xlane.f32.xlu0 %v1895_v47  ;;  %1893 = vmax.xlane.f32.xlu1 %v1892_v37  ;;  %v1622_v3 = vpop.f32.mrf.mxu0 }
 0x305   : > { %v6531_v4 = vadd.f32 %v1573_v2, %v6516_v59  ;;  %v6534_v6 = vadd.f32 %v1622_v3, %v6506_v54 }
 0x306   : > { %v5311_v7 = vpop.f32.mrf.mxu1  ;;  %v5316_v60 = vpop.f32.mrf.mxu0 }
 0x307   : > { %v1898_v5 = vsel %vm911_vm2, %v6531_v4, -inf  ;;  %v1901_v11 = vsel %vm911_vm2, %v6534_v6, -inf }
 0x308   : > { %v1674_v12 = vpop.f32.mrf.mxu1  ;;  %1899 = vmax.xlane.f32.xlu1 %v1898_v5  ;;  %1902 = vmax.xlane.f32.xlu0 %v1901_v11  ;;  %v1625_v15 = vpop.f32.mrf.mxu0 }
 0x309   : > { %v6541_v16 = vadd.f32 %v1674_v12, %v6506_v54  ;;  %v6544_v17 = vadd.f32 %v1625_v15, %v6516_v59 }
 0x30a   : > { %v5317_v18 = vpop.f32.mrf.mxu0  ;;  %v5322_v46 = vpop.f32.mrf.mxu1 }
 0x30b   : > { %v1907_v56 = vsel %vm911_vm2, %v6541_v16, -inf  ;;  %v1904_v9 = vsel %vm911_vm2, %v6544_v17, -inf }
 0x30c   : > { %v1677_v14 = vpop.f32.mrf.mxu1  ;;  %1908 = vmax.xlane.f32.xlu0 %v1907_v56  ;;  %1905 = vmax.xlane.f32.xlu1 %v1904_v9  ;;  %v1726_v52 = vpop.f32.mrf.mxu0 }
 0x30d   : > { %v6551_v24 = vadd.f32 %v1677_v14, %v6516_v59  ;;  %v6554_v26 = vadd.f32 %v1726_v52, %v6506_v54 }
 0x30e   : > { %v5323_v31 = vpop.f32.mrf.mxu1  ;;  %v5328_v33 = vpop.f32.mrf.mxu0 }
 0x30f   : > { %v1910_v34 = vsel %vm911_vm2, %v6551_v24, -inf  ;;  %v1913_v25 = vsel %vm911_vm2, %v6554_v26, -inf }
 0x310   : > { %v1778_v42 = vpop.f32.mrf.mxu1  ;;  %1911 = vmax.xlane.f32.xlu1 %v1910_v34  ;;  %1914 = vmax.xlane.f32.xlu0 %v1913_v25  ;;  %v1729_v43 = vpop.f32.mrf.mxu0 }
 0x311   : > { %v6561_v44 = vadd.f32 %v1778_v42, %v6506_v54  ;;  %v6564_v29 = vadd.f32 %v1729_v43, %v6516_v59 }
 0x312   : > { %v5329_v50 = vpop.f32.mrf.mxu0  ;;  %v5334_v51 = vpop.f32.mrf.mxu1 }
 0x313   : > { %v1919_v38 = vsel %vm911_vm2, %v6561_v44, -inf  ;;  %v1916_v53 = vsel %vm911_vm2, %v6564_v29, -inf }
 0x314   : > { %v1781_v57 = vpop.f32.mrf.mxu1  ;;  %1920 = vmax.xlane.f32.xlu0 %v1919_v38  ;;  %1917 = vmax.xlane.f32.xlu1 %v1916_v53  ;;  %v1830_v32 = vpop.f32.mrf.mxu0 }
 0x315   : > { %v6571_v58 = vadd.f32 %v1781_v57, %v6516_v59  ;;  %v6574_v62 = vadd.f32 %v1830_v32, %v6506_v54 }
 0x316   : > { %v5335_v45 = vpop.f32.mrf.mxu1  ;;  %v5340_v63 = vpop.f32.mrf.mxu0 }
 0x317   : > { %v1922_v1 = vsel %vm911_vm2, %v6571_v58, -inf  ;;  %v1925_v61 = vsel %vm911_vm2, %v6574_v62, -inf }
 0x318   : > { %v1882_v47 = vpop.f32.mrf.mxu1  ;;  %1923 = vmax.xlane.f32.xlu1 %v1922_v1  ;;  %1926 = vmax.xlane.f32.xlu0 %v1925_v61  ;;  %v1833_v37 = vpop.f32.mrf.mxu0 }
 0x319   : > { %v6581_v2 = vadd.f32 %v1882_v47, %v6506_v54  ;;  %v6584_v3 = vadd.f32 %v1833_v37, %v6516_v59 }
 0x31a   : > { %v5341_v7 = vpop.f32.mrf.mxu0  ;;  %v5346_v60 = vpop.f32.mrf.mxu1 }
 0x31b   : > { %v1931_v5 = vsel %vm911_vm2, %v6581_v2, -inf  ;;  %v1928_v11 = vsel %vm911_vm2, %v6584_v3, -inf }
 0x31c   : > { %v1885_v12 = vpop.f32.mrf.mxu1  ;;  %1932 = vmax.xlane.f32.xlu0 %v1931_v5  ;;  %1929 = vmax.xlane.f32.xlu1 %v1928_v11 }
 0x31d   : > { %v6591_v15 = vadd.f32 %v1885_v12, %v6516_v59 }
 0x31e   : > { %v5347_v18 = vpop.f32.mrf.mxu1 }
 0x31f   : > { %v1934_v54 = vsel %vm911_vm2, %v6591_v15, -inf }
 0x320   : > { %1935 = vmax.xlane.f32.xlu1 %v1934_v54 }
 0x389   : > { %v1891_v46 = vpop.xlane.xlu0 %1890 }
 0x38a   : > { %v1937_v56 = vsub.f32 %v6511_v35, %v1891_v46 }
 0x38c   : > { %v1953_v9 = vmul.f32 1.442695, %v1937_v56 }
 0x38d   : > { %v1897_v14 = vpop.xlane.xlu0 %1896  ;;  %v1894_v52 = vpop.xlane.xlu1 %1893 }
 0x38e   : > { %5843 = vpow2.f32 %v1953_v9  ;;  %v1939_v31 = vsub.f32 %v6521_v40, %v1897_v14  ;;  %v1938_v33 = vsub.f32 %v6524_v48, %v1894_v52 }
 0x390   : > { %v1957_v34 = vmul.f32 1.442695, %v1939_v31  ;;  %v1955_v25 = vmul.f32 1.442695, %v1938_v33 }
 0x391   : > { %v1900_v59 = vpop.xlane.xlu1 %1899  ;;  %v1903_v42 = vpop.xlane.xlu0 %1902 }
 0x392   : > { %5845 = vpow2.f32 %v1957_v34  ;;  %v1940_v43 = vsub.f32 %v6531_v4, %v1900_v59  ;;  %v1941_v50 = vsub.f32 %v6534_v6, %v1903_v42 }
 0x393   : > { %5847 = vpow2.f32 %v1955_v25 }
 0x394   : > { %v1959_v51 = vmul.f32 1.442695, %v1940_v43  ;;  %v1961_v35 = vmul.f32 1.442695, %v1941_v50 }
 0x395   : > { %v1909_v38 = vpop.xlane.xlu0 %1908  ;;  %v1906_v53 = vpop.xlane.xlu1 %1905 }
 0x396   : > { %5849 = vpow2.f32 %v1959_v51  ;;  %v1943_v57 = vsub.f32 %v6541_v16, %v1909_v38  ;;  %v1942_v40 = vsub.f32 %v6544_v17, %v1906_v53 }
 0x397   : > { %5851 = vpow2.f32 %v1961_v35 }
 0x398   : > { %v1965_v48 = vmul.f32 1.442695, %v1943_v57  ;;  %v1963_v32 = vmul.f32 1.442695, %v1942_v40 }
 0x399   : > { %v1912_v45 = vpop.xlane.xlu1 %1911  ;;  %v1915_v63 = vpop.xlane.xlu0 %1914 }
 0x39a   : > { %5853 = vpow2.f32 %v1965_v48  ;;  %v1944_v4 = vsub.f32 %v6551_v24, %v1912_v45  ;;  %v1945_v6 = vsub.f32 %v6554_v26, %v1915_v63 }
 0x39b   : > { %v6604_v1 = vpop.eup %5843  ;;  %5855 = vpow2.f32 %v1963_v32 }
 0x39c   : > { %v1967_v61 = vmul.f32 1.442695, %v1944_v4  ;;  %v1969_v47 = vmul.f32 1.442695, %v1945_v6  ;;  %v1985_v16 = vsel %vm911_vm2, %v6604_v1, 0.0 }
 0x39d   : > { %v1921_v37 = vpop.xlane.xlu0 %1920  ;;  %v1918_v17 = vpop.xlane.xlu1 %1917  ;;  %1986 = vadd.xlane.f32.xlu0 %v1985_v16  ;;  %v455_v16 = vld [vmem:[%s6331_s18 + $0x2] sm:$0x3] }
 0x39e   : > { %5857 = vpow2.f32 %v1967_v61  ;;  %v1947_v7 = vsub.f32 %v6561_v44, %v1921_v37  ;;  %v1946_v60 = vsub.f32 %v6564_v29, %v1918_v17  ;;  %v2077_v37 = vsel %vm1099_vm3, %v455_v16, 0 }
 0x39f   : > { %v6610_v5 = vpop.eup %5845  ;;  %5859 = vpow2.f32 %v1969_v47  ;;  %5349 = vmatpush3.bf16.msra.mxu0 %v2077_v37 }
 0x3a0   : > { %v6612_v24 = vpop.eup %5847  ;;  %v1973_v26 = vmul.f32 1.442695, %v1947_v7  ;;  %v1971_v11 = vmul.f32 1.442695, %v1946_v60  ;;  %v1991_v12 = vsel %vm911_vm2, %v6610_v5, 0.0  ;;  %5360 = vmatprep.subr.bf16.mxu0 %v7675_v0 }
 0x3a1   : > { %v1924_v18 = vpop.xlane.xlu1 %1923  ;;  %1992 = vadd.xlane.f32.xlu0 %v1991_v12  ;;  %v1927_v54 = vpop.xlane.xlu0 %1926  ;;  %v1988_v46 = vsel %vm911_vm2, %v6612_v24, 0.0 }
 0x3a2   : > { %5861 = vpow2.f32 %v1973_v26  ;;  %v1948_v44 = vsub.f32 %v6571_v58, %v1924_v18  ;;  %v1949_v29 = vsub.f32 %v6574_v62, %v1927_v54  ;;  %1989 = vadd.xlane.f32.xlu1 %v1988_v46 }
 0x3a3   : > { %v6620_v56 = vpop.eup %5849  ;;  %5863 = vpow2.f32 %v1971_v11  ;;  %v459_v11 = vld [vmem:[%s6331_s18 + $0xa] sm:$0x3] }
 0x3a4   : > { %v6622_v9 = vpop.eup %5851  ;;  %v1975_v14 = vmul.f32 1.442695, %v1948_v44  ;;  %v1977_v52 = vmul.f32 1.442695, %v1949_v29  ;;  %v1994_v31 = vsel %vm911_vm2, %v6620_v56, 0.0  ;;  %v2124_v12 = vsel %vm1099_vm3, %v459_v11, 0 }
 0x3a5   : > { %v1997_v33 = vsel %vm911_vm2, %v6622_v9, 0.0  ;;  %v1933_v34 = vpop.xlane.xlu0 %1932  ;;  %v1930_v25 = vpop.xlane.xlu1 %1929  ;;  %5355 = vmatpush3.bf16.msra.mxu1 %v2124_v12 }
 0x3a6   : > { %5865 = vpow2.f32 %v1975_v14  ;;  %1998 = vadd.xlane.f32.xlu0 %v1997_v33  ;;  %v1951_v58 = vsub.f32 %v6581_v2, %v1933_v34  ;;  %1995 = vadd.xlane.f32.xlu1 %v1994_v31  ;;  %v1950_v62 = vsub.f32 %v6584_v3, %v1930_v25 }
 0x3a7   : > { %v6630_v59 = vpop.eup %5853  ;;  %5867 = vpow2.f32 %v1977_v52  ;;  %5366 = vmatprep.subr.bf16.mxu1 %v7675_v0 }
 0x3a8   : > { %v6632_v42 = vpop.eup %5855  ;;  %v1981_v43 = vmul.f32 1.442695, %v1951_v58  ;;  %v1979_v50 = vmul.f32 1.442695, %v1950_v62  ;;  %v2003_v51 = vsel %vm911_vm2, %v6630_v59, 0.0 }
 0x3a9   : > { %v2000_v35 = vsel %vm911_vm2, %v6632_v42, 0.0  ;;  %v1936_v38 = vpop.xlane.xlu1 %1935 }
 0x3aa   : > { %5869 = vpow2.f32 %v1981_v43  ;;  %2004 = vadd.xlane.f32.xlu0 %v2003_v51  ;;  %2001 = vadd.xlane.f32.xlu1 %v2000_v35  ;;  %v1952_v2 = vsub.f32 %v6591_v15, %v1936_v38  ;;  %v463_v43 = vld [vmem:[%s6331_s18 + $0x12] sm:$0x3] }
 0x3ab   : > { %v6639_v3 = vpop.eup %5857  ;;  %5871 = vpow2.f32 %v1979_v50 }
 0x3ac   : > { %v6641_v53 = vpop.eup %5859  ;;  %v1983_v57 = vmul.f32 1.442695, %v1952_v2  ;;  %v2006_v40 = vsel %vm911_vm2, %v6639_v3, 0.0 }
 0x3ad   : > { %v2009_v48 = vsel %vm911_vm2, %v6641_v53, 0.0 }
 0x3ae   : > { %5873 = vpow2.f32 %v1983_v57  ;;  %2010 = vadd.xlane.f32.xlu0 %v2009_v48  ;;  %2007 = vadd.xlane.f32.xlu1 %v2006_v40  ;;  %v2171_v40 = vsel %vm1099_vm3, %v463_v43, 0 }
 0x3af   : > { %v6647_v32 = vpop.eup %5861 }
 0x3b0   : > { %v6649_v45 = vpop.eup %5863  ;;  %v2015_v15 = vsel %vm911_vm2, %v6647_v32, 0.0 }
 0x3b1   : > { %v2012_v63 = vsel %vm911_vm2, %v6649_v45, 0.0 }
 0x3b2   : > { %2016 = vadd.xlane.f32.xlu0 %v2015_v15  ;;  %2013 = vadd.xlane.f32.xlu1 %v2012_v63  ;;  %v467_v15 = vld [vmem:[%s6331_s18 + $0x1a] sm:$0x3] }
 0x3b3   : > { %v6655_v4 = vpop.eup %5865  ;;  %v2218_v37 = vsel %vm1099_vm3, %v467_v15, 0 }
 0x3b4   : > { %v6657_v6 = vpop.eup %5867  ;;  %v2018_v61 = vsel %vm911_vm2, %v6655_v4, 0.0 }
 0x3b5   : > { %v2021_v47 = vsel %vm911_vm2, %v6657_v6, 0.0 }
 0x3b6   : > { %2022 = vadd.xlane.f32.xlu0 %v2021_v47  ;;  %2019 = vadd.xlane.f32.xlu1 %v2018_v61 }
 0x3b7   : > { %v6665_v17 = vpop.eup %5869 }
 0x3b8   : > { %v6667_v7 = vpop.eup %5871  ;;  %v2027_v60 = vsel %vm911_vm2, %v6665_v17, 0.0 }
 0x3b9   : > { %v2024_v26 = vsel %vm911_vm2, %v6667_v7, 0.0 }
 0x3ba   : > { %2028 = vadd.xlane.f32.xlu0 %v2027_v60  ;;  %2025 = vadd.xlane.f32.xlu1 %v2024_v26  ;;  %v471_v26 = vld [vmem:[%s6331_s18 + $0x22] sm:$0x3] }
 0x3bb   : > { %v6676_v18 = vpop.eup %5873 }
 0x3bc   : > { %v2030_v54 = vsel %vm911_vm2, %v6676_v18, 0.0 }
 0x3be   : > { %2031 = vadd.xlane.f32.xlu1 %v2030_v54 }
 0x426   : > { %v1987_v46 = vpop.xlane.xlu0 %1986 }
 0x427   : > { %5875 = vrcp.f32 %v1987_v46 }
 0x42a   : > { %v1993_v44 = vpop.xlane.xlu0 %1992 }
 0x42b   : > { %v1990_v29 = vpop.xlane.xlu1 %1989 }
 0x42c   : > { %5877 = vrcp.f32 %v1990_v29 }
 0x42d   : > { %5879 = vrcp.f32 %v1993_v44  ;;  %v2265_v44 = vsel %vm1099_vm3, %v471_v26, 0  ;;  %v5762_v26 = vld [vmem:[%s6111_s8 + $0x30] sm:$0xff]  }
 0x42f   : > { %v1999_v14 = vpop.xlane.xlu0 %1998  ;;  %v1996_v52 = vpop.xlane.xlu1 %1995 }
 0x430   : > { %5881 = vrcp.f32 %v1996_v52 }
 0x431   : > { %5883 = vrcp.f32 %v1999_v14  ;;  %v475_v14 = vld [vmem:[%s6331_s18 + $0x2a] sm:$0x3] }
 0x433   : > { %v2005_v31 = vpop.xlane.xlu0 %2004  ;;  %v2002_v33 = vpop.xlane.xlu1 %2001 }
 0x434   : > { %5885 = vrcp.f32 %v2002_v33  ;;  %v5876_v34 = vpop.eup %5875 }
 0x435   : > { %5887 = vrcp.f32 %v2005_v31  ;;  %v2049_v50 = vmul.f32 %v5876_v34, %v6604_v1  ;;  %v2312_v34 = vsel %vm1099_vm3, %v475_v14, 0  ;;  %v5765_v14 = vld [vmem:[%s6111_s8 + $0x90] sm:$0xff]  }
 0x437   : > { %v2011_v25 = vpop.xlane.xlu0 %2010  ;;  %v2008_v58 = vpop.xlane.xlu1 %2007 }
 0x438   : > { %5889 = vrcp.f32 %v2008_v58  ;;  %v479_v58 = vld [vmem:[%s6331_s18 + $0x32] sm:$0x3] }
 0x439   : > { %v5878_v62 = vpop.eup %5877  ;;  %5891 = vrcp.f32 %v2011_v25 }
 0x43a   : > { %v2050_v51 = vmul.f32 %v5878_v62, %v6612_v24  ;;  %v5880_v2 = vpop.eup %5879 }
 0x43b   : > { %v2017_v35 = vpop.xlane.xlu0 %2016  ;;  %v2014_v38 = vpop.xlane.xlu1 %2013  ;;  %v2051_v1 = vmul.f32 %v5880_v2, %v6610_v5 }
 0x43c   : > { %v2065_v57 = vpack.c.bf16 %v2050_v51, %v2049_v50  ;;  %5893 = vrcp.f32 %v2014_v38  ;;  %v2359_v50 = vsel %vm1099_vm3, %v479_v58, 0 }
 0x43d   : > { %v5882_v48 = vpop.eup %5881  ;;  %5895 = vrcp.f32 %v2017_v35  ;;  %v483_v35 = vld [vmem:[%s6331_s18 + $0x3a] sm:$0x3] }
 0x43e   : > { %5351 = vmatmul.mubr.msk.bf16.vlgmr.msra.gmra.mxu0 %vm911_vm2, %v2065_v57  ;;  %v2052_v24 = vmul.f32 %v5882_v48, %v6620_v56  ;;  %v5884_v47 = vpop.eup %5883  ;;  %v2406_v57 = vsel %vm1099_vm3, %v483_v35, 0  ;;  %v424_v48 = vld [vmem:[%s6118_s11 + $0x4] sm:$0x3] }
 0x43f   : > { %v2023_v63 = vpop.xlane.xlu0 %2022  ;;  %5361 = vmatpush3.bf16.msra.mxu0 %v2171_v40  ;;  %v2020_v61 = vpop.xlane.xlu1 %2019  ;;  %5362 = vmatprep.mubr.msk.bf16.mxu0 %vm6044_vm0, %v7675_v0  ;;  %v2053_v56 = vmul.f32 %v5884_v47, %v6622_v9 }
 0x440   : > { %5372 = vmatprep.subr.bf16.mxu0 %v7675_v0  ;;  %5897 = vrcp.f32 %v2020_v61  ;;  %v2066_v16 = vpack.c.bf16 %v2052_v24, %v2051_v1  ;;  %v2458_v1 = vsel %vm499_vm1, %v424_v48, 0 }
 0x441   : > { %v5886_v60 = vpop.eup %5885  ;;  %5899 = vrcp.f32 %v2023_v63 }
 0x442   : > { %5357 = vmatmul.mubr.msk.bf16.vlgmr.msra.gmra.mxu1 %vm911_vm2, %v2066_v16  ;;  %v2054_v12 = vmul.f32 %v5886_v60, %v6632_v42  ;;  %v5888_v54 = vpop.eup %5887  ;;  %v436_v60 = vld [vmem:[%s6118_s11 + $0x1c] sm:$0x3] }
 0x443   : > { %v2029_v11 = vpop.xlane.xlu0 %2028  ;;  %v2026_v5 = vpop.xlane.xlu1 %2025  ;;  %5367 = vmatpush3.bf16.msra.mxu1 %v2218_v37  ;;  %5368 = vmatprep.mubr.msk.bf16.mxu1 %vm6044_vm0, %v7675_v0  ;;  %v2055_v42 = vmul.f32 %v5888_v54, %v6630_v59  ;;  %v432_v37 = vld [vmem:[%s6118_s11 + $0x14] sm:$0x3]  ;;  %v444_v54 = vld [vmem:[%s6118_s11 + $0x2c] sm:$0x3] }
 0x444   : > { %5901 = vrcp.f32 %v2026_v5  ;;  %v2067_v46 = vpack.c.bf16 %v2054_v12, %v2053_v56  ;;  %5378 = vmatprep.subr.bf16.mxu1 %v7675_v0  ;;  %v440_v5 = vld [vmem:[%s6118_s11 + $0x24] sm:$0x3]  ;;  %v5763_v56 = vld [vmem:[%s6111_s8 + $0x50] sm:$0xff]  }
 0x445   : > { %v5890_v29 = vpop.eup %5889  ;;  %5903 = vrcp.f32 %v2029_v11  ;;  %v2614_v11 = vsel %vm499_vm1, %v436_v60, 0  ;;  %v2666_v12 = vsel %vm499_vm1, %v440_v5, 0 }
 0x446   : > { %5363 = vmatmul.mubr.msk.bf16.vlgmr.msra.gmra.mxu0 %vm911_vm2, %v2067_v46  ;;  %v2056_v52 = vmul.f32 %v5890_v29, %v6639_v3  ;;  %v5892_v31 = vpop.eup %5891  ;;  %v5764_v46 = vld [vmem:[%s6111_s8 + $0x70] sm:$0xff]  }
 0x447   : > { %v2032_v9 = vpop.xlane.xlu1 %2031  ;;  %5373 = vmatpush3.bf16.msra.mxu0 %v2265_v44  ;;  %5374 = vmatprep.mubr.msk.bf16.mxu0 %vm6044_vm0, %v7675_v0  ;;  %v2057_v59 = vmul.f32 %v5892_v31, %v6641_v53  ;;  %v2718_v44 = vsel %vm499_vm1, %v444_v54, 0  ;;  %v448_v29 = vld [vmem:[%s6118_s11 + $0x34] sm:$0x3] }
 0x448   : > { %5905 = vrcp.f32 %v2032_v9  ;;  %v2068_v33 = vpack.c.bf16 %v2056_v52, %v2055_v42  ;;  %5384 = vmatprep.subr.bf16.mxu0 %v7675_v0  ;;  %v2770_v9 = vsel %vm499_vm1, %v448_v29, 0  ;;  %v452_v42 = vld [vmem:[%s6118_s11 + $0x3c] sm:$0x3]  ;;  %v5766_v52 = vld [vmem:[%s6111_s8 + $0xb0] sm:$0xff]  }
 0x449   : > { %v5894_v25 = vpop.eup %5893  ;;  %v2822_v31 = vsel %vm499_vm1, %v452_v42, 0 }
 0x44a   : > { %5369 = vmatmul.mubr.msk.bf16.vlgmr.msra.gmra.mxu1 %vm911_vm2, %v2068_v33  ;;  %v2058_v3 = vmul.f32 %v5894_v25, %v6649_v45  ;;  %v5896_v62 = vpop.eup %5895  ;;  %v5767_v33 = vld [vmem:[%s6111_s8 + $0xd0] sm:$0xff]  }
 0x44b   : > { %5379 = vmatpush3.bf16.msra.mxu1 %v2312_v34  ;;  %5380 = vmatprep.mubr.msk.bf16.mxu1 %vm6044_vm0, %v7675_v0  ;;  %v2059_v38 = vmul.f32 %v5896_v62, %v6647_v32  ;;  %v5768_v34 = vld [vmem:[%s6111_s8 + $0xf0] sm:$0xff]  }
 0x44c   : > { %v2069_v43 = vpack.c.bf16 %v2058_v3, %v2057_v59  ;;  %5390 = vmatprep.subr.bf16.mxu1 %v7675_v0 }
 0x44d   : > { %v5898_v51 = vpop.eup %5897 }
 0x44e   : > { %5375 = vmatmul.mubr.msk.bf16.vlgmr.msra.gmra.mxu0 %vm911_vm2, %v2069_v43  ;;  %v2060_v53 = vmul.f32 %v5898_v51, %v6655_v4  ;;  %v5900_v45 = vpop.eup %5899 }
 0x44f   : > { %5385 = vmatpush3.bf16.msra.mxu0 %v2359_v50  ;;  %5386 = vmatprep.mubr.msk.bf16.mxu0 %vm6044_vm0, %v7675_v0  ;;  %v2061_v32 = vmul.f32 %v5900_v45, %v6657_v6  ;;  %v428_v6 = vld [vmem:[%s6118_s11 + $0xc] sm:$0x3] }
 0x450   : > { %v2070_v2 = vpack.c.bf16 %v2060_v53, %v2059_v38  ;;  %5396 = vmatprep.subr.bf16.mxu0 %v7675_v0  ;;  %v2510_v16 = vsel %vm499_vm1, %v428_v6, 0 }
 0x451   : > { %v5902_v40 = vpop.eup %5901 }
 0x452   : > { %v5904_v15 = vpop.eup %5903  ;;  %5381 = vmatmul.mubr.msk.bf16.vlgmr.msra.gmra.mxu1 %vm911_vm2, %v2070_v2  ;;  %v2062_v4 = vmul.f32 %v5902_v40, %v6667_v7 }
 0x453   : > { %5391 = vmatpush3.bf16.msra.mxu1 %v2406_v57  ;;  %5392 = vmatprep.mubr.msk.bf16.mxu1 %vm6044_vm0, %v7675_v0  ;;  %v2063_v24 = vmul.f32 %v5904_v15, %v6665_v17  ;;  %v5761_v17 = vld [vmem:[%s6111_s8 + $0x10] sm:$0xff]  }
 0x454   : > { %v2071_v61 = vpack.c.bf16 %v2062_v4, %v2061_v32  ;;  %5402 = vmatprep.subr.bf16.mxu1 %v7675_v0 }
 0x455   : > { %v5906_v63 = vpop.eup %5905 }
 0x456   : > { %v2064_v47 = vmul.f32 %v5906_v63, %v6676_v18  ;;  %5387 = vmatmul.mubr.msk.bf16.vlgmr.msra.gmra.mxu0 %vm911_vm2, %v2071_v61  ;;  %v2562_v18 = vsel %vm499_vm1, %v432_v37, 0 }
 0x457   : > { %5397 = vmatpush3.bf16.xpose.msra.mxu0 %v2458_v1  ;;  %5398 = vmatprep.mubr.msk.bf16.mxu0 %vm6044_vm0, %v7675_v0 }
 0x458   : > { %v2072_v7 = vpack.c.bf16 %v2064_v47, %v2063_v24  ;;  %5408 = vmatprep.subr.bf16.mxu0 %v7675_v0 }
 0x45a   : > { %5393 = vmatmul.mubr.msk.bf16.vlgmr.msra.gmra.mxu1 %vm911_vm2, %v2072_v7 }
 0x45b   : > { %5403 = vmatpush3.bf16.xpose.msra.mxu1 %v2510_v16  ;;  %5404 = vmatprep.mubr.msk.bf16.mxu1 %vm6044_vm0, %v7675_v0 }
 0x45c   : > { %5414 = vmatprep.subr.bf16.mxu1 %v7675_v0 }
 0x45e   : > { %5399 = vmatmul.mubr.msk.bf16.vlgmr.msra.gmra.mxu0 %vm499_vm1, %v5761_v17 }
 0x45f   : > { %5409 = vmatpush3.bf16.xpose.msra.mxu0 %v2562_v18  ;;  %5410 = vmatprep.mubr.msk.bf16.mxu0 %vm6044_vm0, %v7675_v0 }
 0x460   : > { %5420 = vmatprep.subr.bf16.mxu0 %v7675_v0 }
 0x462   : > { %5405 = vmatmul.mubr.msk.bf16.vlgmr.msra.gmra.mxu1 %vm499_vm1, %v5762_v26 }
 0x463   : > { %5415 = vmatpush3.bf16.xpose.msra.mxu1 %v2614_v11  ;;  %5416 = vmatprep.mubr.msk.bf16.mxu1 %vm6044_vm0, %v7675_v0 }
 0x464   : > { %5426 = vmatprep.subr.bf16.mxu1 %v7675_v0 }
 0x466   : > { %5411 = vmatmul.mubr.msk.bf16.vlgmr.msra.gmra.mxu0 %vm499_vm1, %v5763_v56 }
 0x467   : > { %5421 = vmatpush3.bf16.xpose.msra.mxu0 %v2666_v12  ;;  %5422 = vmatprep.mubr.msk.bf16.mxu0 %vm6044_vm0, %v7675_v0 }
 0x468   : > { %5432 = vmatprep.subr.bf16.mxu0 %v7675_v0 }
 0x46a   : > { %5417 = vmatmul.mubr.msk.bf16.vlgmr.msra.gmra.mxu1 %vm499_vm1, %v5764_v46  ;;  %v6842_v46 = vld [vmem:[%s7670_s3 + $0x20] sm:$0xff] }
 0x46b   : > { %5427 = vmatpush3.bf16.xpose.msra.mxu1 %v2718_v44  ;;  %5428 = vmatprep.mubr.msk.bf16.mxu1 %vm6044_vm0, %v7675_v0 }
 0x46c   : > { %5438 = vmatprep.subr.bf16.mxu1 %v7675_v0 }
 0x46e   : > { %5423 = vmatmul.mubr.msk.bf16.vlgmr.msra.gmra.mxu0 %vm499_vm1, %v5765_v14 }
 0x46f   : > { %5433 = vmatpush3.bf16.xpose.msra.mxu0 %v2770_v9  ;;  %5434 = vmatprep.mubr.msk.bf16.mxu0 %vm6044_vm0, %v7675_v0 }
 0x470   : > { %5444 = vmatprep.subr.bf16.mxu0 %v7675_v0 }
 0x472   : > { %5429 = vmatmul.mubr.msk.bf16.vlgmr.msra.gmra.mxu1 %vm499_vm1, %v5766_v52 }
 0x473   : > { %5439 = vmatpush3.bf16.xpose.msra.mxu1 %v2822_v31  ;;  %5440 = vmatprep.mubr.msk.bf16.mxu1 %vm6044_vm0, %v7675_v0  ;;  %v6854_v31 = vld [vmem:[%s7670_s3 + $0x28] sm:$0xff] }
 0x474   : > { %5450 = vmatprep.subr.bf16.mxu1 %v7675_v0 }
 0x476   : > { %5435 = vmatmul.mubr.msk.bf16.vlgmr.msra.gmra.mxu0 %vm499_vm1, %v5767_v33 }
 0x477   : > { %5446 = vmatprep.mubr.msk.bf16.mxu0 %vm6044_vm0, %v7675_v0 }
 0x47a   : > { %5441 = vmatmul.mubr.msk.bf16.vlgmr.msra.gmra.mxu1 %vm499_vm1, %v5768_v34 }
 0x47b   : > { %5452 = vmatprep.mubr.msk.bf16.mxu1 %vm6044_vm0, %v7675_v0 }
 0x4fe   : > { %v6795_v25 = vpop.f32.mrf.mxu0 }
 0x500   : > { %v5352_v58 = vpop.f32.mrf.mxu0 }
 0x502   : > { %v6797_v59 = vpop.f32.mrf.mxu0  ;;  %v6801_v62 = vpop.f32.mrf.mxu1 }
 0x504   : > { %v5353_v43 = vpop.f32.mrf.mxu0  ;;  %v5358_v50 = vpop.f32.mrf.mxu1 }
 0x506   : > { %v6803_v51 = vpop.f32.mrf.mxu1  ;;  %v6805_v35 = vpop.f32.mrf.mxu0 }
 0x508   : > { %v5359_v53 = vpop.f32.mrf.mxu1  ;;  %v5364_v45 = vpop.f32.mrf.mxu0 }
 0x50a   : > { %v6809_v2 = vpop.f32.mrf.mxu0  ;;  %v6811_v57 = vpop.f32.mrf.mxu1 }
 0x50c   : > { %v5365_v48 = vpop.f32.mrf.mxu0  ;;  %v5370_v15 = vpop.f32.mrf.mxu1 }
 0x50e   : > { %v6815_v32 = vpop.f32.mrf.mxu1  ;;  %v6817_v4 = vpop.f32.mrf.mxu0 }
 0x510   : > { %v5371_v61 = vpop.f32.mrf.mxu1  ;;  %v5376_v1 = vpop.f32.mrf.mxu0 }
 0x512   : > { %v6821_v24 = vpop.f32.mrf.mxu0  ;;  %v6823_v47 = vpop.f32.mrf.mxu1 }
 0x514   : > { %v5377_v7 = vpop.f32.mrf.mxu0  ;;  %v5382_v16 = vpop.f32.mrf.mxu1 }
 0x516   : > { %v6827_v37 = vpop.f32.mrf.mxu1  ;;  %v6829_v17 = vpop.f32.mrf.mxu0 }
 0x518   : > { %v5383_v60 = vpop.f32.mrf.mxu1  ;;  %v5388_v26 = vpop.f32.mrf.mxu0 }
 0x51a   : > { %v6833_v11 = vpop.f32.mrf.mxu0  ;;  %v6835_v5 = vpop.f32.mrf.mxu1 }
 0x51c   : > { %v5389_v12 = vpop.f32.mrf.mxu0  ;;  %v5394_v54 = vpop.f32.mrf.mxu1 }
 0x51e   : > { %v6844_v44 = vpop.f32.mrf.mxu1  ;;  %v2494_v29 = vpop.f32.mrf.mxu0 }
 0x51f   : > { %v6849_v9 = vadd.f32 %v2494_v29, %v6842_v46 }
 0x520   : > { %v5395_v42 = vpop.f32.mrf.mxu1  ;;  %v5400_v52 = vpop.f32.mrf.mxu0 }
 0x521   : > { %v2865_v33 = vsel %vm911_vm2, %v6849_v9, -inf }
 0x522   : > { %v2546_v34 = vpop.f32.mrf.mxu1  ;;  %2866 = vmax.xlane.f32.xlu0 %v2865_v33  ;;  %v2497_v58 = vpop.f32.mrf.mxu0 }
 0x523   : > { %v6859_v43 = vadd.f32 %v2546_v34, %v6842_v46  ;;  %v6862_v50 = vadd.f32 %v2497_v58, %v6854_v31 }
 0x524   : > { %v5401_v53 = vpop.f32.mrf.mxu0  ;;  %v5406_v45 = vpop.f32.mrf.mxu1 }
 0x525   : > { %v2871_v48 = vsel %vm911_vm2, %v6859_v43, -inf  ;;  %v2868_v15 = vsel %vm911_vm2, %v6862_v50, -inf }
 0x526   : > { %v2549_v61 = vpop.f32.mrf.mxu1  ;;  %2872 = vmax.xlane.f32.xlu0 %v2871_v48  ;;  %2869 = vmax.xlane.f32.xlu1 %v2868_v15  ;;  %v2598_v1 = vpop.f32.mrf.mxu0 }
 0x527   : > { %v6869_v7 = vadd.f32 %v2549_v61, %v6854_v31  ;;  %v6872_v16 = vadd.f32 %v2598_v1, %v6842_v46 }
 0x528   : > { %v5407_v60 = vpop.f32.mrf.mxu1  ;;  %v5412_v26 = vpop.f32.mrf.mxu0 }
 0x529   : > { %v2874_v12 = vsel %vm911_vm2, %v6869_v7, -inf  ;;  %v2877_v54 = vsel %vm911_vm2, %v6872_v16, -inf }
 0x52a   : > { %v2650_v29 = vpop.f32.mrf.mxu1  ;;  %2875 = vmax.xlane.f32.xlu1 %v2874_v12  ;;  %2878 = vmax.xlane.f32.xlu0 %v2877_v54  ;;  %v2601_v42 = vpop.f32.mrf.mxu0 }
 0x52b   : > { %v6879_v52 = vadd.f32 %v2650_v29, %v6842_v46  ;;  %v6882_v33 = vadd.f32 %v2601_v42, %v6854_v31 }
 0x52c   : > { %v5413_v34 = vpop.f32.mrf.mxu0  ;;  %v5418_v58 = vpop.f32.mrf.mxu1 }
 0x52d   : > { %v2883_v53 = vsel %vm911_vm2, %v6879_v52, -inf  ;;  %v2880_v45 = vsel %vm911_vm2, %v6882_v33, -inf }
 0x52e   : > { %v2653_v48 = vpop.f32.mrf.mxu1  ;;  %2884 = vmax.xlane.f32.xlu0 %v2883_v53  ;;  %2881 = vmax.xlane.f32.xlu1 %v2880_v45  ;;  %v2702_v15 = vpop.f32.mrf.mxu0 }
 0x52f   : > { %v6889_v61 = vadd.f32 %v2653_v48, %v6854_v31  ;;  %v6892_v1 = vadd.f32 %v2702_v15, %v6842_v46 }
 0x530   : > { %v5419_v60 = vpop.f32.mrf.mxu1  ;;  %v5424_v26 = vpop.f32.mrf.mxu0 }
 0x531   : > { %v2886_v12 = vsel %vm911_vm2, %v6889_v61, -inf  ;;  %v2889_v54 = vsel %vm911_vm2, %v6892_v1, -inf }
 0x532   : > { %v2754_v29 = vpop.f32.mrf.mxu1  ;;  %2887 = vmax.xlane.f32.xlu1 %v2886_v12  ;;  %2890 = vmax.xlane.f32.xlu0 %v2889_v54  ;;  %v2705_v42 = vpop.f32.mrf.mxu0 }
 0x533   : > { %v6899_v34 = vadd.f32 %v2754_v29, %v6842_v46  ;;  %v6902_v58 = vadd.f32 %v2705_v42, %v6854_v31 }
 0x534   : > { %v5425_v53 = vpop.f32.mrf.mxu0  ;;  %v5430_v45 = vpop.f32.mrf.mxu1 }
 0x535   : > { %v2895_v48 = vsel %vm911_vm2, %v6899_v34, -inf  ;;  %v2892_v15 = vsel %vm911_vm2, %v6902_v58, -inf }
 0x536   : > { %v2757_v60 = vpop.f32.mrf.mxu1  ;;  %2896 = vmax.xlane.f32.xlu0 %v2895_v48  ;;  %2893 = vmax.xlane.f32.xlu1 %v2892_v15  ;;  %v2806_v26 = vpop.f32.mrf.mxu0 }
 0x537   : > { %v6909_v12 = vadd.f32 %v2757_v60, %v6854_v31  ;;  %v6912_v54 = vadd.f32 %v2806_v26, %v6842_v46 }
 0x538   : > { %v5431_v29 = vpop.f32.mrf.mxu1  ;;  %v5436_v42 = vpop.f32.mrf.mxu0 }
 0x539   : > { %v2898_v53 = vsel %vm911_vm2, %v6909_v12, -inf  ;;  %v2901_v45 = vsel %vm911_vm2, %v6912_v54, -inf }
 0x53a   : > { %v2858_v14 = vpop.f32.mrf.mxu1  ;;  %2899 = vmax.xlane.f32.xlu1 %v2898_v53  ;;  %2902 = vmax.xlane.f32.xlu0 %v2901_v45  ;;  %v2809_v48 = vpop.f32.mrf.mxu0 }
 0x53b   : > { %v6919_v15 = vadd.f32 %v2858_v14, %v6842_v46  ;;  %v6922_v60 = vadd.f32 %v2809_v48, %v6854_v31 }
 0x53c   : > { %v5437_v26 = vpop.f32.mrf.mxu0  ;;  %v5442_v56 = vpop.f32.mrf.mxu1 }
 0x53d   : > { %v2907_v29 = vsel %vm911_vm2, %v6919_v15, -inf  ;;  %v2904_v42 = vsel %vm911_vm2, %v6922_v60, -inf }
 0x53e   : > { %v2861_v63 = vpop.f32.mrf.mxu1  ;;  %2908 = vmax.xlane.f32.xlu0 %v2907_v29  ;;  %2905 = vmax.xlane.f32.xlu1 %v2904_v42 }
 0x53f   : > { %v6929_v53 = vadd.f32 %v2861_v63, %v6854_v31 }
 0x540   : > { %v5443_v45 = vpop.f32.mrf.mxu1 }
 0x541   : > { %v2910_v46 = vsel %vm911_vm2, %v6929_v53, -inf }
 0x542   : > { %2911 = vmax.xlane.f32.xlu1 %v2910_v46 }
 0x5ab   : > { %v2867_v14 = vpop.xlane.xlu0 %2866 }
 0x5ac   : > { %v2913_v56 = vsub.f32 %v6849_v9, %v2867_v14 }
 0x5ae   : > { %v2929_v48 = vmul.f32 1.442695, %v2913_v56 }
 0x5af   : > { %v2873_v26 = vpop.xlane.xlu0 %2872  ;;  %v2870_v40 = vpop.xlane.xlu1 %2869 }
 0x5b0   : > { %5907 = vpow2.f32 %v2929_v48  ;;  %v2915_v18 = vsub.f32 %v6859_v43, %v2873_v26  ;;  %v2914_v29 = vsub.f32 %v6862_v50, %v2870_v40 }
 0x5b2   : > { %v2933_v42 = vmul.f32 1.442695, %v2915_v18  ;;  %v2931_v38 = vmul.f32 1.442695, %v2914_v29 }
 0x5b3   : > { %v2876_v63 = vpop.xlane.xlu1 %2875  ;;  %v2879_v31 = vpop.xlane.xlu0 %2878 }
 0x5b4   : > { %5909 = vpow2.f32 %v2933_v42  ;;  %v2916_v45 = vsub.f32 %v6869_v7, %v2876_v63  ;;  %v2917_v46 = vsub.f32 %v6872_v16, %v2879_v31 }
 0x5b5   : > { %5911 = vpow2.f32 %v2931_v38 }
 0x5b6   : > { %v2935_v3 = vmul.f32 1.442695, %v2916_v45  ;;  %v2937_v9 = vmul.f32 1.442695, %v2917_v46 }
 0x5b7   : > { %v2885_v14 = vpop.xlane.xlu0 %2884  ;;  %v2882_v56 = vpop.xlane.xlu1 %2881 }
 0x5b8   : > { %5913 = vpow2.f32 %v2935_v3  ;;  %v2919_v48 = vsub.f32 %v6879_v52, %v2885_v14  ;;  %v2918_v43 = vsub.f32 %v6882_v33, %v2882_v56 }
 0x5b9   : > { %5915 = vpow2.f32 %v2937_v9 }
 0x5ba   : > { %v2941_v40 = vmul.f32 1.442695, %v2919_v48  ;;  %v2939_v18 = vmul.f32 1.442695, %v2918_v43 }
 0x5bb   : > { %v2888_v50 = vpop.xlane.xlu1 %2887  ;;  %v2891_v26 = vpop.xlane.xlu0 %2890 }
 0x5bc   : > { %5917 = vpow2.f32 %v2941_v40  ;;  %v2920_v7 = vsub.f32 %v6889_v61, %v2888_v50  ;;  %v2921_v16 = vsub.f32 %v6892_v1, %v2891_v26 }
 0x5bd   : > { %v6942_v38 = vpop.eup %5907  ;;  %5919 = vpow2.f32 %v2939_v18 }
 0x5be   : > { %v2943_v29 = vmul.f32 1.442695, %v2920_v7  ;;  %v2945_v42 = vmul.f32 1.442695, %v2921_v16  ;;  %v2961_v3 = vsel %vm911_vm2, %v6942_v38, 0.0 }
 0x5bf   : > { %v2897_v52 = vpop.xlane.xlu0 %2896  ;;  %v2894_v33 = vpop.xlane.xlu1 %2893  ;;  %2962 = vadd.xlane.f32.xlu0 %v2961_v3 }
 0x5c0   : > { %5921 = vpow2.f32 %v2943_v29  ;;  %v2923_v63 = vsub.f32 %v6899_v34, %v2897_v52  ;;  %v2922_v31 = vsub.f32 %v6902_v58, %v2894_v33 }
 0x5c1   : > { %v6948_v45 = vpop.eup %5909  ;;  %5923 = vpow2.f32 %v2945_v42 }
 0x5c2   : > { %v6950_v61 = vpop.eup %5911  ;;  %v2949_v1 = vmul.f32 1.442695, %v2923_v63  ;;  %v2947_v46 = vmul.f32 1.442695, %v2922_v31  ;;  %v2967_v9 = vsel %vm911_vm2, %v6948_v45, 0.0 }
 0x5c3   : > { %v2900_v14 = vpop.xlane.xlu1 %2899  ;;  %2968 = vadd.xlane.f32.xlu0 %v2967_v9  ;;  %v2903_v56 = vpop.xlane.xlu0 %2902  ;;  %v2964_v48 = vsel %vm911_vm2, %v6950_v61, 0.0 }
 0x5c4   : > { %5925 = vpow2.f32 %v2949_v1  ;;  %v2924_v34 = vsub.f32 %v6909_v12, %v2900_v14  ;;  %v2925_v58 = vsub.f32 %v6912_v54, %v2903_v56  ;;  %2965 = vadd.xlane.f32.xlu1 %v2964_v48 }
 0x5c5   : > { %v6958_v43 = vpop.eup %5913  ;;  %5927 = vpow2.f32 %v2947_v46 }
 0x5c6   : > { %v6960_v40 = vpop.eup %5915  ;;  %v2951_v18 = vmul.f32 1.442695, %v2924_v34  ;;  %v2953_v50 = vmul.f32 1.442695, %v2925_v58  ;;  %v2970_v26 = vsel %vm911_vm2, %v6958_v43, 0.0 }
 0x5c7   : > { %v2973_v7 = vsel %vm911_vm2, %v6960_v40, 0.0  ;;  %v2909_v16 = vpop.xlane.xlu0 %2908  ;;  %v2906_v29 = vpop.xlane.xlu1 %2905 }
 0x5c8   : > { %5929 = vpow2.f32 %v2951_v18  ;;  %2974 = vadd.xlane.f32.xlu0 %v2973_v7  ;;  %v2927_v12 = vsub.f32 %v6919_v15, %v2909_v16  ;;  %2971 = vadd.xlane.f32.xlu1 %v2970_v26  ;;  %v2926_v54 = vsub.f32 %v6922_v60, %v2906_v29  ;;  %v456_v16 = vld [vmem:[%s6331_s18 + $0x4] sm:$0x3] }
 0x5c9   : > { %v6968_v42 = vpop.eup %5917  ;;  %5931 = vpow2.f32 %v2953_v50  ;;  %v3053_v29 = vsel %vm1099_vm3, %v456_v16, 0 }
 0x5ca   : > { %v6970_v3 = vpop.eup %5919  ;;  %v2957_v52 = vmul.f32 1.442695, %v2927_v12  ;;  %v2955_v33 = vmul.f32 1.442695, %v2926_v54  ;;  %v2979_v63 = vsel %vm911_vm2, %v6968_v42, 0.0  ;;  %5445 = vmatpush3.bf16.msra.mxu0 %v3053_v29 }
 0x5cb   : > { %v2976_v31 = vsel %vm911_vm2, %v6970_v3, 0.0  ;;  %v2912_v1 = vpop.xlane.xlu1 %2911  ;;  %5456 = vmatprep.subr.bf16.mxu0 %v7675_v0 }
 0x5cc   : > { %5933 = vpow2.f32 %v2957_v52  ;;  %2980 = vadd.xlane.f32.xlu0 %v2979_v63  ;;  %2977 = vadd.xlane.f32.xlu1 %v2976_v31  ;;  %v2928_v15 = vsub.f32 %v6929_v53, %v2912_v1  ;;  %v460_v63 = vld [vmem:[%s6331_s18 + $0xc] sm:$0x3] }
 0x5cd   : > { %v6977_v60 = vpop.eup %5921  ;;  %5935 = vpow2.f32 %v2955_v33  ;;  %v3100_v31 = vsel %vm1099_vm3, %v460_v63, 0  ;;  %v464_v63 = vld [vmem:[%s6331_s18 + $0x14] sm:$0x3] }
 0x5ce   : > { %v6979_v46 = vpop.eup %5923  ;;  %v2959_v9 = vmul.f32 1.442695, %v2928_v15  ;;  %v2982_v14 = vsel %vm911_vm2, %v6977_v60, 0.0  ;;  %5451 = vmatpush3.bf16.msra.mxu1 %v3100_v31 }
 0x5cf   : > { %v2985_v56 = vsel %vm911_vm2, %v6979_v46, 0.0  ;;  %5462 = vmatprep.subr.bf16.mxu1 %v7675_v0 }
 0x5d0   : > { %5937 = vpow2.f32 %v2959_v9  ;;  %2986 = vadd.xlane.f32.xlu0 %v2985_v56  ;;  %2983 = vadd.xlane.f32.xlu1 %v2982_v14 }
 0x5d1   : > { %v6985_v48 = vpop.eup %5925 }
 0x5d2   : > { %v6987_v34 = vpop.eup %5927  ;;  %v2991_v53 = vsel %vm911_vm2, %v6985_v48, 0.0 }
 0x5d3   : > { %v2988_v58 = vsel %vm911_vm2, %v6987_v34, 0.0 }
 0x5d4   : > { %2992 = vadd.xlane.f32.xlu0 %v2991_v53  ;;  %2989 = vadd.xlane.f32.xlu1 %v2988_v58 }
 0x5d5   : > { %v6993_v18 = vpop.eup %5929 }
 0x5d6   : > { %v6995_v50 = vpop.eup %5931  ;;  %v2994_v26 = vsel %vm911_vm2, %v6993_v18, 0.0 }
 0x5d7   : > { %v2997_v7 = vsel %vm911_vm2, %v6995_v50, 0.0 }
 0x5d8   : > { %2998 = vadd.xlane.f32.xlu0 %v2997_v7  ;;  %2995 = vadd.xlane.f32.xlu1 %v2994_v26 }
 0x5d9   : > { %v7003_v12 = vpop.eup %5933 }
 0x5da   : > { %v7005_v54 = vpop.eup %5935  ;;  %v3003_v52 = vsel %vm911_vm2, %v7003_v12, 0.0 }
 0x5db   : > { %v3000_v33 = vsel %vm911_vm2, %v7005_v54, 0.0 }
 0x5dc   : > { %3004 = vadd.xlane.f32.xlu0 %v3003_v52  ;;  %3001 = vadd.xlane.f32.xlu1 %v3000_v33 }
 0x5dd   : > { %v7014_v1 = vpop.eup %5937 }
 0x5de   : > { %v3006_v15 = vsel %vm911_vm2, %v7014_v1, 0.0 }
 0x5e0   : > { %3007 = vadd.xlane.f32.xlu1 %v3006_v15 }
 0x648   : > { %v2963_v9 = vpop.xlane.xlu0 %2962 }
 0x649   : > { %5939 = vrcp.f32 %v2963_v9 }
 0x64c   : > { %v2969_v14 = vpop.xlane.xlu0 %2968 }
 0x64d   : > { %v2966_v56 = vpop.xlane.xlu1 %2965 }
 0x64e   : > { %5941 = vrcp.f32 %v2966_v56 }
 0x64f   : > { %5943 = vrcp.f32 %v2969_v14 }
 0x651   : > { %v2975_v53 = vpop.xlane.xlu0 %2974  ;;  %v2972_v58 = vpop.xlane.xlu1 %2971 }
 0x652   : > { %5945 = vrcp.f32 %v2972_v58  ;;  %v3147_v58 = vsel %vm1099_vm3, %v464_v63, 0 }
 0x653   : > { %5947 = vrcp.f32 %v2975_v53 }
 0x655   : > { %v2981_v26 = vpop.xlane.xlu0 %2980  ;;  %v2978_v7 = vpop.xlane.xlu1 %2977 }
 0x656   : > { %5949 = vrcp.f32 %v2978_v7  ;;  %v5940_v16 = vpop.eup %5939 }
 0x657   : > { %5951 = vrcp.f32 %v2981_v26  ;;  %v3025_v31 = vmul.f32 %v5940_v16, %v6942_v38  ;;  %v468_v26 = vld [vmem:[%s6331_s18 + $0x1c] sm:$0x3] }
 0x659   : > { %v2987_v29 = vpop.xlane.xlu0 %2986  ;;  %v2984_v52 = vpop.xlane.xlu1 %2983 }
 0x65a   : > { %5953 = vrcp.f32 %v2984_v52 }
 0x65b   : > { %v5942_v33 = vpop.eup %5941  ;;  %5955 = vrcp.f32 %v2987_v29 }
 0x65c   : > { %v3026_v15 = vmul.f32 %v5942_v33, %v6950_v61  ;;  %v5944_v56 = vpop.eup %5943  ;;  %v3194_v33 = vsel %vm1099_vm3, %v468_v26, 0 }
 0x65d   : > { %v2993_v9 = vpop.xlane.xlu0 %2992  ;;  %v2990_v14 = vpop.xlane.xlu1 %2989  ;;  %v3027_v38 = vmul.f32 %v5944_v56, %v6948_v45 }
 0x65e   : > { %v3041_v53 = vpack.c.bf16 %v3026_v15, %v3025_v31  ;;  %5957 = vrcp.f32 %v2990_v14  ;;  %v472_v31 = vld [vmem:[%s6331_s18 + $0x24] sm:$0x3] }
 0x65f   : > { %v5946_v7 = vpop.eup %5945  ;;  %5959 = vrcp.f32 %v2993_v9  ;;  %v3241_v56 = vsel %vm1099_vm3, %v472_v31, 0 }
 0x660   : > { %5447 = vmatmul.mubr.msk.bf16.vlgmr.msra.gmra.mxu0 %vm911_vm2, %v3041_v53  ;;  %v3028_v61 = vmul.f32 %v5946_v7, %v6958_v43  ;;  %v5948_v16 = vpop.eup %5947 }
 0x661   : > { %v2999_v52 = vpop.xlane.xlu0 %2998  ;;  %5457 = vmatpush3.bf16.msra.mxu0 %v3147_v58  ;;  %v2996_v6 = vpop.xlane.xlu1 %2995  ;;  %5458 = vmatprep.mubr.msk.bf16.mxu0 %vm6044_vm0, %v7675_v0  ;;  %v3029_v43 = vmul.f32 %v5948_v16, %v6960_v40  ;;  %v476_v58 = vld [vmem:[%s6331_s18 + $0x2c] sm:$0x3]  ;;  %v480_v16 = vld [vmem:[%s6331_s18 + $0x34] sm:$0x3] }
 0x662   : > { %5468 = vmatprep.subr.bf16.mxu0 %v7675_v0  ;;  %5961 = vrcp.f32 %v2996_v6  ;;  %v3042_v29 = vpack.c.bf16 %v3028_v61, %v3027_v38  ;;  %v3288_v38 = vsel %vm1099_vm3, %v476_v58, 0 }
 0x663   : > { %v5950_v63 = vpop.eup %5949  ;;  %5963 = vrcp.f32 %v2999_v52 }
 0x664   : > { %5453 = vmatmul.mubr.msk.bf16.vlgmr.msra.gmra.mxu1 %vm911_vm2, %v3042_v29  ;;  %v3030_v9 = vmul.f32 %v5950_v63, %v6970_v3  ;;  %v5952_v14 = vpop.eup %5951  ;;  %v3335_v63 = vsel %vm1099_vm3, %v480_v16, 0 }
 0x665   : > { %v3005_v15 = vpop.xlane.xlu0 %3004  ;;  %v3002_v45 = vpop.xlane.xlu1 %3001  ;;  %5463 = vmatpush3.bf16.msra.mxu1 %v3194_v33  ;;  %5464 = vmatprep.mubr.msk.bf16.mxu1 %vm6044_vm0, %v7675_v0  ;;  %v3031_v3 = vmul.f32 %v5952_v14, %v6968_v42 }
 0x666   : > { %5965 = vrcp.f32 %v3002_v45  ;;  %v3043_v6 = vpack.c.bf16 %v3030_v9, %v3029_v43  ;;  %5474 = vmatprep.subr.bf16.mxu1 %v7675_v0 }
 0x667   : > { %v5954_v53 = vpop.eup %5953  ;;  %5967 = vrcp.f32 %v3005_v15  ;;  %v484_v15 = vld [vmem:[%s6331_s18 + $0x3c] sm:$0x3] }
 0x668   : > { %5459 = vmatmul.mubr.msk.bf16.vlgmr.msra.gmra.mxu0 %vm911_vm2, %v3043_v6  ;;  %v3032_v7 = vmul.f32 %v5954_v53, %v6977_v60  ;;  %v5956_v26 = vpop.eup %5955  ;;  %v3382_v9 = vsel %vm1099_vm3, %v484_v15, 0  ;;  %v425_v6 = vld [vmem:[%s6118_s11 + $0x6] sm:$0x3]  ;;  %v449_v15 = vld [vmem:[%s6118_s11 + $0x36] sm:$0x3] }
 0x669   : > { %v3008_v40 = vpop.xlane.xlu1 %3007  ;;  %5469 = vmatpush3.bf16.msra.mxu0 %v3241_v56  ;;  %5470 = vmatprep.mubr.msk.bf16.mxu0 %vm6044_vm0, %v7675_v0  ;;  %v3033_v42 = vmul.f32 %v5956_v26, %v6979_v46 }
 0x66a   : > { %5969 = vrcp.f32 %v3008_v40  ;;  %v3044_v52 = vpack.c.bf16 %v3032_v7, %v3031_v3  ;;  %5480 = vmatprep.subr.bf16.mxu0 %v7675_v0  ;;  %v3434_v40 = vsel %vm499_vm1, %v425_v6, 0  ;;  %v5776_v6 = vld [vmem:[%s6111_s8 + $0xf8] sm:$0xff]  }
 0x66b   : > { %v5958_v61 = vpop.eup %5957 }
 0x66c   : > { %5465 = vmatmul.mubr.msk.bf16.vlgmr.msra.gmra.mxu1 %vm911_vm2, %v3044_v52  ;;  %v3034_v60 = vmul.f32 %v5958_v61, %v6987_v34  ;;  %v5960_v29 = vpop.eup %5959  ;;  %v433_v52 = vld [vmem:[%s6118_s11 + $0x16] sm:$0x3]  ;;  %v5770_v61 = vld [vmem:[%s6111_s8 + $0x38] sm:$0xff]  }
 0x66d   : > { %5475 = vmatpush3.bf16.msra.mxu1 %v3288_v38  ;;  %5476 = vmatprep.mubr.msk.bf16.mxu1 %vm6044_vm0, %v7675_v0  ;;  %v3035_v45 = vmul.f32 %v5960_v29, %v6985_v48  ;;  %v437_v38 = vld [vmem:[%s6118_s11 + $0x1e] sm:$0x3] }
 0x66e   : > { %v3045_v33 = vpack.c.bf16 %v3034_v60, %v3033_v42  ;;  %5486 = vmatprep.subr.bf16.mxu1 %v7675_v0  ;;  %v3590_v16 = vsel %vm499_vm1, %v437_v38, 0  ;;  %v441_v42 = vld [vmem:[%s6118_s11 + $0x26] sm:$0x3]  ;;  %v5771_v60 = vld [vmem:[%s6111_s8 + $0x58] sm:$0xff]  }
 0x66f   : > { %v5962_v31 = vpop.eup %5961  ;;  %v3642_v29 = vsel %vm499_vm1, %v441_v42, 0 }
 0x670   : > { %5471 = vmatmul.mubr.msk.bf16.vlgmr.msra.gmra.mxu0 %vm911_vm2, %v3045_v33  ;;  %v3036_v46 = vmul.f32 %v5962_v31, %v6993_v18  ;;  %v5964_v34 = vpop.eup %5963  ;;  %v445_v33 = vld [vmem:[%s6118_s11 + $0x2e] sm:$0x3] }
 0x671   : > { %5481 = vmatpush3.bf16.msra.mxu0 %v3335_v63  ;;  %5482 = vmatprep.mubr.msk.bf16.mxu0 %vm6044_vm0, %v7675_v0  ;;  %v3037_v48 = vmul.f32 %v5964_v34, %v6995_v50  ;;  %v429_v50 = vld [vmem:[%s6118_s11 + $0xe] sm:$0x3]  ;;  %v5772_v63 = vld [vmem:[%s6111_s8 + $0x78] sm:$0xff]   ;;  %v3694_v31 = vsel %vm499_vm1, %v445_v33, 0 }
 0x672   : > { %v3046_v43 = vpack.c.bf16 %v3036_v46, %v3035_v45  ;;  %5492 = vmatprep.subr.bf16.mxu0 %v7675_v0  ;;  %v3486_v26 = vsel %vm499_vm1, %v429_v50, 0  ;;  %v5773_v45 = vld [vmem:[%s6111_s8 + $0x98] sm:$0xff]   ;;  %v3746_v46 = vsel %vm499_vm1, %v449_v15, 0 }
 0x673   : > { %v5966_v14 = vpop.eup %5965  ;;  %v453_v34 = vld [vmem:[%s6118_s11 + $0x3e] sm:$0x3]  ;;  %s6046_s11 = smov 16  }
 0x674   : > { %v5968_v56 = vpop.eup %5967  ;;  %5477 = vmatmul.mubr.msk.bf16.vlgmr.msra.gmra.mxu1 %vm911_vm2, %v3046_v43  ;;  %v3038_v18 = vmul.f32 %v5966_v14, %v7005_v54  ;;  %v5774_v43 = vld [vmem:[%s6111_s8 + $0xb8] sm:$0xff]  }
 0x675   : > { %5487 = vmatpush3.bf16.msra.mxu1 %v3382_v9  ;;  %5488 = vmatprep.mubr.msk.bf16.mxu1 %vm6044_vm0, %v7675_v0  ;;  %v3039_v3 = vmul.f32 %v5968_v56, %v7003_v12  ;;  %v5769_v12 = vld [vmem:[%s6111_s8 + $0x18] sm:$0xff]   ;;  %v3798_v9 = vsel %vm499_vm1, %v453_v34, 0 }
 0x676   : > { %v3047_v58 = vpack.c.bf16 %v3038_v18, %v3037_v48  ;;  %5498 = vmatprep.subr.bf16.mxu1 %v7675_v0  ;;  %v5775_v14 = vld [vmem:[%s6111_s8 + $0xd8] sm:$0xff]  }
 0x677   : > { %v5970_v53 = vpop.eup %5969 }
 0x678   : > { %v3040_v7 = vmul.f32 %v5970_v53, %v7014_v1  ;;  %5483 = vmatmul.mubr.msk.bf16.vlgmr.msra.gmra.mxu0 %vm911_vm2, %v3047_v58  ;;  %v3538_v1 = vsel %vm499_vm1, %v433_v52, 0 }
 0x679   : > { %5493 = vmatpush3.bf16.xpose.msra.mxu0 %v3434_v40  ;;  %5494 = vmatprep.mubr.msk.bf16.mxu0 %vm6044_vm0, %v7675_v0 }
 0x67a   : > { %v3048_v54 = vpack.c.bf16 %v3040_v7, %v3039_v3  ;;  %5504 = vmatprep.subr.bf16.mxu0 %v7675_v0 }
 0x67c   : > { %5489 = vmatmul.mubr.msk.bf16.vlgmr.msra.gmra.mxu1 %vm911_vm2, %v3048_v54 }
 0x67d   : > { %5499 = vmatpush3.bf16.xpose.msra.mxu1 %v3486_v26  ;;  %5500 = vmatprep.mubr.msk.bf16.mxu1 %vm6044_vm0, %v7675_v0 }
 0x67e   : > { %5510 = vmatprep.subr.bf16.mxu1 %v7675_v0 }
 0x680   : > { %5495 = vmatmul.mubr.msk.bf16.vlgmr.msra.gmra.mxu0 %vm499_vm1, %v5769_v12 }
 0x681   : > { %5505 = vmatpush3.bf16.xpose.msra.mxu0 %v3538_v1  ;;  %5506 = vmatprep.mubr.msk.bf16.mxu0 %vm6044_vm0, %v7675_v0 }
 0x682   : > { %5516 = vmatprep.subr.bf16.mxu0 %v7675_v0 }
 0x684   : > { %5501 = vmatmul.mubr.msk.bf16.vlgmr.msra.gmra.mxu1 %vm499_vm1, %v5770_v61 }
 0x685   : > { %5511 = vmatpush3.bf16.xpose.msra.mxu1 %v3590_v16  ;;  %5512 = vmatprep.mubr.msk.bf16.mxu1 %vm6044_vm0, %v7675_v0 }
 0x686   : > { %5522 = vmatprep.subr.bf16.mxu1 %v7675_v0 }
 0x688   : > { %5507 = vmatmul.mubr.msk.bf16.vlgmr.msra.gmra.mxu0 %vm499_vm1, %v5771_v60 }
 0x689   : > { %5517 = vmatpush3.bf16.xpose.msra.mxu0 %v3642_v29  ;;  %5518 = vmatprep.mubr.msk.bf16.mxu0 %vm6044_vm0, %v7675_v0 }
 0x68a   : > { %5528 = vmatprep.subr.bf16.mxu0 %v7675_v0 }
 0x68c   : > { %5513 = vmatmul.mubr.msk.bf16.vlgmr.msra.gmra.mxu1 %vm499_vm1, %v5772_v63 }
 0x68d   : > { %5523 = vmatpush3.bf16.xpose.msra.mxu1 %v3694_v31  ;;  %5524 = vmatprep.mubr.msk.bf16.mxu1 %vm6044_vm0, %v7675_v0 }
 0x68e   : > { %5534 = vmatprep.subr.bf16.mxu1 %v7675_v0 }
 0x690   : > { %5519 = vmatmul.mubr.msk.bf16.vlgmr.msra.gmra.mxu0 %vm499_vm1, %v5773_v45 }
 0x691   : > { %5529 = vmatpush3.bf16.xpose.msra.mxu0 %v3746_v46  ;;  %5530 = vmatprep.mubr.msk.bf16.mxu0 %vm6044_vm0, %v7675_v0 }
 0x692   : > { %5540 = vmatprep.subr.bf16.mxu0 %v7675_v0 }
 0x694   : > { %5525 = vmatmul.mubr.msk.bf16.vlgmr.msra.gmra.mxu1 %vm499_vm1, %v5774_v43 }
 0x695   : > { %5535 = vmatpush3.bf16.xpose.msra.mxu1 %v3798_v9  ;;  %5536 = vmatprep.mubr.msk.bf16.mxu1 %vm6044_vm0, %v7675_v0 }
 0x696   : > { %5546 = vmatprep.subr.bf16.mxu1 %v7675_v0 }
 0x698   : > { %5531 = vmatmul.mubr.msk.bf16.vlgmr.msra.gmra.mxu0 %vm499_vm1, %v5775_v14 }
 0x699   : > { %5542 = vmatprep.mubr.msk.bf16.mxu0 %vm6044_vm0, %v7675_v0 }
 0x69c   : > { %5537 = vmatmul.mubr.msk.bf16.vlgmr.msra.gmra.mxu1 %vm499_vm1, %v5776_v6 }
 0x69d   : > { %5548 = vmatprep.mubr.msk.bf16.mxu1 %vm6044_vm0, %v7675_v0 }
 0x720   : > { %v7133_v56 = vpop.f32.mrf.mxu0 }
 0x722   : > { %v5448_v48 = vpop.f32.mrf.mxu0 }
 0x724   : > { %v7135_v18 = vpop.f32.mrf.mxu0  ;;  %v7139_v58 = vpop.f32.mrf.mxu1 }
 0x726   : > { %v5449_v40 = vpop.f32.mrf.mxu0  ;;  %v5454_v3 = vpop.f32.mrf.mxu1 }
 0x728   : > { %v7141_v7 = vpop.f32.mrf.mxu1  ;;  %v7143_v50 = vpop.f32.mrf.mxu0 }
 0x72a   : > { %v5455_v26 = vpop.f32.mrf.mxu1  ;;  %v5460_v52 = vpop.f32.mrf.mxu0 }
 0x72c   : > { %v7147_v12 = vpop.f32.mrf.mxu0  ;;  %v7149_v1 = vpop.f32.mrf.mxu1 }
 0x72e   : > { %v5461_v61 = vpop.f32.mrf.mxu0  ;;  %v5466_v16 = vpop.f32.mrf.mxu1 }
 0x72f   : > { %v7180_v16 = vld [vmem:[%s7670_s3 + $0x30] sm:$0xff] }
 0x730   : > { %v7153_v42 = vpop.f32.mrf.mxu1  ;;  %v7155_v60 = vpop.f32.mrf.mxu0 }
 0x732   : > { %v5467_v33 = vpop.f32.mrf.mxu1  ;;  %v5472_v63 = vpop.f32.mrf.mxu0 }
 0x734   : > { %v7159_v31 = vpop.f32.mrf.mxu0  ;;  %v7161_v15 = vpop.f32.mrf.mxu1 }
 0x736   : > { %v5473_v46 = vpop.f32.mrf.mxu0  ;;  %v5478_v34 = vpop.f32.mrf.mxu1 }
 0x738   : > { %v7165_v43 = vpop.f32.mrf.mxu1  ;;  %v7167_v9 = vpop.f32.mrf.mxu0 }
 0x73a   : > { %v5479_v6 = vpop.f32.mrf.mxu1  ;;  %v5484_v48 = vpop.f32.mrf.mxu0 }
 0x73c   : > { %v7171_v40 = vpop.f32.mrf.mxu0  ;;  %v7173_v3 = vpop.f32.mrf.mxu1 }
 0x73e   : > { %v5485_v52 = vpop.f32.mrf.mxu0  ;;  %v5490_v61 = vpop.f32.mrf.mxu1 }
 0x73f   : > { %v7192_v52 = vld [vmem:[%s7670_s3 + $0x38] sm:$0xff] }
 0x740   : > { %v7182_v33 = vpop.f32.mrf.mxu1  ;;  %v3470_v63 = vpop.f32.mrf.mxu0 }
 0x741   : > { %v7187_v34 = vadd.f32 %v3470_v63, %v7180_v16 }
 0x742   : > { %v5491_v6 = vpop.f32.mrf.mxu1  ;;  %v5496_v48 = vpop.f32.mrf.mxu0 }
 0x743   : > { %v3841_v61 = vsel %vm911_vm2, %v7187_v34, -inf }
 0x744   : > { %v3522_v26 = vpop.f32.mrf.mxu1  ;;  %3842 = vmax.xlane.f32.xlu0 %v3841_v61  ;;  %v3473_v29 = vpop.f32.mrf.mxu0 }
 0x745   : > { %v7197_v38 = vadd.f32 %v3522_v26, %v7180_v16  ;;  %v7200_v46 = vadd.f32 %v3473_v29, %v7192_v52 }
 0x746   : > { %v5497_v63 = vpop.f32.mrf.mxu0  ;;  %v5502_v6 = vpop.f32.mrf.mxu1 }
 0x747   : > { %v3847_v48 = vsel %vm911_vm2, %v7197_v38, -inf  ;;  %v3844_v14 = vsel %vm911_vm2, %v7200_v46, -inf }
 0x748   : > { %v3525_v45 = vpop.f32.mrf.mxu1  ;;  %3848 = vmax.xlane.f32.xlu0 %v3847_v48  ;;  %3845 = vmax.xlane.f32.xlu1 %v3844_v14  ;;  %v3574_v54 = vpop.f32.mrf.mxu0 }
 0x749   : > { %v7207_v61 = vadd.f32 %v3525_v45, %v7192_v52  ;;  %v7210_v26 = vadd.f32 %v3574_v54, %v7180_v16 }
 0x74a   : > { %v5503_v29 = vpop.f32.mrf.mxu1  ;;  %v5508_v53 = vpop.f32.mrf.mxu0 }
 0x74b   : > { %v3850_v63 = vsel %vm911_vm2, %v7207_v61, -inf  ;;  %v3853_v6 = vsel %vm911_vm2, %v7210_v26, -inf }
 0x74c   : > { %v3626_v0 = vpop.f32.mrf.mxu1  ;;  %3851 = vmax.xlane.f32.xlu1 %v3850_v63  ;;  %3854 = vmax.xlane.f32.xlu0 %v3853_v6  ;;  %v3577_v48 = vpop.f32.mrf.mxu0 }
 0x74d   : > { %v7217_v14 = vadd.f32 %v3626_v0, %v7180_v16  ;;  %v7220_v45 = vadd.f32 %v3577_v48, %v7192_v52 }
 0x74e   : > { %v5509_v54 = vpop.f32.mrf.mxu0  ;;  %v5514_v36 = vpop.f32.mrf.mxu1 }
 0x74f   : > { %v3859_v53 = vsel %vm911_vm2, %v7217_v14, -inf  ;;  %v3856_v29 = vsel %vm911_vm2, %v7220_v45, -inf }
 0x750   : > { %v3629_v55 = vpop.f32.mrf.mxu1  ;;  %3860 = vmax.xlane.f32.xlu0 %v3859_v53  ;;  %3857 = vmax.xlane.f32.xlu1 %v3856_v29  ;;  %v3678_v63 = vpop.f32.mrf.mxu0 }
 0x751   : > { %v7227_v6 = vadd.f32 %v3629_v55, %v7192_v52  ;;  %v7230_v0 = vadd.f32 %v3678_v63, %v7180_v16 }
 0x752   : > { %v5515_v48 = vpop.f32.mrf.mxu1  ;;  %v5520_v49 = vpop.f32.mrf.mxu0 }
 0x753   : > { %v3862_v36 = vsel %vm911_vm2, %v7227_v6, -inf  ;;  %v3865_v54 = vsel %vm911_vm2, %v7230_v0, -inf }
 0x754   : > { %v3730_v30 = vpop.f32.mrf.mxu1  ;;  %3863 = vmax.xlane.f32.xlu1 %v3862_v36  ;;  %3866 = vmax.xlane.f32.xlu0 %v3865_v54  ;;  %v3681_v53 = vpop.f32.mrf.mxu0 }
 0x755   : > { %v7237_v29 = vadd.f32 %v3730_v30, %v7180_v16  ;;  %v7240_v55 = vadd.f32 %v3681_v53, %v7192_v52 }
 0x756   : > { %v5521_v63 = vpop.f32.mrf.mxu0  ;;  %v5526_v21 = vpop.f32.mrf.mxu1 }
 0x757   : > { %v3871_v49 = vsel %vm911_vm2, %v7237_v29, -inf  ;;  %v3868_v48 = vsel %vm911_vm2, %v7240_v55, -inf }
 0x758   : > { %v3733_v28 = vpop.f32.mrf.mxu1  ;;  %3872 = vmax.xlane.f32.xlu0 %v3871_v49  ;;  %3869 = vmax.xlane.f32.xlu1 %v3868_v48  ;;  %v3782_v36 = vpop.f32.mrf.mxu0 }
 0x759   : > { %v7247_v54 = vadd.f32 %v3733_v28, %v7192_v52  ;;  %v7250_v30 = vadd.f32 %v3782_v36, %v7180_v16 }
 0x75a   : > { %v5527_v53 = vpop.f32.mrf.mxu1  ;;  %v5532_v41 = vpop.f32.mrf.mxu0 }
 0x75b   : > { %v3874_v21 = vsel %vm911_vm2, %v7247_v54, -inf  ;;  %v3877_v63 = vsel %vm911_vm2, %v7250_v30, -inf }
 0x75c   : > { %v3834_v19 = vpop.f32.mrf.mxu1  ;;  %3875 = vmax.xlane.f32.xlu1 %v3874_v21  ;;  %3878 = vmax.xlane.f32.xlu0 %v3877_v63  ;;  %v3785_v49 = vpop.f32.mrf.mxu0 }
 0x75d   : > { %v7257_v48 = vadd.f32 %v3834_v19, %v7180_v16  ;;  %v7260_v28 = vadd.f32 %v3785_v49, %v7192_v52 }
 0x75e   : > { %v5533_v36 = vpop.f32.mrf.mxu0  ;;  %v5538_v20 = vpop.f32.mrf.mxu1 }
 0x75f   : > { %v3883_v41 = vsel %vm911_vm2, %v7257_v48, -inf  ;;  %v3880_v53 = vsel %vm911_vm2, %v7260_v28, -inf }
 0x760   : > { %v3837_v39 = vpop.f32.mrf.mxu1  ;;  %3884 = vmax.xlane.f32.xlu0 %v3883_v41  ;;  %3881 = vmax.xlane.f32.xlu1 %v3880_v53 }
 0x761   : > { %v7267_v21 = vadd.f32 %v3837_v39, %v7192_v52 }
 0x762   : > { %v5539_v63 = vpop.f32.mrf.mxu1 }
 0x763   : > { %v3886_v19 = vsel %vm911_vm2, %v7267_v21, -inf }
 0x764   : > { %3887 = vmax.xlane.f32.xlu1 %v3886_v19 }
 0x7cd   : > { %v3843_v16 = vpop.xlane.xlu0 %3842 }
 0x7ce   : > { %v3889_v20 = vsub.f32 %v7187_v34, %v3843_v16 }
 0x7d0   : > { %v3905_v49 = vmul.f32 1.442695, %v3889_v20 }
 0x7d1   : > { %v3849_v36 = vpop.xlane.xlu0 %3848  ;;  %v3846_v13 = vpop.xlane.xlu1 %3845 }
 0x7d2   : > { %5971 = vpow2.f32 %v3905_v49  ;;  %v3891_v10 = vsub.f32 %v7197_v38, %v3849_v36  ;;  %v3890_v41 = vsub.f32 %v7200_v46, %v3846_v13 }
 0x7d4   : > { %v3909_v53 = vmul.f32 1.442695, %v3891_v10  ;;  %v3907_v8 = vmul.f32 1.442695, %v3890_v41 }
 0x7d5   : > { %v3852_v39 = vpop.xlane.xlu1 %3851  ;;  %v3855_v52 = vpop.xlane.xlu0 %3854 }
 0x7d6   : > { %5973 = vpow2.f32 %v3909_v53  ;;  %v3892_v63 = vsub.f32 %v7207_v61, %v3852_v39  ;;  %v3893_v19 = vsub.f32 %v7210_v26, %v3855_v52 }
 0x7d7   : > { %5975 = vpow2.f32 %v3907_v8 }
 0x7d8   : > { %v3911_v27 = vmul.f32 1.442695, %v3892_v63  ;;  %v3913_v34 = vmul.f32 1.442695, %v3893_v19 }
 0x7d9   : > { %v3861_v16 = vpop.xlane.xlu0 %3860  ;;  %v3858_v20 = vpop.xlane.xlu1 %3857 }
 0x7da   : > { %5977 = vpow2.f32 %v3911_v27  ;;  %v3895_v49 = vsub.f32 %v7217_v14, %v3861_v16  ;;  %v3894_v38 = vsub.f32 %v7220_v45, %v3858_v20 }
 0x7db   : > { %5979 = vpow2.f32 %v3913_v34 }
 0x7dc   : > { %v3917_v13 = vmul.f32 1.442695, %v3895_v49  ;;  %v3915_v10 = vmul.f32 1.442695, %v3894_v38 }
 0x7dd   : > { %v3864_v46 = vpop.xlane.xlu1 %3863  ;;  %v3867_v36 = vpop.xlane.xlu0 %3866 }
 0x7de   : > { %5981 = vpow2.f32 %v3917_v13  ;;  %v3896_v61 = vsub.f32 %v7227_v6, %v3864_v46  ;;  %v3897_v26 = vsub.f32 %v7230_v0, %v3867_v36 }
 0x7df   : > { %v7280_v8 = vpop.eup %5971  ;;  %5983 = vpow2.f32 %v3915_v10 }
 0x7e0   : > { %v3919_v41 = vmul.f32 1.442695, %v3896_v61  ;;  %v3921_v53 = vmul.f32 1.442695, %v3897_v26  ;;  %v3937_v27 = vsel %vm911_vm2, %v7280_v8, 0.0 }
 0x7e1   : > { %v3873_v14 = vpop.xlane.xlu0 %3872  ;;  %v3870_v45 = vpop.xlane.xlu1 %3869  ;;  %3938 = vadd.xlane.f32.xlu0 %v3937_v27 }
 0x7e2   : > { %5985 = vpow2.f32 %v3919_v41  ;;  %v3899_v39 = vsub.f32 %v7237_v29, %v3873_v14  ;;  %v3898_v52 = vsub.f32 %v7240_v55, %v3870_v45 }
 0x7e3   : > { %v7286_v63 = vpop.eup %5973  ;;  %5987 = vpow2.f32 %v3921_v53 }
 0x7e4   : > { %v7288_v6 = vpop.eup %5975  ;;  %v3925_v0 = vmul.f32 1.442695, %v3899_v39  ;;  %v3923_v19 = vmul.f32 1.442695, %v3898_v52  ;;  %v3943_v34 = vsel %vm911_vm2, %v7286_v63, 0.0 }
 0x7e5   : > { %v3876_v16 = vpop.xlane.xlu1 %3875  ;;  %3944 = vadd.xlane.f32.xlu0 %v3943_v34  ;;  %v3879_v20 = vpop.xlane.xlu0 %3878  ;;  %v3940_v49 = vsel %vm911_vm2, %v7288_v6, 0.0 }
 0x7e6   : > { %5989 = vpow2.f32 %v3925_v0  ;;  %v3900_v29 = vsub.f32 %v7247_v54, %v3876_v16  ;;  %v3901_v55 = vsub.f32 %v7250_v30, %v3879_v20  ;;  %3941 = vadd.xlane.f32.xlu1 %v3940_v49 }
 0x7e7   : > { %v7296_v38 = vpop.eup %5977  ;;  %5991 = vpow2.f32 %v3923_v19 }
 0x7e8   : > { %v7298_v13 = vpop.eup %5979  ;;  %v3927_v10 = vmul.f32 1.442695, %v3900_v29  ;;  %v3929_v46 = vmul.f32 1.442695, %v3901_v55  ;;  %v3946_v36 = vsel %vm911_vm2, %v7296_v38, 0.0 }
 0x7e9   : > { %v3949_v61 = vsel %vm911_vm2, %v7298_v13, 0.0  ;;  %v3885_v26 = vpop.xlane.xlu0 %3884  ;;  %v3882_v41 = vpop.xlane.xlu1 %3881 }
 0x7ea   : > { %5993 = vpow2.f32 %v3927_v10  ;;  %3950 = vadd.xlane.f32.xlu0 %v3949_v61  ;;  %v3903_v54 = vsub.f32 %v7257_v48, %v3885_v26  ;;  %3947 = vadd.xlane.f32.xlu1 %v3946_v36  ;;  %v3902_v30 = vsub.f32 %v7260_v28, %v3882_v41 }
 0x7eb   : > { %v7306_v53 = vpop.eup %5981  ;;  %5995 = vpow2.f32 %v3929_v46 }
 0x7ec   : > { %v7308_v27 = vpop.eup %5983  ;;  %v3933_v14 = vmul.f32 1.442695, %v3903_v54  ;;  %v3931_v45 = vmul.f32 1.442695, %v3902_v30  ;;  %v3955_v39 = vsel %vm911_vm2, %v7306_v53, 0.0 }
 0x7ed   : > { %v3952_v52 = vsel %vm911_vm2, %v7308_v27, 0.0  ;;  %v3888_v0 = vpop.xlane.xlu1 %3887 }
 0x7ee   : > { %5997 = vpow2.f32 %v3933_v14  ;;  %3956 = vadd.xlane.f32.xlu0 %v3955_v39  ;;  %3953 = vadd.xlane.f32.xlu1 %v3952_v52  ;;  %v3904_v48 = vsub.f32 %v7267_v21, %v3888_v0  ;;  %v457_v14 = vld [vmem:[%s6331_s18 + $0x6] sm:$0x3]  ;;  %v7691_v0 = vmov 0.0  }
 0x7ef   : > { %v7315_v28 = vpop.eup %5985  ;;  %5999 = vpow2.f32 %v3931_v45  ;;  %v4029_v39 = vsel %vm1099_vm3, %v457_v14, 0 }
 0x7f0   : > { %v7317_v19 = vpop.eup %5987  ;;  %v3935_v34 = vmul.f32 1.442695, %v3904_v48  ;;  %v3958_v16 = vsel %vm911_vm2, %v7315_v28, 0.0  ;;  %5541 = vmatpush3.bf16.msra.mxu0 %v4029_v39  ;;  %v461_v48 = vld [vmem:[%s6331_s18 + $0xe] sm:$0x3] }
 0x7f1   : > { %v3961_v20 = vsel %vm911_vm2, %v7317_v19, 0.0  ;;  %5552 = vmatprep.subr.bf16.mxu0 %v7691_v0 }
 0x7f2   : > { %6001 = vpow2.f32 %v3935_v34  ;;  %3962 = vadd.xlane.f32.xlu0 %v3961_v20  ;;  %3959 = vadd.xlane.f32.xlu1 %v3958_v16  ;;  %v4076_v34 = vsel %vm1099_vm3, %v461_v48, 0  ;;  %v7692_v16 = vpack.i.bf16 %v6821_v24, %v6817_v4  ;;  %v7693_v20 = vpack.i.bf16 %v6797_v59, %v6795_v25  ;;  %v473_v48 = vld [vmem:[%s6331_s18 + $0x26] sm:$0x3] }
 0x7f3   : > { %v7323_v49 = vpop.eup %5989  ;;  %5547 = vmatpush3.bf16.msra.mxu1 %v4076_v34  ;;  %v7697_v4 = vpack.i.bf16 %v7141_v7, %v7139_v58  ;;  %v7698_v25 = vpack.i.bf16 %v7159_v31, %v7155_v60  ;;  %v7699_v59 = vpack.i.bf16 %v6809_v2, %v6805_v35  ;;  %v7702_v24 = vpack.i.bf16 %v6833_v11, %v6829_v17 }
 0x7f4   : > { %v7325_v29 = vpop.eup %5991  ;;  %v3967_v21 = vsel %vm911_vm2, %v7323_v49, 0.0  ;;  %5558 = vmatprep.subr.bf16.mxu1 %v7691_v0  ;;  %v7704_v35 = vpack.i.bf16 %v6844_v44, %v6835_v5  ;;  %v7705_v2 = vpack.i.bf16 %v7153_v42, %v7149_v1  ;;  %v465_v1 = vld [vmem:[%s6331_s18 + $0x16] sm:$0x3] }
 0x7f5   : > { %v3964_v55 = vsel %vm911_vm2, %v7325_v29, 0.0 }
 0x7f6   : > { %3968 = vadd.xlane.f32.xlu0 %v3967_v21  ;;  %3965 = vadd.xlane.f32.xlu1 %v3964_v55  ;;  %v7694_v21 = vpack.i.bf16 %v6803_v51, %v6801_v62  ;;  %v7695_v55 = vpack.i.bf16 %v7135_v18, %v7133_v56  ;;  %v7700_v62 = vpack.i.bf16 %v7165_v43, %v7161_v15 }
 0x7f7   : > { %v7331_v10 = vpop.eup %5993  ;;  %v7701_v51 = vpack.i.bf16 %v6815_v32, %v6811_v57  ;;  %v7706_v57 = vpack.i.bf16 %v7171_v40, %v7167_v9  ;;  %v7707_v32 = vpack.i.bf16 %v7182_v33, %v7173_v3  ;;  %v4123_v40 = vsel %vm1099_vm3, %v465_v1, 0  ;;  %v469_v33 = vld [vmem:[%s6331_s18 + $0x1e] sm:$0x3] }
 0x7f8   : > { %v7333_v46 = vpop.eup %5995  ;;  %v3970_v36 = vsel %vm911_vm2, %v7331_v10, 0.0  ;;  %v4170_v39 = vsel %vm1099_vm3, %v469_v33, 0 }
 0x7f9   : > { %v3973_v61 = vsel %vm911_vm2, %v7333_v46, 0.0 }
 0x7fa   : > { %3974 = vadd.xlane.f32.xlu0 %v3973_v61  ;;  %3971 = vadd.xlane.f32.xlu1 %v3970_v36  ;;  %v7696_v36 = vpack.i.bf16 %v6827_v37, %v6823_v47  ;;  %v7703_v47 = vpack.i.bf16 %v7147_v12, %v7143_v50 }
 0x7fb   : > { %v7339_v26 = vpop.eup %5997 }
 0x7fc   : > { %v7341_v41 = vpop.eup %5999  ;;  %v3979_v54 = vsel %vm911_vm2, %v7339_v26, 0.0 }
 0x7fd   : > { %v3976_v30 = vsel %vm911_vm2, %v7341_v41, 0.0 }
 0x7fe   : > { %3980 = vadd.xlane.f32.xlu0 %v3979_v54  ;;  %3977 = vadd.xlane.f32.xlu1 %v3976_v30 }
 0x7ff   : > { %v7348_v45 = vpop.eup %6001 }
 0x800   : > { %v3982_v52 = vsel %vm911_vm2, %v7348_v45, 0.0 }
 0x802   : > { %3983 = vadd.xlane.f32.xlu1 %v3982_v52 }
 0x813   : > { %5631 = vrot.lane.b32.xlu1 %v7692_v16, %s6045_s10 }
 0x814   : > { %5626 = vrot.lane.b32.xlu0 %v7693_v20, %s6045_s10 }
 0x817   : > { %5636 = vrot.lane.b32.xlu1 %v7694_v21, %s6045_s10 }
 0x818   : > { %5646 = vrot.lane.b32.xlu0 %v7695_v55, %s6046_s11  ;;  %v4217_v55 = vsel %vm1099_vm3, %v473_v48, 0 }
 0x81b   : > { %5641 = vrot.lane.b32.xlu1 %v7696_v36, %s6045_s10 }
 0x81c   : > { %5656 = vrot.lane.b32.xlu0 %v7697_v4, %s6046_s11 }
 0x81f   : > { %5651 = vrot.lane.b32.xlu1 %v7698_v25, %s6046_s11 }
 0x820   : > { %5666 = vrot.lane.b32.xlu0 %v7699_v59, %s6045_s10 }
 0x823   : > { %5661 = vrot.lane.b32.xlu1 %v7700_v62, %s6046_s11 }
 0x824   : > { %5676 = vrot.lane.b32.xlu0 %v7701_v51, %s6045_s10 }
 0x827   : > { %5671 = vrot.lane.b32.xlu1 %v7702_v24, %s6045_s10 }
 0x828   : > { %5686 = vrot.lane.b32.xlu0 %v7703_v47, %s6046_s11  ;;  %v481_v47 = vld [vmem:[%s6331_s18 + $0x36] sm:$0x3] }
 0x82b   : > { %5681 = vrot.lane.b32.xlu1 %v7704_v35, %s6045_s10 }
 0x82c   : > { %5696 = vrot.lane.b32.xlu0 %v7705_v2, %s6046_s11 }
 0x82f   : > { %5691 = vrot.lane.b32.xlu1 %v7706_v57, %s6046_s11  ;;  %v4311_v57 = vsel %vm1099_vm3, %v481_v47, 0 }
 0x833   : > { %5701 = vrot.lane.b32.xlu1 %v7707_v32, %s6046_s11 }
 0x86a   : > { %v3939_v37 = vpop.xlane.xlu0 %3938 }
 0x86b   : > { %6003 = vrcp.f32 %v3939_v37  ;;  %v485_v37 = vld [vmem:[%s6331_s18 + $0x3e] sm:$0x3] }
 0x86e   : > { %v3945_v17 = vpop.xlane.xlu0 %3944 }
 0x86f   : > { %v3942_v11 = vpop.xlane.xlu1 %3941 }
 0x870   : > { %6005 = vrcp.f32 %v3942_v11 }
 0x871   : > { %6007 = vrcp.f32 %v3945_v17 }
 0x873   : > { %v3951_v5 = vpop.xlane.xlu0 %3950  ;;  %v3948_v44 = vpop.xlane.xlu1 %3947 }
 0x874   : > { %6009 = vrcp.f32 %v3948_v44 }
 0x875   : > { %6011 = vrcp.f32 %v3951_v5  ;;  %v4358_v5 = vsel %vm1099_vm3, %v485_v37, 0 }
 0x877   : > { %v3957_v56 = vpop.xlane.xlu0 %3956  ;;  %v3954_v18 = vpop.xlane.xlu1 %3953 }
 0x878   : > { %6013 = vrcp.f32 %v3954_v18  ;;  %v6004_v58 = vpop.eup %6003 }
 0x879   : > { %6015 = vrcp.f32 %v3957_v56  ;;  %v4001_v42 = vmul.f32 %v6004_v58, %v7280_v8 }
 0x87b   : > { %v3963_v7 = vpop.xlane.xlu0 %3962  ;;  %v3960_v50 = vpop.xlane.xlu1 %3959 }
 0x87c   : > { %6017 = vrcp.f32 %v3960_v50 }
 0x87d   : > { %v6006_v12 = vpop.eup %6005  ;;  %6019 = vrcp.f32 %v3963_v7 }
 0x87e   : > { %v4002_v60 = vmul.f32 %v6006_v12, %v7288_v6  ;;  %v6008_v43 = vpop.eup %6007 }
 0x87f   : > { %v3969_v31 = vpop.xlane.xlu0 %3968  ;;  %v3966_v15 = vpop.xlane.xlu1 %3965  ;;  %v4003_v61 = vmul.f32 %v6008_v43, %v7286_v63 }
 0x880   : > { %v4017_v9 = vpack.c.bf16 %v4002_v60, %v4001_v42  ;;  %6021 = vrcp.f32 %v3966_v15 }
 0x881   : > { %v6010_v3 = vpop.eup %6009  ;;  %6023 = vrcp.f32 %v3969_v31 }
 0x882   : > { %5543 = vmatmul.mubr.msk.bf16.vlgmr.msra.gmra.mxu0 %vm911_vm2, %v4017_v9  ;;  %v4004_v54 = vmul.f32 %v6010_v3, %v7296_v38  ;;  %v6012_v30 = vpop.eup %6011 }
 0x883   : > { %v3975_v8 = vpop.xlane.xlu0 %3974  ;;  %5553 = vmatpush3.bf16.msra.mxu0 %v4123_v40  ;;  %v3972_v6 = vpop.xlane.xlu1 %3971  ;;  %5554 = vmatprep.mubr.msk.bf16.mxu0 %vm6044_vm0, %v7691_v0  ;;  %v4005_v63 = vmul.f32 %v6012_v30, %v7298_v13 }
 0x884   : > { %5564 = vmatprep.subr.bf16.mxu0 %v7691_v0  ;;  %v4018_v14 = vpack.c.bf16 %v4004_v54, %v4003_v61  ;;  %6025 = vrcp.f32 %v3972_v6 }
 0x885   : > { %v6014_v52 = vpop.eup %6013  ;;  %6027 = vrcp.f32 %v3975_v8 }
 0x886   : > { %v4006_v38 = vmul.f32 %v6014_v52, %v7308_v27  ;;  %5549 = vmatmul.mubr.msk.bf16.vlgmr.msra.gmra.mxu1 %vm911_vm2, %v4018_v14  ;;  %v6016_v20 = vpop.eup %6015  ;;  %v477_v27 = vld [vmem:[%s6331_s18 + $0x2e] sm:$0x3]  ;;  %s4951_s18 = sshll.u32 %s7725_s17, 3 }
 0x887   : > { %v3981_v34 = vpop.xlane.xlu0 %3980  ;;  %v3978_v16 = vpop.xlane.xlu1 %3977  ;;  %5559 = vmatpush3.bf16.msra.mxu1 %v4170_v39  ;;  %5560 = vmatprep.mubr.msk.bf16.mxu1 %vm6044_vm0, %v7691_v0  ;;  %v4007_v36 = vmul.f32 %v6016_v20, %v7306_v53  ;;  %v4264_v51 = vsel %vm1099_vm3, %v477_v27, 0  ;;  %s7588_s21 = scalar_lea.vmem %s7673_s6, %s4951_s18  ;;  %s7600_s27 = scalar_lea.vmem %s7674_s7, %s4951_s18 }
 0x888   : > { %v4019_v21 = vpack.c.bf16 %v4006_v38, %v4005_v63  ;;  %6029 = vrcp.f32 %v3978_v16  ;;  %5570 = vmatprep.subr.bf16.mxu1 %v7691_v0 }
 0x889   : > { %v6018_v13 = vpop.eup %6017  ;;  %6031 = vrcp.f32 %v3981_v34 }
 0x88a   : > { %v4008_v4 = vmul.f32 %v6018_v13, %v7315_v28  ;;  %5555 = vmatmul.mubr.msk.bf16.vlgmr.msra.gmra.mxu0 %vm911_vm2, %v4019_v21  ;;  %v6020_v59 = vpop.eup %6019 }
 0x88b   : > { %v3984_v25 = vpop.xlane.xlu1 %3983  ;;  %5565 = vmatpush3.bf16.msra.mxu0 %v4217_v55  ;;  %5566 = vmatprep.mubr.msk.bf16.mxu0 %vm6044_vm0, %v7691_v0  ;;  %v4009_v53 = vmul.f32 %v6020_v59, %v7317_v19 }
 0x88c   : > { %6033 = vrcp.f32 %v3984_v25  ;;  %v4020_v62 = vpack.c.bf16 %v4008_v4, %v4007_v36  ;;  %5576 = vmatprep.subr.bf16.mxu0 %v7691_v0 }
 0x88d   : > { %v6022_v24 = vpop.eup %6021 }
 0x88e   : > { %v4010_v28 = vmul.f32 %v6022_v24, %v7325_v29  ;;  %5561 = vmatmul.mubr.msk.bf16.vlgmr.msra.gmra.mxu1 %vm911_vm2, %v4020_v62  ;;  %v6024_v35 = vpop.eup %6023 }
 0x88f   : > { %5571 = vmatpush3.bf16.msra.mxu1 %v4264_v51  ;;  %5572 = vmatprep.mubr.msk.bf16.mxu1 %vm6044_vm0, %v7691_v0  ;;  %v4011_v17 = vmul.f32 %v6024_v35, %v7323_v49  ;;  %v7471_v35 = vpop.permute.xlu1 %5631 }
 0x890   : > { %v4021_v2 = vpack.c.bf16 %v4010_v28, %v4009_v53  ;;  %5582 = vmatprep.subr.bf16.mxu1 %v7691_v0  ;;  %v5627_v28 = vpop.permute.xlu0 %5626 }
 0x891   : > { %v6026_v32 = vpop.eup %6025 }
 0x892   : > { %v4012_v19 = vmul.f32 %v6026_v32, %v7331_v10  ;;  %5567 = vmatmul.mubr.msk.bf16.vlgmr.msra.gmra.mxu0 %vm911_vm2, %v4021_v2  ;;  %v6028_v29 = vpop.eup %6027 }
 0x893   : > { %5577 = vmatpush3.bf16.msra.mxu0 %v4311_v57  ;;  %5578 = vmatprep.mubr.msk.bf16.mxu0 %vm6044_vm0, %v7691_v0  ;;  %v4013_v18 = vmul.f32 %v6028_v29, %v7333_v46  ;;  %v5777_v46 = vld [vmem:[%s7671_s4 + $0x8] sm:$0xff]   ;;  %v5637_v57 = vpop.permute.xlu1 %5636 }
 0x894   : > { %v4022_v11 = vpack.c.bf16 %v4012_v19, %v4011_v17  ;;  %5588 = vmatprep.subr.bf16.mxu0 %v5777_v46  ;;  %v5647_v2 = vpop.permute.xlu0 %5646 }
 0x895   : > { %v6030_v44 = vpop.eup %6029 }
 0x896   : > { %v6032_v56 = vpop.eup %6031  ;;  %v4014_v58 = vmul.f32 %v6030_v44, %v7341_v41  ;;  %5573 = vmatmul.mubr.msk.bf16.vlgmr.msra.gmra.mxu1 %vm911_vm2, %v4022_v11  ;;  %v5778_v41 = vld [vmem:[%s7671_s4] sm:$0xff]  }
 0x897   : > { %5583 = vmatpush3.bf16.msra.mxu1 %v4358_v5  ;;  %5584 = vmatprep.mubr.msk.bf16.mxu1 %vm6044_vm0, %v7691_v0  ;;  %v4015_v7 = vmul.f32 %v6032_v56, %v7339_v26  ;;  %v7473_v37 = vpop.permute.xlu1 %5641 }
 0x898   : > { %v4023_v10 = vpack.c.bf16 %v4014_v58, %v4013_v18  ;;  %5608 = vmatprep.subr.bf16.mxu1 %v5777_v46  ;;  %v5657_v32 = vpop.permute.xlu0 %5656  ;;  %v5629_v18 = vunpack.i.h.bf16 %v5627_v28  ;;  %v5628_v58 = vunpack.i.l.bf16 %v5627_v28  ;;  %v5634_v28 = vunpack.i.h.bf16 %v7471_v35 }
 0x899   : > { %v6034_v49 = vpop.eup %6033 }
 0x89a   : > { %v4016_v50 = vmul.f32 %v6034_v49, %v7348_v45  ;;  %5579 = vmatmul.mubr.msk.bf16.vlgmr.msra.gmra.mxu0 %vm911_vm2, %v4023_v10  ;;  %v5649_v49 = vunpack.i.h.bf16 %v5647_v2  ;;  %v5648_v10 = vunpack.i.l.bf16 %v5647_v2  ;;  %v5633_v2 = vunpack.i.l.bf16 %v7471_v35 }
 0x89b   : > { %5589 = vmatpush3.bf16.msra.mxu0 %v5777_v46  ;;  %v7475_v19 = vpop.permute.xlu1 %5651 }
 0x89c   : > { %v4024_v12 = vpack.c.bf16 %v4016_v50, %v4015_v7  ;;  %5590 = vmatprep.subr.bf16.mxu0 %v5778_v41  ;;  %v5667_v17 = vpop.permute.xlu0 %5666  ;;  %v5639_v7 = vunpack.i.h.bf16 %v5637_v57  ;;  %v5638_v50 = vunpack.i.l.bf16 %v5637_v57 }
 0x89e   : > { %5585 = vmatmul.mubr.msk.bf16.vlgmr.msra.gmra.mxu1 %vm911_vm2, %v4024_v12 }
 0x89f   : > { %5610 = vmatpush3.bf16.msra.mxu1 %v5777_v46  ;;  %5591 = vmatpush3.bf16.msra.mxu0 %v5778_v41  ;;  %v7479_v11 = vpop.permute.xlu1 %5661  ;;  %v4594_v46 = vsel %vm499_vm1, %v6475_v23, %v5629_v18  ;;  %v7713_v18 = vld [vmem:[#allocation6_spill] sm:$0xff] }
 0x8a0   : > { %5609 = vmatprep.subr.bf16.mxu1 %v5778_v41  ;;  %v7477_v29 = vpop.permute.xlu0 %5676 }
 0x8a3   : > { %5611 = vmatpush3.bf16.msra.mxu1 %v5778_v41  ;;  %v7481_v44 = vpop.permute.xlu1 %5671  ;;  %v4593_v41 = vsel %vm499_vm1, %v6473_v22, %v5628_v58 }
 0x8a4   : > { %v5687_v5 = vpop.permute.xlu0 %5686 }
 0x8a8   : > { %v7483_v56 = vpop.permute.xlu0 %5696 }
 0x942   : > { %v4065_v26 = vpop.f32.mrf.mxu0 }
 0x944   : > { %v5544_v45 = vpop.f32.mrf.mxu0 }
 0x946   : > { %v4068_v0 = vpop.f32.mrf.mxu0  ;;  %v4112_v42 = vpop.f32.mrf.mxu1 }
 0x947   : > { %v5705_v1 = vpack.i.bf16 %v4068_v0, %v4065_v26  ;;  %v7489_v26 = vpop.permute.xlu1 %5681 }
 0x948   : > { %v5545_v60 = vpop.f32.mrf.mxu0  ;;  %v5550_v31 = vpop.f32.mrf.mxu1 }
 0x949   : > { %5706 = vrot.lane.b32.xlu0 %v5705_v1, %s6047_s16  ;;  %v4610_v1 = vsel %vm4609_vm4, %v4593_v41, %v5648_v10  ;;  %v5659_v60 = vunpack.i.h.bf16 %v5657_v32  ;;  %v5658_v31 = vunpack.i.l.bf16 %v5657_v32  ;;  %v5654_v10 = vunpack.i.h.bf16 %v7475_v19  ;;  %v7714_v41 = vld [vmem:[#allocation9_spill] sm:$0xff] }
 0x94a   : > { %v4115_v15 = vpop.f32.mrf.mxu1  ;;  %v4159_v43 = vpop.f32.mrf.mxu0 }
 0x94b   : > { %v5710_v9 = vpack.i.bf16 %v4115_v15, %v4112_v42  ;;  %v4611_v42 = vsel %vm4609_vm4, %v4594_v46, %v5649_v49 }
 0x94c   : > { %v5551_v40 = vpop.f32.mrf.mxu1  ;;  %v5556_v3 = vpop.f32.mrf.mxu0 }
 0x94d   : > { %5711 = vrot.lane.b32.xlu0 %v5710_v9, %s6047_s16  ;;  %v7708_v9 = vld [vmem:[#allocation3_spill] sm:$0xff]  ;;  %v7709_v40 = vld [vmem:[#allocation2_spill] sm:$0xff] }
 0x94e   : > { %v4162_v33 = vpop.f32.mrf.mxu0  ;;  %v4206_v61 = vpop.f32.mrf.mxu1  ;;  %v4596_v23 = vsel %vm499_vm1, %v7708_v9, %v5639_v7  ;;  %v4595_v22 = vsel %vm499_vm1, %v7709_v40, %v5638_v50  ;;  %v5653_v7 = vunpack.i.l.bf16 %v7475_v19  ;;  %v5644_v19 = vunpack.i.h.bf16 %v7473_v37 }
 0x94f   : > { %v5715_v54 = vpack.i.bf16 %v4162_v33, %v4159_v43  ;;  %v5669_v33 = vunpack.i.h.bf16 %v5667_v17  ;;  %v5664_v40 = vunpack.i.h.bf16 %v7479_v11 }
 0x950   : > { %v5557_v8 = vpop.f32.mrf.mxu0  ;;  %v5562_v6 = vpop.f32.mrf.mxu1 }
 0x951   : > { %5716 = vrot.lane.b32.xlu0 %v5715_v54, %s6047_s16 }
 0x952   : > { %v4209_v30 = vpop.f32.mrf.mxu1  ;;  %v4253_v14 = vpop.f32.mrf.mxu0 }
 0x953   : > { %v5735_v39 = vpack.i.bf16 %v4209_v30, %v4206_v61  ;;  %v5668_v61 = vunpack.i.l.bf16 %v5667_v17  ;;  %v5689_v30 = vunpack.i.h.bf16 %v5687_v5 }
 0x954   : > { %v5563_v52 = vpop.f32.mrf.mxu1  ;;  %v5568_v48 = vpop.f32.mrf.mxu0 }
 0x955   : > { %5736 = vrot.lane.b32.xlu0 %v5735_v39, %s6047_s16  ;;  %v7500_v39 = vpop.permute.xlu1 %5691  ;;  %v4612_v52 = vsel %vm4609_vm4, %v4595_v22, %v5658_v31  ;;  %v4613_v48 = vsel %vm4609_vm4, %v4596_v23, %v5659_v60  ;;  %v5643_v31 = vunpack.i.l.bf16 %v7473_v37  ;;  %v5663_v22 = vunpack.i.l.bf16 %v7479_v11 }
 0x956   : > { %v4256_v63 = vpop.f32.mrf.mxu0  ;;  %v4300_v38 = vpop.f32.mrf.mxu1  ;;  %v5673_v37 = vunpack.i.l.bf16 %v7481_v44 }
 0x957   : > { %v5720_v34 = vpack.i.bf16 %v4256_v63, %v4253_v14  ;;  %v5688_v14 = vunpack.i.l.bf16 %v5687_v5 }
 0x958   : > { %v5569_v16 = vpop.f32.mrf.mxu0  ;;  %v5574_v20 = vpop.f32.mrf.mxu1 }
 0x959   : > { %5721 = vrot.lane.b32.xlu1 %v5720_v34, %s6047_s16  ;;  %v7710_v34 = vld [vmem:[#allocation5_spill] sm:$0xff]  ;;  %v7711_v20 = vld [vmem:[#allocation4_spill] sm:$0xff]  ;;  %v7521_v57 = vpop.permute.xlu1 %5701 }
 0x95a   : > { %v4303_v21 = vpop.f32.mrf.mxu1  ;;  %v4347_v55 = vpop.f32.mrf.mxu0  ;;  %v4598_v16 = vsel %vm499_vm1, %v7710_v34, %v5669_v33  ;;  %v5694_v34 = vunpack.i.h.bf16 %v7500_v39 }
 0x95b   : > { %v5725_v13 = vpack.i.bf16 %v4303_v21, %v4300_v38  ;;  %v4597_v21 = vsel %vm499_vm1, %v7711_v20, %v5668_v61  ;;  %v5674_v61 = vunpack.i.h.bf16 %v7481_v44 }
 0x95c   : > { %v5575_v27 = vpop.f32.mrf.mxu1  ;;  %v5580_v36 = vpop.f32.mrf.mxu0 }
 0x95d   : > { %5726 = vrot.lane.b32.xlu1 %v5725_v13, %s6047_s16  ;;  %v5679_v27 = vunpack.i.h.bf16 %v7477_v29  ;;  %v5678_v36 = vunpack.i.l.bf16 %v7477_v29  ;;  %v7712_v29 = vld [vmem:[#allocation7_spill] sm:$0xff] }
 0x95e   : > { %v4350_v4 = vpop.f32.mrf.mxu0  ;;  %v4394_v25 = vpop.f32.mrf.mxu1 }
 0x95f   : > { %v5730_v59 = vpack.i.bf16 %v4350_v4, %v4347_v55  ;;  %v4600_v5 = vsel %vm499_vm1, %v7712_v29, %v5679_v27 }
 0x960   : > { %v5581_v62 = vpop.f32.mrf.mxu0  ;;  %v5586_v51 = vpop.f32.mrf.mxu1 }
 0x961   : > { %5731 = vrot.lane.b32.xlu1 %v5730_v59, %s6047_s16  ;;  %v4614_v59 = vsel %vm4609_vm4, %v4597_v21, %v5688_v14  ;;  %v4615_v62 = vsel %vm4609_vm4, %v4598_v16, %v5689_v30  ;;  %v5699_v51 = vunpack.i.h.bf16 %v7483_v56  ;;  %v7717_v14 = vld [vmem:[#allocation10_spill] sm:$0xff]  ;;  %v5693_v16 = vunpack.i.l.bf16 %v7500_v39  ;;  %v7718_v21 = vld [vmem:[#allocation13_spill] sm:$0xff] }
 0x962   : > { %v4397_v24 = vpop.f32.mrf.mxu1 }
 0x963   : > { %v5740_v47 = vpack.i.bf16 %v4397_v24, %v4394_v25  ;;  %v5698_v24 = vunpack.i.l.bf16 %v7483_v56  ;;  %v4599_v56 = vsel %vm499_vm1, %v7713_v18, %v5678_v36  ;;  %v4617_v35 = vsel %vm4609_vm4, %v4600_v5, %v5699_v51  ;;  %v7721_v5 = vld [vmem:[#allocation14_spill] sm:$0xff] }
 0x964   : > { %v5587_v53 = vpop.f32.mrf.mxu1 }
 0x965   : > { %5741 = vrot.lane.b32.xlu1 %v5740_v47, %s6047_s16  ;;  %v4616_v50 = vsel %vm4609_vm4, %v4599_v56, %v5698_v24 }
 0x9bb   : > { %v5707_v12 = vpop.permute.xlu0 %5706 }
 0x9bc   : > { %v5709_v45 = vunpack.i.h.bf16 %v5707_v12  ;;  %v5708_v0 = vunpack.i.l.bf16 %v5707_v12 }
 0x9be   : > { %v4628_v15 = vsel %vm4626_vm5, %v4611_v42, %v5709_v45  ;;  %v4627_v43 = vsel %vm4626_vm5, %v4610_v1, %v5708_v0  ;;  %v4602_v45 = vsel %vm499_vm1, %v7714_v41, %v5634_v28  ;;  %v7715_v0 = vld [vmem:[#allocation8_spill] sm:$0xff] }
 0x9bf   : > { %v4643_v3 = vpack.c.bf16 %v4628_v15, %v4627_v43  ;;  %v5712_v54 = vpop.permute.xlu0 %5711  ;;  %v4601_v1 = vsel %vm499_vm1, %v7715_v0, %v5633_v2  ;;  %v4619_v23 = vsel %vm4609_vm4, %v4602_v45, %v5654_v10  ;;  %v4796_v0 = vld [vmem:[%s7588_s21] sm:$0xff] }
 0x9c0   : > { %v5714_v8 = vunpack.i.h.bf16 %v5712_v54  ;;  %v5713_v6 = vunpack.i.l.bf16 %v5712_v54  ;;  %v4618_v9 = vsel %vm4609_vm4, %v4601_v1, %v5653_v7 }
 0x9c1   : > { %5592 = vmatprep.mubr.msk.bf16.mxu0 %vm4674_vm6, %v4643_v3 }
 0x9c2   : > { %v4630_v63 = vsel %vm4626_vm5, %v4613_v48, %v5714_v8  ;;  %v4629_v38 = vsel %vm4626_vm5, %v4612_v52, %v5713_v6  ;;  %v7716_v6 = vld [vmem:[#allocation11_spill] sm:$0xff]  ;;  %v4603_v52 = vsel %vm499_vm1, %v7717_v14, %v5643_v31  ;;  %v4803_v14 = vld [vmem:[%s7588_s21 + $0x38] sm:$0xff] }
 0x9c3   : > { %v4644_v55 = vpack.c.bf16 %v4630_v63, %v4629_v38  ;;  %v5717_v13 = vpop.permute.xlu0 %5716  ;;  %v4604_v30 = vsel %vm499_vm1, %v7716_v6, %v5644_v19  ;;  %v4620_v63 = vsel %vm4609_vm4, %v4603_v52, %v5663_v22  ;;  %v4799_v19 = vld [vmem:[%s7588_s21 + $0x18] sm:$0xff] }
 0x9c4   : > { %v5719_v4 = vunpack.i.h.bf16 %v5717_v13  ;;  %v5718_v25 = vunpack.i.l.bf16 %v5717_v13  ;;  %v4621_v38 = vsel %vm4609_vm4, %v4604_v30, %v5664_v40  ;;  %v7719_v13 = vld [vmem:[#allocation12_spill] sm:$0xff] }
 0x9c5   : > { %5593 = vmatmul.mubr.msk.bf16.vlgmr.msra.gmra.mxu0 %vm4674_vm6, %v4644_v55  ;;  %v4606_v55 = vsel %vm499_vm1, %v7718_v21, %v5674_v61  ;;  %v4605_v27 = vsel %vm499_vm1, %v7719_v13, %v5673_v37  ;;  %v4804_v13 = vld [vmem:[%s7588_s21 + $0x40] sm:$0xff] }
 0x9c6   : > { %v4632_v47 = vsel %vm4626_vm5, %v4615_v62, %v5719_v4  ;;  %v4631_v53 = vsel %vm4626_vm5, %v4614_v59, %v5718_v25  ;;  %v5684_v25 = vunpack.i.h.bf16 %v7489_v26  ;;  %v5683_v59 = vunpack.i.l.bf16 %v7489_v26  ;;  %v7720_v26 = vld [vmem:[#allocation15_spill] sm:$0xff] }
 0x9c7   : > { %v4645_v32 = vpack.c.bf16 %v4632_v47, %v4631_v53  ;;  %v5737_v17 = vpop.permute.xlu0 %5736  ;;  %v4622_v51 = vsel %vm4609_vm4, %v4605_v27, %v5693_v16  ;;  %v4623_v24 = vsel %vm4609_vm4, %v4606_v55, %v5694_v34  ;;  %v5704_v47 = vunpack.i.h.bf16 %v7521_v57 }
 0x9c8   : > { %v5739_v58 = vunpack.i.h.bf16 %v5737_v17  ;;  %v5738_v49 = vunpack.i.l.bf16 %v5737_v17  ;;  %v5703_v53 = vunpack.i.l.bf16 %v7521_v57  ;;  %v4608_v29 = vsel %vm499_vm1, %v7720_v26, %v5684_v25  ;;  %v4807_v25 = vld [vmem:[%s7588_s21 + $0x58] sm:$0xff]  ;;  %v4808_v26 = vld [vmem:[%s7588_s21 + $0x60] sm:$0xff] }
 0x9c9   : > { %5596 = vmatprep.mubr.msk.bf16.mxu0 %vm4674_vm6, %v4645_v32  ;;  %v4607_v18 = vsel %vm499_vm1, %v7721_v5, %v5683_v59  ;;  %v4625_v57 = vsel %vm4609_vm4, %v4608_v29, %v5704_v47 }
 0x9ca   : > { %v4634_v12 = vsel %vm4626_vm5, %v4617_v35, %v5739_v58  ;;  %v4633_v46 = vsel %vm4626_vm5, %v4616_v50, %v5738_v49  ;;  %v4624_v49 = vsel %vm4609_vm4, %v4607_v18, %v5703_v53  ;;  %v7593_v35 = vld [vmem:[%s7672_s5] ss:$0 sm:$0xff] }
 0x9cb   : > { %v4646_v42 = vpack.c.bf16 %v4634_v12, %v4633_v46  ;;  %v5722_v60 = vpop.permute.xlu1 %5721  ;;  %v4798_v46 = vld [vmem:[%s7588_s21 + $0x10] sm:$0xff] }
 0x9cc   : > { %v5724_v15 = vunpack.i.h.bf16 %v5722_v60  ;;  %v5723_v43 = vunpack.i.l.bf16 %v5722_v60 }
 0x9cd   : > { %5597 = vmatmul.mubr.msk.bf16.gmra.mxu0 %vm4674_vm6, %v4646_v42 }
 0x9ce   : > { %v4636_v3 = vsel %vm4626_vm5, %v4619_v23, %v5724_v15  ;;  %v4635_v33 = vsel %vm4626_vm5, %v4618_v9, %v5723_v43  ;;  %v4797_v9 = vld [vmem:[%s7588_s21 + $0x8] sm:$0xff] }
 0x9cf   : > { %v4647_v54 = vpack.c.bf16 %v4636_v3, %v4635_v33  ;;  %v5727_v8 = vpop.permute.xlu1 %5726  ;;  %v4802_v3 = vld [vmem:[%s7588_s21 + $0x30] sm:$0xff] }
 0x9d0   : > { %v5729_v48 = vunpack.i.h.bf16 %v5727_v8  ;;  %v5728_v11 = vunpack.i.l.bf16 %v5727_v8 }
 0x9d1   : > { %5600 = vmatprep.mubr.msk.bf16.mxu1 %vm4674_vm6, %v4647_v54  ;;  %v4800_v54 = vld [vmem:[%s7588_s21 + $0x20] sm:$0xff] }
 0x9d2   : > { %v4638_v44 = vsel %vm4626_vm5, %v4621_v38, %v5729_v48  ;;  %v4637_v20 = vsel %vm4626_vm5, %v4620_v63, %v5728_v11  ;;  %v4801_v63 = vld [vmem:[%s7588_s21 + $0x28] sm:$0xff] }
 0x9d3   : > { %v4648_v36 = vpack.c.bf16 %v4638_v44, %v4637_v20  ;;  %v5732_v4 = vpop.permute.xlu1 %5731  ;;  %v4806_v44 = vld [vmem:[%s7588_s21 + $0x50] sm:$0xff] }
 0x9d4   : > { %v5734_v62 = vunpack.i.h.bf16 %v5732_v4  ;;  %v5733_v39 = vunpack.i.l.bf16 %v5732_v4 }
 0x9d5   : > { %5601 = vmatmul.mubr.msk.bf16.vlgmr.msra.gmra.mxu1 %vm4674_vm6, %v4648_v36 }
 0x9d6   : > { %v4640_v28 = vsel %vm4626_vm5, %v4623_v24, %v5734_v62  ;;  %v4639_v2 = vsel %vm4626_vm5, %v4622_v51, %v5733_v39  ;;  %v4805_v51 = vld [vmem:[%s7588_s21 + $0x48] sm:$0xff] }
 0x9d7   : > { %v4649_v32 = vpack.c.bf16 %v4640_v28, %v4639_v2  ;;  %v5742_v17 = vpop.permute.xlu1 %5741  ;;  %v4810_v28 = vld [vmem:[%s7588_s21 + $0x70] sm:$0xff] }
 0x9d8   : > { %v5744_v56 = vunpack.i.h.bf16 %v5742_v17  ;;  %v5743_v58 = vunpack.i.l.bf16 %v5742_v17 }
 0x9d9   : > { %5604 = vmatprep.mubr.msk.bf16.mxu1 %vm4674_vm6, %v4649_v32 }
 0x9da   : > { %v4642_v10 = vsel %vm4626_vm5, %v4625_v57, %v5744_v56  ;;  %v4641_v7 = vsel %vm4626_vm5, %v4624_v49, %v5743_v58  ;;  %v4811_v56 = vld [vmem:[%s7588_s21 + $0x78] sm:$0xff] }
 0x9db   : > { %v4650_v50 = vpack.c.bf16 %v4642_v10, %v4641_v7  ;;  %v4809_v10 = vld [vmem:[%s7588_s21 + $0x68] sm:$0xff] }
 0x9dd   : > { %5605 = vmatmul.mubr.msk.bf16.gmra.mxu1 %vm4674_vm6, %v4650_v50 }
 0xa85   : > { %v5594_v12 = vpop.f32.mrf.mxu0 }
 0xa86   : > { %v4742_v41 = vadd.f32 %v5594_v12, %v7593_v35 }
 0xa87   : > { %v4733_v45 = vpop.f32.mrf.mxu0 }
 0xa88   : > { %v4814_v1 = vadd.f32 %v4798_v46, %v4742_v41  ;;  %v4734_v42 = vadd.f32 %v7593_v35, %v4733_v45 }
 0xa89   : > { %v5595_v60 = vpop.f32.mrf.mxu0 }
 0xa8a   : > { %4830 = vst.msk [vmem:[%s7600_s27 + $0x10] sm:$0xff] %vm4674_vm6, %v4814_v1  ;;  %v4812_v31 = vadd.f32 %v4796_v0, %v4734_v42  ;;  %v4745_v15 = vadd.f32 %v5595_v60, %v7593_v35 }
 0xa8b   : > { %v4736_v43 = vpop.f32.mrf.mxu0 }
 0xa8c   : > { %4828 = vst.msk [vmem:[%s7600_s27] sm:$0xff] %vm4674_vm6, %v4812_v31  ;;  %v4815_v23 = vadd.f32 %v4799_v19, %v4745_v15  ;;  %v4737_v40 = vadd.f32 %v7593_v35, %v4736_v43 }
 0xa8d   : > { %v5598_v22 = vpop.f32.mrf.mxu0 }
 0xa8e   : > { %4831 = vst.msk [vmem:[%s7600_s27 + $0x18] sm:$0xff] %vm4674_vm6, %v4815_v23  ;;  %v4813_v33 = vadd.f32 %v4797_v9, %v4737_v40  ;;  %v4758_v61 = vadd.f32 %v5598_v22, %v7593_v35 }
 0xa8f   : > { %v4749_v37 = vpop.f32.mrf.mxu0 }
 0xa90   : > { %4829 = vst.msk [vmem:[%s7600_s27 + $0x8] sm:$0xff] %vm4674_vm6, %v4813_v33  ;;  %v4818_v8 = vadd.f32 %v4802_v3, %v4758_v61  ;;  %v4750_v6 = vadd.f32 %v7593_v35, %v4749_v37 }
 0xa91   : > { %v5599_v30 = vpop.f32.mrf.mxu0 }
 0xa92   : > { %4834 = vst.msk [vmem:[%s7600_s27 + $0x30] sm:$0xff] %vm4674_vm6, %v4818_v8  ;;  %v4816_v52 = vadd.f32 %v4800_v54, %v4750_v6  ;;  %v4761_v48 = vadd.f32 %v5599_v30, %v7593_v35 }
 0xa93   : > { %v4752_v11 = vpop.f32.mrf.mxu0 }
 0xa94   : > { %4832 = vst.msk [vmem:[%s7600_s27 + $0x20] sm:$0xff] %vm4674_vm6, %v4816_v52  ;;  %v4819_v38 = vadd.f32 %v4803_v14, %v4761_v48  ;;  %v4753_v34 = vadd.f32 %v7593_v35, %v4752_v11 }
 0xa95   : > { %v5602_v16 = vpop.f32.mrf.mxu1 }
 0xa96   : > { %4835 = vst.msk [vmem:[%s7600_s27 + $0x38] sm:$0xff] %vm4674_vm6, %v4819_v38  ;;  %v4817_v20 = vadd.f32 %v4801_v63, %v4753_v34  ;;  %v4774_v21 = vadd.f32 %v5602_v16, %v7593_v35 }
 0xa97   : > { %v4765_v55 = vpop.f32.mrf.mxu1 }
 0xa98   : > { %4833 = vst.msk [vmem:[%s7600_s27 + $0x28] sm:$0xff] %vm4674_vm6, %v4817_v20  ;;  %v4822_v27 = vadd.f32 %v4806_v44, %v4774_v21  ;;  %v4766_v36 = vadd.f32 %v7593_v35, %v4765_v55 }
 0xa99   : > { %v5603_v4 = vpop.f32.mrf.mxu1 }
 0xa9a   : > { %4838 = vst.msk [vmem:[%s7600_s27 + $0x50] sm:$0xff] %vm4674_vm6, %v4822_v27  ;;  %v4820_v59 = vadd.f32 %v4804_v13, %v4766_v36  ;;  %v4777_v62 = vadd.f32 %v5603_v4, %v7593_v35 }
 0xa9b   : > { %v4768_v39 = vpop.f32.mrf.mxu1 }
 0xa9c   : > { %4836 = vst.msk [vmem:[%s7600_s27 + $0x40] sm:$0xff] %vm4674_vm6, %v4820_v59  ;;  %v4823_v24 = vadd.f32 %v4807_v25, %v4777_v62  ;;  %v4769_v47 = vadd.f32 %v7593_v35, %v4768_v39 }
 0xa9d   : > { %v5606_v53 = vpop.f32.mrf.mxu1 }
 0xa9e   : > { %4839 = vst.msk [vmem:[%s7600_s27 + $0x58] sm:$0xff] %vm4674_vm6, %v4823_v24  ;;  %v4821_v2 = vadd.f32 %v4805_v51, %v4769_v47  ;;  %v4790_v32 = vadd.f32 %v5606_v53, %v7593_v35 }
 0xa9f   : > { %v4781_v17 = vpop.f32.mrf.mxu1 }
 0xaa0   : > { %4837 = vst.msk [vmem:[%s7600_s27 + $0x48] sm:$0xff] %vm4674_vm6, %v4821_v2  ;;  %v4826_v29 = vadd.f32 %v4810_v28, %v4790_v32  ;;  %v4782_v5 = vadd.f32 %v7593_v35, %v4781_v17 }
 0xaa1   : > { %v5607_v18 = vpop.f32.mrf.mxu1 }
 0xaa2   : > { %4842 = vst.msk [vmem:[%s7600_s27 + $0x70] sm:$0xff] %vm4674_vm6, %v4826_v29  ;;  %v4824_v58 = vadd.f32 %v4808_v26, %v4782_v5  ;;  %v4793_v49 = vadd.f32 %v5607_v18, %v7593_v35 }
 0xaa3   : > { %v4784_v57 = vpop.f32.mrf.mxu1 }
 0xaa4   : > { %4840 = vst.msk [vmem:[%s7600_s27 + $0x60] sm:$0xff] %vm4674_vm6, %v4824_v58  ;;  %v4827_v7 = vadd.f32 %v4811_v56, %v4793_v49  ;;  %v4785_v50 = vadd.f32 %v7593_v35, %v4784_v57 }
 0xaa6   : > { %4843 = vst.msk [vmem:[%s7600_s27 + $0x78] sm:$0xff] %vm4674_vm6, %v4827_v7  ;;  %v4825_v12 = vadd.f32 %v4809_v10, %v4785_v50 }
 0xaa8   : > { %4841 = vst.msk [vmem:[%s7600_s27 + $0x68] sm:$0xff] %vm4674_vm6, %v4825_v12 }
 0xaa9 PF: > { %s17_s24 = sadd.s32 1, %s6041_s24  }
 0xaaa   : > { %p14_p5 = scmp.ge.s32.totalorder %s17_s24, 6  }
 0xaac   :  { %16 = sbr.rel (!%p14_p5) target bundleno = 1 (0x1), region = 87 }

</bundles_post_ra>
